<compile_context>
chip_gen: v5e
topology: v5e:2x2
jax: 0.10.0
libtpu: 0.0.40
codegen_flags: <defaults>
</compile_context>

<pallas_src>
import jax
import jax.numpy as jnp
from jax.experimental import pallas as pl
from jax.experimental.pallas import tpu as pltpu

EPS = 1e-5
LANE = 128


def _round_up(x, m):
    return (x + m - 1) // m * m


# ------------------------------ Pallas kernel -------------------------------


def basic_block_kernel(x_ref, w1_ref, b1_ref, w2_ref, b2_ref, out_ref,
                       shift_ref, acc_ref):
    """Fused BasicBlock for one batch tile.

    x_ref      : (bt, h, w, cp)       bf16 activations (NHWC, lane-padded)
    w{1,2}_ref : (9*cp, cp)           bf16 weights with BN scale folded in,
                                      row = (ky*3+kx)*cp + cin, col = cout
    b{1,2}_ref : (1, cp)              f32 folded BN bias
    out_ref    : (bt, h, w, cp)       bf16 output
    shift_ref  : (3, bt, h+2, w, cp)  bf16 scratch: kx-shifted, halo-padded acts
    acc_ref    : (bt*h*w, cp)         f32 conv accumulator
    """
    bt, h, w, cp = x_ref.shape
    f32 = jnp.float32
    bf16 = jnp.bfloat16

    # ---- zero only the 1-pixel halo of the shift buffers (the interior is
    #      always overwritten before each conv). ----
    zrow = jnp.zeros((bt, 1, w, cp), bf16)
    for kx in range(3):
        shift_ref[kx, :, 0:1, :, :] = zrow
        shift_ref[kx, :, h + 1:h + 2, :, :] = zrow
    zcol = jnp.zeros((bt, h + 2, 1, cp), bf16)
    shift_ref[0, :, :, 0:1, :] = zcol          # left halo column (kx = 0 taps)
    shift_ref[2, :, :, w - 1:w, :] = zcol      # right halo column (kx = 2 taps)

    def load_shifted(act):
        # Build the three kx-shifted copies; only kx in {0, 2} need a sublane
        # shift (2 unaligned stores per conv instead of 9 unaligned im2col slices).
        shift_ref[1, :, 1:h + 1, :, :] = act
        shift_ref[0, :, 1:h + 1, 1:w, :] = act[:, :, 0:w - 1, :]
        shift_ref[2, :, 1:h + 1, 0:w - 1, :] = act[:, :, 1:w, :]

    def conv3x3(w_ref):
        # 9 accumulated (bt*h*w, cp) x (cp, cp) MXU matmuls with f32 accumulation.
        # The ky offset is a free leading-dim row slice of the kx-shifted buffer.
        acc_ref[...] = jnp.zeros_like(acc_ref)
        for ky in range(3):
            for kx in range(3):
                tap = ky * 3 + kx
                view = shift_ref[kx, :, ky:ky + h, :, :].reshape(bt * h * w, cp)
                acc_ref[...] += jnp.dot(view, w_ref[tap * cp:(tap + 1) * cp, :],
                                        preferred_element_type=f32)
        return acc_ref[...]

    # ---- conv1 -> (folded bn1) -> relu; intermediate never leaves VMEM ----
    load_shifted(x_ref[...])
    y = jnp.maximum(conv3x3(w1_ref) + b1_ref[...], 0.0)

    # ---- conv2 -> (folded bn2) -> + identity shortcut -> relu ----
    load_shifted(y.astype(bf16).reshape(bt, h, w, cp))
    y = conv3x3(w2_ref) + b2_ref[...]
    y = y.reshape(bt, h, w, cp) + x_ref[...].astype(f32)
    out_ref[...] = jnp.maximum(y, 0.0).astype(out_ref.dtype)


# ------------------------------ host wrappers --------------------------------


def _fold_bn(gamma, beta, mean, var, eps=EPS):
    scale = gamma / jnp.sqrt(var + eps)
    bias = beta - mean * scale
    return scale, bias


def _pack_weight(w_oihw, scale, cp):
    """PyTorch (Cout, Cin, 3, 3) -> (9*Cp, Cp) bf16 with the BN scale folded into
    the output-channel columns; row index = (ky*3+kx)*Cp + cin."""
    cout, cin = w_oihw.shape[0], w_oihw.shape[1]
    w = jnp.transpose(w_oihw, (2, 3, 1, 0)) * scale           # (3, 3, Cin, Cout)
    w = jnp.pad(w, ((0, 0), (0, 0), (0, cp - cin), (0, cp - cout)))
    return w.reshape(9 * cp, cp).astype(jnp.bfloat16)


def _pad_vec(v, cp):
    return jnp.pad(v, (0, cp - v.shape[0])).reshape(1, cp).astype(jnp.float32)


@jax.jit
def basic_block_forward(x_nchw, params):
    """BasicBlock forward; NCHW in / NCHW out (PyTorch convention)."""
    n, c, h, w = x_nchw.shape
    cp = _round_up(max(c, LANE), LANE)

    # Whole batch per grid step while the per-step working set is tiny: v5e/v6e
    # are single-TensorCore (the grid is a serial loop) and merging images gives
    # a bigger matmul M with half the per-step overhead.
    # TODO(synk): for real ResNet sizes switch to bt=1 plus an H-row-tile grid
    #             axis with a 1-row halo, sized for v7x's 64 MiB VMEM and >= 2
    #             grid steps per v7x TensorCore.
    bt = n if n * h * w * cp * 2 <= (8 << 20) else 1
    grid_n = n // bt

    x = jnp.transpose(x_nchw, (0, 2, 3, 1))                    # NCHW -> NHWC
    x = jnp.pad(x, ((0, 0), (0, 0), (0, 0), (0, cp - c))).astype(jnp.bfloat16)

    s1, b1 = _fold_bn(params["bn1_gamma"], params["bn1_beta"],
                      params["bn1_mean"], params["bn1_var"])
    s2, b2 = _fold_bn(params["bn2_gamma"], params["bn2_beta"],
                      params["bn2_mean"], params["bn2_var"])
    w1 = _pack_weight(params["w1"], s1, cp)                    # BN1 scale folded
    w2 = _pack_weight(params["w2"], s2, cp)                    # BN2 scale folded
    b1, b2 = _pad_vec(b1, cp), _pad_vec(b2, cp)

    flops = 2 * 2 * n * h * w * (9 * cp) * cp                  # two 3x3 convs
    bytes_accessed = (n * h * w * cp * (2 + 2)                 # bf16 in, bf16 out
                      + 2 * 9 * cp * cp * 2                    # two weight slabs
                      + 2 * cp * 4)                            # folded biases

    out = pl.pallas_call(
        basic_block_kernel,
        out_shape=jax.ShapeDtypeStruct((n, h, w, cp), jnp.bfloat16),
        grid_spec=pltpu.PrefetchScalarGridSpec(
            num_scalar_prefetch=0,
            grid=(grid_n,),
            in_specs=[
                pl.BlockSpec((bt, h, w, cp), lambda i: (i, 0, 0, 0)),  # x
                pl.BlockSpec((9 * cp, cp), lambda i: (0, 0)),          # w1 (scaled)
                pl.BlockSpec((1, cp), lambda i: (0, 0)),               # bias1
                pl.BlockSpec((9 * cp, cp), lambda i: (0, 0)),          # w2 (scaled)
                pl.BlockSpec((1, cp), lambda i: (0, 0)),               # bias2
            ],
            out_specs=pl.BlockSpec((bt, h, w, cp), lambda i: (i, 0, 0, 0)),
            scratch_shapes=[
                pltpu.VMEM((3, bt, h + 2, w, cp), jnp.bfloat16),  # kx-shifted acts
                pltpu.VMEM((bt * h * w, cp), jnp.float32),        # conv accumulator
            ],
        ),
        compiler_params=pltpu.CompilerParams(
            dimension_semantics=("parallel",),
            vmem_limit_bytes=32 * 1024 * 1024,
        ),
        cost_estimate=pl.CostEstimate(flops=flops, transcendentals=0,
                                      bytes_accessed=bytes_accessed),
    )(x, w1, b1, w2, b2)

    out = out[..., :c].astype(jnp.float32)                     # drop padded lanes
    return jnp.transpose(out, (0, 3, 1, 2))                    # NHWC -> NCHW


# ------------------------------ pure-JAX reference ---------------------------


def _conv3x3_ref(x_nhwc, w_hwio):
    return jax.lax.conv_general_dilated(
        x_nhwc, w_hwio, window_strides=(1, 1), padding="SAME",
        dimension_numbers=("NHWC", "HWIO", "NHWC"),
        precision=jax.lax.Precision.HIGHEST)


def basic_block_ref(x_nchw, params):
    """Reference; folds BN scale and rounds to bf16 at the same points as the kernel."""
    f32, bf16 = jnp.float32, jnp.bfloat16
    x = jnp.transpose(x_nchw, (0, 2, 3, 1)).astype(bf16).astype(f32)
    s1, b1 = _fold_bn(params["bn1_gamma"], params["bn1_beta"],
                      params["bn1_mean"], params["bn1_var"])
    s2, b2 = _fold_bn(params["bn2_gamma"], params["bn2_beta"],
                      params["bn2_mean"], params["bn2_var"])
    w1 = (jnp.transpose(params["w1"], (2, 3, 1, 0)) * s1).astype(bf16).astype(f32)
    w2 = (jnp.transpose(params["w2"], (2, 3, 1, 0)) * s2).astype(bf16).astype(f32)
    out = jax.nn.relu(_conv3x3_ref(x, w1) + b1)
    out = out.astype(bf16).astype(f32)            # kernel keeps intermediate in bf16
    out = _conv3x3_ref(out, w2) + b2
    out = jax.nn.relu(out + x)
    out = out.astype(bf16).astype(f32)            # kernel writes bf16 output
    return jnp.transpose(out, (0, 3, 1, 2))


# ----------------------------------- main ------------------------------------


def make_params(key, in_planes, planes):
    ks = jax.random.split(key, 8)
    return {
        # PyTorch conv layout (Cout, Cin, 3, 3), bias=False.
        "w1": 0.1 * jax.random.normal(ks[0], (planes, in_planes, 3, 3), jnp.float32),
        "w2": 0.1 * jax.random.normal(ks[1], (planes, planes, 3, 3), jnp.float32),
        "bn1_gamma": 1.0 + 0.1 * jax.random.normal(ks[2], (planes,), jnp.float32),
        "bn1_beta": 0.1 * jax.random.normal(ks[3], (planes,), jnp.float32),
        "bn1_mean": 0.05 * jax.random.normal(ks[4], (planes,), jnp.float32),
        "bn1_var": jnp.abs(jax.random.normal(ks[5], (planes,), jnp.float32)) + 0.5,
        "bn2_gamma": 1.0 + 0.1 * jax.random.normal(ks[6], (planes,), jnp.float32),
        "bn2_beta": 0.1 * jax.random.normal(ks[7], (planes,), jnp.float32),
        "bn2_mean": jnp.zeros((planes,), jnp.float32),
        "bn2_var": jnp.ones((planes,), jnp.float32),
    }


if __name__ == "__main__":
    N, C, H, W = 2, 4, 16, 16          # in_planes = planes = 4, stride = 1
    key = jax.random.PRNGKey(0)
    kx, kp = jax.random.split(key)
    x = jax.random.normal(kx, (N, C, H, W), jnp.float32)   # NCHW like PyTorch
    params = make_params(kp, C, C)

    out = jax.block_until_ready(basic_block_forward(x, params))
    ref = basic_block_ref(x, params)

    assert out.shape == (N, C, H, W)
    max_err = float(jnp.max(jnp.abs(out - ref)))
    # Tolerance absorbs the bf16 output rounding (one ulp) on top of the small
    # bf16-MXU-vs-f32-reference accumulation-order difference.
    assert jnp.allclose(out, ref, rtol=1e-2, atol=1e-2), (
        f"mismatch vs JAX reference, max |diff| = {max_err}")

    print("KERNEL_OK")
</pallas_src>

<mosaic_0001>
module attributes {stable_mosaic.version = 11 : i64} {
  func.func @basic_block_kernel(%arg0: i32, %arg1: memref<2x16x16x128xbf16, #tpu.memory_space<vmem>>, %arg2: memref<1152x128xbf16, #tpu.memory_space<vmem>>, %arg3: memref<1x128xf32, #tpu.memory_space<vmem>>, %arg4: memref<1152x128xbf16, #tpu.memory_space<vmem>>, %arg5: memref<1x128xf32, #tpu.memory_space<vmem>>, %arg6: memref<2x16x16x128xbf16, #tpu.memory_space<vmem>>, %arg7: memref<3x2x18x16x128xbf16, #tpu.memory_space<vmem>>, %arg8: memref<512x128xf32, #tpu.memory_space<vmem>>) attributes {dimension_semantics = [#tpu.dimension_semantics<parallel>], iteration_bounds = array<i64: 1>, scalar_prefetch = 0 : i64, scratch_operands = 2 : i64, tpu.core_type = #tpu.core_type<tc>, window_params = [{transform_indices = @transform_0, window_bounds = array<i64: 2, 16, 16, 128>}, {pipeline_mode = #tpu.pipeline_mode<synchronous>, transform_indices = @transform_1, window_bounds = array<i64: 1152, 128>}, {pipeline_mode = #tpu.pipeline_mode<synchronous>, transform_indices = @transform_2, window_bounds = array<i64: 1, 128>}, {pipeline_mode = #tpu.pipeline_mode<synchronous>, transform_indices = @transform_3, window_bounds = array<i64: 1152, 128>}, {pipeline_mode = #tpu.pipeline_mode<synchronous>, transform_indices = @transform_4, window_bounds = array<i64: 1, 128>}, {transform_indices = @transform_5, window_bounds = array<i64: 2, 16, 16, 128>}]} {
    %cst = arith.constant 0.000000e+00 : bf16
    %0 = vector.broadcast %cst : bf16 to vector<2x1x16x128xbf16>
    %c0 = arith.constant 0 : index
    %c0_0 = arith.constant 0 : index
    %c0_1 = arith.constant 0 : index
    %c0_2 = arith.constant 0 : index
    %c0_3 = arith.constant 0 : index
    %1 = vector.load %arg7[%c0, %c0_0, %c0_1, %c0_2, %c0_3] : memref<3x2x18x16x128xbf16, #tpu.memory_space<vmem>>, vector<1x2x1x16x128xbf16>
    %2 = vector.shape_cast %1 : vector<1x2x1x16x128xbf16> to vector<2x1x16x128xbf16>
    %3 = vector.shape_cast %0 : vector<2x1x16x128xbf16> to vector<1x2x1x16x128xbf16>
    tpu.vector_store %arg7[%c0, %c0_0, %c0_1, %c0_2, %c0_3], %3 {strides = array<i32>} : memref<3x2x18x16x128xbf16, #tpu.memory_space<vmem>>, vector<1x2x1x16x128xbf16>,
    %c0_4 = arith.constant 0 : index
    %c0_5 = arith.constant 0 : index
    %c17 = arith.constant 17 : index
    %c0_6 = arith.constant 0 : index
    %c0_7 = arith.constant 0 : index
    %4 = vector.load %arg7[%c0_4, %c0_5, %c17, %c0_6, %c0_7] : memref<3x2x18x16x128xbf16, #tpu.memory_space<vmem>>, vector<1x2x1x16x128xbf16>
    %5 = vector.shape_cast %4 : vector<1x2x1x16x128xbf16> to vector<2x1x16x128xbf16>
    %6 = vector.shape_cast %0 : vector<2x1x16x128xbf16> to vector<1x2x1x16x128xbf16>
    tpu.vector_store %arg7[%c0_4, %c0_5, %c17, %c0_6, %c0_7], %6 {strides = array<i32>} : memref<3x2x18x16x128xbf16, #tpu.memory_space<vmem>>, vector<1x2x1x16x128xbf16>,
    %c1 = arith.constant 1 : index
    %c0_8 = arith.constant 0 : index
    %c0_9 = arith.constant 0 : index
    %c0_10 = arith.constant 0 : index
    %c0_11 = arith.constant 0 : index
    %7 = vector.load %arg7[%c1, %c0_8, %c0_9, %c0_10, %c0_11] : memref<3x2x18x16x128xbf16, #tpu.memory_space<vmem>>, vector<1x2x1x16x128xbf16>
    %8 = vector.shape_cast %7 : vector<1x2x1x16x128xbf16> to vector<2x1x16x128xbf16>
    %9 = vector.shape_cast %0 : vector<2x1x16x128xbf16> to vector<1x2x1x16x128xbf16>
    tpu.vector_store %arg7[%c1, %c0_8, %c0_9, %c0_10, %c0_11], %9 {strides = array<i32>} : memref<3x2x18x16x128xbf16, #tpu.memory_space<vmem>>, vector<1x2x1x16x128xbf16>,
    %c1_12 = arith.constant 1 : index
    %c0_13 = arith.constant 0 : index
    %c17_14 = arith.constant 17 : index
    %c0_15 = arith.constant 0 : index
    %c0_16 = arith.constant 0 : index
    %10 = vector.load %arg7[%c1_12, %c0_13, %c17_14, %c0_15, %c0_16] : memref<3x2x18x16x128xbf16, #tpu.memory_space<vmem>>, vector<1x2x1x16x128xbf16>
    %11 = vector.shape_cast %10 : vector<1x2x1x16x128xbf16> to vector<2x1x16x128xbf16>
    %12 = vector.shape_cast %0 : vector<2x1x16x128xbf16> to vector<1x2x1x16x128xbf16>
    tpu.vector_store %arg7[%c1_12, %c0_13, %c17_14, %c0_15, %c0_16], %12 {strides = array<i32>} : memref<3x2x18x16x128xbf16, #tpu.memory_space<vmem>>, vector<1x2x1x16x128xbf16>,
    %c2 = arith.constant 2 : index
    %c0_17 = arith.constant 0 : index
    %c0_18 = arith.constant 0 : index
    %c0_19 = arith.constant 0 : index
    %c0_20 = arith.constant 0 : index
    %13 = vector.load %arg7[%c2, %c0_17, %c0_18, %c0_19, %c0_20] : memref<3x2x18x16x128xbf16, #tpu.memory_space<vmem>>, vector<1x2x1x16x128xbf16>
    %14 = vector.shape_cast %13 : vector<1x2x1x16x128xbf16> to vector<2x1x16x128xbf16>
    %15 = vector.shape_cast %0 : vector<2x1x16x128xbf16> to vector<1x2x1x16x128xbf16>
    tpu.vector_store %arg7[%c2, %c0_17, %c0_18, %c0_19, %c0_20], %15 {strides = array<i32>} : memref<3x2x18x16x128xbf16, #tpu.memory_space<vmem>>, vector<1x2x1x16x128xbf16>,
    %c2_21 = arith.constant 2 : index
    %c0_22 = arith.constant 0 : index
    %c17_23 = arith.constant 17 : index
    %c0_24 = arith.constant 0 : index
    %c0_25 = arith.constant 0 : index
    %16 = vector.load %arg7[%c2_21, %c0_22, %c17_23, %c0_24, %c0_25] : memref<3x2x18x16x128xbf16, #tpu.memory_space<vmem>>, vector<1x2x1x16x128xbf16>
    %17 = vector.shape_cast %16 : vector<1x2x1x16x128xbf16> to vector<2x1x16x128xbf16>
    %18 = vector.shape_cast %0 : vector<2x1x16x128xbf16> to vector<1x2x1x16x128xbf16>
    tpu.vector_store %arg7[%c2_21, %c0_22, %c17_23, %c0_24, %c0_25], %18 {strides = array<i32>} : memref<3x2x18x16x128xbf16, #tpu.memory_space<vmem>>, vector<1x2x1x16x128xbf16>,
    %cst_26 = arith.constant 0.000000e+00 : bf16
    %19 = vector.broadcast %cst_26 : bf16 to vector<2x18x1x128xbf16>
    %c0_27 = arith.constant 0 : index
    %c0_28 = arith.constant 0 : index
    %c0_29 = arith.constant 0 : index
    %c0_30 = arith.constant 0 : index
    %c0_31 = arith.constant 0 : index
    %20 = vector.load %arg7[%c0_27, %c0_28, %c0_29, %c0_30, %c0_31] : memref<3x2x18x16x128xbf16, #tpu.memory_space<vmem>>, vector<1x2x18x1x128xbf16>
    %21 = vector.shape_cast %20 : vector<1x2x18x1x128xbf16> to vector<2x18x1x128xbf16>
    %22 = vector.shape_cast %19 : vector<2x18x1x128xbf16> to vector<1x2x18x1x128xbf16>
    tpu.vector_store %arg7[%c0_27, %c0_28, %c0_29, %c0_30, %c0_31], %22 {strides = array<i32>} : memref<3x2x18x16x128xbf16, #tpu.memory_space<vmem>>, vector<1x2x18x1x128xbf16>,
    %c2_32 = arith.constant 2 : index
    %c0_33 = arith.constant 0 : index
    %c0_34 = arith.constant 0 : index
    %c15 = arith.constant 15 : index
    %c0_35 = arith.constant 0 : index
    %23 = vector.load %arg7[%c2_32, %c0_33, %c0_34, %c15, %c0_35] : memref<3x2x18x16x128xbf16, #tpu.memory_space<vmem>>, vector<1x2x18x1x128xbf16>
    %24 = vector.shape_cast %23 : vector<1x2x18x1x128xbf16> to vector<2x18x1x128xbf16>
    %25 = vector.shape_cast %19 : vector<2x18x1x128xbf16> to vector<1x2x18x1x128xbf16>
    tpu.vector_store %arg7[%c2_32, %c0_33, %c0_34, %c15, %c0_35], %25 {strides = array<i32>} : memref<3x2x18x16x128xbf16, #tpu.memory_space<vmem>>, vector<1x2x18x1x128xbf16>,
    %c0_36 = arith.constant 0 : index
    %c0_37 = arith.constant 0 : index
    %c0_38 = arith.constant 0 : index
    %c0_39 = arith.constant 0 : index
    %26 = vector.load %arg1[%c0_36, %c0_37, %c0_38, %c0_39] : memref<2x16x16x128xbf16, #tpu.memory_space<vmem>>, vector<2x16x16x128xbf16>
    %c1_40 = arith.constant 1 : index
    %c0_41 = arith.constant 0 : index
    %c1_42 = arith.constant 1 : index
    %c0_43 = arith.constant 0 : index
    %c0_44 = arith.constant 0 : index
    %27 = vector.load %arg7[%c1_40, %c0_41, %c1_42, %c0_43, %c0_44] : memref<3x2x18x16x128xbf16, #tpu.memory_space<vmem>>, vector<1x2x16x16x128xbf16>
    %28 = vector.shape_cast %27 : vector<1x2x16x16x128xbf16> to vector<2x16x16x128xbf16>
    %29 = vector.shape_cast %26 : vector<2x16x16x128xbf16> to vector<1x2x16x16x128xbf16>
    tpu.vector_store %arg7[%c1_40, %c0_41, %c1_42, %c0_43, %c0_44], %29 {strides = array<i32>} : memref<3x2x18x16x128xbf16, #tpu.memory_space<vmem>>, vector<1x2x16x16x128xbf16>,
    %30 = vector.extract_strided_slice %26 {offsets = [0, 0, 0, 0], sizes = [2, 16, 15, 128], strides = [1, 1, 1, 1]} : vector<2x16x16x128xbf16> to vector<2x16x15x128xbf16>
    %c0_45 = arith.constant 0 : index
    %c0_46 = arith.constant 0 : index
    %c1_47 = arith.constant 1 : index
    %c1_48 = arith.constant 1 : index
    %c0_49 = arith.constant 0 : index
    %31 = vector.load %arg7[%c0_45, %c0_46, %c1_47, %c1_48, %c0_49] : memref<3x2x18x16x128xbf16, #tpu.memory_space<vmem>>, vector<1x2x16x15x128xbf16>
    %32 = vector.shape_cast %31 : vector<1x2x16x15x128xbf16> to vector<2x16x15x128xbf16>
    %33 = vector.shape_cast %30 : vector<2x16x15x128xbf16> to vector<1x2x16x15x128xbf16>
    tpu.vector_store %arg7[%c0_45, %c0_46, %c1_47, %c1_48, %c0_49], %33 {strides = array<i32>} : memref<3x2x18x16x128xbf16, #tpu.memory_space<vmem>>, vector<1x2x16x15x128xbf16>,
    %34 = vector.extract_strided_slice %26 {offsets = [0, 0, 1, 0], sizes = [2, 16, 15, 128], strides = [1, 1, 1, 1]} : vector<2x16x16x128xbf16> to vector<2x16x15x128xbf16>
    %c2_50 = arith.constant 2 : index
    %c0_51 = arith.constant 0 : index
    %c1_52 = arith.constant 1 : index
    %c0_53 = arith.constant 0 : index
    %c0_54 = arith.constant 0 : index
    %35 = vector.load %arg7[%c2_50, %c0_51, %c1_52, %c0_53, %c0_54] : memref<3x2x18x16x128xbf16, #tpu.memory_space<vmem>>, vector<1x2x16x15x128xbf16>
    %36 = vector.shape_cast %35 : vector<1x2x16x15x128xbf16> to vector<2x16x15x128xbf16>
    %37 = vector.shape_cast %34 : vector<2x16x15x128xbf16> to vector<1x2x16x15x128xbf16>
    tpu.vector_store %arg7[%c2_50, %c0_51, %c1_52, %c0_53, %c0_54], %37 {strides = array<i32>} : memref<3x2x18x16x128xbf16, #tpu.memory_space<vmem>>, vector<1x2x16x15x128xbf16>,
    %cst_55 = arith.constant 0.000000e+00 : f32
    %38 = vector.broadcast %cst_55 : f32 to vector<512x128xf32>
    %c0_56 = arith.constant 0 : index
    %c0_57 = arith.constant 0 : index
    %39 = vector.load %arg8[%c0_56, %c0_57] : memref<512x128xf32, #tpu.memory_space<vmem>>, vector<512x128xf32>
    tpu.vector_store %arg8[%c0_56, %c0_57], %38 {strides = array<i32>} : memref<512x128xf32, #tpu.memory_space<vmem>>, vector<512x128xf32>,
    %c0_58 = arith.constant 0 : index
    %c0_59 = arith.constant 0 : index
    %c0_60 = arith.constant 0 : index
    %c0_61 = arith.constant 0 : index
    %c0_62 = arith.constant 0 : index
    %40 = vector.load %arg7[%c0_58, %c0_59, %c0_60, %c0_61, %c0_62] : memref<3x2x18x16x128xbf16, #tpu.memory_space<vmem>>, vector<1x2x16x16x128xbf16>
    %41 = vector.shape_cast %40 : vector<1x2x16x16x128xbf16> to vector<2x16x16x128xbf16>
    %42 = vector.shape_cast %41 : vector<2x16x16x128xbf16> to vector<512x128xbf16>
    %c0_63 = arith.constant 0 : index
    %c0_64 = arith.constant 0 : index
    %43 = vector.load %arg8[%c0_63, %c0_64] : memref<512x128xf32, #tpu.memory_space<vmem>>, vector<512x128xf32>
    %c0_65 = arith.constant 0 : index
    %c0_66 = arith.constant 0 : index
    %44 = vector.load %arg2[%c0_65, %c0_66] : memref<1152x128xbf16, #tpu.memory_space<vmem>>, vector<128x128xbf16>
    %cst_67 = arith.constant dense<0.000000e+00> : vector<512x128xf32>
    %45 = tpu.matmul %42, %44, %cst_67 {dimension_numbers = #tpu.dot_dimension_numbers<[1], [0], [0], [1], [0, 0, 1, 1], [], []>} : vector<512x128xbf16>, vector<128x128xbf16>, vector<512x128xf32> -> vector<512x128xf32>
    %46 = arith.addf %43, %45 : vector<512x128xf32>
    %c0_68 = arith.constant 0 : index
    %c0_69 = arith.constant 0 : index
    %47 = vector.load %arg8[%c0_68, %c0_69] : memref<512x128xf32, #tpu.memory_space<vmem>>, vector<512x128xf32>
    tpu.vector_store %arg8[%c0_68, %c0_69], %46 {strides = array<i32>} : memref<512x128xf32, #tpu.memory_space<vmem>>, vector<512x128xf32>,
    %c1_70 = arith.constant 1 : index
    %c0_71 = arith.constant 0 : index
    %c0_72 = arith.constant 0 : index
    %c0_73 = arith.constant 0 : index
    %c0_74 = arith.constant 0 : index
    %48 = vector.load %arg7[%c1_70, %c0_71, %c0_72, %c0_73, %c0_74] : memref<3x2x18x16x128xbf16, #tpu.memory_space<vmem>>, vector<1x2x16x16x128xbf16>
    %49 = vector.shape_cast %48 : vector<1x2x16x16x128xbf16> to vector<2x16x16x128xbf16>
    %50 = vector.shape_cast %49 : vector<2x16x16x128xbf16> to vector<512x128xbf16>
    %c0_75 = arith.constant 0 : index
    %c0_76 = arith.constant 0 : index
    %51 = vector.load %arg8[%c0_75, %c0_76] : memref<512x128xf32, #tpu.memory_space<vmem>>, vector<512x128xf32>
    %c128 = arith.constant 128 : index
    %c0_77 = arith.constant 0 : index
    %52 = vector.load %arg2[%c128, %c0_77] : memref<1152x128xbf16, #tpu.memory_space<vmem>>, vector<128x128xbf16>
    %cst_78 = arith.constant dense<0.000000e+00> : vector<512x128xf32>
    %53 = tpu.matmul %50, %52, %cst_78 {dimension_numbers = #tpu.dot_dimension_numbers<[1], [0], [0], [1], [0, 0, 1, 1], [], []>} : vector<512x128xbf16>, vector<128x128xbf16>, vector<512x128xf32> -> vector<512x128xf32>
    %54 = arith.addf %51, %53 : vector<512x128xf32>
    %c0_79 = arith.constant 0 : index
    %c0_80 = arith.constant 0 : index
    %55 = vector.load %arg8[%c0_79, %c0_80] : memref<512x128xf32, #tpu.memory_space<vmem>>, vector<512x128xf32>
    tpu.vector_store %arg8[%c0_79, %c0_80], %54 {strides = array<i32>} : memref<512x128xf32, #tpu.memory_space<vmem>>, vector<512x128xf32>,
    %c2_81 = arith.constant 2 : index
    %c0_82 = arith.constant 0 : index
    %c0_83 = arith.constant 0 : index
    %c0_84 = arith.constant 0 : index
    %c0_85 = arith.constant 0 : index
    %56 = vector.load %arg7[%c2_81, %c0_82, %c0_83, %c0_84, %c0_85] : memref<3x2x18x16x128xbf16, #tpu.memory_space<vmem>>, vector<1x2x16x16x128xbf16>
    %57 = vector.shape_cast %56 : vector<1x2x16x16x128xbf16> to vector<2x16x16x128xbf16>
    %58 = vector.shape_cast %57 : vector<2x16x16x128xbf16> to vector<512x128xbf16>
    %c0_86 = arith.constant 0 : index
    %c0_87 = arith.constant 0 : index
    %59 = vector.load %arg8[%c0_86, %c0_87] : memref<512x128xf32, #tpu.memory_space<vmem>>, vector<512x128xf32>
    %c256 = arith.constant 256 : index
    %c0_88 = arith.constant 0 : index
    %60 = vector.load %arg2[%c256, %c0_88] : memref<1152x128xbf16, #tpu.memory_space<vmem>>, vector<128x128xbf16>
    %cst_89 = arith.constant dense<0.000000e+00> : vector<512x128xf32>
    %61 = tpu.matmul %58, %60, %cst_89 {dimension_numbers = #tpu.dot_dimension_numbers<[1], [0], [0], [1], [0, 0, 1, 1], [], []>} : vector<512x128xbf16>, vector<128x128xbf16>, vector<512x128xf32> -> vector<512x128xf32>
    %62 = arith.addf %59, %61 : vector<512x128xf32>
    %c0_90 = arith.constant 0 : index
    %c0_91 = arith.constant 0 : index
    %63 = vector.load %arg8[%c0_90, %c0_91] : memref<512x128xf32, #tpu.memory_space<vmem>>, vector<512x128xf32>
    tpu.vector_store %arg8[%c0_90, %c0_91], %62 {strides = array<i32>} : memref<512x128xf32, #tpu.memory_space<vmem>>, vector<512x128xf32>,
    %c0_92 = arith.constant 0 : index
    %c0_93 = arith.constant 0 : index
    %c1_94 = arith.constant 1 : index
    %c0_95 = arith.constant 0 : index
    %c0_96 = arith.constant 0 : index
    %64 = vector.load %arg7[%c0_92, %c0_93, %c1_94, %c0_95, %c0_96] : memref<3x2x18x16x128xbf16, #tpu.memory_space<vmem>>, vector<1x2x16x16x128xbf16>
    %65 = vector.shape_cast %64 : vector<1x2x16x16x128xbf16> to vector<2x16x16x128xbf16>
    %66 = vector.shape_cast %65 : vector<2x16x16x128xbf16> to vector<512x128xbf16>
    %c0_97 = arith.constant 0 : index
    %c0_98 = arith.constant 0 : index
    %67 = vector.load %arg8[%c0_97, %c0_98] : memref<512x128xf32, #tpu.memory_space<vmem>>, vector<512x128xf32>
    %c384 = arith.constant 384 : index
    %c0_99 = arith.constant 0 : index
    %68 = vector.load %arg2[%c384, %c0_99] : memref<1152x128xbf16, #tpu.memory_space<vmem>>, vector<128x128xbf16>
    %cst_100 = arith.constant dense<0.000000e+00> : vector<512x128xf32>
    %69 = tpu.matmul %66, %68, %cst_100 {dimension_numbers = #tpu.dot_dimension_numbers<[1], [0], [0], [1], [0, 0, 1, 1], [], []>} : vector<512x128xbf16>, vector<128x128xbf16>, vector<512x128xf32> -> vector<512x128xf32>
    %70 = arith.addf %67, %69 : vector<512x128xf32>
    %c0_101 = arith.constant 0 : index
    %c0_102 = arith.constant 0 : index
    %71 = vector.load %arg8[%c0_101, %c0_102] : memref<512x128xf32, #tpu.memory_space<vmem>>, vector<512x128xf32>
    tpu.vector_store %arg8[%c0_101, %c0_102], %70 {strides = array<i32>} : memref<512x128xf32, #tpu.memory_space<vmem>>, vector<512x128xf32>,
    %c1_103 = arith.constant 1 : index
    %c0_104 = arith.constant 0 : index
    %c1_105 = arith.constant 1 : index
    %c0_106 = arith.constant 0 : index
    %c0_107 = arith.constant 0 : index
    %72 = vector.load %arg7[%c1_103, %c0_104, %c1_105, %c0_106, %c0_107] : memref<3x2x18x16x128xbf16, #tpu.memory_space<vmem>>, vector<1x2x16x16x128xbf16>
    %73 = vector.shape_cast %72 : vector<1x2x16x16x128xbf16> to vector<2x16x16x128xbf16>
    %74 = vector.shape_cast %73 : vector<2x16x16x128xbf16> to vector<512x128xbf16>
    %c0_108 = arith.constant 0 : index
    %c0_109 = arith.constant 0 : index
    %75 = vector.load %arg8[%c0_108, %c0_109] : memref<512x128xf32, #tpu.memory_space<vmem>>, vector<512x128xf32>
    %c512 = arith.constant 512 : index
    %c0_110 = arith.constant 0 : index
    %76 = vector.load %arg2[%c512, %c0_110] : memref<1152x128xbf16, #tpu.memory_space<vmem>>, vector<128x128xbf16>
    %cst_111 = arith.constant dense<0.000000e+00> : vector<512x128xf32>
    %77 = tpu.matmul %74, %76, %cst_111 {dimension_numbers = #tpu.dot_dimension_numbers<[1], [0], [0], [1], [0, 0, 1, 1], [], []>} : vector<512x128xbf16>, vector<128x128xbf16>, vector<512x128xf32> -> vector<512x128xf32>
    %78 = arith.addf %75, %77 : vector<512x128xf32>
    %c0_112 = arith.constant 0 : index
    %c0_113 = arith.constant 0 : index
    %79 = vector.load %arg8[%c0_112, %c0_113] : memref<512x128xf32, #tpu.memory_space<vmem>>, vector<512x128xf32>
    tpu.vector_store %arg8[%c0_112, %c0_113], %78 {strides = array<i32>} : memref<512x128xf32, #tpu.memory_space<vmem>>, vector<512x128xf32>,
    %c2_114 = arith.constant 2 : index
    %c0_115 = arith.constant 0 : index
    %c1_116 = arith.constant 1 : index
    %c0_117 = arith.constant 0 : index
    %c0_118 = arith.constant 0 : index
    %80 = vector.load %arg7[%c2_114, %c0_115, %c1_116, %c0_117, %c0_118] : memref<3x2x18x16x128xbf16, #tpu.memory_space<vmem>>, vector<1x2x16x16x128xbf16>
    %81 = vector.shape_cast %80 : vector<1x2x16x16x128xbf16> to vector<2x16x16x128xbf16>
    %82 = vector.shape_cast %81 : vector<2x16x16x128xbf16> to vector<512x128xbf16>
    %c0_119 = arith.constant 0 : index
    %c0_120 = arith.constant 0 : index
    %83 = vector.load %arg8[%c0_119, %c0_120] : memref<512x128xf32, #tpu.memory_space<vmem>>, vector<512x128xf32>
    %c640 = arith.constant 640 : index
    %c0_121 = arith.constant 0 : index
    %84 = vector.load %arg2[%c640, %c0_121] : memref<1152x128xbf16, #tpu.memory_space<vmem>>, vector<128x128xbf16>
    %cst_122 = arith.constant dense<0.000000e+00> : vector<512x128xf32>
    %85 = tpu.matmul %82, %84, %cst_122 {dimension_numbers = #tpu.dot_dimension_numbers<[1], [0], [0], [1], [0, 0, 1, 1], [], []>} : vector<512x128xbf16>, vector<128x128xbf16>, vector<512x128xf32> -> vector<512x128xf32>
    %86 = arith.addf %83, %85 : vector<512x128xf32>
    %c0_123 = arith.constant 0 : index
    %c0_124 = arith.constant 0 : index
    %87 = vector.load %arg8[%c0_123, %c0_124] : memref<512x128xf32, #tpu.memory_space<vmem>>, vector<512x128xf32>
    tpu.vector_store %arg8[%c0_123, %c0_124], %86 {strides = array<i32>} : memref<512x128xf32, #tpu.memory_space<vmem>>, vector<512x128xf32>,
    %c0_125 = arith.constant 0 : index
    %c0_126 = arith.constant 0 : index
    %c2_127 = arith.constant 2 : index
    %c0_128 = arith.constant 0 : index
    %c0_129 = arith.constant 0 : index
    %88 = vector.load %arg7[%c0_125, %c0_126, %c2_127, %c0_128, %c0_129] : memref<3x2x18x16x128xbf16, #tpu.memory_space<vmem>>, vector<1x2x16x16x128xbf16>
    %89 = vector.shape_cast %88 : vector<1x2x16x16x128xbf16> to vector<2x16x16x128xbf16>
    %90 = vector.shape_cast %89 : vector<2x16x16x128xbf16> to vector<512x128xbf16>
    %c0_130 = arith.constant 0 : index
    %c0_131 = arith.constant 0 : index
    %91 = vector.load %arg8[%c0_130, %c0_131] : memref<512x128xf32, #tpu.memory_space<vmem>>, vector<512x128xf32>
    %c768 = arith.constant 768 : index
    %c0_132 = arith.constant 0 : index
    %92 = vector.load %arg2[%c768, %c0_132] : memref<1152x128xbf16, #tpu.memory_space<vmem>>, vector<128x128xbf16>
    %cst_133 = arith.constant dense<0.000000e+00> : vector<512x128xf32>
    %93 = tpu.matmul %90, %92, %cst_133 {dimension_numbers = #tpu.dot_dimension_numbers<[1], [0], [0], [1], [0, 0, 1, 1], [], []>} : vector<512x128xbf16>, vector<128x128xbf16>, vector<512x128xf32> -> vector<512x128xf32>
    %94 = arith.addf %91, %93 : vector<512x128xf32>
    %c0_134 = arith.constant 0 : index
    %c0_135 = arith.constant 0 : index
    %95 = vector.load %arg8[%c0_134, %c0_135] : memref<512x128xf32, #tpu.memory_space<vmem>>, vector<512x128xf32>
    tpu.vector_store %arg8[%c0_134, %c0_135], %94 {strides = array<i32>} : memref<512x128xf32, #tpu.memory_space<vmem>>, vector<512x128xf32>,
    %c1_136 = arith.constant 1 : index
    %c0_137 = arith.constant 0 : index
    %c2_138 = arith.constant 2 : index
    %c0_139 = arith.constant 0 : index
    %c0_140 = arith.constant 0 : index
    %96 = vector.load %arg7[%c1_136, %c0_137, %c2_138, %c0_139, %c0_140] : memref<3x2x18x16x128xbf16, #tpu.memory_space<vmem>>, vector<1x2x16x16x128xbf16>
    %97 = vector.shape_cast %96 : vector<1x2x16x16x128xbf16> to vector<2x16x16x128xbf16>
    %98 = vector.shape_cast %97 : vector<2x16x16x128xbf16> to vector<512x128xbf16>
    %c0_141 = arith.constant 0 : index
    %c0_142 = arith.constant 0 : index
    %99 = vector.load %arg8[%c0_141, %c0_142] : memref<512x128xf32, #tpu.memory_space<vmem>>, vector<512x128xf32>
    %c896 = arith.constant 896 : index
    %c0_143 = arith.constant 0 : index
    %100 = vector.load %arg2[%c896, %c0_143] : memref<1152x128xbf16, #tpu.memory_space<vmem>>, vector<128x128xbf16>
    %cst_144 = arith.constant dense<0.000000e+00> : vector<512x128xf32>
    %101 = tpu.matmul %98, %100, %cst_144 {dimension_numbers = #tpu.dot_dimension_numbers<[1], [0], [0], [1], [0, 0, 1, 1], [], []>} : vector<512x128xbf16>, vector<128x128xbf16>, vector<512x128xf32> -> vector<512x128xf32>
    %102 = arith.addf %99, %101 : vector<512x128xf32>
    %c0_145 = arith.constant 0 : index
    %c0_146 = arith.constant 0 : index
    %103 = vector.load %arg8[%c0_145, %c0_146] : memref<512x128xf32, #tpu.memory_space<vmem>>, vector<512x128xf32>
    tpu.vector_store %arg8[%c0_145, %c0_146], %102 {strides = array<i32>} : memref<512x128xf32, #tpu.memory_space<vmem>>, vector<512x128xf32>,
    %c2_147 = arith.constant 2 : index
    %c0_148 = arith.constant 0 : index
    %c2_149 = arith.constant 2 : index
    %c0_150 = arith.constant 0 : index
    %c0_151 = arith.constant 0 : index
    %104 = vector.load %arg7[%c2_147, %c0_148, %c2_149, %c0_150, %c0_151] : memref<3x2x18x16x128xbf16, #tpu.memory_space<vmem>>, vector<1x2x16x16x128xbf16>
    %105 = vector.shape_cast %104 : vector<1x2x16x16x128xbf16> to vector<2x16x16x128xbf16>
    %106 = vector.shape_cast %105 : vector<2x16x16x128xbf16> to vector<512x128xbf16>
    %c0_152 = arith.constant 0 : index
    %c0_153 = arith.constant 0 : index
    %107 = vector.load %arg8[%c0_152, %c0_153] : memref<512x128xf32, #tpu.memory_space<vmem>>, vector<512x128xf32>
    %c1024 = arith.constant 1024 : index
    %c0_154 = arith.constant 0 : index
    %108 = vector.load %arg2[%c1024, %c0_154] : memref<1152x128xbf16, #tpu.memory_space<vmem>>, vector<128x128xbf16>
    %cst_155 = arith.constant dense<0.000000e+00> : vector<512x128xf32>
    %109 = tpu.matmul %106, %108, %cst_155 {dimension_numbers = #tpu.dot_dimension_numbers<[1], [0], [0], [1], [0, 0, 1, 1], [], []>} : vector<512x128xbf16>, vector<128x128xbf16>, vector<512x128xf32> -> vector<512x128xf32>
    %110 = arith.addf %107, %109 : vector<512x128xf32>
    %c0_156 = arith.constant 0 : index
    %c0_157 = arith.constant 0 : index
    %111 = vector.load %arg8[%c0_156, %c0_157] : memref<512x128xf32, #tpu.memory_space<vmem>>, vector<512x128xf32>
    tpu.vector_store %arg8[%c0_156, %c0_157], %110 {strides = array<i32>} : memref<512x128xf32, #tpu.memory_space<vmem>>, vector<512x128xf32>,
    %c0_158 = arith.constant 0 : index
    %c0_159 = arith.constant 0 : index
    %112 = vector.load %arg8[%c0_158, %c0_159] : memref<512x128xf32, #tpu.memory_space<vmem>>, vector<512x128xf32>
    %c0_160 = arith.constant 0 : index
    %c0_161 = arith.constant 0 : index
    %113 = vector.load %arg3[%c0_160, %c0_161] : memref<1x128xf32, #tpu.memory_space<vmem>>, vector<1x128xf32>
    %114 = vector.broadcast %113 : vector<1x128xf32> to vector<512x128xf32>
    %115 = arith.addf %112, %114 : vector<512x128xf32>
    %cst_162 = arith.constant 0.000000e+00 : f32
    %116 = vector.broadcast %cst_162 : f32 to vector<512x128xf32>
    %117 = arith.maximumf %115, %116 : vector<512x128xf32>
    %118 = arith.truncf %117 : vector<512x128xf32> to vector<512x128xbf16>
    %119 = vector.shape_cast %118 : vector<512x128xbf16> to vector<2x16x16x128xbf16>
    %c1_163 = arith.constant 1 : index
    %c0_164 = arith.constant 0 : index
    %c1_165 = arith.constant 1 : index
    %c0_166 = arith.constant 0 : index
    %c0_167 = arith.constant 0 : index
    %120 = vector.load %arg7[%c1_163, %c0_164, %c1_165, %c0_166, %c0_167] : memref<3x2x18x16x128xbf16, #tpu.memory_space<vmem>>, vector<1x2x16x16x128xbf16>
    %121 = vector.shape_cast %120 : vector<1x2x16x16x128xbf16> to vector<2x16x16x128xbf16>
    %122 = vector.shape_cast %119 : vector<2x16x16x128xbf16> to vector<1x2x16x16x128xbf16>
    tpu.vector_store %arg7[%c1_163, %c0_164, %c1_165, %c0_166, %c0_167], %122 {strides = array<i32>} : memref<3x2x18x16x128xbf16, #tpu.memory_space<vmem>>, vector<1x2x16x16x128xbf16>,
    %123 = vector.extract_strided_slice %119 {offsets = [0, 0, 0, 0], sizes = [2, 16, 15, 128], strides = [1, 1, 1, 1]} : vector<2x16x16x128xbf16> to vector<2x16x15x128xbf16>
    %c0_168 = arith.constant 0 : index
    %c0_169 = arith.constant 0 : index
    %c1_170 = arith.constant 1 : index
    %c1_171 = arith.constant 1 : index
    %c0_172 = arith.constant 0 : index
    %124 = vector.load %arg7[%c0_168, %c0_169, %c1_170, %c1_171, %c0_172] : memref<3x2x18x16x128xbf16, #tpu.memory_space<vmem>>, vector<1x2x16x15x128xbf16>
    %125 = vector.shape_cast %124 : vector<1x2x16x15x128xbf16> to vector<2x16x15x128xbf16>
    %126 = vector.shape_cast %123 : vector<2x16x15x128xbf16> to vector<1x2x16x15x128xbf16>
    tpu.vector_store %arg7[%c0_168, %c0_169, %c1_170, %c1_171, %c0_172], %126 {strides = array<i32>} : memref<3x2x18x16x128xbf16, #tpu.memory_space<vmem>>, vector<1x2x16x15x128xbf16>,
    %127 = vector.extract_strided_slice %119 {offsets = [0, 0, 1, 0], sizes = [2, 16, 15, 128], strides = [1, 1, 1, 1]} : vector<2x16x16x128xbf16> to vector<2x16x15x128xbf16>
    %c2_173 = arith.constant 2 : index
    %c0_174 = arith.constant 0 : index
    %c1_175 = arith.constant 1 : index
    %c0_176 = arith.constant 0 : index
    %c0_177 = arith.constant 0 : index
    %128 = vector.load %arg7[%c2_173, %c0_174, %c1_175, %c0_176, %c0_177] : memref<3x2x18x16x128xbf16, #tpu.memory_space<vmem>>, vector<1x2x16x15x128xbf16>
    %129 = vector.shape_cast %128 : vector<1x2x16x15x128xbf16> to vector<2x16x15x128xbf16>
    %130 = vector.shape_cast %127 : vector<2x16x15x128xbf16> to vector<1x2x16x15x128xbf16>
    tpu.vector_store %arg7[%c2_173, %c0_174, %c1_175, %c0_176, %c0_177], %130 {strides = array<i32>} : memref<3x2x18x16x128xbf16, #tpu.memory_space<vmem>>, vector<1x2x16x15x128xbf16>,
    %cst_178 = arith.constant 0.000000e+00 : f32
    %131 = vector.broadcast %cst_178 : f32 to vector<512x128xf32>
    %c0_179 = arith.constant 0 : index
    %c0_180 = arith.constant 0 : index
    %132 = vector.load %arg8[%c0_179, %c0_180] : memref<512x128xf32, #tpu.memory_space<vmem>>, vector<512x128xf32>
    tpu.vector_store %arg8[%c0_179, %c0_180], %131 {strides = array<i32>} : memref<512x128xf32, #tpu.memory_space<vmem>>, vector<512x128xf32>,
    %c0_181 = arith.constant 0 : index
    %c0_182 = arith.constant 0 : index
    %c0_183 = arith.constant 0 : index
    %c0_184 = arith.constant 0 : index
    %c0_185 = arith.constant 0 : index
    %133 = vector.load %arg7[%c0_181, %c0_182, %c0_183, %c0_184, %c0_185] : memref<3x2x18x16x128xbf16, #tpu.memory_space<vmem>>, vector<1x2x16x16x128xbf16>
    %134 = vector.shape_cast %133 : vector<1x2x16x16x128xbf16> to vector<2x16x16x128xbf16>
    %135 = vector.shape_cast %134 : vector<2x16x16x128xbf16> to vector<512x128xbf16>
    %c0_186 = arith.constant 0 : index
    %c0_187 = arith.constant 0 : index
    %136 = vector.load %arg8[%c0_186, %c0_187] : memref<512x128xf32, #tpu.memory_space<vmem>>, vector<512x128xf32>
    %c0_188 = arith.constant 0 : index
    %c0_189 = arith.constant 0 : index
    %137 = vector.load %arg4[%c0_188, %c0_189] : memref<1152x128xbf16, #tpu.memory_space<vmem>>, vector<128x128xbf16>
    %cst_190 = arith.constant dense<0.000000e+00> : vector<512x128xf32>
    %138 = tpu.matmul %135, %137, %cst_190 {dimension_numbers = #tpu.dot_dimension_numbers<[1], [0], [0], [1], [0, 0, 1, 1], [], []>} : vector<512x128xbf16>, vector<128x128xbf16>, vector<512x128xf32> -> vector<512x128xf32>
    %139 = arith.addf %136, %138 : vector<512x128xf32>
    %c0_191 = arith.constant 0 : index
    %c0_192 = arith.constant 0 : index
    %140 = vector.load %arg8[%c0_191, %c0_192] : memref<512x128xf32, #tpu.memory_space<vmem>>, vector<512x128xf32>
    tpu.vector_store %arg8[%c0_191, %c0_192], %139 {strides = array<i32>} : memref<512x128xf32, #tpu.memory_space<vmem>>, vector<512x128xf32>,
    %c1_193 = arith.constant 1 : index
    %c0_194 = arith.constant 0 : index
    %c0_195 = arith.constant 0 : index
    %c0_196 = arith.constant 0 : index
    %c0_197 = arith.constant 0 : index
    %141 = vector.load %arg7[%c1_193, %c0_194, %c0_195, %c0_196, %c0_197] : memref<3x2x18x16x128xbf16, #tpu.memory_space<vmem>>, vector<1x2x16x16x128xbf16>
    %142 = vector.shape_cast %141 : vector<1x2x16x16x128xbf16> to vector<2x16x16x128xbf16>
    %143 = vector.shape_cast %142 : vector<2x16x16x128xbf16> to vector<512x128xbf16>
    %c0_198 = arith.constant 0 : index
    %c0_199 = arith.constant 0 : index
    %144 = vector.load %arg8[%c0_198, %c0_199] : memref<512x128xf32, #tpu.memory_space<vmem>>, vector<512x128xf32>
    %c128_200 = arith.constant 128 : index
    %c0_201 = arith.constant 0 : index
    %145 = vector.load %arg4[%c128_200, %c0_201] : memref<1152x128xbf16, #tpu.memory_space<vmem>>, vector<128x128xbf16>
    %cst_202 = arith.constant dense<0.000000e+00> : vector<512x128xf32>
    %146 = tpu.matmul %143, %145, %cst_202 {dimension_numbers = #tpu.dot_dimension_numbers<[1], [0], [0], [1], [0, 0, 1, 1], [], []>} : vector<512x128xbf16>, vector<128x128xbf16>, vector<512x128xf32> -> vector<512x128xf32>
    %147 = arith.addf %144, %146 : vector<512x128xf32>
    %c0_203 = arith.constant 0 : index
    %c0_204 = arith.constant 0 : index
    %148 = vector.load %arg8[%c0_203, %c0_204] : memref<512x128xf32, #tpu.memory_space<vmem>>, vector<512x128xf32>
    tpu.vector_store %arg8[%c0_203, %c0_204], %147 {strides = array<i32>} : memref<512x128xf32, #tpu.memory_space<vmem>>, vector<512x128xf32>,
    %c2_205 = arith.constant 2 : index
    %c0_206 = arith.constant 0 : index
    %c0_207 = arith.constant 0 : index
    %c0_208 = arith.constant 0 : index
    %c0_209 = arith.constant 0 : index
    %149 = vector.load %arg7[%c2_205, %c0_206, %c0_207, %c0_208, %c0_209] : memref<3x2x18x16x128xbf16, #tpu.memory_space<vmem>>, vector<1x2x16x16x128xbf16>
    %150 = vector.shape_cast %149 : vector<1x2x16x16x128xbf16> to vector<2x16x16x128xbf16>
    %151 = vector.shape_cast %150 : vector<2x16x16x128xbf16> to vector<512x128xbf16>
    %c0_210 = arith.constant 0 : index
    %c0_211 = arith.constant 0 : index
    %152 = vector.load %arg8[%c0_210, %c0_211] : memref<512x128xf32, #tpu.memory_space<vmem>>, vector<512x128xf32>
    %c256_212 = arith.constant 256 : index
    %c0_213 = arith.constant 0 : index
    %153 = vector.load %arg4[%c256_212, %c0_213] : memref<1152x128xbf16, #tpu.memory_space<vmem>>, vector<128x128xbf16>
    %cst_214 = arith.constant dense<0.000000e+00> : vector<512x128xf32>
    %154 = tpu.matmul %151, %153, %cst_214 {dimension_numbers = #tpu.dot_dimension_numbers<[1], [0], [0], [1], [0, 0, 1, 1], [], []>} : vector<512x128xbf16>, vector<128x128xbf16>, vector<512x128xf32> -> vector<512x128xf32>
    %155 = arith.addf %152, %154 : vector<512x128xf32>
    %c0_215 = arith.constant 0 : index
    %c0_216 = arith.constant 0 : index
    %156 = vector.load %arg8[%c0_215, %c0_216] : memref<512x128xf32, #tpu.memory_space<vmem>>, vector<512x128xf32>
    tpu.vector_store %arg8[%c0_215, %c0_216], %155 {strides = array<i32>} : memref<512x128xf32, #tpu.memory_space<vmem>>, vector<512x128xf32>,
    %c0_217 = arith.constant 0 : index
    %c0_218 = arith.constant 0 : index
    %c1_219 = arith.constant 1 : index
    %c0_220 = arith.constant 0 : index
    %c0_221 = arith.constant 0 : index
    %157 = vector.load %arg7[%c0_217, %c0_218, %c1_219, %c0_220, %c0_221] : memref<3x2x18x16x128xbf16, #tpu.memory_space<vmem>>, vector<1x2x16x16x128xbf16>
    %158 = vector.shape_cast %157 : vector<1x2x16x16x128xbf16> to vector<2x16x16x128xbf16>
    %159 = vector.shape_cast %158 : vector<2x16x16x128xbf16> to vector<512x128xbf16>
    %c0_222 = arith.constant 0 : index
    %c0_223 = arith.constant 0 : index
    %160 = vector.load %arg8[%c0_222, %c0_223] : memref<512x128xf32, #tpu.memory_space<vmem>>, vector<512x128xf32>
    %c384_224 = arith.constant 384 : index
    %c0_225 = arith.constant 0 : index
    %161 = vector.load %arg4[%c384_224, %c0_225] : memref<1152x128xbf16, #tpu.memory_space<vmem>>, vector<128x128xbf16>
    %cst_226 = arith.constant dense<0.000000e+00> : vector<512x128xf32>
    %162 = tpu.matmul %159, %161, %cst_226 {dimension_numbers = #tpu.dot_dimension_numbers<[1], [0], [0], [1], [0, 0, 1, 1], [], []>} : vector<512x128xbf16>, vector<128x128xbf16>, vector<512x128xf32> -> vector<512x128xf32>
    %163 = arith.addf %160, %162 : vector<512x128xf32>
    %c0_227 = arith.constant 0 : index
    %c0_228 = arith.constant 0 : index
    %164 = vector.load %arg8[%c0_227, %c0_228] : memref<512x128xf32, #tpu.memory_space<vmem>>, vector<512x128xf32>
    tpu.vector_store %arg8[%c0_227, %c0_228], %163 {strides = array<i32>} : memref<512x128xf32, #tpu.memory_space<vmem>>, vector<512x128xf32>,
    %c1_229 = arith.constant 1 : index
    %c0_230 = arith.constant 0 : index
    %c1_231 = arith.constant 1 : index
    %c0_232 = arith.constant 0 : index
    %c0_233 = arith.constant 0 : index
    %165 = vector.load %arg7[%c1_229, %c0_230, %c1_231, %c0_232, %c0_233] : memref<3x2x18x16x128xbf16, #tpu.memory_space<vmem>>, vector<1x2x16x16x128xbf16>
    %166 = vector.shape_cast %165 : vector<1x2x16x16x128xbf16> to vector<2x16x16x128xbf16>
    %167 = vector.shape_cast %166 : vector<2x16x16x128xbf16> to vector<512x128xbf16>
    %c0_234 = arith.constant 0 : index
    %c0_235 = arith.constant 0 : index
    %168 = vector.load %arg8[%c0_234, %c0_235] : memref<512x128xf32, #tpu.memory_space<vmem>>, vector<512x128xf32>
    %c512_236 = arith.constant 512 : index
    %c0_237 = arith.constant 0 : index
    %169 = vector.load %arg4[%c512_236, %c0_237] : memref<1152x128xbf16, #tpu.memory_space<vmem>>, vector<128x128xbf16>
    %cst_238 = arith.constant dense<0.000000e+00> : vector<512x128xf32>
    %170 = tpu.matmul %167, %169, %cst_238 {dimension_numbers = #tpu.dot_dimension_numbers<[1], [0], [0], [1], [0, 0, 1, 1], [], []>} : vector<512x128xbf16>, vector<128x128xbf16>, vector<512x128xf32> -> vector<512x128xf32>
    %171 = arith.addf %168, %170 : vector<512x128xf32>
    %c0_239 = arith.constant 0 : index
    %c0_240 = arith.constant 0 : index
    %172 = vector.load %arg8[%c0_239, %c0_240] : memref<512x128xf32, #tpu.memory_space<vmem>>, vector<512x128xf32>
    tpu.vector_store %arg8[%c0_239, %c0_240], %171 {strides = array<i32>} : memref<512x128xf32, #tpu.memory_space<vmem>>, vector<512x128xf32>,
    %c2_241 = arith.constant 2 : index
    %c0_242 = arith.constant 0 : index
    %c1_243 = arith.constant 1 : index
    %c0_244 = arith.constant 0 : index
    %c0_245 = arith.constant 0 : index
    %173 = vector.load %arg7[%c2_241, %c0_242, %c1_243, %c0_244, %c0_245] : memref<3x2x18x16x128xbf16, #tpu.memory_space<vmem>>, vector<1x2x16x16x128xbf16>
    %174 = vector.shape_cast %173 : vector<1x2x16x16x128xbf16> to vector<2x16x16x128xbf16>
    %175 = vector.shape_cast %174 : vector<2x16x16x128xbf16> to vector<512x128xbf16>
    %c0_246 = arith.constant 0 : index
    %c0_247 = arith.constant 0 : index
    %176 = vector.load %arg8[%c0_246, %c0_247] : memref<512x128xf32, #tpu.memory_space<vmem>>, vector<512x128xf32>
    %c640_248 = arith.constant 640 : index
    %c0_249 = arith.constant 0 : index
    %177 = vector.load %arg4[%c640_248, %c0_249] : memref<1152x128xbf16, #tpu.memory_space<vmem>>, vector<128x128xbf16>
    %cst_250 = arith.constant dense<0.000000e+00> : vector<512x128xf32>
    %178 = tpu.matmul %175, %177, %cst_250 {dimension_numbers = #tpu.dot_dimension_numbers<[1], [0], [0], [1], [0, 0, 1, 1], [], []>} : vector<512x128xbf16>, vector<128x128xbf16>, vector<512x128xf32> -> vector<512x128xf32>
    %179 = arith.addf %176, %178 : vector<512x128xf32>
    %c0_251 = arith.constant 0 : index
    %c0_252 = arith.constant 0 : index
    %180 = vector.load %arg8[%c0_251, %c0_252] : memref<512x128xf32, #tpu.memory_space<vmem>>, vector<512x128xf32>
    tpu.vector_store %arg8[%c0_251, %c0_252], %179 {strides = array<i32>} : memref<512x128xf32, #tpu.memory_space<vmem>>, vector<512x128xf32>,
    %c0_253 = arith.constant 0 : index
    %c0_254 = arith.constant 0 : index
    %c2_255 = arith.constant 2 : index
    %c0_256 = arith.constant 0 : index
    %c0_257 = arith.constant 0 : index
    %181 = vector.load %arg7[%c0_253, %c0_254, %c2_255, %c0_256, %c0_257] : memref<3x2x18x16x128xbf16, #tpu.memory_space<vmem>>, vector<1x2x16x16x128xbf16>
    %182 = vector.shape_cast %181 : vector<1x2x16x16x128xbf16> to vector<2x16x16x128xbf16>
    %183 = vector.shape_cast %182 : vector<2x16x16x128xbf16> to vector<512x128xbf16>
    %c0_258 = arith.constant 0 : index
    %c0_259 = arith.constant 0 : index
    %184 = vector.load %arg8[%c0_258, %c0_259] : memref<512x128xf32, #tpu.memory_space<vmem>>, vector<512x128xf32>
    %c768_260 = arith.constant 768 : index
    %c0_261 = arith.constant 0 : index
    %185 = vector.load %arg4[%c768_260, %c0_261] : memref<1152x128xbf16, #tpu.memory_space<vmem>>, vector<128x128xbf16>
    %cst_262 = arith.constant dense<0.000000e+00> : vector<512x128xf32>
    %186 = tpu.matmul %183, %185, %cst_262 {dimension_numbers = #tpu.dot_dimension_numbers<[1], [0], [0], [1], [0, 0, 1, 1], [], []>} : vector<512x128xbf16>, vector<128x128xbf16>, vector<512x128xf32> -> vector<512x128xf32>
    %187 = arith.addf %184, %186 : vector<512x128xf32>
    %c0_263 = arith.constant 0 : index
    %c0_264 = arith.constant 0 : index
    %188 = vector.load %arg8[%c0_263, %c0_264] : memref<512x128xf32, #tpu.memory_space<vmem>>, vector<512x128xf32>
    tpu.vector_store %arg8[%c0_263, %c0_264], %187 {strides = array<i32>} : memref<512x128xf32, #tpu.memory_space<vmem>>, vector<512x128xf32>,
    %c1_265 = arith.constant 1 : index
    %c0_266 = arith.constant 0 : index
    %c2_267 = arith.constant 2 : index
    %c0_268 = arith.constant 0 : index
    %c0_269 = arith.constant 0 : index
    %189 = vector.load %arg7[%c1_265, %c0_266, %c2_267, %c0_268, %c0_269] : memref<3x2x18x16x128xbf16, #tpu.memory_space<vmem>>, vector<1x2x16x16x128xbf16>
    %190 = vector.shape_cast %189 : vector<1x2x16x16x128xbf16> to vector<2x16x16x128xbf16>
    %191 = vector.shape_cast %190 : vector<2x16x16x128xbf16> to vector<512x128xbf16>
    %c0_270 = arith.constant 0 : index
    %c0_271 = arith.constant 0 : index
    %192 = vector.load %arg8[%c0_270, %c0_271] : memref<512x128xf32, #tpu.memory_space<vmem>>, vector<512x128xf32>
    %c896_272 = arith.constant 896 : index
    %c0_273 = arith.constant 0 : index
    %193 = vector.load %arg4[%c896_272, %c0_273] : memref<1152x128xbf16, #tpu.memory_space<vmem>>, vector<128x128xbf16>
    %cst_274 = arith.constant dense<0.000000e+00> : vector<512x128xf32>
    %194 = tpu.matmul %191, %193, %cst_274 {dimension_numbers = #tpu.dot_dimension_numbers<[1], [0], [0], [1], [0, 0, 1, 1], [], []>} : vector<512x128xbf16>, vector<128x128xbf16>, vector<512x128xf32> -> vector<512x128xf32>
    %195 = arith.addf %192, %194 : vector<512x128xf32>
    %c0_275 = arith.constant 0 : index
    %c0_276 = arith.constant 0 : index
    %196 = vector.load %arg8[%c0_275, %c0_276] : memref<512x128xf32, #tpu.memory_space<vmem>>, vector<512x128xf32>
    tpu.vector_store %arg8[%c0_275, %c0_276], %195 {strides = array<i32>} : memref<512x128xf32, #tpu.memory_space<vmem>>, vector<512x128xf32>,
    %c2_277 = arith.constant 2 : index
    %c0_278 = arith.constant 0 : index
    %c2_279 = arith.constant 2 : index
    %c0_280 = arith.constant 0 : index
    %c0_281 = arith.constant 0 : index
    %197 = vector.load %arg7[%c2_277, %c0_278, %c2_279, %c0_280, %c0_281] : memref<3x2x18x16x128xbf16, #tpu.memory_space<vmem>>, vector<1x2x16x16x128xbf16>
    %198 = vector.shape_cast %197 : vector<1x2x16x16x128xbf16> to vector<2x16x16x128xbf16>
    %199 = vector.shape_cast %198 : vector<2x16x16x128xbf16> to vector<512x128xbf16>
    %c0_282 = arith.constant 0 : index
    %c0_283 = arith.constant 0 : index
    %200 = vector.load %arg8[%c0_282, %c0_283] : memref<512x128xf32, #tpu.memory_space<vmem>>, vector<512x128xf32>
    %c1024_284 = arith.constant 1024 : index
    %c0_285 = arith.constant 0 : index
    %201 = vector.load %arg4[%c1024_284, %c0_285] : memref<1152x128xbf16, #tpu.memory_space<vmem>>, vector<128x128xbf16>
    %cst_286 = arith.constant dense<0.000000e+00> : vector<512x128xf32>
    %202 = tpu.matmul %199, %201, %cst_286 {dimension_numbers = #tpu.dot_dimension_numbers<[1], [0], [0], [1], [0, 0, 1, 1], [], []>} : vector<512x128xbf16>, vector<128x128xbf16>, vector<512x128xf32> -> vector<512x128xf32>
    %203 = arith.addf %200, %202 : vector<512x128xf32>
    %c0_287 = arith.constant 0 : index
    %c0_288 = arith.constant 0 : index
    %204 = vector.load %arg8[%c0_287, %c0_288] : memref<512x128xf32, #tpu.memory_space<vmem>>, vector<512x128xf32>
    tpu.vector_store %arg8[%c0_287, %c0_288], %203 {strides = array<i32>} : memref<512x128xf32, #tpu.memory_space<vmem>>, vector<512x128xf32>,
    %c0_289 = arith.constant 0 : index
    %c0_290 = arith.constant 0 : index
    %205 = vector.load %arg8[%c0_289, %c0_290] : memref<512x128xf32, #tpu.memory_space<vmem>>, vector<512x128xf32>
    %c0_291 = arith.constant 0 : index
    %c0_292 = arith.constant 0 : index
    %206 = vector.load %arg5[%c0_291, %c0_292] : memref<1x128xf32, #tpu.memory_space<vmem>>, vector<1x128xf32>
    %207 = vector.broadcast %206 : vector<1x128xf32> to vector<512x128xf32>
    %208 = arith.addf %205, %207 : vector<512x128xf32>
    %209 = vector.shape_cast %208 : vector<512x128xf32> to vector<2x16x16x128xf32>
    %c0_293 = arith.constant 0 : index
    %c0_294 = arith.constant 0 : index
    %c0_295 = arith.constant 0 : index
    %c0_296 = arith.constant 0 : index
    %210 = vector.load %arg1[%c0_293, %c0_294, %c0_295, %c0_296] : memref<2x16x16x128xbf16, #tpu.memory_space<vmem>>, vector<2x16x16x128xbf16>
    %211 = arith.extf %210 : vector<2x16x16x128xbf16> to vector<2x16x16x128xf32>
    %212 = arith.addf %209, %211 : vector<2x16x16x128xf32>
    %cst_297 = arith.constant 0.000000e+00 : f32
    %213 = vector.broadcast %cst_297 : f32 to vector<2x16x16x128xf32>
    %214 = arith.maximumf %212, %213 : vector<2x16x16x128xf32>
    %215 = arith.truncf %214 : vector<2x16x16x128xf32> to vector<2x16x16x128xbf16>
    %c0_298 = arith.constant 0 : index
    %c0_299 = arith.constant 0 : index
    %c0_300 = arith.constant 0 : index
    %c0_301 = arith.constant 0 : index
    %216 = vector.load %arg6[%c0_298, %c0_299, %c0_300, %c0_301] : memref<2x16x16x128xbf16, #tpu.memory_space<vmem>>, vector<2x16x16x128xbf16>
    tpu.vector_store %arg6[%c0_298, %c0_299, %c0_300, %c0_301], %215 {strides = array<i32>} : memref<2x16x16x128xbf16, #tpu.memory_space<vmem>>, vector<2x16x16x128xbf16>,
    return
  }
  func.func @transform_0(%arg0: i32) -> (i32, i32, i32, i32) {
    %c0_i32 = arith.constant 0 : i32
    %c0_i32_0 = arith.constant 0 : i32
    %c0_i32_1 = arith.constant 0 : i32
    %c0_i32_2 = arith.constant 0 : i32
    return %arg0, %c0_i32, %c0_i32_0, %c0_i32_1 : i32, i32, i32, i32
  }
  func.func @transform_1(%arg0: i32) -> (i32, i32) {
    %c0_i32 = arith.constant 0 : i32
    %c0_i32_0 = arith.constant 0 : i32
    %c0_i32_1 = arith.constant 0 : i32
    return %c0_i32, %c0_i32_0 : i32, i32
  }
  func.func @transform_2(%arg0: i32) -> (i32, i32) {
    %c0_i32 = arith.constant 0 : i32
    %c0_i32_0 = arith.constant 0 : i32
    %c0_i32_1 = arith.constant 0 : i32
    return %c0_i32, %c0_i32_0 : i32, i32
  }
  func.func @transform_3(%arg0: i32) -> (i32, i32) {
    %c0_i32 = arith.constant 0 : i32
    %c0_i32_0 = arith.constant 0 : i32
    %c0_i32_1 = arith.constant 0 : i32
    return %c0_i32, %c0_i32_0 : i32, i32
  }
  func.func @transform_4(%arg0: i32) -> (i32, i32) {
    %c0_i32 = arith.constant 0 : i32
    %c0_i32_0 = arith.constant 0 : i32
    %c0_i32_1 = arith.constant 0 : i32
    return %c0_i32, %c0_i32_0 : i32, i32
  }
  func.func @transform_5(%arg0: i32) -> (i32, i32, i32, i32) {
    %c0_i32 = arith.constant 0 : i32
    %c0_i32_0 = arith.constant 0 : i32
    %c0_i32_1 = arith.constant 0 : i32
    %c0_i32_2 = arith.constant 0 : i32
    return %arg0, %c0_i32, %c0_i32_0, %c0_i32_1 : i32, i32, i32, i32
  }
}

</mosaic_0001>

<bundles_post_ra>
// kernel: basic_block_forward.1
= control target key start
LH: loop header
LB: loop body
LE: loop exit
PB: predicated region body
PF: predicated region fallthrough
CT: control target
= control target key end

     0   :  { %v20177_v2 = vmov 0   ;;  %vm50_vm0 = vcmask 1040384   ;;  %vm51_vm1 = vsmask.f32 256  ;;  %vm401_vm3 = vsmask.f32 4368  ;;  %s23871_s1 = inlined_call_operand.vmem [shape: bf16[1152,128], index: 1, kind: input, shape index: {}]   ;;  %s23872_s0 = inlined_call_operand.vmem [shape: bf16[2,16,16,128], index: 0, kind: input, shape index: {}]   ;;  %s23873_s3 = inlined_call_operand.vmem [shape: bf16[1152,128], index: 3, kind: input, shape index: {}]   ;;  %s23874_s2 = inlined_call_operand.vmem [shape: f32[1,128], index: 2, kind: input, shape index: {}]   ;;  %s23875_s4 = inlined_call_operand.vmem [shape: f32[1,128], index: 4, kind: input, shape index: {}]   ;;  %s23876_s5 = inlined_call_operand.vmem [shape: bf16[2,16,16,128], index: 5, kind: output, shape index: {}]  }
   0x1   :  { %v18932_v0 = vld [vmem:[%s23871_s1 + $0x38] sm:$0xff]  ;;  %21 = vst [vmem:[#allocation2] sm:$0xf] %v20177_v2  ;;  %v18931_v3 = vld [vmem:[%s23871_s1 + $0x30] sm:$0xff]  ;;  %vm20226_vm2 = vmand %vm50_vm0, %vm51_vm1  ;;  %vm980_vm5 = vcmask 1043456   ;;  %vm161_vm8 = vcmask 1043459  }
   0x2   :  { %v18972_v1 = vld [vmem:[%s23871_s1 + $0x78] sm:$0xff]  ;;  %22 = vst [vmem:[#allocation2 + $0x4] sm:$0xf] %v20177_v2  ;;  %2044 = vmatpush.bf16.msra.mxu0 %v18932_v0  ;;  %20154 = vmatpush.bf16.msra.mxu2 %v18932_v0  ;;  %v18971_v4 = vld [vmem:[%s23871_s1 + $0x70] sm:$0xff]  ;;  %v18930_v6 = vld [vmem:[%s23871_s1 + $0x28] sm:$0xff] }
   0x3   :  { %23 = vst [vmem:[#allocation2 + $0x90] sm:$0xf] %v20177_v2  ;;  %20162 = vmatpush.bf16.msra.mxu3 %v18972_v1  ;;  %2725 = vmatpush.bf16.msra.mxu1 %v18972_v1  ;;  %v18970_v7 = vld [vmem:[%s23871_s1 + $0x68] sm:$0xff]  ;;  %v20245_v10 = vld [vmem:[%s23872_s0] sm:$0xf]  ;;  %v18928_v19 = vld [vmem:[%s23871_s1 + $0x18] sm:$0xff] }
   0x4   :  { %24 = vst [vmem:[#allocation2 + $0x94] sm:$0xf] %v20177_v2  ;;  %v20250_v11 = vld [vmem:[%s23872_s0 + $0x4] sm:$0xf]  ;;  %v23955_v14 = vshrl.u32 %v20245_v10, 16  ;;  %v18968_v20 = vld [vmem:[%s23871_s1 + $0x58] sm:$0xff]  ;;  %vm20326_vm4 = vmor %vm51_vm1, %vm401_vm3 }
   0x5   :  { %26 = vst [vmem:[#allocation2 + $0x88] sm:$0xf] %v20177_v2  ;;  %v18929_v12 = vld [vmem:[%s23871_s1 + $0x20] sm:$0xff]  ;;  %v412_v15 = vshrl.u32 %v20250_v11, 16  ;;  %v415_v16 = vshll.u32 %v20250_v11, 16  ;;  %v18927_v28 = vld [vmem:[%s23871_s1 + $0x10] sm:$0xff] }
   0x6   :  { %27 = vst [vmem:[#allocation2 + $0x8c] sm:$0xf] %v20177_v2  ;;  %2045 = vmatpush.bf16.msra.mxu0 %v18931_v3  ;;  %20155 = vmatpush.bf16.msra.mxu2 %v18931_v3  ;;  %v18969_v13 = vld [vmem:[%s23871_s1 + $0x60] sm:$0xff]  ;;  %v20284_v22 = vrot.slane %v23955_v14, 7  ;;  %v18967_v29 = vld [vmem:[%s23871_s1 + $0x50] sm:$0xff]  ;;  %v18926_v42 = vld [vmem:[%s23871_s1 + $0x8] sm:$0xff] }
   0x7   :  { %28 = vst [vmem:[#allocation2 + $0x118] sm:$0xf] %v20177_v2  ;;  %20163 = vmatpush.bf16.msra.mxu3 %v18971_v4  ;;  %2726 = vmatpush.bf16.msra.mxu1 %v18971_v4  ;;  %v20265_v17 = vrot.slane %v415_v16, 5  ;;  %v20267_v18 = vrot.slane %v412_v15, 4  ;;  %v20279_v21 = vld [vmem:[%s23872_s0 + $0x80] sm:$0xf] }
   0x8   :  { %v53_v8 = vld [vmem:[#allocation2] sm:$0x1]  ;;  %29 = vst [vmem:[#allocation2 + $0x11c] sm:$0xf] %v20177_v2  ;;  %v20291_v24 = vld [vmem:[%s23872_s0 + $0x84] sm:$0xf] }
   0x9   :  { %v54_v9 = vsel %vm20226_vm2, 0, %v53_v8  ;;  %31 = vst [vmem:[#allocation2 + $0x120] sm:$0xf] %v20177_v2  ;;  %v23895_v25 = vshrl.u32 %v20279_v21, 16  ;;  %v414_v26 = vrot.slane %v412_v15, 7  ;;  %v23896_v27 = vshrl.u32 %v20291_v24, 16 }
   0xa   :  { %55 = vst [vmem:[#allocation2] sm:$0x1] %v54_v9  ;;  %2046 = vmatpush.bf16.msra.mxu0 %v18930_v6  ;;  %20156 = vmatpush.bf16.msra.mxu2 %v18930_v6  ;;  %v107_v30 = vld [vmem:[#allocation2 + $0x90] sm:$0x1]  ;;  %v56_v31 = vld [vmem:[#allocation2 + $0x8] sm:$0x1] }
   0xb   :  { %32 = vst [vmem:[#allocation2 + $0x124] sm:$0xf] %v20177_v2  ;;  %20164 = vmatpush.bf16.msra.mxu3 %v18970_v7  ;;  %2727 = vmatpush.bf16.msra.mxu1 %v18970_v7  ;;  %v410_v32 = vrot.slane %v20284_v22, 4  ;;  %v20308_v33 = vrot.slane %v23895_v25, 7  ;;  %v670_v34 = vrot.slane %v23896_v27, 7  ;;  %v23893_v35 = vshll.u32 %v20291_v24, 16 }
   0xc   :  { %33 = vst [vmem:[#allocation2 + $0x1b0] sm:$0xf] %v20177_v2  ;;  %v417_v36 = vor.u32 %v415_v16, %v414_v26  ;;  %v20317_v37 = vld [vmem:[%s23872_s0 + $0x8] sm:$0xf]  ;;  %v20322_v38 = vld [vmem:[%s23872_s0 + $0xc] sm:$0xf] }
   0xd   :  { %34 = vst [vmem:[#allocation2 + $0x1b4] sm:$0xf] %v20177_v2  ;;  %v23950_v40 = vshrl.u32 %v20317_v37, 16  ;;  %v23951_v41 = vshrl.u32 %v20322_v38, 16  ;;  %v18966_v43 = vld [vmem:[%s23871_s1 + $0x48] sm:$0xff]  ;;  %v108_v44 = vsel %vm20226_vm2, 0, %v107_v30  ;;  %v673_v50 = vor.u32 %v23893_v35, %v670_v34 }
   0xe   :  { %36 = vst [vmem:[#allocation2 + $0x1a8] sm:$0xf] %v20177_v2  ;;  %2047 = vmatpush.bf16.msra.mxu0 %v18929_v12  ;;  %20157 = vmatpush.bf16.msra.mxu2 %v18929_v12  ;;  %v57_v45 = vsel %vm20226_vm2, 0, %v56_v31  ;;  %v110_v46 = vld [vmem:[#allocation2 + $0x98] sm:$0x1]  ;;  %v418_v48 = vsel %vm20326_vm4, %v410_v32, %v417_v36  ;;  %v666_v49 = vrot.slane %v20308_v33, 4 }
   0xf   :  { %37 = vst [vmem:[#allocation2 + $0x1ac] sm:$0xf] %v20177_v2  ;;  %20165 = vmatpush.bf16.msra.mxu3 %v18969_v13  ;;  %2728 = vmatpush.bf16.msra.mxu1 %v18969_v13  ;;  %v20348_v47 = vld [vmem:[%s23872_s0 + $0x88] sm:$0xf]  ;;  %v20359_v51 = vld [vmem:[%s23872_s0 + $0x8c] sm:$0xf] }
  0x10   :  { %24045 = vst [vmem:[#allocation4_spill] sm:$0xff] %v20279_v21  ;;  %v20363_v52 = vrot.slane %v23950_v40, 7  ;;  %v430_v53 = vrot.slane %v23951_v41, 7  ;;  %v23943_v54 = vshll.u32 %v20322_v38, 16  ;;  %v18925_v55 = vld [vmem:[%s23871_s1] sm:$0xff]  ;;  %v23954_v56 = vshll.u32 %v20245_v10, 16 }
  0x11   :  { %38 = vst [vmem:[#allocation2 + $0x238] sm:$0xf] %v20177_v2  ;;  %v23888_v57 = vshrl.u32 %v20348_v47, 16  ;;  %v23890_v58 = vshrl.u32 %v20359_v51, 16  ;;  %v18965_v59 = vld [vmem:[%s23871_s1 + $0x40] sm:$0xff]  ;;  %v111_v60 = vsel %vm20226_vm2, 0, %v110_v46  ;;  %v674_v63 = vsel %vm20326_vm4, %v666_v49, %v673_v50 }
  0x12   :  { %24046 = vst [vmem:[#allocation5_spill] sm:$0xff] %v20291_v24  ;;  %2048 = vmatpush.bf16.msra.mxu0 %v18928_v19  ;;  %20158 = vmatpush.bf16.msra.mxu2 %v18928_v19  ;;  %vm981_vm6 = vsmask.f32 7938  ;;  %v19012_v61 = vld [vmem:[%s23871_s1 + $0xb8] sm:$0xff]  ;;  %v59_v0 = vld [vmem:[#allocation2 + $0x10] sm:$0x1]  ;;  %v433_v4 = vor.u32 %v23943_v54, %v430_v53  ;;  %v409_v7 = vor.u32 %v23954_v56, %v20284_v22 }
  0x13   :  { %39 = vst [vmem:[#allocation2 + $0x23c] sm:$0xf] %v20177_v2  ;;  %20166 = vmatpush.bf16.msra.mxu3 %v18968_v20  ;;  %2729 = vmatpush.bf16.msra.mxu1 %v18968_v20  ;;  %v19052_v62 = vld [vmem:[%s23871_s1 + $0xf8] sm:$0xff]  ;;  %v18893_v1 = vld [vmem:[#allocation2] sm:$0xff]  ;;  %v426_v3 = vrot.slane %v20363_v52, 4  ;;  %v20398_v8 = vrot.slane %v23888_v57, 7  ;;  %vm20408_vm7 = vmand %vm980_vm5, %vm981_vm6 }
  0x14   :  { %41 = vst [vmem:[#allocation2 + $0x240] sm:$0xf] %v20177_v2  ;;  %v18949_v6 = vld [vmem:[#allocation2 + $0x1b0] sm:$0xff]  ;;  %v686_v9 = vrot.slane %v23890_v58, 7  ;;  %v18933_v12 = vld [vmem:[#allocation2 + $0x120] sm:$0xff]  ;;  %v19092_v13 = vld [vmem:[%s23871_s1 + $0x138] sm:$0xff] }
  0x15   :  { %42 = vst [vmem:[#allocation2 + $0x244] sm:$0xf] %v20177_v2  ;;  %v60_v16 = vsel %vm20226_vm2, 0, %v59_v0  ;;  %v23946_v20 = vshll.u32 %v20317_v37, 16  ;;  %v682_v31 = vrot.slane %v20398_v8, 4  ;;  %v19051_v36 = vld [vmem:[%s23871_s1 + $0xf0] sm:$0xff] }
  0x16   :  { %43 = vst [vmem:[#allocation2 + $0x2d0] sm:$0xf] %v20177_v2  ;;  %2049 = vmatpush.bf16.msra.mxu0 %v18927_v28  ;;  %20159 = vmatpush.bf16.msra.mxu2 %v18927_v28  ;;  %v434_v28 = vsel %vm20326_vm4, %v426_v3, %v433_v4  ;;  %v20433_v34 = vld [vmem:[%s23872_s0 + $0x10] sm:$0xf]  ;;  %vm162_vm9 = vsmask.f32 7950 }
  0x17   :  { %44 = vst [vmem:[#allocation2 + $0x2d4] sm:$0xf] %v20177_v2  ;;  %20167 = vmatpush.bf16.msra.mxu3 %v18967_v29  ;;  %2730 = vmatpush.bf16.msra.mxu1 %v18967_v29  ;;  %v113_v29 = vld [vmem:[#allocation2 + $0xa0] sm:$0x1]  ;;  %vm21344_vm10 = vmand %vm161_vm8, %vm162_vm9  ;;  %vm1111_vm11 = vsmask.f32 3328 }
  0x18   :  { %46 = vst [vmem:[#allocation2 + $0x2c8] sm:$0xf] %v20177_v2  ;;  %v114_v49 = vsel %vm20226_vm2, 0, %v113_v29  ;;  %vm21371_vm12 = vmand %vm980_vm5, %vm1111_vm11  ;;  %vm1112_vm13 = vsmask.f32 7440 }
  0x19   :  { %47 = vst [vmem:[#allocation2 + $0x2cc] sm:$0xf] %v20177_v2  ;;  %vm21387_vm14 = vmor %vm1111_vm11, %vm1112_vm13 }
  0x1a   :  { %48 = vst [vmem:[#allocation2 + $0x358] sm:$0xf] %v20177_v2  ;;  %2050 = vmatpush.bf16.msra.mxu0 %v18926_v42  ;;  %20160 = vmatpush.bf16.msra.mxu2 %v18926_v42  ;;  %v19091_v42 = vld [vmem:[%s23871_s1 + $0x130] sm:$0xff] }
  0x1b   :  { %24049 = vst [vmem:[#allocation6_spill] sm:$0xff] %v20348_v47  ;;  %20168 = vmatpush.bf16.msra.mxu3 %v18966_v43  ;;  %2731 = vmatpush.bf16.msra.mxu1 %v18966_v43  ;;  %v20444_v43 = vld [vmem:[%s23872_s0 + $0x14] sm:$0xf] }
  0x1c   :  { %49 = vst [vmem:[#allocation2 + $0x35c] sm:$0xf] %v20177_v2  ;;  %v23894_v2 = vshll.u32 %v20279_v21, 16  ;;  %v23932_v50 = vshll.u32 %v20444_v43, 16 }
  0x1d   :  { %24050 = vst [vmem:[#allocation7_spill] sm:$0xff] %v20359_v51 }
  0x1e   :  { %109 = vst [vmem:[#allocation2 + $0x90] sm:$0x1] %v108_v44  ;;  %2051 = vmatpush.bf16.msra.mxu0 %v18925_v55  ;;  %20161 = vmatpush.bf16.msra.mxu2 %v18925_v55  ;;  %v665_v26 = vor.u32 %v23894_v2, %v20308_v33  ;;  %v19011_v33 = vld [vmem:[%s23871_s1 + $0xb0] sm:$0xff]  ;;  %v23937_v44 = vshrl.u32 %v20433_v34, 16 }
  0x1f   :  { %58 = vst [vmem:[#allocation2 + $0x8] sm:$0x1] %v57_v45  ;;  %20169 = vmatpush.bf16.msra.mxu3 %v18965_v59  ;;  %2732 = vmatpush.bf16.msra.mxu1 %v18965_v59  ;;  %v23938_v45 = vshrl.u32 %v20444_v43, 16  ;;  %v62_v59 = vld [vmem:[#allocation2 + $0x18] sm:$0x1] }
  0x20   :  { %986 = vst [vmem:[#allocation2 + $0xc] sm:$0xf] %v418_v48  ;;  %v425_v48 = vor.u32 %v23946_v20, %v20363_v52  ;;  %v438_v52 = vrot.slane %v23937_v44, 7  ;;  %v19132_v20 = vld [vmem:[%s23871_s1 + $0x178] sm:$0xff] }
  0x21   :  { %337 = vst [vmem:[#allocation2 + $0x128] sm:$0xf] %v20245_v10  ;;  %2052 = vmatmul.bf16.vlgmr.msra.gmra.mxu0 %v18893_v1 }
  0x22   :  { %338 = vst [vmem:[#allocation2 + $0x12c] sm:$0xf] %v20250_v11  ;;  %v23885_v11 = vshll.u32 %v20359_v51, 16  ;;  %3406 = vmatpush.bf16.msrb.mxu2 %v19012_v61  ;;  %2813 = vmatmul.bf16.vlgmr.msra.gmra.mxu3 %v18949_v6  ;;  %v20467_v61 = vld [vmem:[%s23872_s0 + $0x90] sm:$0xf]  ;;  %v442_v0 = vrot.slane %v438_v52, 4 }
  0x23   :  { %112 = vst [vmem:[#allocation2 + $0x98] sm:$0x1] %v111_v60  ;;  %4087 = vmatpush.bf16.msrb.mxu3 %v19052_v62  ;;  %2733 = vmatmul.bf16.vlgmr.msra.gmra.mxu1 %v18933_v12  ;;  %v446_v60 = vrot.slane %v23938_v45, 7  ;;  %v20472_v62 = vld [vmem:[%s23872_s0 + $0x94] sm:$0xf]  ;;  %v23883_v3 = vshrl.u32 %v20467_v61, 16 }
  0x24   :  { %1050 = vst [vmem:[#allocation2 + $0x9c] sm:$0xf] %v674_v63  ;;  %v689_v32 = vor.u32 %v23885_v11, %v686_v9  ;;  %4768 = vmatpush.bf16.msrb.mxu0 %v19092_v13  ;;  %v23886_v63 = vshll.u32 %v20348_v47, 16  ;;  %v23884_v6 = vshrl.u32 %v20472_v62, 16  ;;  %v63_v9 = vsel %vm20226_vm2, 0, %v62_v59  ;;  %5449 = vmatpush.bf16.msrb.mxu1 %v19132_v20 }
  0x25   :  { %v18909_v19 = vld [vmem:[#allocation2 + $0x90] sm:$0xff]  ;;  %369 = vst [vmem:[#allocation2 + $0x1b8] sm:$0xf] %v20279_v21  ;;  %v449_v1 = vor.u32 %v23932_v50, %v446_v60  ;;  %v694_v12 = vrot.slane %v23883_v3, 7  ;;  %v23881_v13 = vshll.u32 %v20472_v62, 16  ;;  %v23882_v59 = vshll.u32 %v20467_v61, 16 }
  0x26   :  { %v983_v22 = vld [vmem:[#allocation2 + $0x8] sm:$0xf]  ;;  %370 = vst [vmem:[#allocation2 + $0x1bc] sm:$0xf] %v20291_v24  ;;  %2132 = vmatmul.bf16.vlgmr.msra.gmra.mxu2 %v18909_v19  ;;  %v690_v55 = vsel %vm20326_vm4, %v682_v31, %v689_v32  ;;  %v702_v19 = vrot.slane %v23884_v6, 7  ;;  %v19088_v50 = vld [vmem:[%s23871_s1 + $0x118] sm:$0xff] }
  0x27   :  { %v984_v30 = vsel %vm20408_vm7, %v409_v7, %v983_v22  ;;  %61 = vst [vmem:[#allocation2 + $0x10] sm:$0x1] %v60_v16  ;;  %3407 = vmatpush.bf16.msrb.mxu2 %v19011_v33  ;;  %4088 = vmatpush.bf16.msrb.mxu3 %v19051_v36  ;;  %v450_v16 = vsel %vm20326_vm4, %v442_v0, %v449_v1  ;;  %v20517_v60 = vld [vmem:[%s23872_s0 + $0x1c] sm:$0xf] }
  0x28   :  { %985 = vst [vmem:[#allocation2 + $0x8] sm:$0xf] %v984_v30  ;;  %4769 = vmatpush.bf16.msrb.mxu0 %v19091_v42  ;;  %v681_v22 = vor.u32 %v23886_v63, %v20398_v8  ;;  %v23935_v30 = vshll.u32 %v20433_v34, 16  ;;  %v705_v31 = vor.u32 %v23881_v13, %v702_v19  ;;  %v23919_v1 = vshll.u32 %v20517_v60, 16 }
  0x29   :  { %990 = vst [vmem:[#allocation2 + $0x14] sm:$0xf] %v434_v28  ;;  %v698_v28 = vrot.slane %v694_v12, 4  ;;  %v18934_v36 = vld [vmem:[#allocation2 + $0x128] sm:$0xff] }
  0x2a   :  { %v1047_v46 = vld [vmem:[#allocation2 + $0x98] sm:$0xf]  ;;  %339 = vst [vmem:[#allocation2 + $0x130] sm:$0xf] %v20317_v37 }
  0x2b   :  { %v1048_v53 = vsel %vm20408_vm7, %v665_v26, %v1047_v46  ;;  %340 = vst [vmem:[#allocation2 + $0x134] sm:$0xf] %v20322_v38  ;;  %v116_v26 = vld [vmem:[#allocation2 + $0xa8] sm:$0x1] }
  0x2c   :  { %1049 = vst [vmem:[#allocation2 + $0x98] sm:$0xf] %v1048_v53  ;;  %v117_v8 = vsel %vm20226_vm2, 0, %v116_v26  ;;  %v65_v53 = vld [vmem:[#allocation2 + $0x20] sm:$0x1] }
  0x2d   :  { %24053 = vst [vmem:[#allocation8_spill] sm:$0xff] %v20467_v61  ;;  %v18950_v33 = vld [vmem:[#allocation2 + $0x1b8] sm:$0xff] }
  0x2e   :  { %24054 = vst [vmem:[#allocation9_spill] sm:$0xff] %v20472_v62  ;;  %v987_v4 = vld [vmem:[#allocation2 + $0x10] sm:$0xf]  ;;  %v20535_v26 = vld [vmem:[%s23872_s0 + $0x98] sm:$0xf] }
  0x2f   :  { %115 = vst [vmem:[#allocation2 + $0xa0] sm:$0x1] %v114_v49  ;;  %v988_v7 = vsel %vm20408_vm7, %v425_v48, %v987_v4  ;;  %v18894_v29 = vld [vmem:[#allocation2 + $0x8] sm:$0xff]  ;;  %v706_v48 = vsel %vm20326_vm4, %v698_v28, %v705_v31  ;;  %v441_v49 = vor.u32 %v23935_v30, %v438_v52  ;;  %v23930_v52 = vshrl.u32 %v20517_v60, 16  ;;  %v20542_v31 = vld [vmem:[%s23872_s0 + $0x9c] sm:$0xf] }
  0x30   :  { %1054 = vst [vmem:[#allocation2 + $0xa4] sm:$0xf] %v690_v55  ;;  %v20511_v55 = vld [vmem:[%s23872_s0 + $0x18] sm:$0xf]  ;;  %v697_v28 = vor.u32 %v23882_v59, %v694_v12 }
  0x31   :  { %371 = vst [vmem:[#allocation2 + $0x1c0] sm:$0xf] %v20348_v47  ;;  %2057 = vmatmul.bf16.gmra.mxu0 %v18894_v29  ;;  %v23925_v0 = vshrl.u32 %v20511_v55, 16 }
  0x32   :  { %989 = vst [vmem:[#allocation2 + $0x10] sm:$0xf] %v988_v7  ;;  %2818 = vmatmul.bf16.gmra.mxu3 %v18950_v33  ;;  %v66_v7 = vsel %vm20226_vm2, 0, %v65_v53  ;;  %v23920_v33 = vshll.u32 %v20511_v55, 16 }
  0x33   :  { %372 = vst [vmem:[#allocation2 + $0x1c4] sm:$0xf] %v20359_v51  ;;  %v18910_v32 = vld [vmem:[#allocation2 + $0x98] sm:$0xff]  ;;  %2738 = vmatmul.bf16.gmra.mxu1 %v18934_v36 }
  0x34   :  { %64 = vst [vmem:[#allocation2 + $0x18] sm:$0x1] %v63_v9  ;;  %v454_v9 = vrot.slane %v23925_v0, 7 }
  0x35   :  { %994 = vst [vmem:[#allocation2 + $0x1c] sm:$0xf] %v450_v16  ;;  %v119_v16 = vld [vmem:[#allocation2 + $0xb0] sm:$0x1] }
  0x36   :  { %v1051_v42 = vld [vmem:[#allocation2 + $0xa0] sm:$0xf]  ;;  %341 = vst [vmem:[#allocation2 + $0x138] sm:$0xf] %v20433_v34  ;;  %2137 = vmatmul.bf16.gmra.mxu2 %v18910_v32  ;;  %v458_v29 = vrot.slane %v454_v9, 4  ;;  %v23877_v32 = vshrl.u32 %v20535_v26, 16 }
  0x37   :  { %v1052_v46 = vsel %vm20408_vm7, %v681_v22, %v1051_v42  ;;  %342 = vst [vmem:[#allocation2 + $0x13c] sm:$0xf] %v20444_v43  ;;  %v462_v22 = vrot.slane %v23930_v52, 7  ;;  %v23878_v42 = vshrl.u32 %v20542_v31, 16 }
  0x38   :  { %1053 = vst [vmem:[#allocation2 + $0xa0] sm:$0xf] %v1052_v46  ;;  %v710_v12 = vrot.slane %v23877_v32, 7 }
  0x39   :  { %118 = vst [vmem:[#allocation2 + $0xa8] sm:$0x1] %v117_v8  ;;  %v465_v36 = vor.u32 %v23919_v1, %v462_v22  ;;  %v23879_v8 = vshll.u32 %v20542_v31, 16  ;;  %v718_v53 = vrot.slane %v23878_v42, 7 }
  0x3a   :  { %1058 = vst [vmem:[#allocation2 + $0xac] sm:$0xf] %v706_v48  ;;  %v18951_v32 = vld [vmem:[#allocation2 + $0x1c0] sm:$0xff] }
  0x3b   :  { %v991_v4 = vld [vmem:[#allocation2 + $0x18] sm:$0xf]  ;;  %373 = vst [vmem:[#allocation2 + $0x1c8] sm:$0xf] %v20467_v61  ;;  %v466_v48 = vsel %vm20326_vm4, %v458_v29, %v465_v36  ;;  %v721_v22 = vor.u32 %v23879_v8, %v718_v53  ;;  %v23880_v29 = vshll.u32 %v20535_v26, 16  ;;  %v18895_v36 = vld [vmem:[#allocation2 + $0x10] sm:$0xff] }
  0x3c   :  { %v992_v19 = vsel %vm20408_vm7, %v441_v49, %v991_v4  ;;  %374 = vst [vmem:[#allocation2 + $0x1cc] sm:$0xf] %v20472_v62  ;;  %v120_v49 = vsel %vm20226_vm2, 0, %v119_v16  ;;  %v122_v53 = vld [vmem:[#allocation2 + $0xb8] sm:$0x1] }
  0x3d   :  { %24055 = vst [vmem:[#allocation10_spill] sm:$0xff] %v20535_v26 }
  0x3e   :  { %993 = vst [vmem:[#allocation2 + $0x18] sm:$0xf] %v992_v19  ;;  %v457_v19 = vor.u32 %v23920_v33, %v454_v9  ;;  %v18936_v58 = vld [vmem:[#allocation2 + $0x138] sm:$0xff] }
  0x3f   :  { %24056 = vst [vmem:[#allocation11_spill] sm:$0xff] %v20542_v31  ;;  %v18911_v16 = vld [vmem:[#allocation2 + $0xa0] sm:$0xff] }
  0x40   :  { %67 = vst [vmem:[#allocation2 + $0x20] sm:$0x1] %v66_v7  ;;  %v1055_v46 = vld [vmem:[#allocation2 + $0xa8] sm:$0xf]  ;;  %v714_v7 = vrot.slane %v710_v12, 4 }
  0x41   :  { %343 = vst [vmem:[#allocation2 + $0x140] sm:$0xf] %v20511_v55  ;;  %v1056_v4 = vsel %vm20408_vm7, %v697_v28, %v1055_v46  ;;  %v68_v46 = vld [vmem:[#allocation2 + $0x28] sm:$0x1]  ;;  %2062 = vmatmul.bf16.gmra.mxu0 %v18895_v36 }
  0x42   :  { %344 = vst [vmem:[#allocation2 + $0x144] sm:$0xf] %v20517_v60  ;;  %v722_v42 = vsel %vm20326_vm4, %v714_v7, %v721_v22  ;;  %v123_v7 = vsel %vm20226_vm2, 0, %v122_v53  ;;  %2823 = vmatmul.bf16.gmra.mxu3 %v18951_v32  ;;  %v19050_v36 = vld [vmem:[%s23871_s1 + $0xe8] sm:$0xff]  ;;  %v20610_v53 = vld [vmem:[%s23872_s0 + $0xa0] sm:$0xf] }
  0x43   :  { %998 = vst [vmem:[#allocation2 + $0x24] sm:$0xf] %v466_v48  ;;  %v18935_v48 = vld [vmem:[#allocation2 + $0x130] sm:$0xff]  ;;  %4089 = vmatpush.bf16.msrb.mxu3 %v19050_v36  ;;  %v23887_v36 = vshrl.u32 %v20610_v53, 16  ;;  %v18952_v57 = vld [vmem:[#allocation2 + $0x1c8] sm:$0xff] }
  0x44   :  { %1057 = vst [vmem:[#allocation2 + $0xa8] sm:$0xf] %v1056_v4  ;;  %v713_v4 = vor.u32 %v23880_v29, %v710_v12  ;;  %2743 = vmatmul.bf16.gmra.mxu1 %v18935_v48 }
  0x45   :  { %121 = vst [vmem:[#allocation2 + $0xb0] sm:$0x1] %v120_v49  ;;  %v69_v49 = vsel %vm20226_vm2, 0, %v68_v46  ;;  %v20601_v46 = vld [vmem:[%s23872_s0 + $0x24] sm:$0xf]  ;;  %v726_v59 = vrot.slane %v23887_v36, 7 }
  0x46   :  { %375 = vst [vmem:[#allocation2 + $0x1d0] sm:$0xf] %v20535_v26  ;;  %2142 = vmatmul.bf16.gmra.mxu2 %v18911_v16 }
  0x47   :  { %v995_v28 = vld [vmem:[#allocation2 + $0x20] sm:$0xf]  ;;  %1062 = vst [vmem:[#allocation2 + $0xb4] sm:$0xf] %v722_v42  ;;  %v730_v63 = vrot.slane %v726_v59, 4 }
  0x48   :  { %v996_v9 = vsel %vm20408_vm7, %v457_v19, %v995_v28  ;;  %376 = vst [vmem:[#allocation2 + $0x1d4] sm:$0xf] %v20542_v31  ;;  %v20580_v42 = vld [vmem:[%s23872_s0 + $0x20] sm:$0xf]  ;;  %v19010_v19 = vld [vmem:[%s23871_s1 + $0xa8] sm:$0xff] }
  0x49   :  { %997 = vst [vmem:[#allocation2 + $0x20] sm:$0xf] %v996_v9  ;;  %v23913_v22 = vshrl.u32 %v20580_v42, 16  ;;  %v19090_v28 = vld [vmem:[%s23871_s1 + $0x128] sm:$0xff]  ;;  %v23911_v32 = vshll.u32 %v20580_v42, 16  ;;  %3408 = vmatpush.bf16.msrb.mxu2 %v19010_v19  ;;  %v23917_v9 = vshrl.u32 %v20601_v46, 16 }
  0x4a   :  { %70 = vst [vmem:[#allocation2 + $0x28] sm:$0x1] %v69_v49  ;;  %4770 = vmatpush.bf16.msrb.mxu0 %v19090_v28  ;;  %v23909_v49 = vshll.u32 %v20601_v46, 16  ;;  %v23892_v28 = vshll.u32 %v20610_v53, 16 }
  0x4b   :  { %345 = vst [vmem:[#allocation2 + $0x148] sm:$0xf] %v20580_v42  ;;  %v470_v48 = vrot.slane %v23913_v22, 7  ;;  %v18912_v36 = vld [vmem:[#allocation2 + $0xa8] sm:$0xff] }
  0x4c   :  { %v1059_v12 = vld [vmem:[#allocation2 + $0xb0] sm:$0xf]  ;;  %124 = vst [vmem:[#allocation2 + $0xb8] sm:$0x1] %v123_v7  ;;  %v20618_v7 = vld [vmem:[%s23872_s0 + $0xa4] sm:$0xf]  ;;  %v729_v11 = vor.u32 %v23892_v28, %v726_v59 }
  0x4d   :  { %v1060_v16 = vsel %vm20408_vm7, %v713_v4, %v1059_v12  ;;  %24057 = vst [vmem:[#allocation12_spill] sm:$0xff] %v20610_v53  ;;  %v473_v4 = vor.u32 %v23911_v32, %v470_v48  ;;  %v474_v19 = vrot.slane %v470_v48, 4  ;;  %v478_v12 = vrot.slane %v23917_v9, 7 }
  0x4e   :  { %1061 = vst [vmem:[#allocation2 + $0xb0] sm:$0xf] %v1060_v16  ;;  %v23889_v8 = vshrl.u32 %v20618_v7, 16  ;;  %v23891_v29 = vshll.u32 %v20618_v7, 16 }
  0x4f   :  { %346 = vst [vmem:[#allocation2 + $0x14c] sm:$0xf] %v20601_v46  ;;  %v481_v13 = vor.u32 %v23909_v49, %v478_v12 }
  0x50   :  { %24058 = vst [vmem:[#allocation13_spill] sm:$0xff] %v20618_v7  ;;  %v734_v3 = vrot.slane %v23889_v8, 7 }
  0x51   :  { %v999_v16 = vld [vmem:[#allocation2 + $0x28] sm:$0xf]  ;;  %377 = vst [vmem:[#allocation2 + $0x1d8] sm:$0xf] %v20610_v53  ;;  %v482_v6 = vsel %vm20326_vm4, %v474_v19, %v481_v13  ;;  %v71_v13 = vld [vmem:[#allocation2 + $0x30] sm:$0x1] }
  0x52   :  { %v1000_v48 = vsel %vm20408_vm7, %v473_v4, %v999_v16  ;;  %378 = vst [vmem:[#allocation2 + $0x1dc] sm:$0xf] %v20618_v7  ;;  %v737_v4 = vor.u32 %v23891_v29, %v734_v3  ;;  %v18896_v16 = vld [vmem:[#allocation2 + $0x18] sm:$0xff]  ;;  %v125_v19 = vld [vmem:[#allocation2 + $0xc0] sm:$0x1]  ;;  %2828 = vmatmul.bf16.gmra.mxu3 %v18952_v57 }
  0x53   :  { %1001 = vst [vmem:[#allocation2 + $0x28] sm:$0xf] %v1000_v48  ;;  %v1063_v12 = vld [vmem:[#allocation2 + $0xb8] sm:$0xf]  ;;  %2067 = vmatmul.bf16.gmra.mxu0 %v18896_v16  ;;  %v20651_v3 = vld [vmem:[%s23872_s0 + $0x28] sm:$0xf] }
  0x54   :  { %1002 = vst [vmem:[#allocation2 + $0x2c] sm:$0xf] %v482_v6  ;;  %v1064_v48 = vsel %vm20408_vm7, %v729_v11, %v1063_v12  ;;  %v738_v8 = vsel %vm20326_vm4, %v730_v63, %v737_v4  ;;  %v72_v6 = vsel %vm20226_vm2, 0, %v71_v13  ;;  %v20656_v11 = vld [vmem:[%s23872_s0 + $0x2c] sm:$0xf]  ;;  %v126_v63 = vsel %vm20226_vm2, 0, %v125_v19  ;;  %2748 = vmatmul.bf16.gmra.mxu1 %v18936_v58 }
  0x55   :  { %1065 = vst [vmem:[#allocation2 + $0xb8] sm:$0xf] %v1064_v48  ;;  %v23901_v59 = vshrl.u32 %v20651_v3, 16  ;;  %v23899_v12 = vshll.u32 %v20651_v3, 16  ;;  %v23897_v4 = vshll.u32 %v20656_v11, 16 }
  0x56   :  { %1066 = vst [vmem:[#allocation2 + $0xbc] sm:$0xf] %v738_v8  ;;  %2147 = vmatmul.bf16.gmra.mxu2 %v18912_v36  ;;  %v23906_v8 = vshrl.u32 %v20656_v11, 16  ;;  %v20673_v57 = vld [vmem:[%s23872_s0 + $0xa8] sm:$0xf] }
  0x57   :  { %73 = vst [vmem:[#allocation2 + $0x30] sm:$0x1] %v72_v6  ;;  %v486_v16 = vrot.slane %v23901_v59, 7  ;;  %v20678_v58 = vld [vmem:[%s23872_s0 + $0xac] sm:$0xf]  ;;  %v23898_v6 = vshrl.u32 %v20673_v57, 16 }
  0x58   :  { %347 = vst [vmem:[#allocation2 + $0x150] sm:$0xf] %v20651_v3  ;;  %v494_v36 = vrot.slane %v23906_v8, 7  ;;  %v23903_v29 = vshll.u32 %v20673_v57, 16  ;;  %v23900_v28 = vshrl.u32 %v20678_v58, 16  ;;  %v23902_v35 = vshll.u32 %v20678_v58, 16 }
  0x59   :  { %348 = vst [vmem:[#allocation2 + $0x154] sm:$0xf] %v20656_v11  ;;  %v489_v48 = vor.u32 %v23899_v12, %v486_v16  ;;  %v490_v13 = vrot.slane %v486_v16, 4  ;;  %v18953_v12 = vld [vmem:[#allocation2 + $0x1d0] sm:$0xff]  ;;  %v18937_v59 = vld [vmem:[#allocation2 + $0x140] sm:$0xff]  ;;  %v18954_v32 = vld [vmem:[#allocation2 + $0x1d8] sm:$0xff] }
  0x5a   :  { %127 = vst [vmem:[#allocation2 + $0xc0] sm:$0x1] %v126_v63  ;;  %v497_v19 = vor.u32 %v23897_v4, %v494_v36  ;;  %v742_v36 = vrot.slane %v23898_v6, 7  ;;  %v750_v25 = vrot.slane %v23900_v28, 7  ;;  %v18913_v6 = vld [vmem:[#allocation2 + $0xb0] sm:$0xff]  ;;  %v18938_v22 = vld [vmem:[#allocation2 + $0x148] sm:$0xff] }
  0x5b   :  { %24059 = vst [vmem:[#allocation14_spill] sm:$0xff] %v20673_v57  ;;  %v128_v28 = vld [vmem:[#allocation2 + $0xc8] sm:$0x1] }
  0x5c   :  { %24060 = vst [vmem:[#allocation15_spill] sm:$0xff] %v20678_v58  ;;  %v498_v2 = vsel %vm20326_vm4, %v490_v13, %v497_v19  ;;  %v745_v27 = vor.u32 %v23903_v29, %v742_v36  ;;  %v746_v4 = vrot.slane %v742_v36, 4  ;;  %v753_v13 = vor.u32 %v23902_v35, %v750_v25  ;;  %v20711_v25 = vld [vmem:[%s23872_s0 + $0x30] sm:$0xf] }
  0x5d   :  { %379 = vst [vmem:[#allocation2 + $0x1e0] sm:$0xf] %v20673_v57 }
  0x5e   :  { %v1003_v63 = vld [vmem:[#allocation2 + $0x30] sm:$0xf]  ;;  %380 = vst [vmem:[#allocation2 + $0x1e4] sm:$0xf] %v20678_v58 }
  0x5f   :  { %v1004_v16 = vsel %vm20408_vm7, %v489_v48, %v1003_v63  ;;  %1006 = vst [vmem:[#allocation2 + $0x34] sm:$0xf] %v498_v2  ;;  %v18897_v63 = vld [vmem:[#allocation2 + $0x20] sm:$0xff]  ;;  %v74_v2 = vld [vmem:[#allocation2 + $0x38] sm:$0x1] }
  0x60   :  { %1005 = vst [vmem:[#allocation2 + $0x30] sm:$0xf] %v1004_v16  ;;  %v754_v16 = vsel %vm20326_vm4, %v746_v4, %v753_v13  ;;  %v75_v36 = vsel %vm20226_vm2, 0, %v74_v2  ;;  %v129_v4 = vsel %vm20226_vm2, 0, %v128_v28  ;;  %v19009_v13 = vld [vmem:[%s23871_s1 + $0xa0] sm:$0xff] }
  0x61   :  { %v1067_v19 = vld [vmem:[#allocation2 + $0xc0] sm:$0xf]  ;;  %1070 = vst [vmem:[#allocation2 + $0xc4] sm:$0xf] %v754_v16  ;;  %3409 = vmatpush.bf16.msrb.mxu2 %v19009_v13  ;;  %v20742_v2 = vld [vmem:[%s23872_s0 + $0xb0] sm:$0xf] }
  0x62   :  { %v1068_v48 = vsel %vm20408_vm7, %v745_v27, %v1067_v19  ;;  %76 = vst [vmem:[#allocation2 + $0x38] sm:$0x1] %v75_v36  ;;  %v20716_v27 = vld [vmem:[%s23872_s0 + $0x34] sm:$0xf]  ;;  %2833 = vmatmul.bf16.gmra.mxu3 %v18953_v12  ;;  %v23904_v19 = vshrl.u32 %v20711_v25, 16  ;;  %v19089_v28 = vld [vmem:[%s23871_s1 + $0x120] sm:$0xff] }
  0x63   :  { %1069 = vst [vmem:[#allocation2 + $0xc0] sm:$0xf] %v1068_v48  ;;  %2072 = vmatmul.bf16.gmra.mxu0 %v18897_v63  ;;  %v23905_v48 = vshrl.u32 %v20716_v27, 16  ;;  %v19049_v63 = vld [vmem:[%s23871_s1 + $0xe0] sm:$0xff]  ;;  %v23908_v12 = vshll.u32 %v20711_v25, 16 }
  0x64   :  { %349 = vst [vmem:[#allocation2 + $0x158] sm:$0xf] %v20711_v25  ;;  %2753 = vmatmul.bf16.gmra.mxu1 %v18937_v59  ;;  %v502_v16 = vrot.slane %v23904_v19, 7  ;;  %4090 = vmatpush.bf16.msrb.mxu3 %v19049_v63  ;;  %v20747_v36 = vld [vmem:[%s23872_s0 + $0xb4] sm:$0xf] }
  0x65   :  { %350 = vst [vmem:[#allocation2 + $0x15c] sm:$0xf] %v20716_v27  ;;  %v510_v59 = vrot.slane %v23905_v48, 7  ;;  %4771 = vmatpush.bf16.msrb.mxu0 %v19089_v28  ;;  %v23915_v28 = vshll.u32 %v20742_v2, 16  ;;  %v23912_v19 = vshrl.u32 %v20747_v36, 16  ;;  %v23914_v48 = vshll.u32 %v20747_v36, 16 }
  0x66   :  { %2152 = vmatmul.bf16.gmra.mxu2 %v18913_v6  ;;  %v23907_v6 = vshll.u32 %v20716_v27, 16  ;;  %130 = vst [vmem:[#allocation2 + $0xc8] sm:$0x1] %v129_v4  ;;  %v505_v13 = vor.u32 %v23908_v12, %v502_v16  ;;  %v506_v35 = vrot.slane %v502_v16, 4  ;;  %v23910_v4 = vshrl.u32 %v20742_v2, 16 }
  0x67   :  { %24061 = vst [vmem:[#allocation16_spill] sm:$0xff] %v20742_v2 }
  0x68   :  { %24062 = vst [vmem:[#allocation17_spill] sm:$0xff] %v20747_v36  ;;  %v513_v29 = vor.u32 %v23907_v6, %v510_v59  ;;  %v758_v59 = vrot.slane %v23910_v4, 7  ;;  %v766_v6 = vrot.slane %v23912_v19, 7  ;;  %v18914_v4 = vld [vmem:[#allocation2 + $0xb8] sm:$0xff]  ;;  %v131_v19 = vld [vmem:[#allocation2 + $0xd0] sm:$0x1] }
  0x69   :  { %381 = vst [vmem:[#allocation2 + $0x1e8] sm:$0xf] %v20742_v2  ;;  %v1007_v63 = vld [vmem:[#allocation2 + $0x38] sm:$0xf]  ;;  %4772 = vmatpush.bf16.msrb.mxu0 %v19088_v50  ;;  %v20909_v50 = vld [vmem:[%s23872_s0 + $0x48] sm:$0xf] }
  0x6a   :  { %v514_v8 = vsel %vm20326_vm4, %v506_v35, %v513_v29  ;;  %v1008_v16 = vsel %vm20408_vm7, %v505_v13, %v1007_v63  ;;  %382 = vst [vmem:[#allocation2 + $0x1ec] sm:$0xf] %v20747_v36  ;;  %v761_v12 = vor.u32 %v23915_v28, %v758_v59  ;;  %v762_v49 = vrot.slane %v758_v59, 4  ;;  %v18898_v63 = vld [vmem:[#allocation2 + $0x28] sm:$0xff] }
  0x6b   :  { %1009 = vst [vmem:[#allocation2 + $0x38] sm:$0xf] %v1008_v16  ;;  %v769_v35 = vor.u32 %v23914_v48, %v766_v6  ;;  %v20785_v6 = vld [vmem:[%s23872_s0 + $0x3c] sm:$0xf] }
  0x6c   :  { %1010 = vst [vmem:[#allocation2 + $0x3c] sm:$0xf] %v514_v8  ;;  %v77_v8 = vld [vmem:[#allocation2 + $0x40] sm:$0x1] }
  0x6d   :  { %v1071_v29 = vld [vmem:[#allocation2 + $0xc8] sm:$0xf]  ;;  %v770_v16 = vsel %vm20326_vm4, %v762_v49, %v769_v35  ;;  %v78_v59 = vsel %vm20226_vm2, 0, %v77_v8  ;;  %v132_v49 = vsel %vm20226_vm2, 0, %v131_v19  ;;  %352 = vst [vmem:[#allocation2 + $0x164] sm:$0xf] %v20785_v6 }
  0x6e   :  { %v1072_v13 = vsel %vm20408_vm7, %v761_v12, %v1071_v29  ;;  %1074 = vst [vmem:[#allocation2 + $0xcc] sm:$0xf] %v770_v16  ;;  %v20780_v12 = vld [vmem:[%s23872_s0 + $0x38] sm:$0xf]  ;;  %v23918_v29 = vshrl.u32 %v20785_v6, 16 }
  0x6f   :  { %1073 = vst [vmem:[#allocation2 + $0xc8] sm:$0xf] %v1072_v13  ;;  %v23916_v35 = vshrl.u32 %v20780_v12, 16  ;;  %v20796_v13 = vld [vmem:[%s23872_s0 + $0xb8] sm:$0xf] }
  0x70   :  { %79 = vst [vmem:[#allocation2 + $0x40] sm:$0x1] %v78_v59  ;;  %v20801_v19 = vld [vmem:[%s23872_s0 + $0xbc] sm:$0xf]  ;;  %v23923_v16 = vshrl.u32 %v20796_v13, 16  ;;  %v23926_v8 = vshll.u32 %v20796_v13, 16 }
  0x71   :  { %351 = vst [vmem:[#allocation2 + $0x160] sm:$0xf] %v20780_v12  ;;  %v23924_v59 = vshrl.u32 %v20801_v19, 16  ;;  %v23927_v48 = vshll.u32 %v20801_v19, 16  ;;  %v18956_v45 = vld [vmem:[#allocation2 + $0x1e8] sm:$0xff] }
  0x72   :  { %2838 = vmatmul.bf16.gmra.mxu3 %v18954_v32  ;;  %24063 = vst [vmem:[#allocation18_spill] sm:$0xff] %v20796_v13  ;;  %v518_v32 = vrot.slane %v23916_v35, 7 }
  0x73   :  { %2077 = vmatmul.bf16.gmra.mxu0 %v18898_v63  ;;  %24064 = vst [vmem:[#allocation19_spill] sm:$0xff] %v20801_v19  ;;  %v23921_v63 = vshll.u32 %v20785_v6, 16  ;;  %v782_v1 = vrot.slane %v23924_v59, 7 }
  0x74   :  { %2758 = vmatmul.bf16.gmra.mxu1 %v18938_v22  ;;  %v526_v22 = vrot.slane %v23918_v29, 7  ;;  %133 = vst [vmem:[#allocation2 + $0xd0] sm:$0x1] %v132_v49  ;;  %v522_v35 = vrot.slane %v518_v32, 4  ;;  %v774_v49 = vrot.slane %v23923_v16, 7 }
  0x75   :  { %383 = vst [vmem:[#allocation2 + $0x1f0] sm:$0xf] %v20796_v13 }
  0x76   :  { %2157 = vmatmul.bf16.gmra.mxu2 %v18914_v4  ;;  %v23922_v4 = vshll.u32 %v20780_v12, 16  ;;  %v529_v9 = vor.u32 %v23921_v63, %v526_v22  ;;  %384 = vst [vmem:[#allocation2 + $0x1f4] sm:$0xf] %v20801_v19  ;;  %v777_v22 = vor.u32 %v23926_v8, %v774_v49  ;;  %v778_v63 = vrot.slane %v774_v49, 4  ;;  %v134_v8 = vld [vmem:[#allocation2 + $0xd8] sm:$0x1] }
  0x77   :  { %v1011_v29 = vld [vmem:[#allocation2 + $0x40] sm:$0xf]  ;;  %v18916_v44 = vld [vmem:[#allocation2 + $0xc8] sm:$0xff]  ;;  %355 = vst [vmem:[#allocation2 + $0x170] sm:$0xf] %v20909_v50 }
  0x78   :  { %v521_v28 = vor.u32 %v23922_v4, %v518_v32  ;;  %v530_v33 = vsel %vm20326_vm4, %v522_v35, %v529_v9  ;;  %v785_v4 = vor.u32 %v23927_v48, %v782_v1  ;;  %v18899_v9 = vld [vmem:[#allocation2 + $0x30] sm:$0xff]  ;;  %v18955_v35 = vld [vmem:[#allocation2 + $0x1e0] sm:$0xff] }
  0x79   :  { %1014 = vst [vmem:[#allocation2 + $0x44] sm:$0xf] %v530_v33  ;;  %v20840_v1 = vld [vmem:[%s23872_s0 + $0x40] sm:$0xf]  ;;  %v20848_v33 = vld [vmem:[%s23872_s0 + $0x44] sm:$0xf] }
  0x7a   :  { %v1012_v32 = vsel %vm20408_vm7, %v521_v28, %v1011_v29  ;;  %v786_v16 = vsel %vm20326_vm4, %v778_v63, %v785_v4  ;;  %v18915_v28 = vld [vmem:[#allocation2 + $0xc0] sm:$0xff]  ;;  %v80_v29 = vld [vmem:[#allocation2 + $0x48] sm:$0x1]  ;;  %v23928_v4 = vshrl.u32 %v20840_v1, 16  ;;  %v135_v63 = vsel %vm20226_vm2, 0, %v134_v8 }
  0x7b   :  { %1013 = vst [vmem:[#allocation2 + $0x40] sm:$0xf] %v1012_v32  ;;  %v1075_v59 = vld [vmem:[#allocation2 + $0xd0] sm:$0xf]  ;;  %v81_v49 = vsel %vm20226_vm2, 0, %v80_v29  ;;  %v23931_v8 = vshll.u32 %v20840_v1, 16 }
  0x7c   :  { %v1076_v0 = vsel %vm20408_vm7, %v777_v22, %v1075_v59  ;;  %1078 = vst [vmem:[#allocation2 + $0xd4] sm:$0xf] %v786_v16  ;;  %v18939_v32 = vld [vmem:[#allocation2 + $0x150] sm:$0xff]  ;;  %v19048_v16 = vld [vmem:[%s23871_s1 + $0xd8] sm:$0xff]  ;;  %v23929_v59 = vshrl.u32 %v20848_v33, 16 }
  0x7d   :  { %1077 = vst [vmem:[#allocation2 + $0xd0] sm:$0xf] %v1076_v0  ;;  %v19008_v0 = vld [vmem:[%s23871_s1 + $0x98] sm:$0xff]  ;;  %v20861_v22 = vld [vmem:[%s23872_s0 + $0xc0] sm:$0xf]  ;;  %4091 = vmatpush.bf16.msrb.mxu3 %v19048_v16  ;;  %v18957_v41 = vld [vmem:[#allocation2 + $0x1f0] sm:$0xff] }
  0x7e   :  { %82 = vst [vmem:[#allocation2 + $0x48] sm:$0x1] %v81_v49  ;;  %3410 = vmatpush.bf16.msrb.mxu2 %v19008_v0  ;;  %v20873_v29 = vld [vmem:[%s23872_s0 + $0xc4] sm:$0xf]  ;;  %v23940_v48 = vshll.u32 %v20861_v22, 16 }
  0x7f   :  { %353 = vst [vmem:[#allocation2 + $0x168] sm:$0xf] %v20840_v1  ;;  %v23939_v52 = vshll.u32 %v20873_v29, 16 }
  0x80   :  { %24065 = vst [vmem:[#allocation20_spill] sm:$0xff] %v20861_v22 }
  0x81   :  { %354 = vst [vmem:[#allocation2 + $0x16c] sm:$0xf] %v20848_v33 }
  0x82   :  { %2843 = vmatmul.bf16.gmra.mxu3 %v18955_v35  ;;  %v542_v35 = vrot.slane %v23929_v59, 7  ;;  %136 = vst [vmem:[#allocation2 + $0xd8] sm:$0x1] %v135_v63 }
  0x83   :  { %2082 = vmatmul.bf16.gmra.mxu0 %v18899_v9  ;;  %v534_v9 = vrot.slane %v23928_v4, 7  ;;  %24066 = vst [vmem:[#allocation21_spill] sm:$0xff] %v20873_v29  ;;  %v23936_v4 = vshrl.u32 %v20873_v29, 16 }
  0x84   :  { %2763 = vmatmul.bf16.gmra.mxu1 %v18939_v32  ;;  %v23933_v32 = vshrl.u32 %v20861_v22, 16  ;;  %385 = vst [vmem:[#allocation2 + $0x1f8] sm:$0xf] %v20861_v22  ;;  %v18917_v40 = vld [vmem:[#allocation2 + $0xd0] sm:$0xff] }
  0x85   :  { %v537_v49 = vor.u32 %v23931_v8, %v534_v9  ;;  %v538_v0 = vrot.slane %v534_v9, 4  ;;  %v1015_v16 = vld [vmem:[#allocation2 + $0x48] sm:$0xf]  ;;  %386 = vst [vmem:[#allocation2 + $0x1fc] sm:$0xf] %v20873_v29  ;;  %v798_v8 = vrot.slane %v23936_v4, 7 }
  0x86   :  { %2162 = vmatmul.bf16.gmra.mxu2 %v18915_v28  ;;  %v23934_v28 = vshll.u32 %v20848_v33, 16  ;;  %v790_v59 = vrot.slane %v23933_v32, 7  ;;  %v18900_v4 = vld [vmem:[#allocation2 + $0x38] sm:$0xff] }
  0x87   :  { %v1016_v9 = vsel %vm20408_vm7, %v537_v49, %v1015_v16  ;;  %v801_v30 = vor.u32 %v23939_v52, %v798_v8  ;;  %v20916_v8 = vld [vmem:[%s23872_s0 + $0x4c] sm:$0xf] }
  0x88   :  { %v545_v63 = vor.u32 %v23934_v28, %v542_v35  ;;  %1017 = vst [vmem:[#allocation2 + $0x48] sm:$0xf] %v1016_v9  ;;  %v793_v32 = vor.u32 %v23940_v48, %v790_v59  ;;  %v794_v28 = vrot.slane %v790_v59, 4  ;;  %v137_v9 = vld [vmem:[#allocation2 + $0xe0] sm:$0x1]  ;;  %v18940_v59 = vld [vmem:[#allocation2 + $0x158] sm:$0xff] }
  0x89   :  { %v1079_v16 = vld [vmem:[#allocation2 + $0xd8] sm:$0xf]  ;;  %356 = vst [vmem:[#allocation2 + $0x174] sm:$0xf] %v20916_v8 }
  0x8a   :  { %v546_v35 = vsel %vm20326_vm4, %v538_v0, %v545_v63  ;;  %v802_v49 = vsel %vm20326_vm4, %v794_v28, %v801_v30  ;;  %v1080_v0 = vsel %vm20408_vm7, %v793_v32, %v1079_v16  ;;  %v83_v63 = vld [vmem:[#allocation2 + $0x50] sm:$0x1]  ;;  %v138_v30 = vsel %vm20226_vm2, 0, %v137_v9  ;;  %v20925_v32 = vld [vmem:[%s23872_s0 + $0xc8] sm:$0xf] }
  0x8b   :  { %1018 = vst [vmem:[#allocation2 + $0x4c] sm:$0xf] %v546_v35  ;;  %v84_v35 = vsel %vm20226_vm2, 0, %v83_v63  ;;  %v23941_v28 = vshrl.u32 %v20909_v50, 16  ;;  %v23945_v16 = vshrl.u32 %v20925_v32, 16  ;;  %v23948_v9 = vshll.u32 %v20925_v32, 16 }
  0x8c   :  { %1082 = vst [vmem:[#allocation2 + $0xdc] sm:$0xf] %v802_v49  ;;  %v23947_v49 = vshll.u32 %v20916_v8, 16  ;;  %v20937_v63 = vld [vmem:[%s23872_s0 + $0xcc] sm:$0xf]  ;;  %v18958_v13 = vld [vmem:[#allocation2 + $0x1f8] sm:$0xff] }
  0x8d   :  { %1081 = vst [vmem:[#allocation2 + $0xd8] sm:$0xf] %v1080_v0  ;;  %v806_v52 = vrot.slane %v23945_v16, 7 }
  0x8e   :  { %85 = vst [vmem:[#allocation2 + $0x50] sm:$0x1] %v84_v35 }
  0x8f   :  { %24067 = vst [vmem:[#allocation22_spill] sm:$0xff] %v20925_v32 }
  0x90   :  { %139 = vst [vmem:[#allocation2 + $0xe0] sm:$0x1] %v138_v30  ;;  %v23949_v30 = vshrl.u32 %v20937_v63, 16 }
  0x91   :  { %24068 = vst [vmem:[#allocation23_spill] sm:$0xff] %v20937_v63 }
  0x92   :  { %2848 = vmatmul.bf16.gmra.mxu3 %v18956_v45  ;;  %v23944_v45 = vshll.u32 %v20909_v50, 16  ;;  %387 = vst [vmem:[#allocation2 + $0x200] sm:$0xf] %v20925_v32  ;;  %v814_v16 = vrot.slane %v23949_v30, 7  ;;  %v18902_v22 = vld [vmem:[#allocation2 + $0x48] sm:$0xff] }
  0x93   :  { %2087 = vmatmul.bf16.gmra.mxu0 %v18900_v4  ;;  %v23942_v4 = vshrl.u32 %v20916_v8, 16  ;;  %388 = vst [vmem:[#allocation2 + $0x204] sm:$0xf] %v20937_v63 }
  0x94   :  { %2768 = vmatmul.bf16.gmra.mxu1 %v18940_v59  ;;  %v18918_v29 = vld [vmem:[#allocation2 + $0xd8] sm:$0xff] }
  0x95   :  { %v558_v0 = vrot.slane %v23942_v4, 7  ;;  %v23952_v4 = vshll.u32 %v20937_v63, 16 }
  0x96   :  { %2167 = vmatmul.bf16.gmra.mxu2 %v18916_v44  ;;  %v550_v44 = vrot.slane %v23941_v28, 7  ;;  %v1019_v28 = vld [vmem:[#allocation2 + $0x50] sm:$0xf] }
  0x97   :  { %v561_v48 = vor.u32 %v23947_v49, %v558_v0  ;;  %v817_v49 = vor.u32 %v23952_v4, %v814_v16  ;;  %v140_v16 = vld [vmem:[#allocation2 + $0xe8] sm:$0x1] }
  0x98   :  { %v553_v59 = vor.u32 %v23944_v45, %v550_v44  ;;  %v554_v35 = vrot.slane %v550_v44, 4  ;;  %v809_v44 = vor.u32 %v23948_v9, %v806_v52  ;;  %v810_v45 = vrot.slane %v806_v52, 4  ;;  %v18901_v9 = vld [vmem:[#allocation2 + $0x40] sm:$0xff] }
  0x9a   :  { %v1020_v54 = vsel %vm20408_vm7, %v553_v59, %v1019_v28  ;;  %v562_v0 = vsel %vm20326_vm4, %v554_v35, %v561_v48  ;;  %v1083_v28 = vld [vmem:[#allocation2 + $0xe0] sm:$0xf]  ;;  %v818_v52 = vsel %vm20326_vm4, %v810_v45, %v817_v49  ;;  %v86_v48 = vld [vmem:[#allocation2 + $0x58] sm:$0x1]  ;;  %v20974_v45 = vld [vmem:[%s23872_s0 + $0x50] sm:$0xf] }
  0x9b   :  { %1021 = vst [vmem:[#allocation2 + $0x50] sm:$0xf] %v1020_v54  ;;  %v1084_v59 = vsel %vm20408_vm7, %v809_v44, %v1083_v28  ;;  %v18941_v54 = vld [vmem:[#allocation2 + $0x160] sm:$0xff]  ;;  %v87_v35 = vsel %vm20226_vm2, 0, %v86_v48  ;;  %v19007_v49 = vld [vmem:[%s23871_s1 + $0x90] sm:$0xff] }
  0x9c   :  { %1022 = vst [vmem:[#allocation2 + $0x54] sm:$0xf] %v562_v0  ;;  %v20982_v44 = vld [vmem:[%s23872_s0 + $0x54] sm:$0xf]  ;;  %v20995_v28 = vld [vmem:[%s23872_s0 + $0xd0] sm:$0xf]  ;;  %3411 = vmatpush.bf16.msrb.mxu2 %v19007_v49 }
  0x9d   :  { %1085 = vst [vmem:[#allocation2 + $0xe0] sm:$0xf] %v1084_v59  ;;  %v23959_v59 = vshll.u32 %v20974_v45, 16  ;;  %v23961_v48 = vshll.u32 %v20982_v44, 16  ;;  %v21008_v49 = vld [vmem:[%s23872_s0 + $0xd4] sm:$0xf] }
  0x9e   :  { %v2053_v30 = vpop.f32.mrf.mxu0  ;;  %1086 = vst [vmem:[#allocation2 + $0xe4] sm:$0xf] %v818_v52  ;;  %v23971_v32 = vshrl.u32 %v21008_v49, 16  ;;  %v18959_v36 = vld [vmem:[#allocation2 + $0x200] sm:$0xff] }
  0x9f   :  { %88 = vst [vmem:[#allocation2 + $0x58] sm:$0x1] %v87_v35 }
  0xa0   :  { %v2734_v20 = vpop.f32.mrf.mxu1  ;;  %357 = vst [vmem:[#allocation2 + $0x178] sm:$0xf] %v20974_v45 }
  0xa1   :  { %v20969_v0 = vadd.f32 %v2734_v20, %v2053_v30  ;;  %v23953_v30 = vshrl.u32 %v20974_v45, 16  ;;  %24069 = vst [vmem:[#allocation24_spill] sm:$0xff] %v20995_v28 }
  0xa2   :  { %2853 = vmatmul.bf16.gmra.mxu3 %v18957_v41  ;;  %v23956_v41 = vshrl.u32 %v20982_v44, 16  ;;  %358 = vst [vmem:[#allocation2 + $0x17c] sm:$0xf] %v20982_v44 }
  0xa3   :  { %2092 = vmatmul.bf16.gmra.mxu0 %v18901_v9  ;;  %v141_v9 = vsel %vm20226_vm2, 0, %v140_v16  ;;  %v566_v52 = vrot.slane %v23953_v30, 7  ;;  %24070 = vst [vmem:[#allocation25_spill] sm:$0xff] %v21008_v49  ;;  %v18903_v19 = vld [vmem:[#allocation2 + $0x50] sm:$0xff] }
  0xa4   :  { %2773 = vmatmul.bf16.gmra.mxu1 %v18941_v54  ;;  %v23960_v54 = vshrl.u32 %v20995_v28, 16  ;;  %v574_v20 = vrot.slane %v23956_v41, 7  ;;  %142 = vst [vmem:[#allocation2 + $0xe8] sm:$0x1] %v141_v9  ;;  %v23970_v41 = vshll.u32 %v20995_v28, 16 }
  0xa5   :  { %v2814_v16 = vpop.f32.mrf.mxu3  ;;  %v569_v23 = vor.u32 %v23959_v59, %v566_v52  ;;  %v570_v56 = vrot.slane %v566_v52, 4  ;;  %389 = vst [vmem:[#allocation2 + $0x208] sm:$0xf] %v20995_v28  ;;  %v18919_v2 = vld [vmem:[#allocation2 + $0xe0] sm:$0xff] }
  0xa6   :  { %2172 = vmatmul.bf16.gmra.mxu2 %v18917_v40  ;;  %v19047_v40 = vld [vmem:[%s23871_s1 + $0xd0] sm:$0xff]  ;;  %v2055_v30 = vpop.f32.mrf.mxu0  ;;  %v822_v14 = vrot.slane %v23960_v54, 7  ;;  %v577_v9 = vor.u32 %v23961_v48, %v574_v20  ;;  %390 = vst [vmem:[#allocation2 + $0x20c] sm:$0xf] %v21008_v49 }
  0xa7   :  { %4092 = vmatpush.bf16.msrb.mxu3 %v19047_v40  ;;  %v1023_v40 = vld [vmem:[#allocation2 + $0x58] sm:$0xf]  ;;  %v19087_v20 = vld [vmem:[%s23871_s1 + $0x110] sm:$0xff] }
  0xa8   :  { %v1024_v59 = vsel %vm20408_vm7, %v569_v23, %v1023_v40  ;;  %v826_v52 = vrot.slane %v822_v14, 4  ;;  %v578_v48 = vsel %vm20326_vm4, %v570_v56, %v577_v9  ;;  %4773 = vmatpush.bf16.msrb.mxu0 %v19087_v20  ;;  %v24072_v23 = vshll.u32 %v21008_v49, 16  ;;  %v143_v20 = vld [vmem:[#allocation2 + $0xf0] sm:$0x1] }
  0xa9   :  { %v2133_v35 = vpop.f32.mrf.mxu2  ;;  %1025 = vst [vmem:[#allocation2 + $0x58] sm:$0xf] %v1024_v59 }
  0xaa   :  { %v21010_v4 = vadd.f32 %v2814_v16, %v2133_v35  ;;  %v2736_v16 = vpop.f32.mrf.mxu1  ;;  %v825_v35 = vor.u32 %v23970_v41, %v822_v14  ;;  %1026 = vst [vmem:[#allocation2 + $0x5c] sm:$0xf] %v578_v48  ;;  %v89_v48 = vld [vmem:[#allocation2 + $0x60] sm:$0x1]  ;;  %v18942_v41 = vld [vmem:[#allocation2 + $0x168] sm:$0xff] }
  0xab   :  { %v21025_v54 = vadd.f32 %v2736_v16, %v2055_v30  ;;  %v1087_v40 = vld [vmem:[#allocation2 + $0xe8] sm:$0xf] }
  0xac   :  { %24071 = vst [vmem:[#allocation26_spill] sm:$0xff] %v21010_v4  ;;  %v830_v4 = vrot.slane %v23971_v32, 7  ;;  %v1088_v14 = vsel %vm20408_vm7, %v825_v35, %v1087_v40  ;;  %v21051_v35 = vld [vmem:[%s23872_s0 + $0x58] sm:$0xf] }
  0xad   :  { %v2816_v63 = vpop.f32.mrf.mxu3  ;;  %1089 = vst [vmem:[#allocation2 + $0xe8] sm:$0xf] %v1088_v14  ;;  %v21067_v40 = vld [vmem:[%s23872_s0 + $0xd8] sm:$0xf]  ;;  %v18960_v53 = vld [vmem:[#allocation2 + $0x208] sm:$0xff] }
  0xae   :  { %v833_v30 = vor.u32 %v24072_v23, %v830_v4  ;;  %v2058_v9 = vpop.f32.mrf.mxu0  ;;  %v90_v4 = vsel %vm20226_vm2, 0, %v89_v48  ;;  %359 = vst [vmem:[#allocation2 + $0x180] sm:$0xf] %v21051_v35  ;;  %v21079_v48 = vld [vmem:[%s23872_s0 + $0xdc] sm:$0xf] }
  0xaf   :  { %91 = vst [vmem:[#allocation2 + $0x60] sm:$0x1] %v90_v4 }
  0xb0   :  { %v834_v56 = vsel %vm20326_vm4, %v826_v52, %v833_v30  ;;  %v21058_v52 = vld [vmem:[%s23872_s0 + $0x5c] sm:$0xf]  ;;  %v23972_v30 = vshrl.u32 %v21051_v35, 16  ;;  %24074 = vst [vmem:[#allocation28_spill] sm:$0xff] %v21067_v40 }
  0xb1   :  { %v2135_v16 = vpop.f32.mrf.mxu2  ;;  %1090 = vst [vmem:[#allocation2 + $0xec] sm:$0xf] %v834_v56  ;;  %v23979_v56 = vshrl.u32 %v21067_v40, 16  ;;  %v18904_v58 = vld [vmem:[#allocation2 + $0x58] sm:$0xff] }
  0xb2   :  { %v21042_v59 = vadd.f32 %v2816_v63, %v2135_v16  ;;  %v2739_v23 = vpop.f32.mrf.mxu1  ;;  %v144_v63 = vsel %vm20226_vm2, 0, %v143_v20  ;;  %2858 = vmatmul.bf16.gmra.mxu3 %v18958_v13  ;;  %360 = vst [vmem:[#allocation2 + $0x184] sm:$0xf] %v21058_v52  ;;  %v582_v13 = vrot.slane %v23972_v30, 7  ;;  %v23988_v20 = vshrl.u32 %v21079_v48, 16 }
  0xb3   :  { %v21046_v32 = vadd.f32 %v2739_v23, %v2058_v9  ;;  %2097 = vmatmul.bf16.gmra.mxu0 %v18902_v22  ;;  %v23973_v22 = vshrl.u32 %v21058_v52, 16  ;;  %145 = vst [vmem:[#allocation2 + $0xf0] sm:$0x1] %v144_v63  ;;  %v838_v16 = vrot.slane %v23979_v56, 7  ;;  %v19131_v56 = vld [vmem:[%s23871_s1 + $0x170] sm:$0xff] }
  0xb4   :  { %24073 = vst [vmem:[#allocation27_spill] sm:$0xff] %v21042_v59  ;;  %2778 = vmatmul.bf16.gmra.mxu1 %v18942_v41  ;;  %v586_v30 = vrot.slane %v582_v13, 4  ;;  %v846_v49 = vrot.slane %v23988_v20, 7 }
  0xb5   :  { %v2819_v14 = vpop.f32.mrf.mxu3  ;;  %v590_v9 = vrot.slane %v23973_v22, 7  ;;  %24075 = vst [vmem:[#allocation29_spill] sm:$0xff] %v21079_v48  ;;  %v24077_v22 = vshll.u32 %v21058_v52, 16  ;;  %5450 = vmatpush.bf16.msrb.mxu1 %v19131_v56  ;;  %v92_v56 = vld [vmem:[#allocation2 + $0x68] sm:$0x1] }
  0xb6   :  { %2177 = vmatmul.bf16.gmra.mxu2 %v18918_v29  ;;  %v23978_v29 = vshll.u32 %v21051_v35, 16  ;;  %391 = vst [vmem:[#allocation2 + $0x210] sm:$0xf] %v21067_v40  ;;  %v2060_v23 = vpop.f32.mrf.mxu0  ;;  %v1027_v28 = vld [vmem:[#allocation2 + $0x60] sm:$0xf] }
  0xb7   :  { %392 = vst [vmem:[#allocation2 + $0x214] sm:$0xf] %v21079_v48  ;;  %v593_v59 = vor.u32 %v24077_v22, %v590_v9  ;;  %v842_v9 = vrot.slane %v838_v16, 4 }
  0xb8   :  { %v585_v63 = vor.u32 %v23978_v29, %v582_v13  ;;  %v24078_v29 = vshll.u32 %v21067_v40, 16 }
  0xb9   :  { %v2138_v41 = vpop.f32.mrf.mxu2  ;;  %v594_v22 = vsel %vm20326_vm4, %v586_v30, %v593_v59 }
  0xba   :  { %v21083_v4 = vadd.f32 %v2819_v14, %v2138_v41  ;;  %v2741_v41 = vpop.f32.mrf.mxu1  ;;  %v1028_v14 = vsel %vm20408_vm7, %v585_v63, %v1027_v28  ;;  %v841_v13 = vor.u32 %v24078_v29, %v838_v16  ;;  %1030 = vst [vmem:[#allocation2 + $0x64] sm:$0xf] %v594_v22  ;;  %v24079_v28 = vshll.u32 %v21079_v48, 16  ;;  %v1091_v29 = vld [vmem:[#allocation2 + $0xf0] sm:$0xf] }
  0xbb   :  { %1029 = vst [vmem:[#allocation2 + $0x60] sm:$0xf] %v1028_v14  ;;  %v146_v14 = vld [vmem:[#allocation2 + $0xf8] sm:$0x1]  ;;  %v93_v22 = vsel %vm20226_vm2, 0, %v92_v56 }
  0xbc   :  { %24076 = vst [vmem:[#allocation30_spill] sm:$0xff] %v21083_v4  ;;  %v21098_v4 = vadd.f32 %v2741_v41, %v2060_v23  ;;  %v849_v63 = vor.u32 %v24079_v28, %v846_v49  ;;  %v1092_v23 = vsel %vm20408_vm7, %v841_v13, %v1091_v29  ;;  %v18943_v49 = vld [vmem:[#allocation2 + $0x170] sm:$0xff]  ;;  %v19006_v29 = vld [vmem:[%s23871_s1 + $0x88] sm:$0xff] }
  0xbd   :  { %v2821_v40 = vpop.f32.mrf.mxu3  ;;  %1093 = vst [vmem:[#allocation2 + $0xf0] sm:$0xf] %v1092_v23  ;;  %3412 = vmatpush.bf16.msrb.mxu2 %v19006_v29 }
  0xbe   :  { %v850_v59 = vsel %vm20326_vm4, %v842_v9, %v849_v63  ;;  %v2063_v16 = vpop.f32.mrf.mxu0  ;;  %94 = vst [vmem:[#allocation2 + $0x68] sm:$0x1] %v93_v22  ;;  %v21122_v9 = vld [vmem:[%s23872_s0 + $0x60] sm:$0xf]  ;;  %v147_v63 = vsel %vm20226_vm2, 0, %v146_v14 }
  0xbf   :  { %1094 = vst [vmem:[#allocation2 + $0xf4] sm:$0xf] %v850_v59  ;;  %v23996_v59 = vshll.u32 %v21122_v9, 16  ;;  %v21155_v22 = vld [vmem:[%s23872_s0 + $0xe4] sm:$0xf] }
  0xc0   :  { %361 = vst [vmem:[#allocation2 + $0x188] sm:$0xf] %v21122_v9  ;;  %v24001_v57 = vshrl.u32 %v21155_v22, 16 }
  0xc1   :  { %v2140_v41 = vpop.f32.mrf.mxu2  ;;  %148 = vst [vmem:[#allocation2 + $0xf8] sm:$0x1] %v147_v63 }
  0xc2   :  { %v21113_v30 = vadd.f32 %v2821_v40, %v2140_v41  ;;  %v2744_v13 = vpop.f32.mrf.mxu1  ;;  %v21127_v40 = vld [vmem:[%s23872_s0 + $0x64] sm:$0xf]  ;;  %2863 = vmatmul.bf16.gmra.mxu3 %v18959_v36  ;;  %v19046_v41 = vld [vmem:[%s23871_s1 + $0xc8] sm:$0xff]  ;;  %24082 = vst [vmem:[#allocation33_spill] sm:$0xff] %v21155_v22 }
  0xc3   :  { %v21117_v28 = vadd.f32 %v2744_v13, %v2063_v16  ;;  %2102 = vmatmul.bf16.gmra.mxu0 %v18903_v19  ;;  %v23989_v19 = vshrl.u32 %v21122_v9, 16  ;;  %v23990_v23 = vshrl.u32 %v21127_v40, 16  ;;  %362 = vst [vmem:[#allocation2 + $0x18c] sm:$0xf] %v21127_v40  ;;  %4093 = vmatpush.bf16.msrb.mxu3 %v19046_v41  ;;  %v24084_v63 = vshll.u32 %v21127_v40, 16 }
  0xc4   :  { %24080 = vst [vmem:[#allocation31_spill] sm:$0xff] %v21113_v30  ;;  %2783 = vmatmul.bf16.gmra.mxu1 %v18943_v49 }
  0xc5   :  { %v598_v36 = vrot.slane %v23989_v19, 7  ;;  %v606_v16 = vrot.slane %v23990_v23, 7  ;;  %v2824_v49 = vpop.f32.mrf.mxu3  ;;  %v1031_v41 = vld [vmem:[#allocation2 + $0x68] sm:$0xf]  ;;  %394 = vst [vmem:[#allocation2 + $0x21c] sm:$0xf] %v21155_v22 }
  0xc6   :  { %2182 = vmatmul.bf16.gmra.mxu2 %v18919_v2  ;;  %v21144_v2 = vld [vmem:[%s23872_s0 + $0xe0] sm:$0xf]  ;;  %v2065_v19 = vpop.f32.mrf.mxu0 }
  0xc7   :  { %24081 = vst [vmem:[#allocation32_spill] sm:$0xff] %v21144_v2  ;;  %v23995_v13 = vshrl.u32 %v21144_v2, 16  ;;  %v601_v23 = vor.u32 %v23996_v59, %v598_v36  ;;  %v602_v56 = vrot.slane %v598_v36, 4  ;;  %v609_v30 = vor.u32 %v24084_v63, %v606_v16  ;;  %v19086_v63 = vld [vmem:[%s23871_s1 + $0x108] sm:$0xff] }
  0xc8   :  { %393 = vst [vmem:[#allocation2 + $0x218] sm:$0xf] %v21144_v2  ;;  %4774 = vmatpush.bf16.msrb.mxu0 %v19086_v63  ;;  %v95_v63 = vld [vmem:[#allocation2 + $0x70] sm:$0x1] }
  0xc9   :  { %v2143_v14 = vpop.f32.mrf.mxu2  ;;  %v854_v48 = vrot.slane %v23995_v13, 7  ;;  %v1032_v36 = vsel %vm20408_vm7, %v601_v23, %v1031_v41  ;;  %v24085_v13 = vshll.u32 %v21144_v2, 16 }
  0xca   :  { %v21159_v20 = vadd.f32 %v2824_v49, %v2143_v14  ;;  %v2746_v14 = vpop.f32.mrf.mxu1  ;;  %v610_v49 = vsel %vm20326_vm4, %v602_v56, %v609_v30  ;;  %1033 = vst [vmem:[#allocation2 + $0x68] sm:$0xf] %v1032_v36  ;;  %v24086_v30 = vshll.u32 %v21155_v22, 16  ;;  %v1095_v56 = vld [vmem:[#allocation2 + $0xf8] sm:$0xf]  ;;  %v18920_v36 = vld [vmem:[#allocation2 + $0xe8] sm:$0xff] }
  0xcb   :  { %v21175_v16 = vadd.f32 %v2746_v14, %v2065_v19  ;;  %v857_v59 = vor.u32 %v24085_v13, %v854_v48  ;;  %v858_v29 = vrot.slane %v854_v48, 4  ;;  %1034 = vst [vmem:[#allocation2 + $0x6c] sm:$0xf] %v610_v49 }
  0xcc   :  { %24083 = vst [vmem:[#allocation34_spill] sm:$0xff] %v21159_v20  ;;  %v862_v20 = vrot.slane %v24001_v57, 7  ;;  %v149_v57 = vld [vmem:[#allocation2 + $0x100] sm:$0x1] }
  0xcd   :  { %v1096_v19 = vsel %vm20408_vm7, %v857_v59, %v1095_v56  ;;  %v2826_v14 = vpop.f32.mrf.mxu3 }
  0xce   :  { %v865_v23 = vor.u32 %v24086_v30, %v862_v20  ;;  %1097 = vst [vmem:[#allocation2 + $0xf8] sm:$0xf] %v1096_v19  ;;  %v18944_v20 = vld [vmem:[#allocation2 + $0x178] sm:$0xff]  ;;  %v96_v30 = vsel %vm20226_vm2, 0, %v95_v63  ;;  %v150_v19 = vsel %vm20226_vm2, 0, %v149_v57 }
  0xcf   :  { %97 = vst [vmem:[#allocation2 + $0x70] sm:$0x1] %v96_v30  ;;  %v21220_v57 = vld [vmem:[%s23872_s0 + $0xec] sm:$0xf] }
  0xd0   :  { %v866_v48 = vsel %vm20326_vm4, %v858_v29, %v865_v23  ;;  %v2068_v49 = vpop.f32.mrf.mxu0  ;;  %v21199_v29 = vld [vmem:[%s23872_s0 + $0x68] sm:$0xf]  ;;  %v21204_v23 = vld [vmem:[%s23872_s0 + $0x6c] sm:$0xf]  ;;  %24089 = vst [vmem:[#allocation37_spill] sm:$0xff] %v21220_v57  ;;  %v24020_v22 = vshll.u32 %v21220_v57, 16 }
  0xd1   :  { %v2145_v41 = vpop.f32.mrf.mxu2  ;;  %1098 = vst [vmem:[#allocation2 + $0xfc] sm:$0xf] %v866_v48 }
  0xd2   :  { %v21190_v13 = vadd.f32 %v2826_v14, %v2145_v41  ;;  %v2749_v59 = vpop.f32.mrf.mxu1  ;;  %2868 = vmatmul.bf16.gmra.mxu3 %v18960_v53  ;;  %v24006_v41 = vshrl.u32 %v21199_v29, 16  ;;  %v24009_v14 = vshrl.u32 %v21204_v23, 16  ;;  %363 = vst [vmem:[#allocation2 + $0x190] sm:$0xf] %v21199_v29 }
  0xd3   :  { %v21194_v56 = vadd.f32 %v2749_v59, %v2068_v49  ;;  %2107 = vmatmul.bf16.gmra.mxu0 %v18904_v58  ;;  %364 = vst [vmem:[#allocation2 + $0x194] sm:$0xf] %v21204_v23  ;;  %v21215_v58 = vld [vmem:[%s23872_s0 + $0xe8] sm:$0xf]  ;;  %v24016_v49 = vshll.u32 %v21204_v23, 16 }
  0xd4   :  { %24087 = vst [vmem:[#allocation35_spill] sm:$0xff] %v21190_v13  ;;  %2788 = vmatmul.bf16.gmra.mxu1 %v18944_v20  ;;  %v614_v53 = vrot.slane %v24006_v41, 7  ;;  %v622_v48 = vrot.slane %v24009_v14, 7  ;;  %v24015_v30 = vshrl.u32 %v21215_v58, 16  ;;  %v24017_v13 = vshrl.u32 %v21220_v57, 16 }
  0xd5   :  { %24088 = vst [vmem:[#allocation36_spill] sm:$0xff] %v21215_v58  ;;  %v2829_v20 = vpop.f32.mrf.mxu3 }
  0xd6   :  { %2187 = vmatmul.bf16.gmra.mxu2 %v18920_v36  ;;  %v24014_v36 = vshll.u32 %v21199_v29, 16  ;;  %151 = vst [vmem:[#allocation2 + $0x100] sm:$0x1] %v150_v19  ;;  %v618_v14 = vrot.slane %v614_v53, 4  ;;  %v625_v19 = vor.u32 %v24016_v49, %v622_v48  ;;  %v1035_v26 = vld [vmem:[#allocation2 + $0x70] sm:$0xf] }
  0xd7   :  { %395 = vst [vmem:[#allocation2 + $0x220] sm:$0xf] %v21215_v58  ;;  %v870_v59 = vrot.slane %v24015_v30, 7  ;;  %v878_v31 = vrot.slane %v24017_v13, 7  ;;  %v19130_v48 = vld [vmem:[%s23871_s1 + $0x168] sm:$0xff]  ;;  %v24091_v30 = vshll.u32 %v21215_v58, 16 }
  0xd8   :  { %v2070_v41 = vpop.f32.mrf.mxu0  ;;  %v617_v7 = vor.u32 %v24014_v36, %v614_v53  ;;  %396 = vst [vmem:[#allocation2 + $0x224] sm:$0xf] %v21220_v57  ;;  %5451 = vmatpush.bf16.msrb.mxu1 %v19130_v48  ;;  %v18961_v57 = vld [vmem:[#allocation2 + $0x210] sm:$0xff] }
  0xd9   :  { %v2148_v63 = vpop.f32.mrf.mxu2  ;;  %v873_v49 = vor.u32 %v24091_v30, %v870_v59  ;;  %v874_v13 = vrot.slane %v870_v59, 4  ;;  %v18921_v59 = vld [vmem:[#allocation2 + $0xf0] sm:$0xff] }
  0xda   :  { %v21232_v2 = vadd.f32 %v2829_v20, %v2148_v63  ;;  %v2751_v63 = vpop.f32.mrf.mxu1  ;;  %v626_v20 = vsel %vm20326_vm4, %v618_v14, %v625_v19  ;;  %v1036_v53 = vsel %vm20408_vm7, %v617_v7, %v1035_v26 }
  0xdb   :  { %v21248_v36 = vadd.f32 %v2751_v63, %v2070_v41  ;;  %1037 = vst [vmem:[#allocation2 + $0x70] sm:$0xf] %v1036_v53  ;;  %v18905_v63 = vld [vmem:[#allocation2 + $0x60] sm:$0xff] }
  0xdc   :  { %24090 = vst [vmem:[#allocation38_spill] sm:$0xff] %v21232_v2  ;;  %v881_v2 = vor.u32 %v24020_v22, %v878_v31  ;;  %v98_v31 = vld [vmem:[#allocation2 + $0x78] sm:$0x1] }
  0xdd   :  { %1038 = vst [vmem:[#allocation2 + $0x74] sm:$0xf] %v626_v20  ;;  %v1099_v26 = vld [vmem:[#allocation2 + $0x100] sm:$0xf]  ;;  %v2831_v19 = vpop.f32.mrf.mxu3  ;;  %v99_v48 = vsel %vm20226_vm2, 0, %v98_v31 }
  0xde   :  { %v882_v14 = vsel %vm20326_vm4, %v874_v13, %v881_v2  ;;  %v1100_v7 = vsel %vm20408_vm7, %v873_v49, %v1099_v26  ;;  %v18945_v20 = vld [vmem:[#allocation2 + $0x180] sm:$0xff]  ;;  %v152_v2 = vld [vmem:[#allocation2 + $0x108] sm:$0x1]  ;;  %100 = vst [vmem:[#allocation2 + $0x78] sm:$0x1] %v99_v48 }
  0xdf   :  { %1102 = vst [vmem:[#allocation2 + $0x104] sm:$0xf] %v882_v14  ;;  %v21270_v49 = vld [vmem:[%s23872_s0 + $0x70] sm:$0xf]  ;;  %v21275_v14 = vld [vmem:[%s23872_s0 + $0x74] sm:$0xf] }
  0xe0   :  { %1101 = vst [vmem:[#allocation2 + $0x100] sm:$0xf] %v1100_v7  ;;  %v2073_v30 = vpop.f32.mrf.mxu0  ;;  %v19005_v26 = vld [vmem:[%s23871_s1 + $0x80] sm:$0xff]  ;;  %v24021_v7 = vshrl.u32 %v21270_v49, 16  ;;  %v24097_v61 = vshll.u32 %v21275_v14, 16 }
  0xe1   :  { %v2150_v41 = vpop.f32.mrf.mxu2  ;;  %365 = vst [vmem:[#allocation2 + $0x198] sm:$0xf] %v21270_v49  ;;  %3413 = vmatpush.bf16.msrb.mxu2 %v19005_v26 }
  0xe2   :  { %v21261_v53 = vadd.f32 %v2831_v19, %v2150_v41  ;;  %v2754_v13 = vpop.f32.mrf.mxu1  ;;  %2873 = vmatmul.bf16.gmra.mxu3 %v18961_v57  ;;  %v24022_v41 = vshrl.u32 %v21275_v14, 16  ;;  %v153_v19 = vsel %vm20226_vm2, 0, %v152_v2  ;;  %366 = vst [vmem:[#allocation2 + $0x19c] sm:$0xf] %v21275_v14  ;;  %v21292_v57 = vld [vmem:[%s23872_s0 + $0xf0] sm:$0xf] }
  0xe3   :  { %v21265_v22 = vadd.f32 %v2754_v13, %v2073_v30  ;;  %2112 = vmatmul.bf16.gmra.mxu0 %v18905_v63  ;;  %v19045_v63 = vld [vmem:[%s23871_s1 + $0xc0] sm:$0xff]  ;;  %24093 = vst [vmem:[#allocation40_spill] sm:$0xff] %v21292_v57  ;;  %v630_v30 = vrot.slane %v24021_v7, 7  ;;  %v21303_v13 = vld [vmem:[%s23872_s0 + $0xf4] sm:$0xf]  ;;  %v24031_v26 = vshrl.u32 %v21292_v57, 16 }
  0xe4   :  { %24092 = vst [vmem:[#allocation39_spill] sm:$0xff] %v21261_v53  ;;  %2793 = vmatmul.bf16.gmra.mxu1 %v18945_v20  ;;  %v638_v31 = vrot.slane %v24022_v41, 7  ;;  %4094 = vmatpush.bf16.msrb.mxu3 %v19045_v63  ;;  %v24096_v41 = vshll.u32 %v21270_v49, 16  ;;  %v24036_v47 = vshrl.u32 %v21303_v13, 16 }
  0xe5   :  { %v2834_v2 = vpop.f32.mrf.mxu3  ;;  %154 = vst [vmem:[#allocation2 + $0x108] sm:$0x1] %v153_v19  ;;  %v634_v20 = vrot.slane %v630_v30, 4  ;;  %v1039_v19 = vld [vmem:[#allocation2 + $0x78] sm:$0xf]  ;;  %v886_v62 = vrot.slane %v24031_v26, 7 }
  0xe6   :  { %2192 = vmatmul.bf16.gmra.mxu2 %v18921_v59  ;;  %24094 = vst [vmem:[#allocation41_spill] sm:$0xff] %v21303_v13  ;;  %v633_v58 = vor.u32 %v24096_v41, %v630_v30  ;;  %v641_v63 = vor.u32 %v24097_v61, %v638_v31  ;;  %v19085_v30 = vld [vmem:[%s23871_s1 + $0x100] sm:$0xff]  ;;  %v24098_v31 = vshll.u32 %v21292_v57, 16 }
  0xe7   :  { %397 = vst [vmem:[#allocation2 + $0x228] sm:$0xf] %v21292_v57  ;;  %v890_v7 = vrot.slane %v886_v62, 4  ;;  %4775 = vmatpush.bf16.msrb.mxu0 %v19085_v30  ;;  %v18922_v57 = vld [vmem:[#allocation2 + $0xf8] sm:$0xff] }
  0xe8   :  { %v2075_v59 = vpop.f32.mrf.mxu0  ;;  %v1040_v41 = vsel %vm20408_vm7, %v633_v58, %v1039_v19  ;;  %398 = vst [vmem:[#allocation2 + $0x22c] sm:$0xf] %v21303_v13  ;;  %v889_v26 = vor.u32 %v24098_v31, %v886_v62  ;;  %v24099_v58 = vshll.u32 %v21303_v13, 16 }
  0xe9   :  { %v2153_v48 = vpop.f32.mrf.mxu2  ;;  %1041 = vst [vmem:[#allocation2 + $0x78] sm:$0xf] %v1040_v41 }
  0xea   :  { %v21307_v53 = vadd.f32 %v2834_v2, %v2153_v48  ;;  %v2756_v48 = vpop.f32.mrf.mxu1  ;;  %v642_v2 = vsel %vm20326_vm4, %v634_v20, %v641_v63 }
  0xeb   :  { %v21323_v61 = vadd.f32 %v2756_v48, %v2075_v59  ;;  %1042 = vst [vmem:[#allocation2 + $0x7c] sm:$0xf] %v642_v2  ;;  %v18906_v48 = vld [vmem:[#allocation2 + $0x68] sm:$0xff] }
  0xec   :  { %24095 = vst [vmem:[#allocation42_spill] sm:$0xff] %v21307_v53  ;;  %v894_v53 = vrot.slane %v24036_v47, 7  ;;  %v1103_v63 = vld [vmem:[#allocation2 + $0x108] sm:$0xf]  ;;  %v18962_v47 = vld [vmem:[#allocation2 + $0x218] sm:$0xff] }
  0xed   :  { %v2836_v19 = vpop.f32.mrf.mxu3  ;;  %v1104_v41 = vsel %vm20408_vm7, %v889_v26, %v1103_v63  ;;  %v18946_v2 = vld [vmem:[#allocation2 + $0x188] sm:$0xff] }
  0xee   :  { %v897_v20 = vor.u32 %v24099_v58, %v894_v53  ;;  %1105 = vst [vmem:[#allocation2 + $0x108] sm:$0xf] %v1104_v41 }
  0xf0   :  { %v898_v51 = vsel %vm20326_vm4, %v890_v7, %v897_v20  ;;  %v2078_v62 = vpop.f32.mrf.mxu0 }
  0xf1   :  { %v2155_v59 = vpop.f32.mrf.mxu2  ;;  %1106 = vst [vmem:[#allocation2 + $0x10c] sm:$0xf] %v898_v51 }
  0xf2   :  { %v21338_v31 = vadd.f32 %v2836_v19, %v2155_v59  ;;  %v2759_v30 = vpop.f32.mrf.mxu1  ;;  %2878 = vmatmul.bf16.gmra.mxu3 %v18962_v47  ;;  %v164_v59 = vld [vmem:[#allocation2 + $0x244] sm:$0x8] }
  0xf3   :  { %v21340_v53 = vadd.f32 %v2759_v30, %v2078_v62  ;;  %2117 = vmatmul.bf16.gmra.mxu0 %v18906_v48  ;;  %v165_v19 = vsel %vm21344_vm10, 0, %v164_v59  ;;  %v19129_v47 = vld [vmem:[%s23871_s1 + $0x160] sm:$0xff]  ;;  %v24105_v62 = vshrl.u32 %v20245_v10, 16  ;;  %v24106_v30 = vshll.u32 %v20245_v10, 16  ;;  %v18907_v59 = vld [vmem:[#allocation2 + $0x70] sm:$0xff] }
  0xf4   :  { %24100 = vst [vmem:[#allocation43_spill] sm:$0xff] %v21338_v31  ;;  %2798 = vmatmul.bf16.gmra.mxu1 %v18946_v2  ;;  %v18947_v31 = vld [vmem:[#allocation2 + $0x190] sm:$0xff]  ;;  %v24108_v10 = vor.u32 %v20267_v18, %v20265_v17  ;;  %v19172_v18 = vld [vmem:[%s23871_s1 + $0x1b8] sm:$0xff] }
  0xf5   :  { %v2839_v7 = vpop.f32.mrf.mxu3  ;;  %166 = vst [vmem:[#allocation2 + $0x244] sm:$0x8] %v165_v19  ;;  %5452 = vmatpush.bf16.msrb.mxu1 %v19129_v47  ;;  %v1114_v2 = vrot.slane %v24105_v62, 4  ;;  %6131 = vmatpush.bf16.msra.mxu2 %v19172_v18  ;;  %v170_v18 = vld [vmem:[#allocation2 + $0x254] sm:$0x8] }
  0xf6   :  { %2197 = vmatmul.bf16.gmra.mxu2 %v18922_v57  ;;  %v167_v57 = vld [vmem:[#allocation2 + $0x24c] sm:$0x8]  ;;  %v1122_v62 = vrot.slane %v24108_v10, 4 }
  0xf7   :  { %v168_v41 = vsel %vm21344_vm10, 0, %v167_v57  ;;  %v18963_v57 = vld [vmem:[#allocation2 + $0x220] sm:$0xff] }
  0xf8   :  { %v2080_v26 = vpop.f32.mrf.mxu0  ;;  %169 = vst [vmem:[#allocation2 + $0x24c] sm:$0x8] %v168_v41 }
  0xf9   :  { %v2158_v58 = vpop.f32.mrf.mxu2 }
  0xfa   :  { %v21342_v20 = vadd.f32 %v2839_v7, %v2158_v58  ;;  %v2761_v51 = vpop.f32.mrf.mxu1  ;;  %v1115_v58 = vrot.slane %v24106_v30, 5 }
  0xfb   :  { %v21350_v48 = vadd.f32 %v2761_v51, %v2080_v26  ;;  %v19128_v51 = vld [vmem:[%s23871_s1 + $0x158] sm:$0xff] }
  0xfc   :  { %24101 = vst [vmem:[#allocation44_spill] sm:$0xff] %v21342_v20  ;;  %v18923_v20 = vld [vmem:[#allocation2 + $0x100] sm:$0xff]  ;;  %5453 = vmatpush.bf16.msrb.mxu1 %v19128_v51  ;;  %v1116_v30 = vor.u32 %v1115_v58, %v1114_v2  ;;  %v19212_v2 = vld [vmem:[%s23871_s1 + $0x1f8] sm:$0xff] }
  0xfd   :  { %24104 = vst [vmem:[#allocation45_spill] sm:$0xff] %v21350_v48  ;;  %v2841_v26 = vpop.f32.mrf.mxu3  ;;  %6813 = vmatpush.bf16.msra.mxu3 %v19212_v2  ;;  %v171_v2 = vsel %vm21344_vm10, 0, %v170_v18  ;;  %v24120_v18 = vshll.u32 %v20322_v38, 16 }
  0xfe   :  { %v1117_v58 = vrot.slane %v1116_v30, 4  ;;  %172 = vst [vmem:[#allocation2 + $0x254] sm:$0x8] %v171_v2 }
 0x100   :  { %v2083_v47 = vpop.f32.mrf.mxu0 }
 0x101   :  { %v2160_v7 = vpop.f32.mrf.mxu2 }
 0x102   :  { %v21364_v19 = vadd.f32 %v2841_v26, %v2160_v7  ;;  %v2764_v41 = vpop.f32.mrf.mxu1  ;;  %v19127_v7 = vld [vmem:[%s23871_s1 + $0x150] sm:$0xff]  ;;  %2883 = vmatmul.bf16.gmra.mxu3 %v18963_v57 }
 0x103   :  { %v21375_v21 = vadd.f32 %v2764_v41, %v2083_v47  ;;  %2122 = vmatmul.bf16.gmra.mxu0 %v18907_v59  ;;  %v1469_v59 = vld [vmem:[#allocation2 + $0x24c] sm:$0xf]  ;;  %5454 = vmatpush.bf16.msrb.mxu1 %v19127_v7 }
 0x104   :  { %24107 = vst [vmem:[#allocation46_spill] sm:$0xff] %v21364_v19  ;;  %2803 = vmatmul.bf16.gmra.mxu1 %v18947_v31  ;;  %v1470_v51 = vsel %vm21371_vm12, %v1122_v62, %v1469_v59  ;;  %v19126_v31 = vld [vmem:[%s23871_s1 + $0x148] sm:$0xff]  ;;  %v19252_v62 = vld [vmem:[%s23871_s1 + $0x238] sm:$0xff] }
 0x105   :  { %24111 = vst [vmem:[#allocation47_spill] sm:$0xff] %v21375_v21  ;;  %v2844_v57 = vpop.f32.mrf.mxu3  ;;  %7495 = vmatpush.bf16.msra.mxu0 %v19252_v62  ;;  %v24119_v62 = vshll.u32 %v20317_v37, 16  ;;  %v1127_v21 = vrot.slane %v24120_v18, 5  ;;  %v19053_v18 = vld [vmem:[#allocation2 + $0x128] sm:$0xff] }
 0x106   :  { %2202 = vmatmul.bf16.gmra.mxu2 %v18923_v20  ;;  %v1119_v20 = vsel %vm21387_vm14, %v1117_v58, %v20265_v17  ;;  %1471 = vst [vmem:[#allocation2 + $0x24c] sm:$0xf] %v1470_v51  ;;  %v19125_v17 = vld [vmem:[%s23871_s1 + $0x140] sm:$0xff]  ;;  %v24116_v58 = vshrl.u32 %v20322_v38, 16 }
 0x107   :  { %1467 = vst [vmem:[#allocation2 + $0x248] sm:$0xf] %v1119_v20  ;;  %5455 = vmatpush.bf16.msrb.mxu1 %v19126_v31 }
 0x108   :  { %v2085_v41 = vpop.f32.mrf.mxu0  ;;  %v1129_v59 = vrot.slane %v24116_v58, 4  ;;  %v18948_v58 = vld [vmem:[#allocation2 + $0x198] sm:$0xff] }
 0x109   :  { %v2163_v47 = vpop.f32.mrf.mxu2 }
 0x10a   :  { %v21399_v10 = vadd.f32 %v2844_v57, %v2163_v47  ;;  %v2766_v30 = vpop.f32.mrf.mxu1  ;;  %v18908_v47 = vld [vmem:[#allocation2 + $0x78] sm:$0xff]  ;;  %v1130_v48 = vor.u32 %v1129_v59, %v1127_v21 }
 0x10b   :  { %v21401_v7 = vadd.f32 %v2766_v30, %v2085_v41  ;;  %5456 = vmatpush.bf16.msrb.mxu1 %v19125_v17  ;;  %v18924_v41 = vld [vmem:[#allocation2 + $0x108] sm:$0xff] }
 0x10c   :  { %24114 = vst [vmem:[#allocation48_spill] sm:$0xff] %v21399_v10  ;;  %v18964_v30 = vld [vmem:[#allocation2 + $0x228] sm:$0xff]  ;;  %v24118_v10 = vshrl.u32 %v20317_v37, 16 }
 0x10d   :  { %24115 = vst [vmem:[#allocation49_spill] sm:$0xff] %v21401_v7  ;;  %v2846_v51 = vpop.f32.mrf.mxu3  ;;  %v1124_v7 = vrot.slane %v24119_v62, 5 }
 0x10e   :  { %v1123_v19 = vrot.slane %v24118_v10, 4 }
 0x110   :  { %v2088_v31 = vpop.f32.mrf.mxu0  ;;  %v1125_v2 = vor.u32 %v1124_v7, %v1123_v19 }
 0x111   :  { %v2165_v20 = vpop.f32.mrf.mxu2 }
 0x112   :  { %v21413_v57 = vadd.f32 %v2846_v51, %v2165_v20  ;;  %v2769_v17 = vpop.f32.mrf.mxu1  ;;  %2888 = vmatmul.bf16.gmra.mxu3 %v18964_v30  ;;  %v1126_v20 = vrot.slane %v1125_v2, 4  ;;  %v1131_v51 = vrot.slane %v1130_v48, 4  ;;  %v18973_v2 = vld [vmem:[#allocation2 + $0x240] sm:$0xff] }
 0x113   :  { %v21421_v24 = vadd.f32 %v2769_v17, %v2088_v31  ;;  %2127 = vmatmul.bf16.gmra.mxu0 %v18908_v47  ;;  %v173_v31 = vld [vmem:[#allocation2 + $0x25c] sm:$0x8] }
 0x114   :  { %24117 = vst [vmem:[#allocation50_spill] sm:$0xff] %v21413_v57  ;;  %2808 = vmatmul.bf16.gmra.mxu1 %v18948_v58  ;;  %v1473_v57 = vld [vmem:[#allocation2 + $0x254] sm:$0xf]  ;;  %v1128_v37 = vsel %vm21387_vm14, %v1126_v20, %v1127_v21  ;;  %v174_v48 = vsel %vm21344_vm10, 0, %v173_v31  ;;  %v19013_v20 = vld [vmem:[#allocation2 + $0x8] sm:$0xff] }
 0x115   :  { %v1474_v38 = vsel %vm21371_vm12, %v1131_v51, %v1473_v57  ;;  %v2849_v62 = vpop.f32.mrf.mxu3  ;;  %1472 = vst [vmem:[#allocation2 + $0x250] sm:$0xf] %v1128_v37  ;;  %v24124_v51 = vshrl.u32 %v20433_v34, 16 }
 0x116   :  { %2207 = vmatmul.bf16.gmra.mxu2 %v18924_v41  ;;  %1475 = vst [vmem:[#allocation2 + $0x254] sm:$0xf] %v1474_v38  ;;  %v24122_v41 = vshrl.u32 %v20444_v43, 16  ;;  %v24125_v38 = vshll.u32 %v20433_v34, 16 }
 0x117   :  { %175 = vst [vmem:[#allocation2 + $0x25c] sm:$0x8] %v174_v48  ;;  %v1132_v37 = vrot.slane %v24124_v51, 4 }
 0x118   :  { %v2090_v7 = vpop.f32.mrf.mxu0  ;;  %v1138_v21 = vrot.slane %v24122_v41, 4 }
 0x119   :  { %v2168_v10 = vpop.f32.mrf.mxu2 }
 0x11a   :  { %v21427_v19 = vadd.f32 %v2849_v62, %v2168_v10  ;;  %v2771_v59 = vpop.f32.mrf.mxu1  ;;  %v1133_v10 = vrot.slane %v24125_v38, 5  ;;  %v24126_v62 = vshll.u32 %v20444_v43, 16 }
 0x11b   :  { %v21429_v47 = vadd.f32 %v2771_v59, %v2090_v7  ;;  %v19093_v59 = vld [vmem:[#allocation2 + $0x248] sm:$0xff] }
 0x11c   :  { %24121 = vst [vmem:[#allocation51_spill] sm:$0xff] %v21427_v19  ;;  %v1136_v7 = vrot.slane %v24126_v62, 5  ;;  %v1134_v48 = vor.u32 %v1133_v10, %v1132_v37  ;;  %v24128_v10 = vshrl.u32 %v20517_v60, 16 }
 0x11d   :  { %v2851_v57 = vpop.f32.mrf.mxu3 }
 0x11e   :  { %v1139_v41 = vor.u32 %v1138_v21, %v1136_v7  ;;  %v1147_v62 = vrot.slane %v24128_v10, 4 }
 0x120   :  { %v2093_v17 = vpop.f32.mrf.mxu0 }
 0x121   :  { %v2170_v30 = vpop.f32.mrf.mxu2 }
 0x122   :  { %v21435_v58 = vadd.f32 %v2851_v57, %v2170_v30  ;;  %v2774_v31 = vpop.f32.mrf.mxu1  ;;  %4095 = vmatmul.bf16.vlgmr.msrb.gmra.mxu3 %v19013_v20  ;;  %v1135_v30 = vrot.slane %v1134_v48, 4  ;;  %v1140_v57 = vrot.slane %v1139_v41, 4  ;;  %v18974_v41 = vld [vmem:[#allocation2 + $0x248] sm:$0xff] }
 0x123   :  { %v21443_v19 = vadd.f32 %v2774_v31, %v2093_v17  ;;  %4776 = vmatmul.bf16.vlgmr.msrb.gmra.mxu0 %v19053_v18 }
 0x124   :  { %24123 = vst [vmem:[#allocation52_spill] sm:$0xff] %v21435_v58  ;;  %5457 = vmatmul.bf16.vlgmr.msrb.gmra.mxu1 %v19093_v59  ;;  %v1477_v58 = vld [vmem:[#allocation2 + $0x25c] sm:$0xf]  ;;  %v1137_v34 = vsel %vm21387_vm14, %v1135_v30, %v1136_v7  ;;  %v19054_v59 = vld [vmem:[#allocation2 + $0x130] sm:$0xff] }
 0x125   :  { %v1478_v43 = vsel %vm21371_vm12, %v1140_v57, %v1477_v58  ;;  %v2854_v38 = vpop.f32.mrf.mxu3  ;;  %1476 = vst [vmem:[#allocation2 + $0x258] sm:$0xf] %v1137_v34  ;;  %v19014_v30 = vld [vmem:[#allocation2 + $0x10] sm:$0xff]  ;;  %v24130_v57 = vshrl.u32 %v20511_v55, 16 }
 0x126   :  { %3414 = vmatmul.bf16.vlgmr.msrb.gmra.mxu2 %v18973_v2  ;;  %1479 = vst [vmem:[#allocation2 + $0x25c] sm:$0xf] %v1478_v43  ;;  %v176_v2 = vld [vmem:[#allocation2 + $0x264] sm:$0x8]  ;;  %v24131_v43 = vshll.u32 %v20511_v55, 16 }
 0x127   :  { %v177_v20 = vsel %vm21344_vm10, 0, %v176_v2  ;;  %v1141_v34 = vrot.slane %v24130_v57, 4 }
 0x128   :  { %v2095_v21 = vpop.f32.mrf.mxu0  ;;  %178 = vst [vmem:[#allocation2 + $0x264] sm:$0x8] %v177_v20 }
 0x129   :  { %v2173_v51 = vpop.f32.mrf.mxu2 }
 0x12a   :  { %v21449_v37 = vadd.f32 %v2854_v38, %v2173_v51  ;;  %v2776_v18 = vpop.f32.mrf.mxu1  ;;  %v1142_v51 = vrot.slane %v24131_v43, 5  ;;  %v24132_v38 = vshll.u32 %v20517_v60, 16 }
 0x12b   :  { %v21451_v17 = vadd.f32 %v2776_v18, %v2095_v21  ;;  %v19094_v18 = vld [vmem:[#allocation2 + $0x250] sm:$0xff] }
 0x12c   :  { %24127 = vst [vmem:[#allocation53_spill] sm:$0xff] %v21449_v37  ;;  %v1145_v21 = vrot.slane %v24132_v38, 5  ;;  %v1143_v20 = vor.u32 %v1142_v51, %v1141_v34  ;;  %v24134_v51 = vshrl.u32 %v20601_v46, 16 }
 0x12d   :  { %v2856_v58 = vpop.f32.mrf.mxu3 }
 0x12e   :  { %v1148_v10 = vor.u32 %v1147_v62, %v1145_v21  ;;  %v1156_v38 = vrot.slane %v24134_v51, 4 }
 0x130   :  { %v2098_v48 = vpop.f32.mrf.mxu0 }
 0x131   :  { %v2175_v7 = vpop.f32.mrf.mxu2 }
 0x132   :  { %v21457_v31 = vadd.f32 %v2856_v58, %v2175_v7  ;;  %v2779_v2 = vpop.f32.mrf.mxu1  ;;  %4100 = vmatmul.bf16.gmra.mxu3 %v19014_v30  ;;  %v1144_v7 = vrot.slane %v1143_v20, 4  ;;  %v1149_v58 = vrot.slane %v1148_v10, 4  ;;  %v18975_v10 = vld [vmem:[#allocation2 + $0x250] sm:$0xff] }
 0x133   :  { %v21465_v37 = vadd.f32 %v2779_v2, %v2098_v48  ;;  %4781 = vmatmul.bf16.gmra.mxu0 %v19054_v59 }
 0x134   :  { %24129 = vst [vmem:[#allocation54_spill] sm:$0xff] %v21457_v31  ;;  %5462 = vmatmul.bf16.gmra.mxu1 %v19094_v18  ;;  %v1481_v31 = vld [vmem:[#allocation2 + $0x264] sm:$0xf]  ;;  %v1146_v55 = vsel %vm21387_vm14, %v1144_v7, %v1145_v21  ;;  %v19055_v18 = vld [vmem:[#allocation2 + $0x138] sm:$0xff] }
 0x135   :  { %v1482_v60 = vsel %vm21371_vm12, %v1149_v58, %v1481_v31  ;;  %v2859_v43 = vpop.f32.mrf.mxu3  ;;  %1480 = vst [vmem:[#allocation2 + $0x260] sm:$0xf] %v1146_v55  ;;  %v19015_v7 = vld [vmem:[#allocation2 + $0x18] sm:$0xff]  ;;  %v24136_v58 = vshrl.u32 %v20580_v42, 16 }
 0x136   :  { %3419 = vmatmul.bf16.gmra.mxu2 %v18974_v41  ;;  %1483 = vst [vmem:[#allocation2 + $0x264] sm:$0xf] %v1482_v60  ;;  %v179_v41 = vld [vmem:[#allocation2 + $0x26c] sm:$0x8]  ;;  %v24137_v60 = vshll.u32 %v20580_v42, 16  ;;  %v19211_v42 = vld [vmem:[%s23871_s1 + $0x1f0] sm:$0xff] }
 0x137   :  { %v180_v30 = vsel %vm21344_vm10, 0, %v179_v41  ;;  %v1150_v55 = vrot.slane %v24136_v58, 4  ;;  %6814 = vmatpush.bf16.msra.mxu3 %v19211_v42  ;;  %v19056_v42 = vld [vmem:[#allocation2 + $0x140] sm:$0xff] }
 0x138   :  { %v2100_v62 = vpop.f32.mrf.mxu0  ;;  %181 = vst [vmem:[#allocation2 + $0x26c] sm:$0x8] %v180_v30 }
 0x139   :  { %v2178_v57 = vpop.f32.mrf.mxu2 }
 0x13a   :  { %v21471_v34 = vadd.f32 %v2859_v43, %v2178_v57  ;;  %v2781_v59 = vpop.f32.mrf.mxu1  ;;  %v1151_v57 = vrot.slane %v24137_v60, 5  ;;  %v24138_v43 = vshll.u32 %v20601_v46, 16 }
 0x13b   :  { %v21473_v48 = vadd.f32 %v2781_v59, %v2100_v62  ;;  %v19095_v59 = vld [vmem:[#allocation2 + $0x258] sm:$0xff] }
 0x13c   :  { %24133 = vst [vmem:[#allocation55_spill] sm:$0xff] %v21471_v34  ;;  %v1154_v62 = vrot.slane %v24138_v43, 5  ;;  %v1152_v30 = vor.u32 %v1151_v57, %v1150_v55  ;;  %v19251_v43 = vld [vmem:[%s23871_s1 + $0x230] sm:$0xff] }
 0x13d   :  { %v2861_v31 = vpop.f32.mrf.mxu3  ;;  %7496 = vmatpush.bf16.msra.mxu0 %v19251_v43 }
 0x13e   :  { %v1157_v51 = vor.u32 %v1156_v38, %v1154_v62 }
 0x13f   :  { %v1485_v58 = vld [vmem:[#allocation2 + $0x26c] sm:$0xf] }
 0x140   :  { %v2103_v20 = vpop.f32.mrf.mxu0  ;;  %v1158_v46 = vrot.slane %v1157_v51, 4 }
 0x141   :  { %v2180_v21 = vpop.f32.mrf.mxu2 }
 0x142   :  { %v21479_v2 = vadd.f32 %v2861_v31, %v2180_v21  ;;  %v2784_v41 = vpop.f32.mrf.mxu1  ;;  %4105 = vmatmul.bf16.gmra.mxu3 %v19015_v7  ;;  %v19171_v21 = vld [vmem:[%s23871_s1 + $0x1b0] sm:$0xff]  ;;  %v1153_v31 = vrot.slane %v1152_v30, 4 }
 0x143   :  { %v21487_v34 = vadd.f32 %v2784_v41, %v2103_v20  ;;  %4786 = vmatmul.bf16.gmra.mxu0 %v19055_v18  ;;  %6132 = vmatpush.bf16.msra.mxu2 %v19171_v21  ;;  %v1486_v18 = vsel %vm21371_vm12, %v1158_v46, %v1485_v58  ;;  %v24140_v41 = vshrl.u32 %v20656_v11, 16  ;;  %v18976_v58 = vld [vmem:[#allocation2 + $0x258] sm:$0xff] }
 0x144   :  { %24135 = vst [vmem:[#allocation56_spill] sm:$0xff] %v21479_v2  ;;  %5467 = vmatmul.bf16.gmra.mxu1 %v19095_v59  ;;  %v1155_v38 = vsel %vm21387_vm14, %v1153_v31, %v1154_v62  ;;  %v182_v59 = vld [vmem:[#allocation2 + $0x274] sm:$0x8] }
 0x145   :  { %1484 = vst [vmem:[#allocation2 + $0x268] sm:$0xf] %v1155_v38  ;;  %v183_v62 = vsel %vm21344_vm10, 0, %v182_v59  ;;  %v1165_v30 = vrot.slane %v24140_v41, 4  ;;  %v19016_v38 = vld [vmem:[#allocation2 + $0x20] sm:$0xff] }
 0x146   :  { %3424 = vmatmul.bf16.gmra.mxu2 %v18975_v10  ;;  %v2864_v10 = vpop.f32.mrf.mxu3  ;;  %1487 = vst [vmem:[#allocation2 + $0x26c] sm:$0xf] %v1486_v18  ;;  %v24142_v18 = vshrl.u32 %v20651_v3, 16  ;;  %v19096_v59 = vld [vmem:[#allocation2 + $0x260] sm:$0xff] }
 0x147   :  { %184 = vst [vmem:[#allocation2 + $0x274] sm:$0x8] %v183_v62 }
 0x148   :  { %v2105_v55 = vpop.f32.mrf.mxu0 }
 0x149   :  { %v2183_v20 = vpop.f32.mrf.mxu2 }
 0x14a   :  { %v21499_v7 = vadd.f32 %v2864_v10, %v2183_v20  ;;  %v2786_v60 = vpop.f32.mrf.mxu1  ;;  %v1159_v20 = vrot.slane %v24142_v18, 4  ;;  %v24143_v10 = vshll.u32 %v20651_v3, 16 }
 0x14b   :  { %v21501_v57 = vadd.f32 %v2786_v60, %v2105_v55  ;;  %v24144_v60 = vshll.u32 %v20656_v11, 16 }
 0x14c   :  { %24139 = vst [vmem:[#allocation57_spill] sm:$0xff] %v21499_v7  ;;  %v1160_v55 = vrot.slane %v24143_v10, 5 }
 0x14d   :  { %v1163_v43 = vrot.slane %v24144_v60, 5 }
 0x14e   :  { %v2866_v21 = vpop.f32.mrf.mxu3  ;;  %v1161_v62 = vor.u32 %v1160_v55, %v1159_v20 }
 0x14f   :  { %v1166_v7 = vor.u32 %v1165_v30, %v1163_v43 }
 0x150   :  { %v2108_v46 = vpop.f32.mrf.mxu0 }
 0x151   :  { %v2185_v51 = vpop.f32.mrf.mxu2 }
 0x152   :  { %v21510_v31 = vadd.f32 %v2866_v21, %v2185_v51  ;;  %v2789_v41 = vpop.f32.mrf.mxu1  ;;  %4110 = vmatmul.bf16.gmra.mxu3 %v19016_v38  ;;  %v1162_v51 = vrot.slane %v1161_v62, 4  ;;  %v1167_v21 = vrot.slane %v1166_v7, 4  ;;  %v24146_v38 = vshrl.u32 %v20716_v27, 16  ;;  %v18977_v62 = vld [vmem:[#allocation2 + $0x260] sm:$0xff] }
 0x153   :  { %v21518_v2 = vadd.f32 %v2789_v41, %v2108_v46  ;;  %4791 = vmatmul.bf16.gmra.mxu0 %v19056_v42 }
 0x154   :  { %24141 = vst [vmem:[#allocation58_spill] sm:$0xff] %v21510_v31  ;;  %5472 = vmatmul.bf16.gmra.mxu1 %v19096_v59  ;;  %v1489_v31 = vld [vmem:[#allocation2 + $0x274] sm:$0xf]  ;;  %v1164_v3 = vsel %vm21387_vm14, %v1162_v51, %v1163_v43  ;;  %v1174_v55 = vrot.slane %v24146_v38, 4  ;;  %v19057_v43 = vld [vmem:[#allocation2 + $0x148] sm:$0xff] }
 0x155   :  { %v1490_v11 = vsel %vm21371_vm12, %v1167_v21, %v1489_v31  ;;  %1488 = vst [vmem:[#allocation2 + $0x270] sm:$0xf] %v1164_v3  ;;  %v19017_v51 = vld [vmem:[#allocation2 + $0x28] sm:$0xff]  ;;  %v24148_v21 = vshrl.u32 %v20711_v25, 16 }
 0x156   :  { %3429 = vmatmul.bf16.gmra.mxu2 %v18976_v58  ;;  %v2869_v10 = vpop.f32.mrf.mxu3  ;;  %1491 = vst [vmem:[#allocation2 + $0x274] sm:$0xf] %v1490_v11  ;;  %v185_v58 = vld [vmem:[#allocation2 + $0x27c] sm:$0x8]  ;;  %v24149_v11 = vshll.u32 %v20711_v25, 16 }
 0x157   :  { %v186_v7 = vsel %vm21344_vm10, 0, %v185_v58  ;;  %v1168_v3 = vrot.slane %v24148_v21, 4 }
 0x158   :  { %v2110_v30 = vpop.f32.mrf.mxu0  ;;  %187 = vst [vmem:[#allocation2 + $0x27c] sm:$0x8] %v186_v7 }
 0x159   :  { %v2188_v18 = vpop.f32.mrf.mxu2 }
 0x15a   :  { %v21524_v20 = vadd.f32 %v2869_v10, %v2188_v18  ;;  %v2791_v42 = vpop.f32.mrf.mxu1  ;;  %v1169_v18 = vrot.slane %v24149_v11, 5  ;;  %v24150_v10 = vshll.u32 %v20716_v27, 16 }
 0x15b   :  { %v21526_v46 = vadd.f32 %v2791_v42, %v2110_v30  ;;  %v19097_v42 = vld [vmem:[#allocation2 + $0x268] sm:$0xff] }
 0x15c   :  { %24145 = vst [vmem:[#allocation59_spill] sm:$0xff] %v21524_v20  ;;  %v1172_v30 = vrot.slane %v24150_v10, 5  ;;  %v1170_v7 = vor.u32 %v1169_v18, %v1168_v3  ;;  %v24152_v18 = vshrl.u32 %v20785_v6, 16 }
 0x15e   :  { %v2871_v31 = vpop.f32.mrf.mxu3  ;;  %v1175_v38 = vor.u32 %v1174_v55, %v1172_v30  ;;  %v1183_v10 = vrot.slane %v24152_v18, 4 }
 0x160   :  { %v2113_v41 = vpop.f32.mrf.mxu0 }
 0x161   :  { %v2190_v60 = vpop.f32.mrf.mxu2 }
 0x162   :  { %v21532_v59 = vadd.f32 %v2871_v31, %v2190_v60  ;;  %v2794_v58 = vpop.f32.mrf.mxu1  ;;  %4115 = vmatmul.bf16.gmra.mxu3 %v19017_v51  ;;  %v1171_v60 = vrot.slane %v1170_v7, 4  ;;  %v1176_v31 = vrot.slane %v1175_v38, 4  ;;  %v18978_v38 = vld [vmem:[#allocation2 + $0x268] sm:$0xff] }
 0x163   :  { %v21540_v20 = vadd.f32 %v2794_v58, %v2113_v41  ;;  %4796 = vmatmul.bf16.gmra.mxu0 %v19057_v43 }
 0x164   :  { %24147 = vst [vmem:[#allocation60_spill] sm:$0xff] %v21532_v59  ;;  %5477 = vmatmul.bf16.gmra.mxu1 %v19097_v42  ;;  %v1493_v59 = vld [vmem:[#allocation2 + $0x27c] sm:$0xf]  ;;  %v1173_v25 = vsel %vm21387_vm14, %v1171_v60, %v1172_v30  ;;  %v19058_v42 = vld [vmem:[#allocation2 + $0x150] sm:$0xff] }
 0x165   :  { %v1494_v27 = vsel %vm21371_vm12, %v1176_v31, %v1493_v59  ;;  %1492 = vst [vmem:[#allocation2 + $0x278] sm:$0xf] %v1173_v25  ;;  %v19018_v60 = vld [vmem:[#allocation2 + $0x30] sm:$0xff]  ;;  %v24154_v31 = vshrl.u32 %v20780_v12, 16 }
 0x166   :  { %3434 = vmatmul.bf16.gmra.mxu2 %v18977_v62  ;;  %v2874_v11 = vpop.f32.mrf.mxu3  ;;  %1495 = vst [vmem:[#allocation2 + $0x27c] sm:$0xf] %v1494_v27  ;;  %v188_v62 = vld [vmem:[#allocation2 + $0x284] sm:$0x8]  ;;  %v24155_v27 = vshll.u32 %v20780_v12, 16 }
 0x167   :  { %v189_v51 = vsel %vm21344_vm10, 0, %v188_v62  ;;  %v1177_v25 = vrot.slane %v24154_v31, 4 }
 0x168   :  { %v2115_v55 = vpop.f32.mrf.mxu0  ;;  %190 = vst [vmem:[#allocation2 + $0x284] sm:$0x8] %v189_v51 }
 0x169   :  { %v2193_v21 = vpop.f32.mrf.mxu2 }
 0x16a   :  { %v21546_v3 = vadd.f32 %v2874_v11, %v2193_v21  ;;  %v2796_v43 = vpop.f32.mrf.mxu1  ;;  %v1178_v21 = vrot.slane %v24155_v27, 5  ;;  %v24156_v11 = vshll.u32 %v20785_v6, 16 }
 0x16b   :  { %v21548_v41 = vadd.f32 %v2796_v43, %v2115_v55  ;;  %v19098_v43 = vld [vmem:[#allocation2 + $0x270] sm:$0xff] }
 0x16c   :  { %24151 = vst [vmem:[#allocation61_spill] sm:$0xff] %v21546_v3  ;;  %v1181_v55 = vrot.slane %v24156_v11, 5  ;;  %v1179_v51 = vor.u32 %v1178_v21, %v1177_v25  ;;  %v24158_v21 = vshrl.u32 %v20848_v33, 16 }
 0x16e   :  { %v2876_v59 = vpop.f32.mrf.mxu3  ;;  %v1184_v18 = vor.u32 %v1183_v10, %v1181_v55  ;;  %v1192_v11 = vrot.slane %v24158_v21, 4 }
 0x170   :  { %v2118_v7 = vpop.f32.mrf.mxu0 }
 0x171   :  { %v2195_v30 = vpop.f32.mrf.mxu2 }
 0x172   :  { %v21554_v58 = vadd.f32 %v2876_v59, %v2195_v30  ;;  %v2799_v62 = vpop.f32.mrf.mxu1  ;;  %4120 = vmatmul.bf16.gmra.mxu3 %v19018_v60  ;;  %v1180_v30 = vrot.slane %v1179_v51, 4  ;;  %v1185_v59 = vrot.slane %v1184_v18, 4  ;;  %v18979_v18 = vld [vmem:[#allocation2 + $0x270] sm:$0xff] }
 0x173   :  { %v21562_v3 = vadd.f32 %v2799_v62, %v2118_v7  ;;  %4801 = vmatmul.bf16.gmra.mxu0 %v19058_v42 }
 0x174   :  { %24153 = vst [vmem:[#allocation62_spill] sm:$0xff] %v21554_v58  ;;  %5482 = vmatmul.bf16.gmra.mxu1 %v19098_v43  ;;  %v1497_v58 = vld [vmem:[#allocation2 + $0x284] sm:$0xf]  ;;  %v1182_v12 = vsel %vm21387_vm14, %v1180_v30, %v1181_v55  ;;  %v19059_v43 = vld [vmem:[#allocation2 + $0x158] sm:$0xff] }
 0x175   :  { %v1498_v6 = vsel %vm21371_vm12, %v1185_v59, %v1497_v58  ;;  %1496 = vst [vmem:[#allocation2 + $0x280] sm:$0xf] %v1182_v12  ;;  %v19019_v30 = vld [vmem:[#allocation2 + $0x38] sm:$0xff]  ;;  %v24160_v59 = vshrl.u32 %v20840_v1, 16 }
 0x176   :  { %3439 = vmatmul.bf16.gmra.mxu2 %v18978_v38  ;;  %v2879_v27 = vpop.f32.mrf.mxu3  ;;  %1499 = vst [vmem:[#allocation2 + $0x284] sm:$0xf] %v1498_v6  ;;  %v191_v38 = vld [vmem:[#allocation2 + $0x28c] sm:$0x8]  ;;  %v24161_v6 = vshll.u32 %v20840_v1, 16 }
 0x177   :  { %v192_v60 = vsel %vm21344_vm10, 0, %v191_v38  ;;  %v1186_v12 = vrot.slane %v24160_v59, 4  ;;  %v19210_v1 = vld [vmem:[%s23871_s1 + $0x1e8] sm:$0xff] }
 0x178   :  { %v2120_v10 = vpop.f32.mrf.mxu0  ;;  %193 = vst [vmem:[#allocation2 + $0x28c] sm:$0x8] %v192_v60  ;;  %6815 = vmatpush.bf16.msra.mxu3 %v19210_v1  ;;  %v19060_v1 = vld [vmem:[#allocation2 + $0x160] sm:$0xff] }
 0x179   :  { %v2198_v31 = vpop.f32.mrf.mxu2 }
 0x17a   :  { %v21568_v25 = vadd.f32 %v2879_v27, %v2198_v31  ;;  %v2801_v42 = vpop.f32.mrf.mxu1  ;;  %v1187_v31 = vrot.slane %v24161_v6, 5  ;;  %v24162_v27 = vshll.u32 %v20848_v33, 16 }
 0x17b   :  { %v21570_v7 = vadd.f32 %v2801_v42, %v2120_v10  ;;  %v19099_v42 = vld [vmem:[#allocation2 + $0x278] sm:$0xff] }
 0x17c   :  { %24157 = vst [vmem:[#allocation63_spill] sm:$0xff] %v21568_v25  ;;  %v1190_v10 = vrot.slane %v24162_v27, 5  ;;  %v1188_v60 = vor.u32 %v1187_v31, %v1186_v12  ;;  %v194_v27 = vld [vmem:[#allocation2 + $0x294] sm:$0x8] }
 0x17e   :  { %v2881_v58 = vpop.f32.mrf.mxu3  ;;  %v1193_v21 = vor.u32 %v1192_v11, %v1190_v10 }
 0x17f   :  { %v1501_v59 = vld [vmem:[#allocation2 + $0x28c] sm:$0xf] }
 0x180   :  { %v2123_v51 = vpop.f32.mrf.mxu0  ;;  %v1194_v33 = vrot.slane %v1193_v21, 4 }
 0x181   :  { %v2200_v55 = vpop.f32.mrf.mxu2 }
 0x182   :  { %v21576_v62 = vadd.f32 %v2881_v58, %v2200_v55  ;;  %v2804_v38 = vpop.f32.mrf.mxu1  ;;  %4125 = vmatmul.bf16.gmra.mxu3 %v19019_v30  ;;  %v19170_v55 = vld [vmem:[%s23871_s1 + $0x1a8] sm:$0xff]  ;;  %v1189_v58 = vrot.slane %v1188_v60, 4 }
 0x183   :  { %v21584_v25 = vadd.f32 %v2804_v38, %v2123_v51  ;;  %4806 = vmatmul.bf16.gmra.mxu0 %v19059_v43  ;;  %6133 = vmatpush.bf16.msra.mxu2 %v19170_v55  ;;  %v1502_v43 = vsel %vm21371_vm12, %v1194_v33, %v1501_v59  ;;  %v24165_v38 = vshrl.u32 %v20916_v8, 16  ;;  %v19250_v60 = vld [vmem:[%s23871_s1 + $0x228] sm:$0xff]  ;;  %v18980_v59 = vld [vmem:[#allocation2 + $0x278] sm:$0xff] }
 0x184   :  { %24159 = vst [vmem:[#allocation64_spill] sm:$0xff] %v21576_v62  ;;  %5487 = vmatmul.bf16.gmra.mxu1 %v19099_v42  ;;  %v1191_v11 = vsel %vm21387_vm14, %v1189_v58, %v1190_v10  ;;  %v195_v42 = vsel %vm21344_vm10, 0, %v194_v27  ;;  %7497 = vmatpush.bf16.msra.mxu0 %v19250_v60 }
 0x185   :  { %1500 = vst [vmem:[#allocation2 + $0x288] sm:$0xf] %v1191_v11  ;;  %v1201_v10 = vrot.slane %v24165_v38, 4  ;;  %v19020_v11 = vld [vmem:[#allocation2 + $0x40] sm:$0xff] }
 0x186   :  { %3444 = vmatmul.bf16.gmra.mxu2 %v18979_v18  ;;  %v2884_v18 = vpop.f32.mrf.mxu3  ;;  %1503 = vst [vmem:[#allocation2 + $0x28c] sm:$0xf] %v1502_v43  ;;  %v24167_v43 = vshrl.u32 %v20909_v50, 16  ;;  %v19100_v38 = vld [vmem:[#allocation2 + $0x280] sm:$0xff] }
 0x187   :  { %196 = vst [vmem:[#allocation2 + $0x294] sm:$0x8] %v195_v42 }
 0x188   :  { %v2125_v12 = vpop.f32.mrf.mxu0 }
 0x189   :  { %v2203_v51 = vpop.f32.mrf.mxu2 }
 0x18a   :  { %v21596_v30 = vadd.f32 %v2884_v18, %v2203_v51  ;;  %v2806_v6 = vpop.f32.mrf.mxu1  ;;  %v1195_v51 = vrot.slane %v24167_v43, 4  ;;  %v24168_v18 = vshll.u32 %v20909_v50, 16 }
 0x18b   :  { %v21598_v31 = vadd.f32 %v2806_v6, %v2125_v12  ;;  %v24169_v6 = vshll.u32 %v20916_v8, 16 }
 0x18c   :  { %24163 = vst [vmem:[#allocation65_spill] sm:$0xff] %v21596_v30  ;;  %v1196_v12 = vrot.slane %v24168_v18, 5 }
 0x18d   :  { %24164 = vst [vmem:[#allocation66_spill] sm:$0xff] %v21598_v31  ;;  %v1199_v27 = vrot.slane %v24169_v6, 5 }
 0x18e   :  { %v2886_v55 = vpop.f32.mrf.mxu3  ;;  %v1197_v30 = vor.u32 %v1196_v12, %v1195_v51  ;;  %v19292_v12 = vld [vmem:[%s23873_s3 + $0x38] sm:$0xff] }
 0x18f   :  { %v1202_v62 = vor.u32 %v1201_v10, %v1199_v27  ;;  %9748 = vmatpush.bf16.msra.mxu1 %v19292_v12 }
 0x190   :  { %v2128_v33 = vpop.f32.mrf.mxu0 }
 0x191   :  { %v2205_v21 = vpop.f32.mrf.mxu2  ;;  %v1203_v60 = vrot.slane %v1202_v62, 4 }
 0x192   :  { %v21607_v58 = vadd.f32 %v2886_v55, %v2205_v21  ;;  %v2809_v42 = vpop.f32.mrf.mxu1  ;;  %4130 = vmatmul.bf16.gmra.mxu3 %v19020_v11  ;;  %v1198_v21 = vrot.slane %v1197_v30, 4  ;;  %v1505_v55 = vld [vmem:[#allocation2 + $0x294] sm:$0xf]  ;;  %v197_v30 = vld [vmem:[#allocation2 + $0x29c] sm:$0x8] }
 0x193   :  { %v21615_v31 = vadd.f32 %v2809_v42, %v2128_v33  ;;  %4811 = vmatmul.bf16.gmra.mxu0 %v19060_v1  ;;  %v1506_v8 = vsel %vm21371_vm12, %v1203_v60, %v1505_v55  ;;  %v198_v62 = vsel %vm21344_vm10, 0, %v197_v30  ;;  %v18981_v60 = vld [vmem:[#allocation2 + $0x280] sm:$0xff]  ;;  %v19021_v55 = vld [vmem:[#allocation2 + $0x48] sm:$0xff] }
 0x194   :  { %24166 = vst [vmem:[#allocation67_spill] sm:$0xff] %v21607_v58  ;;  %5492 = vmatmul.bf16.gmra.mxu1 %v19100_v38  ;;  %v1200_v50 = vsel %vm21387_vm14, %v1198_v21, %v1199_v27  ;;  %v19061_v38 = vld [vmem:[#allocation2 + $0x168] sm:$0xff] }
 0x195   :  { %1504 = vst [vmem:[#allocation2 + $0x290] sm:$0xf] %v1200_v50  ;;  %v24173_v50 = vshrl.u32 %v20974_v45, 16  ;;  %v19101_v30 = vld [vmem:[#allocation2 + $0x288] sm:$0xff] }
 0x196   :  { %3449 = vmatmul.bf16.gmra.mxu2 %v18980_v59  ;;  %v2889_v18 = vpop.f32.mrf.mxu3  ;;  %1507 = vst [vmem:[#allocation2 + $0x294] sm:$0xf] %v1506_v8  ;;  %v24171_v59 = vshrl.u32 %v20982_v44, 16 }
 0x197   :  { %199 = vst [vmem:[#allocation2 + $0x29c] sm:$0x8] %v198_v62  ;;  %v1204_v8 = vrot.slane %v24173_v50, 4 }
 0x198   :  { %v2130_v10 = vpop.f32.mrf.mxu0  ;;  %v1210_v11 = vrot.slane %v24171_v59, 4 }
 0x199   :  { %v2208_v43 = vpop.f32.mrf.mxu2 }
 0x19a   :  { %v21621_v51 = vadd.f32 %v2889_v18, %v2208_v43  ;;  %v2811_v1 = vpop.f32.mrf.mxu1  ;;  %v24174_v43 = vshll.u32 %v20974_v45, 16 }
 0x19b   :  { %v21623_v33 = vadd.f32 %v2811_v1, %v2130_v10  ;;  %v24175_v10 = vshll.u32 %v20982_v44, 16 }
 0x19c   :  { %24170 = vst [vmem:[#allocation68_spill] sm:$0xff] %v21621_v51  ;;  %v1205_v18 = vrot.slane %v24174_v43, 5 }
 0x19d   :  { %v1208_v1 = vrot.slane %v24175_v10, 5 }
 0x19e   :  { %v2891_v27 = vpop.f32.mrf.mxu3  ;;  %v1206_v59 = vor.u32 %v1205_v18, %v1204_v8  ;;  %v1509_v12 = vld [vmem:[#allocation2 + $0x29c] sm:$0xf] }
 0x19f   :  { %v1211_v51 = vor.u32 %v1210_v11, %v1208_v1 }
 0x1a0   :  { %v4777_v21 = vpop.f32.mrf.mxu0 }
 0x1a1   :  { %v2210_v6 = vpop.f32.mrf.mxu2 }
 0x1a2   :  { %v21632_v42 = vadd.f32 %v2891_v27, %v2210_v6  ;;  %v5458_v62 = vpop.f32.mrf.mxu1  ;;  %4135 = vmatmul.bf16.gmra.mxu3 %v19021_v55  ;;  %v1207_v6 = vrot.slane %v1206_v59, 4  ;;  %v1212_v27 = vrot.slane %v1211_v51, 4  ;;  %v200_v55 = vld [vmem:[#allocation2 + $0x2a4] sm:$0x8]  ;;  %v19062_v59 = vld [vmem:[#allocation2 + $0x170] sm:$0xff] }
 0x1a3   :  { %4816 = vmatmul.bf16.gmra.mxu0 %v19061_v38  ;;  %v201_v51 = vsel %vm21344_vm10, 0, %v200_v55 }
 0x1a4   :  { %24172 = vst [vmem:[#allocation69_spill] sm:$0xff] %v21632_v42  ;;  %5497 = vmatmul.bf16.gmra.mxu1 %v19101_v30  ;;  %v1209_v50 = vsel %vm21387_vm14, %v1207_v6, %v1208_v1  ;;  %v1510_v45 = vsel %vm21371_vm12, %v1212_v27, %v1509_v12  ;;  %v18982_v12 = vld [vmem:[#allocation2 + $0x288] sm:$0xff] }
 0x1a5   :  { %1508 = vst [vmem:[#allocation2 + $0x298] sm:$0xf] %v1209_v50  ;;  %v24177_v50 = vshrl.u32 %v21051_v35, 16 }
 0x1a6   :  { %3454 = vmatmul.bf16.gmra.mxu2 %v18981_v60  ;;  %v4096_v44 = vpop.f32.mrf.mxu3  ;;  %1511 = vst [vmem:[#allocation2 + $0x29c] sm:$0xf] %v1510_v45 }
 0x1a7   :  { %202 = vst [vmem:[#allocation2 + $0x2a4] sm:$0x8] %v201_v51  ;;  %v1213_v45 = vrot.slane %v24177_v50, 4 }
 0x1a8   :  { %v4779_v8 = vpop.f32.mrf.mxu0 }
 0x1a9   :  { %v3415_v43 = vpop.f32.mrf.mxu2 }
 0x1aa   :  { %v3575_v10 = vadd.f32 %v3415_v43, %v20969_v0  ;;  %v5460_v38 = vpop.f32.mrf.mxu1  ;;  %v19022_v0 = vld [vmem:[#allocation2 + $0x50] sm:$0xff] }
 0x1ac   :  { %v4256_v11 = vadd.f32 %v4096_v44, %v3575_v10  ;;  %v24179_v44 = vshll.u32 %v21058_v52, 16 }
 0x1ae   :  { %v4937_v60 = vadd.f32 %v4777_v21, %v4256_v11  ;;  %v4098_v30 = vpop.f32.mrf.mxu3  ;;  %v24178_v21 = vshll.u32 %v21051_v35, 16  ;;  %v1217_v10 = vrot.slane %v24179_v44, 5  ;;  %v24180_v11 = vshrl.u32 %v21058_v52, 16  ;;  %v1513_v35 = vld [vmem:[#allocation2 + $0x2a4] sm:$0xf] }
 0x1b0   :  { %v21647_v18 = vadd.f32 %v5458_v62, %v4937_v60  ;;  %v4782_v27 = vpop.f32.mrf.mxu0  ;;  %v1214_v43 = vrot.slane %v24178_v21, 5  ;;  %v19102_v62 = vld [vmem:[#allocation2 + $0x290] sm:$0xff]  ;;  %v1219_v60 = vrot.slane %v24180_v11, 4 }
 0x1b1   :  { %v3417_v1 = vpop.f32.mrf.mxu2 }
 0x1b2   :  { %24176 = vst [vmem:[#allocation70_spill] sm:$0xff] %v21647_v18  ;;  %v3576_v6 = vadd.f32 %v3417_v1, %v21025_v54  ;;  %v5463_v51 = vpop.f32.mrf.mxu1  ;;  %v1215_v18 = vor.u32 %v1214_v43, %v1213_v45  ;;  %v1220_v54 = vor.u32 %v1219_v60, %v1217_v10  ;;  %4140 = vmatmul.bf16.gmra.mxu3 %v19022_v0  ;;  %v203_v0 = vld [vmem:[#allocation2 + $0x2ac] sm:$0x8]  ;;  %v18983_v60 = vld [vmem:[#allocation2 + $0x290] sm:$0xff] }
 0x1b3   :  { %4821 = vmatmul.bf16.gmra.mxu0 %v19062_v59 }
 0x1b4   :  { %v4257_v55 = vadd.f32 %v4098_v30, %v3576_v6  ;;  %v1216_v42 = vrot.slane %v1215_v18, 4  ;;  %5502 = vmatmul.bf16.gmra.mxu1 %v19102_v62  ;;  %v1221_v50 = vrot.slane %v1220_v54, 4 }
 0x1b6   :  { %3459 = vmatmul.bf16.gmra.mxu2 %v18982_v12  ;;  %v4938_v1 = vadd.f32 %v4779_v8, %v4257_v55  ;;  %v1218_v44 = vsel %vm21387_vm14, %v1216_v42, %v1217_v10  ;;  %v4101_v52 = vpop.f32.mrf.mxu3  ;;  %v1514_v30 = vsel %vm21371_vm12, %v1221_v50, %v1513_v35  ;;  %v19063_v10 = vld [vmem:[#allocation2 + $0x178] sm:$0xff]  ;;  %v24184_v35 = vshrl.u32 %v21127_v40, 16 }
 0x1b7   :  { %1512 = vst [vmem:[#allocation2 + $0x2a0] sm:$0xf] %v1218_v44 }
 0x1b8   :  { %v21658_v21 = vadd.f32 %v5460_v38, %v4938_v1  ;;  %v4784_v6 = vpop.f32.mrf.mxu0  ;;  %1515 = vst [vmem:[#allocation2 + $0x2a4] sm:$0xf] %v1514_v30  ;;  %v204_v38 = vsel %vm21344_vm10, 0, %v203_v0  ;;  %v24183_v1 = vshll.u32 %v21127_v40, 16  ;;  %v1228_v44 = vrot.slane %v24184_v35, 4  ;;  %v19209_v40 = vld [vmem:[%s23871_s1 + $0x1e0] sm:$0xff] }
 0x1b9   :  { %v3420_v58 = vpop.f32.mrf.mxu2  ;;  %205 = vst [vmem:[#allocation2 + $0x2ac] sm:$0x8] %v204_v38  ;;  %6816 = vmatpush.bf16.msra.mxu3 %v19209_v40  ;;  %v24188_v40 = vshrl.u32 %v21204_v23, 16 }
 0x1ba   :  { %v3577_v59 = vadd.f32 %v3420_v58, %v21046_v32  ;;  %v5465_v18 = vpop.f32.mrf.mxu1  ;;  %v19023_v32 = vld [vmem:[#allocation2 + $0x58] sm:$0xff]  ;;  %v24181_v58 = vshrl.u32 %v21122_v9, 16  ;;  %v1226_v50 = vrot.slane %v24183_v1, 5 }
 0x1bc   :  { %v4258_v8 = vadd.f32 %v4101_v52, %v3577_v59  ;;  %v1222_v55 = vrot.slane %v24181_v58, 4 }
 0x1be   :  { %v4939_v12 = vadd.f32 %v4782_v27, %v4258_v8  ;;  %v4103_v43 = vpop.f32.mrf.mxu3  ;;  %v24182_v27 = vshll.u32 %v21122_v9, 16  ;;  %v19169_v9 = vld [vmem:[%s23871_s1 + $0x1a0] sm:$0xff] }
 0x1bf   :  { %6134 = vmatpush.bf16.msra.mxu2 %v19169_v9 }
 0x1c0   :  { %v21667_v45 = vadd.f32 %v5463_v51, %v4939_v12  ;;  %v4787_v11 = vpop.f32.mrf.mxu0  ;;  %v1223_v54 = vrot.slane %v24182_v27, 5  ;;  %v19103_v51 = vld [vmem:[#allocation2 + $0x298] sm:$0xff]  ;;  %v1517_v38 = vld [vmem:[#allocation2 + $0x2ac] sm:$0xf]  ;;  %v206_v27 = vld [vmem:[#allocation2 + $0x2b4] sm:$0x8] }
 0x1c1   :  { %v3422_v42 = vpop.f32.mrf.mxu2 }
 0x1c2   :  { %v3578_v62 = vadd.f32 %v3422_v42, %v21098_v4  ;;  %v5468_v30 = vpop.f32.mrf.mxu1  ;;  %v1224_v59 = vor.u32 %v1223_v54, %v1222_v55  ;;  %v1229_v4 = vor.u32 %v1228_v44, %v1226_v50  ;;  %4145 = vmatmul.bf16.gmra.mxu3 %v19023_v32  ;;  %v207_v54 = vsel %vm21344_vm10, 0, %v206_v27 }
 0x1c3   :  { %4826 = vmatmul.bf16.gmra.mxu0 %v19063_v10  ;;  %208 = vst [vmem:[#allocation2 + $0x2b4] sm:$0x8] %v207_v54 }
 0x1c4   :  { %v4259_v52 = vadd.f32 %v4103_v43, %v3578_v62  ;;  %v1225_v12 = vrot.slane %v1224_v59, 4  ;;  %5507 = vmatmul.bf16.gmra.mxu1 %v19103_v51  ;;  %v1230_v0 = vrot.slane %v1229_v4, 4  ;;  %v18984_v59 = vld [vmem:[#allocation2 + $0x298] sm:$0xff]  ;;  %v19024_v4 = vld [vmem:[#allocation2 + $0x60] sm:$0xff] }
 0x1c6   :  { %3464 = vmatmul.bf16.gmra.mxu2 %v18983_v60  ;;  %v4940_v8 = vadd.f32 %v4784_v6, %v4259_v52  ;;  %v1227_v43 = vsel %vm21387_vm14, %v1225_v12, %v1226_v50  ;;  %v4106_v6 = vpop.f32.mrf.mxu3  ;;  %v1518_v62 = vsel %vm21371_vm12, %v1230_v0, %v1517_v38  ;;  %v19249_v50 = vld [vmem:[%s23871_s1 + $0x220] sm:$0xff]  ;;  %v24187_v12 = vshll.u32 %v21204_v23, 16 }
 0x1c7   :  { %1516 = vst [vmem:[#allocation2 + $0x2a8] sm:$0xf] %v1227_v43  ;;  %7498 = vmatpush.bf16.msra.mxu0 %v19249_v50  ;;  %v19104_v38 = vld [vmem:[#allocation2 + $0x2a0] sm:$0xff]  ;;  %v1237_v43 = vrot.slane %v24188_v40, 4  ;;  %v19025_v40 = vld [vmem:[#allocation2 + $0x68] sm:$0xff] }
 0x1c8   :  { %v21681_v42 = vadd.f32 %v5465_v18, %v4940_v8  ;;  %v4789_v32 = vpop.f32.mrf.mxu0  ;;  %1519 = vst [vmem:[#allocation2 + $0x2ac] sm:$0xf] %v1518_v62  ;;  %v1235_v0 = vrot.slane %v24187_v12, 5  ;;  %v18985_v12 = vld [vmem:[#allocation2 + $0x2a0] sm:$0xff] }
 0x1c9   :  { %v3425_v10 = vpop.f32.mrf.mxu2 }
 0x1ca   :  { %v3579_v60 = vadd.f32 %v3425_v10, %v21117_v28  ;;  %v5470_v58 = vpop.f32.mrf.mxu1  ;;  %v19064_v28 = vld [vmem:[#allocation2 + $0x180] sm:$0xff]  ;;  %v1238_v62 = vor.u32 %v1237_v43, %v1235_v0 }
 0x1cc   :  { %v4260_v18 = vadd.f32 %v4106_v6, %v3579_v60 }
 0x1ce   :  { %v4941_v55 = vadd.f32 %v4787_v11, %v4260_v18  ;;  %v4108_v35 = vpop.f32.mrf.mxu3  ;;  %v24185_v11 = vshrl.u32 %v21199_v29, 16 }
 0x1d0   :  { %v21693_v1 = vadd.f32 %v5468_v30, %v4941_v55  ;;  %v4792_v52 = vpop.f32.mrf.mxu0  ;;  %v1231_v8 = vrot.slane %v24185_v11, 4  ;;  %v24186_v30 = vshll.u32 %v21199_v29, 16  ;;  %v1239_v55 = vrot.slane %v1238_v62, 4  ;;  %v1521_v29 = vld [vmem:[#allocation2 + $0x2b4] sm:$0xf] }
 0x1d1   :  { %v3427_v51 = vpop.f32.mrf.mxu2 }
 0x1d2   :  { %v3580_v44 = vadd.f32 %v3427_v51, %v21175_v16  ;;  %v1232_v9 = vrot.slane %v24186_v30, 5  ;;  %v5473_v6 = vpop.f32.mrf.mxu1  ;;  %4150 = vmatmul.bf16.gmra.mxu3 %v19024_v4  ;;  %v1522_v51 = vsel %vm21371_vm12, %v1239_v55, %v1521_v29  ;;  %v209_v4 = vld [vmem:[#allocation2 + $0x2bc] sm:$0x8]  ;;  %v24192_v55 = vshrl.u32 %v21275_v14, 16 }
 0x1d3   :  { %4831 = vmatmul.bf16.gmra.mxu0 %v19064_v28  ;;  %1523 = vst [vmem:[#allocation2 + $0x2b4] sm:$0xf] %v1522_v51 }
 0x1d4   :  { %v4261_v10 = vadd.f32 %v4108_v35, %v3580_v44  ;;  %v1233_v16 = vor.u32 %v1232_v9, %v1231_v8  ;;  %5512 = vmatmul.bf16.gmra.mxu1 %v19104_v38  ;;  %v19291_v8 = vld [vmem:[%s23873_s3 + $0x30] sm:$0xff]  ;;  %v1246_v29 = vrot.slane %v24192_v55, 4 }
 0x1d5   :  { %9749 = vmatpush.bf16.msra.mxu1 %v19291_v8 }
 0x1d6   :  { %3469 = vmatmul.bf16.gmra.mxu2 %v18984_v59  ;;  %v4942_v60 = vadd.f32 %v4789_v32, %v4261_v10  ;;  %v1234_v18 = vrot.slane %v1233_v16, 4  ;;  %v4111_v23 = vpop.f32.mrf.mxu3  ;;  %v24190_v10 = vshll.u32 %v21270_v49, 16  ;;  %v24191_v16 = vshll.u32 %v21275_v14, 16 }
 0x1d8   :  { %v21707_v27 = vadd.f32 %v5470_v58, %v4942_v60  ;;  %v1236_v54 = vsel %vm21387_vm14, %v1234_v18, %v1235_v0  ;;  %v4794_v28 = vpop.f32.mrf.mxu0  ;;  %v210_v58 = vsel %vm21344_vm10, 0, %v209_v4  ;;  %v1244_v62 = vrot.slane %v24191_v16, 5  ;;  %v101_v60 = vld [vmem:[#allocation2 + $0x80] sm:$0x1]  ;;  %v19105_v18 = vld [vmem:[#allocation2 + $0x2a8] sm:$0xff] }
 0x1d9   :  { %v3430_v50 = vpop.f32.mrf.mxu2  ;;  %1520 = vst [vmem:[#allocation2 + $0x2b0] sm:$0xf] %v1236_v54 }
 0x1da   :  { %v3581_v35 = vadd.f32 %v3430_v50, %v21194_v56  ;;  %v5475_v44 = vpop.f32.mrf.mxu1  ;;  %211 = vst [vmem:[#allocation2 + $0x2bc] sm:$0x8] %v210_v58  ;;  %v19065_v56 = vld [vmem:[#allocation2 + $0x188] sm:$0xff]  ;;  %v1247_v51 = vor.u32 %v1246_v29, %v1244_v62 }
 0x1dc   :  { %v4262_v32 = vadd.f32 %v4111_v23, %v3581_v35  ;;  %v303_v35 = vld [vmem:[%s23872_s0 + $0x7c] sm:$0xf]  ;;  %v1248_v58 = vrot.slane %v1247_v51, 4 }
 0x1dd   :  { %v652_v4 = vshrl.u32 %v303_v35, 16  ;;  %368 = vst [vmem:[#allocation2 + $0x1a4] sm:$0xf] %v303_v35 }
 0x1de   :  { %v4943_v59 = vadd.f32 %v4792_v52, %v4262_v32  ;;  %v4113_v9 = vpop.f32.mrf.mxu3  ;;  %v24189_v52 = vshrl.u32 %v21270_v49, 16  ;;  %v302_v49 = vld [vmem:[%s23872_s0 + $0x78] sm:$0xf] }
 0x1df   :  { %367 = vst [vmem:[#allocation2 + $0x1a0] sm:$0xf] %v302_v49 }
 0x1e0   :  { %v21716_v11 = vadd.f32 %v5473_v6, %v4943_v59  ;;  %v4797_v38 = vpop.f32.mrf.mxu0  ;;  %v1240_v43 = vrot.slane %v24189_v52, 4  ;;  %v1241_v6 = vrot.slane %v24190_v10, 5  ;;  %v644_v59 = vshrl.u32 %v302_v49, 16 }
 0x1e1   :  { %v3432_v30 = vpop.f32.mrf.mxu2  ;;  %v1525_v8 = vld [vmem:[#allocation2 + $0x2bc] sm:$0xf] }
 0x1e2   :  { %v3582_v0 = vadd.f32 %v3432_v30, %v21248_v36  ;;  %v102_v36 = vsel %vm20226_vm2, 0, %v101_v60  ;;  %v5478_v50 = vpop.f32.mrf.mxu1  ;;  %v1242_v23 = vor.u32 %v1241_v6, %v1240_v43  ;;  %4155 = vmatmul.bf16.gmra.mxu3 %v19025_v40  ;;  %v655_v40 = vshll.u32 %v303_v35, 16 }
 0x1e3   :  { %103 = vst [vmem:[#allocation2 + $0x80] sm:$0x1] %v102_v36  ;;  %4836 = vmatmul.bf16.gmra.mxu0 %v19065_v56  ;;  %v646_v56 = vrot.slane %v644_v59, 7 }
 0x1e4   :  { %v4263_v54 = vadd.f32 %v4113_v9, %v3582_v0  ;;  %v1243_v32 = vrot.slane %v1242_v23, 4  ;;  %5517 = vmatmul.bf16.gmra.mxu1 %v19105_v18  ;;  %v647_v0 = vshll.u32 %v302_v49, 16  ;;  %v212_v23 = vld [vmem:[#allocation2 + $0x2c4] sm:$0x8] }
 0x1e6   :  { %3474 = vmatmul.bf16.gmra.mxu2 %v18985_v12  ;;  %v4944_v14 = vadd.f32 %v4794_v28, %v4263_v54  ;;  %v1245_v9 = vsel %vm21387_vm14, %v1243_v32, %v1244_v62  ;;  %v4116_v43 = vpop.f32.mrf.mxu3  ;;  %v1526_v28 = vsel %vm21371_vm12, %v1248_v58, %v1525_v8  ;;  %v654_v12 = vrot.slane %v652_v4, 7  ;;  %v18986_v8 = vld [vmem:[#allocation2 + $0x2a8] sm:$0xff] }
 0x1e7   :  { %1524 = vst [vmem:[#allocation2 + $0x2b8] sm:$0xf] %v1245_v9  ;;  %v649_v16 = vor.u32 %v647_v0, %v646_v56  ;;  %v19026_v9 = vld [vmem:[#allocation2 + $0x70] sm:$0xff] }
 0x1e8   :  { %v21738_v30 = vadd.f32 %v5475_v44, %v4944_v14  ;;  %v4799_v6 = vpop.f32.mrf.mxu0  ;;  %1527 = vst [vmem:[#allocation2 + $0x2bc] sm:$0xf] %v1526_v28  ;;  %v650_v44 = vrot.slane %v646_v56, 4  ;;  %v657_v60 = vor.u32 %v655_v40, %v654_v12  ;;  %v19066_v14 = vld [vmem:[#allocation2 + $0x190] sm:$0xff]  ;;  %v1249_v56 = vrot.slane %v644_v59, 4 }
 0x1e9   :  { %v3435_v52 = vpop.f32.mrf.mxu2  ;;  %v1255_v28 = vrot.slane %v652_v4, 4 }
 0x1ea   :  { %v3583_v10 = vadd.f32 %v3435_v52, %v21265_v22  ;;  %v1043_v18 = vld [vmem:[#allocation2 + $0x80] sm:$0xf]  ;;  %v5480_v62 = vpop.f32.mrf.mxu1  ;;  %v658_v36 = vsel %vm20326_vm4, %v650_v44, %v657_v60  ;;  %v213_v22 = vsel %vm21344_vm10, 0, %v212_v23  ;;  %v1250_v52 = vrot.slane %v647_v0, 5 }
 0x1eb   :  { %v1044_v29 = vsel %vm20408_vm7, %v649_v16, %v1043_v18  ;;  %1046 = vst [vmem:[#allocation2 + $0x84] sm:$0xf] %v658_v36 }
 0x1ec   :  { %v4264_v55 = vadd.f32 %v4116_v43, %v3583_v10  ;;  %1045 = vst [vmem:[#allocation2 + $0x80] sm:$0xf] %v1044_v29  ;;  %v1253_v43 = vrot.slane %v655_v40, 5  ;;  %v1251_v16 = vor.u32 %v1250_v52, %v1249_v56  ;;  %v19067_v52 = vld [vmem:[#allocation2 + $0x198] sm:$0xff] }
 0x1ed   :  { %214 = vst [vmem:[#allocation2 + $0x2c4] sm:$0x8] %v213_v22 }
 0x1ee   :  { %v4945_v54 = vadd.f32 %v4797_v38, %v4264_v55  ;;  %v4118_v35 = vpop.f32.mrf.mxu3  ;;  %v19106_v38 = vld [vmem:[#allocation2 + $0x2b0] sm:$0xff]  ;;  %v1252_v60 = vrot.slane %v1251_v16, 4  ;;  %v19027_v16 = vld [vmem:[#allocation2 + $0x78] sm:$0xff] }
 0x1f0   :  { %v21751_v51 = vadd.f32 %v5478_v50, %v4945_v54  ;;  %v4802_v58 = vpop.f32.mrf.mxu0  ;;  %v1256_v50 = vor.u32 %v1255_v28, %v1253_v43  ;;  %v1254_v59 = vsel %vm21387_vm14, %v1252_v60, %v1253_v43  ;;  %v24195_v43 = vld [vmem:[#allocation45_spill] sm:$0xff] }
 0x1f1   :  { %v3437_v49 = vpop.f32.mrf.mxu2  ;;  %1528 = vst [vmem:[#allocation2 + $0x2c0] sm:$0xf] %v1254_v59 }
 0x1f2   :  { %v3584_v32 = vadd.f32 %v3437_v49, %v21323_v61  ;;  %v5483_v10 = vpop.f32.mrf.mxu1  ;;  %4160 = vmatmul.bf16.gmra.mxu3 %v19026_v9  ;;  %v1257_v18 = vrot.slane %v1256_v50, 4  ;;  %v221_v49 = vld [vmem:[#allocation2 + $0x2dc] sm:$0x8]  ;;  %v24196_v50 = vld [vmem:[#allocation4_spill] sm:$0xff] }
 0x1f3   :  { %4841 = vmatmul.bf16.gmra.mxu0 %v19066_v14  ;;  %v24193_v14 = vld [vmem:[#allocation5_spill] sm:$0xff]  ;;  %v24198_v60 = vshll.u32 %v24196_v50, 16 }
 0x1f4   :  { %v4265_v12 = vadd.f32 %v4118_v35, %v3584_v32  ;;  %5522 = vmatmul.bf16.gmra.mxu1 %v19106_v38  ;;  %v1529_v61 = vld [vmem:[#allocation2 + $0x2c4] sm:$0xf]  ;;  %v222_v35 = vsel %vm21344_vm10, 0, %v221_v49  ;;  %v24194_v32 = vshrl.u32 %v24193_v14, 16 }
 0x1f5   :  { %v1530_v4 = vsel %vm21371_vm12, %v1257_v18, %v1529_v61  ;;  %223 = vst [vmem:[#allocation2 + $0x2dc] sm:$0x8] %v222_v35  ;;  %v1259_v18 = vrot.slane %v24198_v60, 5  ;;  %v24199_v61 = vshll.u32 %v24193_v14, 16  ;;  %v19208_v14 = vld [vmem:[%s23871_s1 + $0x1d8] sm:$0xff] }
 0x1f6   :  { %3479 = vmatmul.bf16.gmra.mxu2 %v18986_v8  ;;  %v4946_v44 = vadd.f32 %v4799_v6, %v4265_v12  ;;  %v4121_v40 = vpop.f32.mrf.mxu3  ;;  %1531 = vst [vmem:[#allocation2 + $0x2c4] sm:$0xf] %v1530_v4  ;;  %v218_v6 = vld [vmem:[#allocation2 + $0x2d4] sm:$0x8]  ;;  %v1264_v8 = vrot.slane %v24194_v32, 4  ;;  %6817 = vmatpush.bf16.msra.mxu3 %v19208_v14 }
 0x1f7   :  { %v18987_v12 = vld [vmem:[#allocation2 + $0x2b0] sm:$0xff]  ;;  %v1262_v59 = vrot.slane %v24199_v61, 5  ;;  %v19248_v61 = vld [vmem:[%s23871_s1 + $0x218] sm:$0xff] }
 0x1f8   :  { %v21754_v55 = vadd.f32 %v5480_v62, %v4946_v44  ;;  %v4804_v36 = vpop.f32.mrf.mxu0  ;;  %v219_v62 = vsel %vm21344_vm10, 0, %v218_v6  ;;  %7499 = vmatpush.bf16.msra.mxu0 %v19248_v61 }
 0x1f9   :  { %v3440_v0 = vpop.f32.mrf.mxu2  ;;  %220 = vst [vmem:[#allocation2 + $0x2d4] sm:$0x8] %v219_v62 }
 0x1fa   :  { %v3585_v29 = vadd.f32 %v3440_v0, %v21340_v53  ;;  %v5485_v23 = vpop.f32.mrf.mxu1 }
 0x1fc   :  { %v4266_v54 = vadd.f32 %v4121_v40, %v3585_v29  ;;  %v1265_v29 = vor.u32 %v1264_v8, %v1262_v59  ;;  %v1533_v49 = vld [vmem:[#allocation2 + $0x2dc] sm:$0xf] }
 0x1fe   :  { %v4947_v22 = vadd.f32 %v4802_v58, %v4266_v54  ;;  %v4123_v56 = vpop.f32.mrf.mxu3  ;;  %v24197_v58 = vshrl.u32 %v24196_v50, 16  ;;  %v19168_v54 = vld [vmem:[%s23871_s1 + $0x198] sm:$0xff] }
 0x1ff   :  { %6135 = vmatpush.bf16.msra.mxu2 %v19168_v54  ;;  %v19028_v54 = vld [vmem:[#allocation2 + $0x80] sm:$0xff] }
 0x200   :  { %v21767_v9 = vadd.f32 %v5483_v10, %v4947_v22  ;;  %v4807_v28 = vpop.f32.mrf.mxu0  ;;  %v1258_v44 = vrot.slane %v24197_v58, 4  ;;  %v19107_v10 = vld [vmem:[#allocation2 + $0x2b8] sm:$0xff]  ;;  %v1266_v22 = vrot.slane %v1265_v29, 4 }
 0x201   :  { %v3442_v53 = vpop.f32.mrf.mxu2  ;;  %v24201_v58 = vld [vmem:[#allocation7_spill] sm:$0xff] }
 0x202   :  { %v3586_v38 = vadd.f32 %v3442_v53, %v24195_v43  ;;  %v5488_v40 = vpop.f32.mrf.mxu1  ;;  %v1260_v4 = vor.u32 %v1259_v18, %v1258_v44  ;;  %4165 = vmatmul.bf16.gmra.mxu3 %v19027_v16  ;;  %v224_v16 = vld [vmem:[#allocation2 + $0x2e4] sm:$0x8]  ;;  %v24202_v44 = vshrl.u32 %v24201_v58, 16 }
 0x203   :  { %4846 = vmatmul.bf16.gmra.mxu0 %v19067_v52  ;;  %v225_v50 = vsel %vm21344_vm10, 0, %v224_v16 }
 0x204   :  { %v4267_v0 = vadd.f32 %v4123_v56, %v3586_v38  ;;  %v1261_v62 = vrot.slane %v1260_v4, 4  ;;  %5527 = vmatmul.bf16.gmra.mxu1 %v19107_v10  ;;  %v24200_v56 = vld [vmem:[#allocation47_spill] sm:$0xff]  ;;  %v1273_v60 = vrot.slane %v24202_v44, 4  ;;  %226 = vst [vmem:[#allocation2 + $0x2e4] sm:$0x8] %v225_v50  ;;  %v24203_v4 = vld [vmem:[#allocation49_spill] sm:$0xff] }
 0x206   :  { %3484 = vmatmul.bf16.gmra.mxu2 %v18987_v12  ;;  %v4948_v6 = vadd.f32 %v4804_v36, %v4267_v0  ;;  %v1263_v32 = vsel %vm21387_vm14, %v1261_v62, %v1262_v59  ;;  %v1534_v36 = vsel %vm21371_vm12, %v1266_v22, %v1533_v49  ;;  %v4126_v53 = vpop.f32.mrf.mxu3  ;;  %v19068_v0 = vld [vmem:[#allocation2 + $0x1a0] sm:$0xff]  ;;  %v24204_v62 = vld [vmem:[#allocation6_spill] sm:$0xff] }
 0x207   :  { %1532 = vst [vmem:[#allocation2 + $0x2d8] sm:$0xf] %v1263_v32  ;;  %v24205_v22 = vshrl.u32 %v24204_v62, 16  ;;  %v24207_v32 = vshll.u32 %v24201_v58, 16 }
 0x208   :  { %v21779_v35 = vadd.f32 %v5485_v23, %v4948_v6  ;;  %v4809_v43 = vpop.f32.mrf.mxu0  ;;  %1535 = vst [vmem:[#allocation2 + $0x2dc] sm:$0xf] %v1534_v36  ;;  %v18988_v6 = vld [vmem:[#allocation2 + $0x2b8] sm:$0xff] }
 0x209   :  { %v3445_v8 = vpop.f32.mrf.mxu2  ;;  %v1267_v49 = vrot.slane %v24205_v22, 4  ;;  %v1271_v36 = vrot.slane %v24207_v32, 5 }
 0x20a   :  { %v3587_v52 = vadd.f32 %v3445_v8, %v24200_v56  ;;  %v5490_v38 = vpop.f32.mrf.mxu1  ;;  %v19108_v8 = vld [vmem:[#allocation2 + $0x2c0] sm:$0xff] }
 0x20b   :  { %v1537_v44 = vld [vmem:[#allocation2 + $0x2e4] sm:$0xf] }
 0x20c   :  { %v4268_v23 = vadd.f32 %v4126_v53, %v3587_v52 }
 0x20e   :  { %v4949_v12 = vadd.f32 %v4807_v28, %v4268_v23  ;;  %v4128_v10 = vpop.f32.mrf.mxu3  ;;  %v1274_v23 = vor.u32 %v1273_v60, %v1271_v36 }
 0x210   :  { %v21793_v18 = vadd.f32 %v5488_v40, %v4949_v12  ;;  %v4812_v28 = vpop.f32.mrf.mxu0  ;;  %v24206_v40 = vshll.u32 %v24204_v62, 16  ;;  %v1275_v50 = vrot.slane %v1274_v23, 4  ;;  %v24208_v62 = vld [vmem:[#allocation9_spill] sm:$0xff]  ;;  %v24210_v23 = vld [vmem:[#allocation8_spill] sm:$0xff] }
 0x211   :  { %v3447_v59 = vpop.f32.mrf.mxu2  ;;  %v24209_v22 = vshrl.u32 %v24208_v62, 16 }
 0x212   :  { %v3588_v29 = vadd.f32 %v3447_v59, %v24203_v4  ;;  %v1268_v14 = vrot.slane %v24206_v40, 5  ;;  %v5493_v56 = vpop.f32.mrf.mxu1  ;;  %4170 = vmatmul.bf16.gmra.mxu3 %v19028_v54  ;;  %v1538_v58 = vsel %vm21371_vm12, %v1275_v50, %v1537_v44  ;;  %v227_v54 = vld [vmem:[#allocation2 + $0x2ec] sm:$0x8]  ;;  %v24213_v44 = vshll.u32 %v24208_v62, 16 }
 0x213   :  { %4851 = vmatmul.bf16.gmra.mxu0 %v19068_v0  ;;  %1539 = vst [vmem:[#allocation2 + $0x2e4] sm:$0xf] %v1538_v58  ;;  %v19109_v58 = vld [vmem:[#allocation2 + $0x2d8] sm:$0xff] }
 0x214   :  { %v4269_v53 = vadd.f32 %v4128_v10, %v3588_v29  ;;  %v1269_v52 = vor.u32 %v1268_v14, %v1267_v49  ;;  %5532 = vmatmul.bf16.gmra.mxu1 %v19108_v8  ;;  %v1282_v49 = vrot.slane %v24209_v22, 4  ;;  %v19290_v14 = vld [vmem:[%s23873_s3 + $0x28] sm:$0xff] }
 0x215   :  { %9750 = vmatpush.bf16.msra.mxu1 %v19290_v14 }
 0x216   :  { %3489 = vmatmul.bf16.gmra.mxu2 %v18988_v6  ;;  %v4950_v12 = vadd.f32 %v4809_v43, %v4269_v53  ;;  %v1270_v16 = vrot.slane %v1269_v52, 4  ;;  %v4131_v4 = vpop.f32.mrf.mxu3  ;;  %v18989_v53 = vld [vmem:[#allocation2 + $0x2d0] sm:$0xff]  ;;  %v19029_v52 = vld [vmem:[#allocation2 + $0x98] sm:$0xff] }
 0x218   :  { %v21805_v61 = vadd.f32 %v5490_v38, %v4950_v12  ;;  %v1272_v59 = vsel %vm21387_vm14, %v1270_v16, %v1271_v36  ;;  %v4814_v0 = vpop.f32.mrf.mxu0  ;;  %v228_v38 = vsel %vm21344_vm10, 0, %v227_v54  ;;  %v19069_v36 = vld [vmem:[#allocation2 + $0x1b8] sm:$0xff]  ;;  %v24211_v12 = vshrl.u32 %v24210_v23, 16 }
 0x219   :  { %v3450_v10 = vpop.f32.mrf.mxu2  ;;  %1536 = vst [vmem:[#allocation2 + $0x2e0] sm:$0xf] %v1272_v59  ;;  %v1280_v59 = vrot.slane %v24213_v44, 5 }
 0x21a   :  { %v3589_v60 = vadd.f32 %v3450_v10, %v21421_v24  ;;  %v5495_v29 = vpop.f32.mrf.mxu1  ;;  %229 = vst [vmem:[#allocation2 + $0x2ec] sm:$0x8] %v228_v38  ;;  %v1276_v16 = vrot.slane %v24211_v12, 4 }
 0x21c   :  { %v4270_v43 = vadd.f32 %v4131_v4, %v3589_v60 }
 0x21e   :  { %v4951_v6 = vadd.f32 %v4812_v28, %v4270_v43  ;;  %v4133_v32 = vpop.f32.mrf.mxu3  ;;  %v1283_v43 = vor.u32 %v1282_v49, %v1280_v59 }
 0x220   :  { %v21816_v40 = vadd.f32 %v5493_v56, %v4951_v6  ;;  %v4817_v28 = vpop.f32.mrf.mxu0  ;;  %v24212_v56 = vshll.u32 %v24210_v23, 16  ;;  %v1284_v54 = vrot.slane %v1283_v43, 4  ;;  %v24214_v23 = vld [vmem:[#allocation11_spill] sm:$0xff]  ;;  %v24216_v43 = vld [vmem:[#allocation10_spill] sm:$0xff] }
 0x221   :  { %v3452_v24 = vpop.f32.mrf.mxu2  ;;  %v1541_v38 = vld [vmem:[#allocation2 + $0x2ec] sm:$0xf]  ;;  %v24215_v12 = vshrl.u32 %v24214_v23, 16 }
 0x222   :  { %v3590_v8 = vadd.f32 %v3452_v24, %v21429_v47  ;;  %v1277_v50 = vrot.slane %v24212_v56, 5  ;;  %v5498_v4 = vpop.f32.mrf.mxu1  ;;  %4175 = vmatmul.bf16.gmra.mxu3 %v19029_v52  ;;  %v1542_v62 = vsel %vm21371_vm12, %v1284_v54, %v1541_v38  ;;  %v230_v52 = vld [vmem:[#allocation2 + $0x2f4] sm:$0x8]  ;;  %v24219_v38 = vshll.u32 %v24214_v23, 16 }
 0x223   :  { %4856 = vmatmul.bf16.gmra.mxu0 %v19069_v36  ;;  %1543 = vst [vmem:[#allocation2 + $0x2ec] sm:$0xf] %v1542_v62 }
 0x224   :  { %v4271_v10 = vadd.f32 %v4133_v32, %v3590_v8  ;;  %v1278_v60 = vor.u32 %v1277_v50, %v1276_v16  ;;  %5537 = vmatmul.bf16.gmra.mxu1 %v19109_v58  ;;  %v1291_v16 = vrot.slane %v24215_v12, 4 }
 0x226   :  { %3494 = vmatmul.bf16.gmra.mxu2 %v18989_v53  ;;  %v4952_v47 = vadd.f32 %v4814_v0, %v4271_v10  ;;  %v1279_v6 = vrot.slane %v1278_v60, 4  ;;  %v4136_v32 = vpop.f32.mrf.mxu3  ;;  %v18990_v10 = vld [vmem:[#allocation2 + $0x2d8] sm:$0xff]  ;;  %v19030_v60 = vld [vmem:[#allocation2 + $0xa0] sm:$0xff] }
 0x228   :  { %v21828_v22 = vadd.f32 %v5495_v29, %v4952_v47  ;;  %v1281_v14 = vsel %vm21387_vm14, %v1279_v6, %v1280_v59  ;;  %v4819_v36 = vpop.f32.mrf.mxu0  ;;  %v231_v29 = vsel %vm21344_vm10, 0, %v230_v52  ;;  %v19070_v59 = vld [vmem:[#allocation2 + $0x1c0] sm:$0xff]  ;;  %v24218_v6 = vshll.u32 %v24216_v43, 16 }
 0x229   :  { %v3455_v24 = vpop.f32.mrf.mxu2  ;;  %1540 = vst [vmem:[#allocation2 + $0x2e8] sm:$0xf] %v1281_v14  ;;  %v1289_v14 = vrot.slane %v24219_v38, 5 }
 0x22a   :  { %v3591_v49 = vadd.f32 %v3455_v24, %v21443_v19  ;;  %v5500_v8 = vpop.f32.mrf.mxu1  ;;  %232 = vst [vmem:[#allocation2 + $0x2f4] sm:$0x8] %v231_v29  ;;  %v1286_v54 = vrot.slane %v24218_v6, 5 }
 0x22c   :  { %v4272_v0 = vadd.f32 %v4136_v32, %v3591_v49  ;;  %v1292_v49 = vor.u32 %v1291_v16, %v1289_v14 }
 0x22e   :  { %v4953_v53 = vadd.f32 %v4817_v28, %v4272_v0  ;;  %v4138_v44 = vpop.f32.mrf.mxu3  ;;  %v24217_v28 = vshrl.u32 %v24216_v43, 16  ;;  %v24220_v43 = vld [vmem:[#allocation13_spill] sm:$0xff] }
 0x230   :  { %v21839_v56 = vadd.f32 %v5498_v4, %v4953_v53  ;;  %v4822_v58 = vpop.f32.mrf.mxu0  ;;  %v1285_v47 = vrot.slane %v24217_v28, 4  ;;  %v19110_v4 = vld [vmem:[#allocation2 + $0x2e0] sm:$0xff]  ;;  %v1293_v53 = vrot.slane %v1292_v49, 4  ;;  %v24221_v28 = vshrl.u32 %v24220_v43, 16 }
 0x231   :  { %v3457_v50 = vpop.f32.mrf.mxu2  ;;  %v1545_v52 = vld [vmem:[#allocation2 + $0x2f4] sm:$0xf]  ;;  %v24222_v49 = vld [vmem:[#allocation12_spill] sm:$0xff] }
 0x232   :  { %v3592_v19 = vadd.f32 %v3457_v50, %v21451_v17  ;;  %v5503_v24 = vpop.f32.mrf.mxu1  ;;  %v1287_v32 = vor.u32 %v1286_v54, %v1285_v47  ;;  %4180 = vmatmul.bf16.gmra.mxu3 %v19030_v60  ;;  %v1546_v23 = vsel %vm21371_vm12, %v1293_v53, %v1545_v52  ;;  %v233_v60 = vld [vmem:[#allocation2 + $0x2fc] sm:$0x8]  ;;  %v1300_v47 = vrot.slane %v24221_v28, 4 }
 0x233   :  { %4861 = vmatmul.bf16.gmra.mxu0 %v19070_v59  ;;  %1547 = vst [vmem:[#allocation2 + $0x2f4] sm:$0xf] %v1546_v23  ;;  %v24225_v52 = vshll.u32 %v24220_v43, 16  ;;  %v19207_v43 = vld [vmem:[%s23871_s1 + $0x1d0] sm:$0xff] }
 0x234   :  { %v4273_v62 = vadd.f32 %v4138_v44, %v3592_v19  ;;  %v1288_v0 = vrot.slane %v1287_v32, 4  ;;  %5542 = vmatmul.bf16.gmra.mxu1 %v19110_v4  ;;  %v19031_v32 = vld [vmem:[#allocation2 + $0xa8] sm:$0xff]  ;;  %6818 = vmatpush.bf16.msra.mxu3 %v19207_v43 }
 0x236   :  { %3499 = vmatmul.bf16.gmra.mxu2 %v18990_v10  ;;  %v4954_v17 = vadd.f32 %v4819_v36, %v4273_v62  ;;  %v1290_v12 = vsel %vm21387_vm14, %v1288_v0, %v1289_v14  ;;  %v4141_v44 = vpop.f32.mrf.mxu3  ;;  %v19071_v14 = vld [vmem:[#allocation2 + $0x1c8] sm:$0xff]  ;;  %v18991_v62 = vld [vmem:[#allocation2 + $0x2e0] sm:$0xff]  ;;  %v24224_v0 = vshll.u32 %v24222_v49, 16 }
 0x237   :  { %1544 = vst [vmem:[#allocation2 + $0x2f0] sm:$0xf] %v1290_v12  ;;  %v1298_v12 = vrot.slane %v24225_v52, 5 }
 0x238   :  { %v21848_v29 = vadd.f32 %v5500_v8, %v4954_v17  ;;  %v4824_v59 = vpop.f32.mrf.mxu0  ;;  %v234_v8 = vsel %vm21344_vm10, 0, %v233_v60  ;;  %v1295_v53 = vrot.slane %v24224_v0, 5 }
 0x239   :  { %v3460_v50 = vpop.f32.mrf.mxu2  ;;  %235 = vst [vmem:[#allocation2 + $0x2fc] sm:$0x8] %v234_v8 }
 0x23a   :  { %v3593_v16 = vadd.f32 %v3460_v50, %v21465_v37  ;;  %v5505_v19 = vpop.f32.mrf.mxu1 }
 0x23c   :  { %v4274_v36 = vadd.f32 %v4141_v44, %v3593_v16  ;;  %v1301_v16 = vor.u32 %v1300_v47, %v1298_v12 }
 0x23e   :  { %v4955_v10 = vadd.f32 %v4822_v58, %v4274_v36  ;;  %v4143_v38 = vpop.f32.mrf.mxu3  ;;  %v24223_v58 = vshrl.u32 %v24222_v49, 16  ;;  %v19167_v36 = vld [vmem:[%s23871_s1 + $0x190] sm:$0xff]  ;;  %v1302_v60 = vrot.slane %v1301_v16, 4  ;;  %v236_v49 = vld [vmem:[#allocation2 + $0x304] sm:$0x8]  ;;  %v18992_v16 = vld [vmem:[#allocation2 + $0x2e8] sm:$0xff] }
 0x23f   :  { %6136 = vmatpush.bf16.msra.mxu2 %v19167_v36  ;;  %v24228_v36 = vld [vmem:[#allocation14_spill] sm:$0xff] }
 0x240   :  { %v21859_v6 = vadd.f32 %v5503_v24, %v4955_v10  ;;  %v4827_v4 = vpop.f32.mrf.mxu0  ;;  %v1294_v17 = vrot.slane %v24223_v58, 4  ;;  %v19111_v24 = vld [vmem:[#allocation2 + $0x2e8] sm:$0xff]  ;;  %v1549_v8 = vld [vmem:[#allocation2 + $0x2fc] sm:$0xf]  ;;  %v237_v58 = vsel %vm21344_vm10, 0, %v236_v49 }
 0x241   :  { %v3462_v54 = vpop.f32.mrf.mxu2  ;;  %238 = vst [vmem:[#allocation2 + $0x304] sm:$0x8] %v237_v58 }
 0x242   :  { %v3594_v37 = vadd.f32 %v3462_v54, %v21473_v48  ;;  %v5508_v50 = vpop.f32.mrf.mxu1  ;;  %v1296_v44 = vor.u32 %v1295_v53, %v1294_v17  ;;  %4185 = vmatmul.bf16.gmra.mxu3 %v19031_v32  ;;  %v24226_v17 = vld [vmem:[#allocation15_spill] sm:$0xff] }
 0x243   :  { %4866 = vmatmul.bf16.gmra.mxu0 %v19071_v14  ;;  %v24227_v0 = vshrl.u32 %v24226_v17, 16  ;;  %v24231_v43 = vshll.u32 %v24226_v17, 16 }
 0x244   :  { %v4275_v23 = vadd.f32 %v4143_v38, %v3594_v37  ;;  %v1297_v10 = vrot.slane %v1296_v44, 4  ;;  %5547 = vmatmul.bf16.gmra.mxu1 %v19111_v24 }
 0x245   :  { %v1309_v53 = vrot.slane %v24227_v0, 4 }
 0x246   :  { %3504 = vmatmul.bf16.gmra.mxu2 %v18991_v62  ;;  %v4956_v48 = vadd.f32 %v4824_v59, %v4275_v23  ;;  %v1299_v47 = vsel %vm21387_vm14, %v1297_v10, %v1298_v12  ;;  %v1550_v59 = vsel %vm21371_vm12, %v1302_v60, %v1549_v8  ;;  %v4146_v38 = vpop.f32.mrf.mxu3  ;;  %v19247_v12 = vld [vmem:[%s23871_s1 + $0x210] sm:$0xff]  ;;  %v24229_v10 = vshrl.u32 %v24228_v36, 16 }
 0x247   :  { %1548 = vst [vmem:[#allocation2 + $0x2f8] sm:$0xf] %v1299_v47  ;;  %v19072_v23 = vld [vmem:[#allocation2 + $0x1d0] sm:$0xff]  ;;  %7500 = vmatpush.bf16.msra.mxu0 %v19247_v12  ;;  %v1307_v47 = vrot.slane %v24231_v43, 5 }
 0x248   :  { %v21871_v28 = vadd.f32 %v5505_v19, %v4956_v48  ;;  %v4829_v37 = vpop.f32.mrf.mxu0  ;;  %1551 = vst [vmem:[#allocation2 + $0x2fc] sm:$0xf] %v1550_v59  ;;  %v19032_v48 = vld [vmem:[#allocation2 + $0xb0] sm:$0xff]  ;;  %v1303_v60 = vrot.slane %v24229_v10, 4  ;;  %v1553_v58 = vld [vmem:[#allocation2 + $0x304] sm:$0xf] }
 0x249   :  { %v3465_v54 = vpop.f32.mrf.mxu2  ;;  %v19112_v59 = vld [vmem:[#allocation2 + $0x2f0] sm:$0xff] }
 0x24a   :  { %v3595_v14 = vadd.f32 %v3465_v54, %v21487_v34  ;;  %v5510_v62 = vpop.f32.mrf.mxu1 }
 0x24c   :  { %v4276_v19 = vadd.f32 %v4146_v38, %v3595_v14 }
 0x24e   :  { %v4957_v32 = vadd.f32 %v4827_v4, %v4276_v19  ;;  %v4148_v24 = vpop.f32.mrf.mxu3  ;;  %v1310_v19 = vor.u32 %v1309_v53, %v1307_v47 }
 0x250   :  { %v21885_v52 = vadd.f32 %v5508_v50, %v4957_v32  ;;  %v4832_v4 = vpop.f32.mrf.mxu0  ;;  %v24230_v50 = vshll.u32 %v24228_v36, 16  ;;  %v1311_v49 = vrot.slane %v1310_v19, 4  ;;  %v24232_v36 = vld [vmem:[#allocation17_spill] sm:$0xff]  ;;  %v24234_v19 = vld [vmem:[#allocation16_spill] sm:$0xff] }
 0x251   :  { %v3467_v34 = vpop.f32.mrf.mxu2  ;;  %v24233_v10 = vshrl.u32 %v24232_v36, 16 }
 0x252   :  { %v3596_v44 = vadd.f32 %v3467_v34, %v21501_v57  ;;  %v1304_v8 = vrot.slane %v24230_v50, 5  ;;  %v5513_v38 = vpop.f32.mrf.mxu1  ;;  %4190 = vmatmul.bf16.gmra.mxu3 %v19032_v48  ;;  %v1554_v17 = vsel %vm21371_vm12, %v1311_v49, %v1553_v58  ;;  %v239_v48 = vld [vmem:[#allocation2 + $0x30c] sm:$0x8]  ;;  %v24237_v58 = vshll.u32 %v24232_v36, 16 }
 0x253   :  { %4871 = vmatmul.bf16.gmra.mxu0 %v19072_v23  ;;  %1555 = vst [vmem:[#allocation2 + $0x304] sm:$0xf] %v1554_v17  ;;  %v19113_v17 = vld [vmem:[#allocation2 + $0x2f8] sm:$0xff] }
 0x254   :  { %v4277_v54 = vadd.f32 %v4148_v24, %v3596_v44  ;;  %v1305_v14 = vor.u32 %v1304_v8, %v1303_v60  ;;  %5552 = vmatmul.bf16.gmra.mxu1 %v19112_v59  ;;  %v1318_v60 = vrot.slane %v24233_v10, 4  ;;  %v19289_v8 = vld [vmem:[%s23873_s3 + $0x20] sm:$0xff] }
 0x255   :  { %9751 = vmatpush.bf16.msra.mxu1 %v19289_v8 }
 0x256   :  { %3509 = vmatmul.bf16.gmra.mxu2 %v18992_v16  ;;  %v4958_v57 = vadd.f32 %v4829_v37, %v4277_v54  ;;  %v1306_v32 = vrot.slane %v1305_v14, 4  ;;  %v4151_v24 = vpop.f32.mrf.mxu3  ;;  %v18993_v54 = vld [vmem:[#allocation2 + $0x2f0] sm:$0xff]  ;;  %v19033_v14 = vld [vmem:[#allocation2 + $0xb8] sm:$0xff] }
 0x258   :  { %v21897_v0 = vadd.f32 %v5510_v62, %v4958_v57  ;;  %v1308_v12 = vsel %vm21387_vm14, %v1306_v32, %v1307_v47  ;;  %v4834_v23 = vpop.f32.mrf.mxu0  ;;  %v240_v62 = vsel %vm21344_vm10, 0, %v239_v48  ;;  %v19073_v47 = vld [vmem:[#allocation2 + $0x1d8] sm:$0xff]  ;;  %v24235_v57 = vshrl.u32 %v24234_v19, 16 }
 0x259   :  { %v3470_v34 = vpop.f32.mrf.mxu2  ;;  %1552 = vst [vmem:[#allocation2 + $0x300] sm:$0xf] %v1308_v12  ;;  %v1316_v12 = vrot.slane %v24237_v58, 5 }
 0x25a   :  { %v3597_v53 = vadd.f32 %v3470_v34, %v21518_v2  ;;  %v5515_v44 = vpop.f32.mrf.mxu1  ;;  %241 = vst [vmem:[#allocation2 + $0x30c] sm:$0x8] %v240_v62  ;;  %v1312_v32 = vrot.slane %v24235_v57, 4 }
 0x25c   :  { %v4278_v37 = vadd.f32 %v4151_v24, %v3597_v53 }
 0x25e   :  { %v4959_v16 = vadd.f32 %v4832_v4, %v4278_v37  ;;  %v4153_v43 = vpop.f32.mrf.mxu3  ;;  %v1319_v37 = vor.u32 %v1318_v60, %v1316_v12 }
 0x260   :  { %v21908_v50 = vadd.f32 %v5513_v38, %v4959_v16  ;;  %v4837_v4 = vpop.f32.mrf.mxu0  ;;  %v24236_v38 = vshll.u32 %v24234_v19, 16  ;;  %v1320_v48 = vrot.slane %v1319_v37, 4  ;;  %v24238_v19 = vld [vmem:[#allocation19_spill] sm:$0xff]  ;;  %v24240_v37 = vld [vmem:[#allocation18_spill] sm:$0xff] }
 0x261   :  { %v3472_v2 = vpop.f32.mrf.mxu2  ;;  %v1557_v62 = vld [vmem:[#allocation2 + $0x30c] sm:$0xf]  ;;  %v24239_v57 = vshrl.u32 %v24238_v19, 16 }
 0x262   :  { %v3598_v59 = vadd.f32 %v3472_v2, %v21526_v46  ;;  %v1313_v49 = vrot.slane %v24236_v38, 5  ;;  %v5518_v24 = vpop.f32.mrf.mxu1  ;;  %4195 = vmatmul.bf16.gmra.mxu3 %v19033_v14  ;;  %v1558_v36 = vsel %vm21371_vm12, %v1320_v48, %v1557_v62  ;;  %v242_v14 = vld [vmem:[#allocation2 + $0x314] sm:$0x8]  ;;  %v24243_v62 = vshll.u32 %v24238_v19, 16 }
 0x263   :  { %4876 = vmatmul.bf16.gmra.mxu0 %v19073_v47  ;;  %1559 = vst [vmem:[#allocation2 + $0x30c] sm:$0xf] %v1558_v36 }
 0x264   :  { %v4279_v34 = vadd.f32 %v4153_v43, %v3598_v59  ;;  %v1314_v53 = vor.u32 %v1313_v49, %v1312_v32  ;;  %5557 = vmatmul.bf16.gmra.mxu1 %v19113_v17  ;;  %v1327_v32 = vrot.slane %v24239_v57, 4 }
 0x266   :  { %3514 = vmatmul.bf16.gmra.mxu2 %v18993_v54  ;;  %v4960_v46 = vadd.f32 %v4834_v23, %v4279_v34  ;;  %v1315_v16 = vrot.slane %v1314_v53, 4  ;;  %v4156_v43 = vpop.f32.mrf.mxu3  ;;  %v18994_v34 = vld [vmem:[#allocation2 + $0x2f8] sm:$0xff]  ;;  %v19034_v53 = vld [vmem:[#allocation2 + $0xc0] sm:$0xff] }
 0x268   :  { %v21920_v10 = vadd.f32 %v5515_v44, %v4960_v46  ;;  %v1317_v8 = vsel %vm21387_vm14, %v1315_v16, %v1316_v12  ;;  %v4839_v47 = vpop.f32.mrf.mxu0  ;;  %v243_v44 = vsel %vm21344_vm10, 0, %v242_v14  ;;  %v19074_v12 = vld [vmem:[#allocation2 + $0x1e0] sm:$0xff]  ;;  %v24242_v16 = vshll.u32 %v24240_v37, 16 }
 0x269   :  { %v3475_v2 = vpop.f32.mrf.mxu2  ;;  %1556 = vst [vmem:[#allocation2 + $0x308] sm:$0xf] %v1317_v8  ;;  %v1325_v8 = vrot.slane %v24243_v62, 5 }
 0x26a   :  { %v3599_v60 = vadd.f32 %v3475_v2, %v21540_v20  ;;  %v5520_v59 = vpop.f32.mrf.mxu1  ;;  %244 = vst [vmem:[#allocation2 + $0x314] sm:$0x8] %v243_v44  ;;  %v1322_v48 = vrot.slane %v24242_v16, 5 }
 0x26c   :  { %v4280_v23 = vadd.f32 %v4156_v43, %v3599_v60  ;;  %v1328_v60 = vor.u32 %v1327_v32, %v1325_v8 }
 0x26e   :  { %v4961_v54 = vadd.f32 %v4837_v4, %v4280_v23  ;;  %v4158_v58 = vpop.f32.mrf.mxu3  ;;  %v24241_v4 = vshrl.u32 %v24240_v37, 16  ;;  %v24244_v37 = vld [vmem:[#allocation21_spill] sm:$0xff] }
 0x270   :  { %v21931_v38 = vadd.f32 %v5518_v24, %v4961_v54  ;;  %v4842_v17 = vpop.f32.mrf.mxu0  ;;  %v1321_v46 = vrot.slane %v24241_v4, 4  ;;  %v19114_v24 = vld [vmem:[#allocation2 + $0x300] sm:$0xff]  ;;  %v1329_v54 = vrot.slane %v1328_v60, 4  ;;  %v24245_v4 = vshrl.u32 %v24244_v37, 16 }
 0x271   :  { %v3477_v49 = vpop.f32.mrf.mxu2  ;;  %v1561_v14 = vld [vmem:[#allocation2 + $0x314] sm:$0xf]  ;;  %v24246_v60 = vld [vmem:[#allocation20_spill] sm:$0xff] }
 0x272   :  { %v3600_v20 = vadd.f32 %v3477_v49, %v21548_v41  ;;  %v5523_v2 = vpop.f32.mrf.mxu1  ;;  %v1323_v43 = vor.u32 %v1322_v48, %v1321_v46  ;;  %4200 = vmatmul.bf16.gmra.mxu3 %v19034_v53  ;;  %v1562_v19 = vsel %vm21371_vm12, %v1329_v54, %v1561_v14  ;;  %v245_v53 = vld [vmem:[#allocation2 + $0x31c] sm:$0x8]  ;;  %v1336_v46 = vrot.slane %v24245_v4, 4 }
 0x273   :  { %4881 = vmatmul.bf16.gmra.mxu0 %v19074_v12  ;;  %1563 = vst [vmem:[#allocation2 + $0x314] sm:$0xf] %v1562_v19  ;;  %v24249_v14 = vshll.u32 %v24244_v37, 16  ;;  %v19206_v37 = vld [vmem:[%s23871_s1 + $0x1c8] sm:$0xff] }
 0x274   :  { %v4281_v36 = vadd.f32 %v4158_v58, %v3600_v20  ;;  %v1324_v23 = vrot.slane %v1323_v43, 4  ;;  %5562 = vmatmul.bf16.gmra.mxu1 %v19114_v24  ;;  %v19035_v43 = vld [vmem:[#allocation2 + $0xc8] sm:$0xff]  ;;  %6819 = vmatpush.bf16.msra.mxu3 %v19206_v37 }
 0x276   :  { %3519 = vmatmul.bf16.gmra.mxu2 %v18994_v34  ;;  %v4962_v41 = vadd.f32 %v4839_v47, %v4281_v36  ;;  %v1326_v57 = vsel %vm21387_vm14, %v1324_v23, %v1325_v8  ;;  %v4161_v58 = vpop.f32.mrf.mxu3  ;;  %v19075_v8 = vld [vmem:[#allocation2 + $0x1e8] sm:$0xff]  ;;  %v18995_v36 = vld [vmem:[#allocation2 + $0x300] sm:$0xff]  ;;  %v24248_v23 = vshll.u32 %v24246_v60, 16 }
 0x277   :  { %1560 = vst [vmem:[#allocation2 + $0x310] sm:$0xf] %v1326_v57  ;;  %v1334_v57 = vrot.slane %v24249_v14, 5 }
 0x278   :  { %v21940_v44 = vadd.f32 %v5520_v59, %v4962_v41  ;;  %v4844_v12 = vpop.f32.mrf.mxu0  ;;  %v246_v59 = vsel %vm21344_vm10, 0, %v245_v53  ;;  %v1331_v54 = vrot.slane %v24248_v23, 5 }
 0x279   :  { %v3480_v49 = vpop.f32.mrf.mxu2  ;;  %247 = vst [vmem:[#allocation2 + $0x31c] sm:$0x8] %v246_v59 }
 0x27a   :  { %v3601_v32 = vadd.f32 %v3480_v49, %v21562_v3  ;;  %v5525_v20 = vpop.f32.mrf.mxu1 }
 0x27c   :  { %v4282_v47 = vadd.f32 %v4161_v58, %v3601_v32  ;;  %v1337_v32 = vor.u32 %v1336_v46, %v1334_v57 }
 0x27e   :  { %v4963_v34 = vadd.f32 %v4842_v17, %v4282_v47  ;;  %v4163_v62 = vpop.f32.mrf.mxu3  ;;  %v24247_v17 = vshrl.u32 %v24246_v60, 16  ;;  %v19166_v47 = vld [vmem:[%s23871_s1 + $0x188] sm:$0xff]  ;;  %v1338_v53 = vrot.slane %v1337_v32, 4  ;;  %v248_v60 = vld [vmem:[#allocation2 + $0x324] sm:$0x8] }
 0x27f   :  { %6137 = vmatpush.bf16.msra.mxu2 %v19166_v47  ;;  %v19036_v47 = vld [vmem:[#allocation2 + $0xd0] sm:$0xff] }
 0x280   :  { %v21951_v16 = vadd.f32 %v5523_v2, %v4963_v34  ;;  %v4847_v24 = vpop.f32.mrf.mxu0  ;;  %v1330_v41 = vrot.slane %v24247_v17, 4  ;;  %v19115_v2 = vld [vmem:[#allocation2 + $0x308] sm:$0xff]  ;;  %v1565_v59 = vld [vmem:[#allocation2 + $0x31c] sm:$0xf]  ;;  %v249_v17 = vsel %vm21344_vm10, 0, %v248_v60 }
 0x281   :  { %v3482_v48 = vpop.f32.mrf.mxu2  ;;  %250 = vst [vmem:[#allocation2 + $0x324] sm:$0x8] %v249_v17 }
 0x282   :  { %v3602_v3 = vadd.f32 %v3482_v48, %v21570_v7  ;;  %v5528_v49 = vpop.f32.mrf.mxu1  ;;  %v1332_v58 = vor.u32 %v1331_v54, %v1330_v41  ;;  %4205 = vmatmul.bf16.gmra.mxu3 %v19035_v43  ;;  %v24250_v41 = vld [vmem:[#allocation23_spill] sm:$0xff] }
 0x283   :  { %4886 = vmatmul.bf16.gmra.mxu0 %v19075_v8  ;;  %v24251_v23 = vshrl.u32 %v24250_v41, 16 }
 0x284   :  { %v4283_v19 = vadd.f32 %v4163_v62, %v3602_v3  ;;  %v1333_v34 = vrot.slane %v1332_v58, 4  ;;  %5567 = vmatmul.bf16.gmra.mxu1 %v19115_v2  ;;  %v24252_v58 = vld [vmem:[#allocation66_spill] sm:$0xff] }
 0x285   :  { %v1345_v54 = vrot.slane %v24251_v23, 4 }
 0x286   :  { %3524 = vmatmul.bf16.gmra.mxu2 %v18995_v36  ;;  %v4964_v7 = vadd.f32 %v4844_v12, %v4283_v19  ;;  %v1335_v46 = vsel %vm21387_vm14, %v1333_v34, %v1334_v57  ;;  %v1566_v12 = vsel %vm21371_vm12, %v1338_v53, %v1565_v59  ;;  %v4166_v62 = vpop.f32.mrf.mxu3  ;;  %v19246_v57 = vld [vmem:[%s23871_s1 + $0x208] sm:$0xff]  ;;  %v19076_v19 = vld [vmem:[#allocation2 + $0x1f0] sm:$0xff] }
 0x287   :  { %1564 = vst [vmem:[#allocation2 + $0x318] sm:$0xf] %v1335_v46  ;;  %7501 = vmatpush.bf16.msra.mxu0 %v19246_v57  ;;  %v24253_v34 = vld [vmem:[#allocation22_spill] sm:$0xff]  ;;  %v24256_v46 = vshll.u32 %v24250_v41, 16 }
 0x288   :  { %v21963_v4 = vadd.f32 %v5525_v20, %v4964_v7  ;;  %v4849_v3 = vpop.f32.mrf.mxu0  ;;  %1567 = vst [vmem:[#allocation2 + $0x31c] sm:$0xf] %v1566_v12  ;;  %v18996_v7 = vld [vmem:[#allocation2 + $0x308] sm:$0xff]  ;;  %v24254_v53 = vshrl.u32 %v24253_v34, 16  ;;  %v1569_v57 = vld [vmem:[#allocation2 + $0x324] sm:$0xf] }
 0x289   :  { %v3485_v48 = vpop.f32.mrf.mxu2  ;;  %v1343_v12 = vrot.slane %v24256_v46, 5  ;;  %v19288_v46 = vld [vmem:[%s23873_s3 + $0x18] sm:$0xff] }
 0x28a   :  { %v3603_v8 = vadd.f32 %v3485_v48, %v21584_v25  ;;  %v5530_v36 = vpop.f32.mrf.mxu1  ;;  %v1339_v59 = vrot.slane %v24254_v53, 4  ;;  %v19116_v48 = vld [vmem:[#allocation2 + $0x310] sm:$0xff]  ;;  %v24257_v53 = vld [vmem:[#allocation25_spill] sm:$0xff]  ;;  %9752 = vmatpush.bf16.msra.mxu1 %v19288_v46 }
 0x28c   :  { %v4284_v20 = vadd.f32 %v4166_v62, %v3603_v8 }
 0x28e   :  { %v4965_v43 = vadd.f32 %v4847_v24, %v4284_v20  ;;  %v4168_v2 = vpop.f32.mrf.mxu3 }
 0x290   :  { %v21977_v14 = vadd.f32 %v5528_v49, %v4965_v43  ;;  %v4852_v24 = vpop.f32.mrf.mxu0  ;;  %v24255_v49 = vshll.u32 %v24253_v34, 16  ;;  %v1346_v43 = vor.u32 %v1345_v54, %v1343_v12  ;;  %v251_v34 = vld [vmem:[#allocation2 + $0x32c] sm:$0x8] }
 0x291   :  { %v3487_v25 = vpop.f32.mrf.mxu2 }
 0x292   :  { %v3604_v32 = vadd.f32 %v3487_v25, %v24252_v58  ;;  %v1340_v37 = vrot.slane %v24255_v49, 5  ;;  %v5533_v8 = vpop.f32.mrf.mxu1  ;;  %4210 = vmatmul.bf16.gmra.mxu3 %v19036_v47  ;;  %v1347_v23 = vrot.slane %v1346_v43, 4  ;;  %v19037_v43 = vld [vmem:[#allocation2 + $0xd8] sm:$0xff] }
 0x293   :  { %4891 = vmatmul.bf16.gmra.mxu0 %v19076_v19 }
 0x294   :  { %v4285_v62 = vadd.f32 %v4168_v2, %v3604_v32  ;;  %v1341_v20 = vor.u32 %v1340_v37, %v1339_v59  ;;  %5572 = vmatmul.bf16.gmra.mxu1 %v19116_v48  ;;  %v1570_v41 = vsel %vm21371_vm12, %v1347_v23, %v1569_v57  ;;  %v24258_v59 = vshrl.u32 %v24257_v53, 16  ;;  %v19077_v48 = vld [vmem:[#allocation2 + $0x1f8] sm:$0xff] }
 0x295   :  { %1571 = vst [vmem:[#allocation2 + $0x324] sm:$0xf] %v1570_v41 }
 0x296   :  { %3529 = vmatmul.bf16.gmra.mxu2 %v18996_v7  ;;  %v4966_v60 = vadd.f32 %v4849_v3, %v4285_v62  ;;  %v1342_v17 = vrot.slane %v1341_v20, 4  ;;  %v4171_v32 = vpop.f32.mrf.mxu3  ;;  %v1354_v49 = vrot.slane %v24258_v59, 4  ;;  %v18997_v20 = vld [vmem:[#allocation2 + $0x310] sm:$0xff] }
 0x298   :  { %v21989_v25 = vadd.f32 %v5530_v36, %v4966_v60  ;;  %v1344_v58 = vsel %vm21387_vm14, %v1342_v17, %v1343_v12  ;;  %v4854_v19 = vpop.f32.mrf.mxu0  ;;  %v252_v36 = vsel %vm21344_vm10, 0, %v251_v34  ;;  %v24259_v60 = vld [vmem:[#allocation24_spill] sm:$0xff] }
 0x299   :  { %v3490_v2 = vpop.f32.mrf.mxu2  ;;  %1568 = vst [vmem:[#allocation2 + $0x320] sm:$0xf] %v1344_v58  ;;  %v24260_v17 = vshrl.u32 %v24259_v60, 16  ;;  %v24262_v58 = vshll.u32 %v24257_v53, 16 }
 0x29a   :  { %v3605_v54 = vadd.f32 %v3490_v2, %v21615_v31  ;;  %v5535_v7 = vpop.f32.mrf.mxu1  ;;  %253 = vst [vmem:[#allocation2 + $0x32c] sm:$0x8] %v252_v36  ;;  %v19117_v2 = vld [vmem:[#allocation2 + $0x318] sm:$0xff] }
 0x29b   :  { %v1348_v23 = vrot.slane %v24260_v17, 4  ;;  %v1352_v41 = vrot.slane %v24262_v58, 5  ;;  %v254_v17 = vld [vmem:[#allocation2 + $0x334] sm:$0x8]  ;;  %v19078_v58 = vld [vmem:[#allocation2 + $0x200] sm:$0xff] }
 0x29c   :  { %v4286_v3 = vadd.f32 %v4171_v32, %v3605_v54 }
 0x29e   :  { %v4967_v47 = vadd.f32 %v4852_v24, %v4286_v3  ;;  %v4173_v12 = vpop.f32.mrf.mxu3 }
 0x2a0   :  { %v22000_v37 = vadd.f32 %v5533_v8, %v4967_v47  ;;  %v4857_v24 = vpop.f32.mrf.mxu0  ;;  %v24261_v8 = vshll.u32 %v24259_v60, 16  ;;  %v1355_v47 = vor.u32 %v1354_v49, %v1352_v41  ;;  %v24263_v49 = vld [vmem:[#allocation26_spill] sm:$0xff] }
 0x2a1   :  { %v3492_v31 = vpop.f32.mrf.mxu2  ;;  %v1573_v59 = vld [vmem:[#allocation2 + $0x32c] sm:$0xf] }
 0x2a2   :  { %v3606_v62 = vadd.f32 %v3492_v31, %v21623_v33  ;;  %v1349_v57 = vrot.slane %v24261_v8, 5  ;;  %v5538_v54 = vpop.f32.mrf.mxu1  ;;  %4215 = vmatmul.bf16.gmra.mxu3 %v19037_v43  ;;  %v1356_v36 = vrot.slane %v1355_v47, 4  ;;  %v19038_v47 = vld [vmem:[#allocation2 + $0xe0] sm:$0xff] }
 0x2a3   :  { %4896 = vmatmul.bf16.gmra.mxu0 %v19077_v48 }
 0x2a4   :  { %v4287_v32 = vadd.f32 %v4173_v12, %v3606_v62  ;;  %v1350_v3 = vor.u32 %v1349_v57, %v1348_v23  ;;  %5577 = vmatmul.bf16.gmra.mxu1 %v19117_v2  ;;  %v1574_v53 = vsel %vm21371_vm12, %v1356_v36, %v1573_v59 }
 0x2a5   :  { %1575 = vst [vmem:[#allocation2 + $0x32c] sm:$0xf] %v1574_v53 }
 0x2a6   :  { %3534 = vmatmul.bf16.gmra.mxu2 %v18997_v20  ;;  %v4968_v33 = vadd.f32 %v4854_v19, %v4287_v32  ;;  %v1351_v34 = vrot.slane %v1350_v3, 4  ;;  %v4176_v62 = vpop.f32.mrf.mxu3  ;;  %v18998_v3 = vld [vmem:[#allocation2 + $0x318] sm:$0xff] }
 0x2a8   :  { %v22012_v46 = vadd.f32 %v5535_v7, %v4968_v33  ;;  %v1353_v31 = vsel %vm21387_vm14, %v1351_v34, %v1352_v41  ;;  %v4859_v20 = vpop.f32.mrf.mxu0  ;;  %v255_v7 = vsel %vm21344_vm10, 0, %v254_v17  ;;  %v24265_v41 = vld [vmem:[#allocation27_spill] sm:$0xff]  ;;  %v24266_v33 = vld [vmem:[#allocation28_spill] sm:$0xff] }
 0x2a9   :  { %v3495_v12 = vpop.f32.mrf.mxu2  ;;  %1572 = vst [vmem:[#allocation2 + $0x328] sm:$0xf] %v1353_v31  ;;  %v24267_v34 = vshrl.u32 %v24266_v33, 16  ;;  %v24269_v31 = vld [vmem:[#allocation29_spill] sm:$0xff] }
 0x2aa   :  { %v3607_v48 = vadd.f32 %v3495_v12, %v24263_v49  ;;  %v5540_v43 = vpop.f32.mrf.mxu1  ;;  %256 = vst [vmem:[#allocation2 + $0x334] sm:$0x8] %v255_v7  ;;  %v24270_v53 = vshll.u32 %v24269_v31, 16 }
 0x2ab   :  { %v1357_v36 = vrot.slane %v24267_v34, 4 }
 0x2ac   :  { %v4288_v19 = vadd.f32 %v4176_v62, %v3607_v48  ;;  %v1361_v12 = vrot.slane %v24270_v53, 5  ;;  %v24271_v62 = vshrl.u32 %v24269_v31, 16 }
 0x2ae   :  { %v4969_v60 = vadd.f32 %v4857_v24, %v4288_v19  ;;  %v4178_v57 = vpop.f32.mrf.mxu3  ;;  %v24268_v24 = vshll.u32 %v24266_v33, 16  ;;  %v1363_v49 = vrot.slane %v24271_v62, 4 }
 0x2b0   :  { %v22021_v23 = vadd.f32 %v5538_v54, %v4969_v60  ;;  %v4862_v32 = vpop.f32.mrf.mxu0  ;;  %v1358_v59 = vrot.slane %v24268_v24, 5  ;;  %v19118_v54 = vld [vmem:[#allocation2 + $0x320] sm:$0xff]  ;;  %v1364_v17 = vor.u32 %v1363_v49, %v1361_v12  ;;  %v19079_v49 = vld [vmem:[#allocation2 + $0x208] sm:$0xff] }
 0x2b1   :  { %v3497_v8 = vpop.f32.mrf.mxu2  ;;  %v1577_v33 = vld [vmem:[#allocation2 + $0x334] sm:$0xf] }
 0x2b2   :  { %24264 = vst [vmem:[#allocation5_spill] sm:$0xff] %v22021_v23  ;;  %v3608_v2 = vadd.f32 %v3497_v8, %v24265_v41  ;;  %v5543_v19 = vpop.f32.mrf.mxu1  ;;  %v1359_v60 = vor.u32 %v1358_v59, %v1357_v36  ;;  %4220 = vmatmul.bf16.gmra.mxu3 %v19038_v47  ;;  %v1365_v41 = vrot.slane %v1364_v17, 4  ;;  %v257_v59 = vld [vmem:[#allocation2 + $0x33c] sm:$0x8]  ;;  %v19223_v23 = vld [vmem:[#allocation2 + $0x2a0] sm:$0xff] }
 0x2b3   :  { %4901 = vmatmul.bf16.gmra.mxu0 %v19078_v58  ;;  %v24273_v58 = vld [vmem:[#allocation30_spill] sm:$0xff] }
 0x2b4   :  { %v4289_v48 = vadd.f32 %v4178_v57, %v3608_v2  ;;  %v1360_v8 = vrot.slane %v1359_v60, 4  ;;  %5582 = vmatmul.bf16.gmra.mxu1 %v19118_v54  ;;  %v1578_v57 = vsel %vm21371_vm12, %v1365_v41, %v1577_v33  ;;  %v24276_v41 = vld [vmem:[#allocation32_spill] sm:$0xff] }
 0x2b5   :  { %1579 = vst [vmem:[#allocation2 + $0x334] sm:$0xf] %v1578_v57  ;;  %v24277_v33 = vshrl.u32 %v24276_v41, 16 }
 0x2b6   :  { %3539 = vmatmul.bf16.gmra.mxu2 %v18998_v3  ;;  %v4970_v7 = vadd.f32 %v4859_v20, %v4289_v48  ;;  %v1362_v24 = vsel %vm21387_vm14, %v1360_v8, %v1361_v12  ;;  %v4181_v31 = vpop.f32.mrf.mxu3  ;;  %v24275_v48 = vld [vmem:[#allocation31_spill] sm:$0xff]  ;;  %v19039_v8 = vld [vmem:[#allocation2 + $0xe8] sm:$0xff] }
 0x2b7   :  { %1576 = vst [vmem:[#allocation2 + $0x330] sm:$0xf] %v1362_v24  ;;  %v1366_v24 = vrot.slane %v24277_v33, 4 }
 0x2b8   :  { %v22032_v34 = vadd.f32 %v5540_v43, %v4970_v7  ;;  %v4864_v3 = vpop.f32.mrf.mxu0  ;;  %v258_v43 = vsel %vm21344_vm10, 0, %v257_v59  ;;  %v18999_v7 = vld [vmem:[#allocation2 + $0x320] sm:$0xff] }
 0x2b9   :  { %v3500_v53 = vpop.f32.mrf.mxu2  ;;  %259 = vst [vmem:[#allocation2 + $0x33c] sm:$0x8] %v258_v43 }
 0x2ba   :  { %24272 = vst [vmem:[#allocation45_spill] sm:$0xff] %v22032_v34  ;;  %v3609_v2 = vadd.f32 %v3500_v53, %v24273_v58  ;;  %v5545_v47 = vpop.f32.mrf.mxu1 }
 0x2bc   :  { %v4290_v20 = vadd.f32 %v4181_v31, %v3609_v2  ;;  %v24279_v31 = vld [vmem:[#allocation33_spill] sm:$0xff] }
 0x2bd   :  { %v24280_v57 = vshll.u32 %v24279_v31, 16  ;;  %v24281_v2 = vshrl.u32 %v24279_v31, 16 }
 0x2be   :  { %v4971_v36 = vadd.f32 %v4862_v32, %v4290_v20  ;;  %v4183_v62 = vpop.f32.mrf.mxu3  ;;  %v24278_v32 = vshll.u32 %v24276_v41, 16  ;;  %v19165_v41 = vld [vmem:[%s23871_s1 + $0x180] sm:$0xff] }
 0x2bf   :  { %v1370_v58 = vrot.slane %v24280_v57, 5  ;;  %v1372_v20 = vrot.slane %v24281_v2, 4  ;;  %6138 = vmatpush.bf16.msra.mxu2 %v19165_v41  ;;  %v260_v2 = vld [vmem:[#allocation2 + $0x344] sm:$0x8]  ;;  %v24285_v41 = vld [vmem:[#allocation35_spill] sm:$0xff] }
 0x2c0   :  { %v22041_v54 = vadd.f32 %v5543_v19, %v4971_v36  ;;  %v4867_v17 = vpop.f32.mrf.mxu0  ;;  %v1367_v53 = vrot.slane %v24278_v32, 5  ;;  %v19119_v19 = vld [vmem:[#allocation2 + $0x328] sm:$0xff]  ;;  %v1581_v57 = vld [vmem:[#allocation2 + $0x33c] sm:$0xf] }
 0x2c1   :  { %v3502_v12 = vpop.f32.mrf.mxu2 }
 0x2c2   :  { %24274 = vst [vmem:[#allocation4_spill] sm:$0xff] %v22041_v54  ;;  %v3610_v60 = vadd.f32 %v3502_v12, %v24275_v48  ;;  %v5548_v59 = vpop.f32.mrf.mxu1  ;;  %v1368_v43 = vor.u32 %v1367_v53, %v1366_v24  ;;  %v1373_v12 = vor.u32 %v1372_v20, %v1370_v58  ;;  %4225 = vmatmul.bf16.gmra.mxu3 %v19039_v8  ;;  %v24283_v8 = vld [vmem:[#allocation34_spill] sm:$0xff]  ;;  %v261_v20 = vsel %vm21344_vm10, 0, %v260_v2 }
 0x2c3   :  { %4906 = vmatmul.bf16.gmra.mxu0 %v19079_v49  ;;  %262 = vst [vmem:[#allocation2 + $0x344] sm:$0x8] %v261_v20 }
 0x2c4   :  { %v4291_v36 = vadd.f32 %v4183_v62, %v3610_v60  ;;  %v1369_v33 = vrot.slane %v1368_v43, 4  ;;  %5587 = vmatmul.bf16.gmra.mxu1 %v19119_v19  ;;  %v1374_v32 = vrot.slane %v1373_v12, 4  ;;  %v19205_v62 = vld [vmem:[%s23871_s1 + $0x1c0] sm:$0xff] }
 0x2c5   :  { %6820 = vmatpush.bf16.msra.mxu3 %v19205_v62  ;;  %v19040_v62 = vld [vmem:[#allocation2 + $0xf0] sm:$0xff] }
 0x2c6   :  { %3544 = vmatmul.bf16.gmra.mxu2 %v18999_v7  ;;  %v4972_v48 = vadd.f32 %v4864_v3, %v4291_v36  ;;  %v1371_v49 = vsel %vm21387_vm14, %v1369_v33, %v1370_v58  ;;  %v4186_v3 = vpop.f32.mrf.mxu3  ;;  %v1582_v7 = vsel %vm21371_vm12, %v1374_v32, %v1581_v57  ;;  %v19245_v58 = vld [vmem:[%s23871_s1 + $0x200] sm:$0xff]  ;;  %v19000_v57 = vld [vmem:[#allocation2 + $0x328] sm:$0xff] }
 0x2c7   :  { %1580 = vst [vmem:[#allocation2 + $0x338] sm:$0xf] %v1371_v49  ;;  %7502 = vmatpush.bf16.msra.mxu0 %v19245_v58 }
 0x2c8   :  { %v22055_v54 = vadd.f32 %v5545_v47, %v4972_v48  ;;  %v4869_v53 = vpop.f32.mrf.mxu0  ;;  %1583 = vst [vmem:[#allocation2 + $0x33c] sm:$0xf] %v1582_v7  ;;  %v19080_v48 = vld [vmem:[#allocation2 + $0x210] sm:$0xff]  ;;  %v24289_v7 = vld [vmem:[#allocation37_spill] sm:$0xff] }
 0x2c9   :  { %v3505_v60 = vpop.f32.mrf.mxu2 }
 0x2ca   :  { %24282 = vst [vmem:[#allocation47_spill] sm:$0xff] %v22055_v54  ;;  %v3611_v24 = vadd.f32 %v3505_v60, %v24283_v8  ;;  %v5550_v31 = vpop.f32.mrf.mxu1  ;;  %v24290_v8 = vshll.u32 %v24289_v7, 16 }
 0x2cc   :  { %v4292_v47 = vadd.f32 %v4186_v3, %v3611_v24  ;;  %v1379_v24 = vrot.slane %v24290_v8, 5 }
 0x2ce   :  { %v4973_v19 = vadd.f32 %v4867_v17, %v4292_v47  ;;  %v4188_v12 = vpop.f32.mrf.mxu3  ;;  %v24286_v17 = vld [vmem:[#allocation36_spill] sm:$0xff]  ;;  %v19120_v47 = vld [vmem:[#allocation2 + $0x330] sm:$0xff] }
 0x2cf   :  { %v24287_v49 = vshrl.u32 %v24286_v17, 16 }
 0x2d0   :  { %v22067_v36 = vadd.f32 %v5548_v59, %v4973_v19  ;;  %v4872_v32 = vpop.f32.mrf.mxu0  ;;  %v24288_v59 = vshll.u32 %v24286_v17, 16  ;;  %v24291_v19 = vshrl.u32 %v24289_v7, 16  ;;  %v1585_v17 = vld [vmem:[#allocation2 + $0x344] sm:$0xf] }
 0x2d1   :  { %v3507_v43 = vpop.f32.mrf.mxu2  ;;  %v1375_v60 = vrot.slane %v24287_v49, 4 }
 0x2d2   :  { %24284 = vst [vmem:[#allocation7_spill] sm:$0xff] %v22067_v36  ;;  %v3612_v33 = vadd.f32 %v3507_v43, %v24285_v41  ;;  %v1376_v3 = vrot.slane %v24288_v59, 5  ;;  %v1381_v2 = vrot.slane %v24291_v19, 4  ;;  %v5553_v36 = vpop.f32.mrf.mxu1  ;;  %4230 = vmatmul.bf16.gmra.mxu3 %v19040_v62 }
 0x2d3   :  { %4911 = vmatmul.bf16.gmra.mxu0 %v19080_v48  ;;  %v24293_v48 = vld [vmem:[#allocation38_spill] sm:$0xff] }
 0x2d4   :  { %v4293_v20 = vadd.f32 %v4188_v12, %v3612_v33  ;;  %v1377_v43 = vor.u32 %v1376_v3, %v1375_v60  ;;  %v1382_v41 = vor.u32 %v1381_v2, %v1379_v24  ;;  %5592 = vmatmul.bf16.gmra.mxu1 %v19120_v47  ;;  %v263_v3 = vld [vmem:[#allocation2 + $0x34c] sm:$0x8]  ;;  %v19001_v2 = vld [vmem:[#allocation2 + $0x330] sm:$0xff] }
 0x2d6   :  { %3549 = vmatmul.bf16.gmra.mxu2 %v19000_v57  ;;  %v4974_v58 = vadd.f32 %v4869_v53, %v4293_v20  ;;  %v1378_v54 = vrot.slane %v1377_v43, 4  ;;  %v1383_v49 = vrot.slane %v1382_v41, 4  ;;  %v4191_v7 = vpop.f32.mrf.mxu3  ;;  %v24295_v20 = vld [vmem:[#allocation39_spill] sm:$0xff] }
 0x2d8   :  { %v22081_v59 = vadd.f32 %v5550_v31, %v4974_v58  ;;  %v1380_v8 = vsel %vm21387_vm14, %v1378_v54, %v1379_v24  ;;  %v1586_v12 = vsel %vm21371_vm12, %v1383_v49, %v1585_v17  ;;  %v4874_v57 = vpop.f32.mrf.mxu0  ;;  %v264_v31 = vsel %vm21344_vm10, 0, %v263_v3  ;;  %v19287_v54 = vld [vmem:[%s23873_s3 + $0x10] sm:$0xff]  ;;  %v19041_v58 = vld [vmem:[#allocation2 + $0xf8] sm:$0xff] }
 0x2d9   :  { %v3510_v34 = vpop.f32.mrf.mxu2  ;;  %1584 = vst [vmem:[#allocation2 + $0x340] sm:$0xf] %v1380_v8  ;;  %9753 = vmatpush.bf16.msra.mxu1 %v19287_v54 }
 0x2da   :  { %24292 = vst [vmem:[#allocation49_spill] sm:$0xff] %v22081_v59  ;;  %v3613_v33 = vadd.f32 %v3510_v34, %v24293_v48  ;;  %v5555_v62 = vpop.f32.mrf.mxu1  ;;  %v19081_v34 = vld [vmem:[#allocation2 + $0x218] sm:$0xff] }
 0x2db   :  { %1587 = vst [vmem:[#allocation2 + $0x344] sm:$0xf] %v1586_v12 }
 0x2dc   :  { %v4294_v53 = vadd.f32 %v4191_v7, %v3613_v33  ;;  %265 = vst [vmem:[#allocation2 + $0x34c] sm:$0x8] %v264_v31  ;;  %v24299_v7 = vld [vmem:[#allocation41_spill] sm:$0xff]  ;;  %v155_v33 = vld [vmem:[#allocation2 + $0x110] sm:$0x1] }
 0x2dd   :  { %v24300_v12 = vshll.u32 %v24299_v7, 16  ;;  %v156_v31 = vsel %vm20226_vm2, 0, %v155_v33 }
 0x2de   :  { %v4975_v60 = vadd.f32 %v4872_v32, %v4294_v53  ;;  %v4193_v19 = vpop.f32.mrf.mxu3  ;;  %v24296_v32 = vld [vmem:[#allocation40_spill] sm:$0xff]  ;;  %v19121_v53 = vld [vmem:[#allocation2 + $0x338] sm:$0xff]  ;;  %157 = vst [vmem:[#allocation2 + $0x110] sm:$0x1] %v156_v31 }
 0x2df   :  { %v24297_v49 = vshrl.u32 %v24296_v32, 16  ;;  %v1388_v48 = vrot.slane %v24300_v12, 5 }
 0x2e0   :  { %v22090_v47 = vadd.f32 %v5553_v36, %v4975_v60  ;;  %v4877_v41 = vpop.f32.mrf.mxu0  ;;  %v24298_v36 = vshll.u32 %v24296_v32, 16  ;;  %v24301_v60 = vshrl.u32 %v24299_v7, 16  ;;  %v334_v32 = vld [vmem:[%s23872_s0 + $0xf8] sm:$0xf] }
 0x2e1   :  { %v3512_v24 = vpop.f32.mrf.mxu2  ;;  %v1384_v17 = vrot.slane %v24297_v49, 4  ;;  %399 = vst [vmem:[#allocation2 + $0x230] sm:$0xf] %v334_v32 }
 0x2e2   :  { %24294 = vst [vmem:[#allocation6_spill] sm:$0xff] %v22090_v47  ;;  %v3614_v43 = vadd.f32 %v3512_v24, %v24295_v20  ;;  %v1385_v8 = vrot.slane %v24298_v36, 5  ;;  %v1390_v3 = vrot.slane %v24301_v60, 4  ;;  %v5558_v20 = vpop.f32.mrf.mxu1  ;;  %v335_v36 = vld [vmem:[%s23872_s0 + $0xfc] sm:$0xf]  ;;  %4235 = vmatmul.bf16.gmra.mxu3 %v19041_v58  ;;  %v900_v60 = vshrl.u32 %v334_v32, 16 }
 0x2e3   :  { %4916 = vmatmul.bf16.gmra.mxu0 %v19081_v34  ;;  %v908_v33 = vshrl.u32 %v335_v36, 16  ;;  %400 = vst [vmem:[#allocation2 + $0x234] sm:$0xf] %v335_v36  ;;  %v911_v58 = vshll.u32 %v335_v36, 16  ;;  %v266_v36 = vld [vmem:[#allocation2 + $0x354] sm:$0x8] }
 0x2e4   :  { %v4295_v24 = vadd.f32 %v4193_v19, %v3614_v43  ;;  %v1386_v54 = vor.u32 %v1385_v8, %v1384_v17  ;;  %v1391_v49 = vor.u32 %v1390_v3, %v1388_v48  ;;  %5597 = vmatmul.bf16.gmra.mxu1 %v19121_v53  ;;  %v1589_v43 = vld [vmem:[#allocation2 + $0x34c] sm:$0xf]  ;;  %v902_v8 = vrot.slane %v900_v60, 7 }
 0x2e5   :  { %v903_v3 = vshll.u32 %v334_v32, 16 }
 0x2e6   :  { %3554 = vmatmul.bf16.gmra.mxu2 %v19001_v2  ;;  %v4976_v7 = vadd.f32 %v4874_v57, %v4295_v24  ;;  %v1387_v12 = vrot.slane %v1386_v54, 4  ;;  %v1392_v19 = vrot.slane %v1391_v49, 4  ;;  %v4196_v47 = vpop.f32.mrf.mxu3  ;;  %v910_v2 = vrot.slane %v908_v33, 7  ;;  %v24303_v24 = vld [vmem:[#allocation42_spill] sm:$0xff] }
 0x2e7   :  { %v905_v49 = vor.u32 %v903_v3, %v902_v8 }
 0x2e8   :  { %v22112_v34 = vadd.f32 %v5555_v62, %v4976_v7  ;;  %v1389_v17 = vsel %vm21387_vm14, %v1387_v12, %v1388_v48  ;;  %v1590_v57 = vsel %vm21371_vm12, %v1392_v19, %v1589_v43  ;;  %v4879_v54 = vpop.f32.mrf.mxu0  ;;  %v906_v62 = vrot.slane %v902_v8, 4 }
 0x2e9   :  { %v3515_v31 = vpop.f32.mrf.mxu2  ;;  %1588 = vst [vmem:[#allocation2 + $0x348] sm:$0xf] %v1389_v17  ;;  %v913_v7 = vor.u32 %v911_v58, %v910_v2  ;;  %v267_v43 = vsel %vm21344_vm10, 0, %v266_v36 }
 0x2ea   :  { %24302 = vst [vmem:[#allocation9_spill] sm:$0xff] %v22112_v34  ;;  %v3615_v53 = vadd.f32 %v3515_v31, %v24303_v24  ;;  %v1107_v34 = vld [vmem:[#allocation2 + $0x110] sm:$0xf]  ;;  %v22119_v48 = vpop.f32.mrf.mxu1  ;;  %v19082_v31 = vld [vmem:[#allocation2 + $0x220] sm:$0xff] }
 0x2eb   :  { %1591 = vst [vmem:[#allocation2 + $0x34c] sm:$0xf] %v1590_v57  ;;  %v1108_v32 = vsel %vm20408_vm7, %v905_v49, %v1107_v34  ;;  %v914_v12 = vsel %vm20326_vm4, %v906_v62, %v913_v7  ;;  %v24306_v57 = vld [vmem:[#allocation43_spill] sm:$0xff]  ;;  %v1393_v49 = vrot.slane %v900_v60, 4  ;;  %v1394_v62 = vrot.slane %v903_v3, 5 }
 0x2ec   :  { %v4296_v59 = vadd.f32 %v4196_v47, %v3615_v53  ;;  %24304 = vst [vmem:[#allocation8_spill] sm:$0xff] %v22119_v48  ;;  %v19002_v34 = vld [vmem:[#allocation2 + $0x338] sm:$0xff]  ;;  %v19042_v53 = vld [vmem:[#allocation2 + $0x100] sm:$0xff]  ;;  %v1397_v7 = vrot.slane %v911_v58, 5 }
 0x2ed   :  { %1109 = vst [vmem:[#allocation2 + $0x110] sm:$0xf] %v1108_v32  ;;  %v1395_v48 = vor.u32 %v1394_v62, %v1393_v49  ;;  %v19083_v62 = vld [vmem:[#allocation2 + $0x228] sm:$0xff] }
 0x2ee   :  { %v4977_v19 = vadd.f32 %v4877_v41, %v4296_v59  ;;  %1110 = vst [vmem:[#allocation2 + $0x114] sm:$0xf] %v914_v12  ;;  %v4198_v47 = vpop.f32.mrf.mxu3  ;;  %v19122_v59 = vld [vmem:[#allocation2 + $0x340] sm:$0xff]  ;;  %v1399_v41 = vrot.slane %v908_v33, 4 }
 0x2ef   :  { %268 = vst [vmem:[#allocation2 + $0x354] sm:$0x8] %v267_v43  ;;  %v1396_v36 = vrot.slane %v1395_v48, 4 }
 0x2f0   :  { %v22127_v17 = vadd.f32 %v5558_v20, %v4977_v19  ;;  %v4882_v24 = vpop.f32.mrf.mxu0  ;;  %v1400_v20 = vor.u32 %v1399_v41, %v1397_v7 }
 0x2f1   :  { %v3517_v8 = vpop.f32.mrf.mxu2  ;;  %v1398_v60 = vsel %vm21387_vm14, %v1396_v36, %v1397_v7  ;;  %v24311_v7 = vld [vmem:[#allocation46_spill] sm:$0xff] }
 0x2f2   :  { %24305 = vst [vmem:[#allocation11_spill] sm:$0xff] %v22127_v17  ;;  %v3616_v2 = vadd.f32 %v3517_v8, %v24306_v57  ;;  %v5563_v12 = vpop.f32.mrf.mxu1  ;;  %4240 = vmatmul.bf16.gmra.mxu3 %v19042_v53  ;;  %v1401_v43 = vrot.slane %v1400_v20, 4  ;;  %v19043_v20 = vld [vmem:[#allocation2 + $0x108] sm:$0xff] }
 0x2f3   :  { %4921 = vmatmul.bf16.gmra.mxu0 %v19082_v31  ;;  %1592 = vst [vmem:[#allocation2 + $0x350] sm:$0xf] %v1398_v60  ;;  %v19123_v36 = vld [vmem:[#allocation2 + $0x348] sm:$0xff] }
 0x2f4   :  { %v4297_v32 = vadd.f32 %v4198_v47, %v3616_v2  ;;  %5602 = vmatmul.bf16.gmra.mxu1 %v19122_v59  ;;  %v24308_v47 = vld [vmem:[#allocation44_spill] sm:$0xff] }
 0x2f6   :  { %3559 = vmatmul.bf16.gmra.mxu2 %v19002_v34  ;;  %v22130_v19 = vadd.f32 %v4879_v54, %v4297_v32  ;;  %v1593_v8 = vld [vmem:[#allocation2 + $0x354] sm:$0xf]  ;;  %v4201_v58 = vpop.f32.mrf.mxu3  ;;  %v19003_v32 = vld [vmem:[#allocation2 + $0x340] sm:$0xff] }
 0x2f7   :  { %v1594_v33 = vsel %vm21371_vm12, %v1401_v43, %v1593_v8 }
 0x2f8   :  { %24307 = vst [vmem:[#allocation10_spill] sm:$0xff] %v22130_v19  ;;  %v4884_v57 = vpop.f32.mrf.mxu0 }
 0x2f9   :  { %v3520_v3 = vpop.f32.mrf.mxu2  ;;  %1595 = vst [vmem:[#allocation2 + $0x354] sm:$0xf] %v1594_v33 }
 0x2fa   :  { %v3617_v31 = vadd.f32 %v3520_v3, %v24308_v47  ;;  %v22137_v54 = vpop.f32.mrf.mxu1  ;;  %v24313_v3 = vld [vmem:[#allocation48_spill] sm:$0xff] }
 0x2fb   :  { %24309 = vst [vmem:[#allocation13_spill] sm:$0xff] %v22137_v54 }
 0x2fc   :  { %v4298_v2 = vadd.f32 %v4201_v58, %v3617_v31 }
 0x2fe   :  { %v4979_v48 = vadd.f32 %v4882_v24, %v4298_v2  ;;  %v4203_v49 = vpop.f32.mrf.mxu3 }
 0x2ff   :  { %v24372_v5 = vld [vmem:[#allocation10_spill] sm:$0xff] }
 0x300   :  { %v22139_v34 = vadd.f32 %v5563_v12, %v4979_v48  ;;  %v4887_v41 = vpop.f32.mrf.mxu0 }
 0x301   :  { %v3522_v53 = vpop.f32.mrf.mxu2 }
 0x302   :  { %24310 = vst [vmem:[#allocation12_spill] sm:$0xff] %v22139_v34  ;;  %v3618_v59 = vadd.f32 %v3522_v53, %v24311_v7  ;;  %v5568_v8 = vpop.f32.mrf.mxu1  ;;  %4245 = vmatmul.bf16.gmra.mxu3 %v19043_v20  ;;  %v19084_v7 = vld [vmem:[#allocation2 + $0x230] sm:$0xff] }
 0x303   :  { %4926 = vmatmul.bf16.gmra.mxu0 %v19083_v62  ;;  %v24316_v62 = vld [vmem:[#allocation50_spill] sm:$0xff] }
 0x304   :  { %v4299_v43 = vadd.f32 %v4203_v49, %v3618_v59  ;;  %5607 = vmatmul.bf16.gmra.mxu1 %v19123_v36  ;;  %v19044_v20 = vld [vmem:[#allocation2 + $0x110] sm:$0xff] }
 0x305   :  { %v19124_v36 = vld [vmem:[#allocation2 + $0x350] sm:$0xff] }
 0x306   :  { %3564 = vmatmul.bf16.gmra.mxu2 %v19003_v32  ;;  %v22142_v60 = vadd.f32 %v4884_v57, %v4299_v43  ;;  %v4206_v12 = vpop.f32.mrf.mxu3  ;;  %v19004_v57 = vld [vmem:[#allocation2 + $0x348] sm:$0xff] }
 0x308   :  { %24312 = vst [vmem:[#allocation15_spill] sm:$0xff] %v22142_v60  ;;  %v4889_v33 = vpop.f32.mrf.mxu0 }
 0x309   :  { %v3525_v24 = vpop.f32.mrf.mxu2 }
 0x30a   :  { %v3619_v58 = vadd.f32 %v3525_v24, %v24313_v3  ;;  %v22145_v31 = vpop.f32.mrf.mxu1 }
 0x30b   :  { %24314 = vst [vmem:[#allocation14_spill] sm:$0xff] %v22145_v31  ;;  %v19173_v31 = vld [vmem:[#allocation2 + $0x130] sm:$0xff] }
 0x30c   :  { %v4300_v47 = vadd.f32 %v4206_v12, %v3619_v58  ;;  %v24318_v12 = vld [vmem:[#allocation51_spill] sm:$0xff] }
 0x30e   :  { %v4981_v2 = vadd.f32 %v4887_v41, %v4300_v47  ;;  %v4208_v49 = vpop.f32.mrf.mxu3 }
 0x310   :  { %v22147_v48 = vadd.f32 %v5568_v8, %v4981_v2  ;;  %v4892_v32 = vpop.f32.mrf.mxu0 }
 0x311   :  { %v3527_v53 = vpop.f32.mrf.mxu2 }
 0x312   :  { %24315 = vst [vmem:[#allocation17_spill] sm:$0xff] %v22147_v48  ;;  %v3620_v59 = vadd.f32 %v3527_v53, %v24316_v62  ;;  %v5573_v54 = vpop.f32.mrf.mxu1  ;;  %4250 = vmatmul.bf16.gmra.mxu3 %v19044_v20  ;;  %v24355_v48 = vld [vmem:[#allocation67_spill] sm:$0xff] }
 0x313   :  { %4931 = vmatmul.bf16.gmra.mxu0 %v19084_v7 }
 0x314   :  { %v4301_v43 = vadd.f32 %v4208_v49, %v3620_v59  ;;  %5612 = vmatmul.bf16.gmra.mxu1 %v19124_v36  ;;  %v19286_v49 = vld [vmem:[%s23873_s3 + $0x8] sm:$0xff] }
 0x315   :  { %9754 = vmatpush.bf16.msra.mxu1 %v19286_v49 }
 0x316   :  { %3569 = vmatmul.bf16.gmra.mxu2 %v19004_v57  ;;  %v22150_v24 = vadd.f32 %v4889_v33, %v4301_v43  ;;  %v4211_v8 = vpop.f32.mrf.mxu3  ;;  %v19213_v33 = vld [vmem:[#allocation2 + $0x250] sm:$0xff]  ;;  %v24321_v57 = vld [vmem:[#allocation52_spill] sm:$0xff] }
 0x317   :  { %v19133_v43 = vld [vmem:[#allocation2 + $0x10] sm:$0xff] }
 0x318   :  { %24317 = vst [vmem:[#allocation16_spill] sm:$0xff] %v22150_v24  ;;  %v4894_v58 = vpop.f32.mrf.mxu0 }
 0x319   :  { %v3530_v41 = vpop.f32.mrf.mxu2 }
 0x31a   :  { %v3621_v3 = vadd.f32 %v3530_v41, %v24318_v12  ;;  %v22153_v2 = vpop.f32.mrf.mxu1 }
 0x31b   :  { %24319 = vst [vmem:[#allocation19_spill] sm:$0xff] %v22153_v2 }
 0x31c   :  { %v4302_v47 = vadd.f32 %v4211_v8, %v3621_v3  ;;  %v24323_v3 = vld [vmem:[#allocation53_spill] sm:$0xff] }
 0x31e   :  { %v4983_v53 = vadd.f32 %v4892_v32, %v4302_v47  ;;  %v4213_v59 = vpop.f32.mrf.mxu3 }
 0x320   :  { %v22155_v62 = vadd.f32 %v5573_v54, %v4983_v53  ;;  %v4897_v36 = vpop.f32.mrf.mxu0 }
 0x321   :  { %v3532_v7 = vpop.f32.mrf.mxu2 }
 0x322   :  { %24320 = vst [vmem:[#allocation18_spill] sm:$0xff] %v22155_v62  ;;  %v3622_v20 = vadd.f32 %v3532_v7, %v24321_v57  ;;  %v5578_v8 = vpop.f32.mrf.mxu1  ;;  %6821 = vmatmul.bf16.vlgmr.msra.gmra.mxu3 %v19173_v31  ;;  %v19134_v31 = vld [vmem:[#allocation2 + $0x18] sm:$0xff] }
 0x323   :  { %7503 = vmatmul.bf16.vlgmr.msra.gmra.mxu0 %v19213_v33 }
 0x324   :  { %v4303_v41 = vadd.f32 %v4213_v59, %v3622_v20  ;;  %v19214_v59 = vld [vmem:[#allocation2 + $0x258] sm:$0xff]  ;;  %v24326_v20 = vld [vmem:[#allocation54_spill] sm:$0xff] }
 0x326   :  { %6139 = vmatmul.bf16.vlgmr.msra.gmra.mxu2 %v19133_v43  ;;  %v22161_v54 = vadd.f32 %v4894_v58, %v4303_v41  ;;  %v4216_v12 = vpop.f32.mrf.mxu3  ;;  %v19174_v58 = vld [vmem:[#allocation2 + $0x138] sm:$0xff] }
 0x328   :  { %24322 = vst [vmem:[#allocation21_spill] sm:$0xff] %v22161_v54  ;;  %v4899_v53 = vpop.f32.mrf.mxu0 }
 0x329   :  { %v3535_v32 = vpop.f32.mrf.mxu2 }
 0x32a   :  { %v3623_v47 = vadd.f32 %v3535_v32, %v24323_v3  ;;  %v22164_v62 = vpop.f32.mrf.mxu1 }
 0x32b   :  { %24324 = vst [vmem:[#allocation20_spill] sm:$0xff] %v22164_v62 }
 0x32c   :  { %v4304_v2 = vadd.f32 %v4216_v12, %v3623_v47 }
 0x32e   :  { %v4985_v7 = vadd.f32 %v4897_v36, %v4304_v2  ;;  %v4218_v49 = vpop.f32.mrf.mxu3  ;;  %v24328_v2 = vld [vmem:[#allocation55_spill] sm:$0xff] }
 0x330   :  { %v22166_v57 = vadd.f32 %v5578_v8, %v4985_v7  ;;  %v4902_v43 = vpop.f32.mrf.mxu0 }
 0x331   :  { %v3537_v24 = vpop.f32.mrf.mxu2 }
 0x332   :  { %24325 = vst [vmem:[#allocation23_spill] sm:$0xff] %v22166_v57  ;;  %v3624_v33 = vadd.f32 %v3537_v24, %v24326_v20  ;;  %v5583_v54 = vpop.f32.mrf.mxu1  ;;  %6826 = vmatmul.bf16.gmra.mxu3 %v19174_v58  ;;  %v19135_v58 = vld [vmem:[#allocation2 + $0x20] sm:$0xff] }
 0x333   :  { %7508 = vmatmul.bf16.gmra.mxu0 %v19214_v59 }
 0x334   :  { %v4305_v41 = vadd.f32 %v4218_v49, %v3624_v33  ;;  %v19215_v49 = vld [vmem:[#allocation2 + $0x260] sm:$0xff] }
 0x335   :  { %v24331_v33 = vld [vmem:[#allocation56_spill] sm:$0xff] }
 0x336   :  { %6144 = vmatmul.bf16.gmra.mxu2 %v19134_v31  ;;  %v22169_v32 = vadd.f32 %v4899_v53, %v4305_v41  ;;  %v4221_v3 = vpop.f32.mrf.mxu3  ;;  %v19175_v53 = vld [vmem:[#allocation2 + $0x140] sm:$0xff] }
 0x338   :  { %24327 = vst [vmem:[#allocation66_spill] sm:$0xff] %v22169_v32  ;;  %v4904_v8 = vpop.f32.mrf.mxu0 }
 0x339   :  { %v3540_v12 = vpop.f32.mrf.mxu2 }
 0x33a   :  { %v3625_v36 = vadd.f32 %v3540_v12, %v24328_v2  ;;  %v22172_v7 = vpop.f32.mrf.mxu1 }
 0x33b   :  { %24329 = vst [vmem:[#allocation22_spill] sm:$0xff] %v22172_v7 }
 0x33c   :  { %v4306_v47 = vadd.f32 %v4221_v3, %v3625_v36 }
 0x33e   :  { %v4987_v62 = vadd.f32 %v4902_v43, %v4306_v47  ;;  %v4223_v57 = vpop.f32.mrf.mxu3  ;;  %v24333_v43 = vld [vmem:[#allocation57_spill] sm:$0xff] }
 0x340   :  { %v22174_v24 = vadd.f32 %v5583_v54, %v4987_v62  ;;  %v4907_v31 = vpop.f32.mrf.mxu0 }
 0x341   :  { %v3542_v20 = vpop.f32.mrf.mxu2 }
 0x342   :  { %24330 = vst [vmem:[#allocation25_spill] sm:$0xff] %v22174_v24  ;;  %v3626_v59 = vadd.f32 %v3542_v20, %v24331_v33  ;;  %v5588_v32 = vpop.f32.mrf.mxu1  ;;  %6831 = vmatmul.bf16.gmra.mxu3 %v19175_v53  ;;  %v19136_v53 = vld [vmem:[#allocation2 + $0x28] sm:$0xff] }
 0x343   :  { %7513 = vmatmul.bf16.gmra.mxu0 %v19215_v49 }
 0x344   :  { %v4307_v41 = vadd.f32 %v4223_v57, %v3626_v59  ;;  %v19216_v57 = vld [vmem:[#allocation2 + $0x268] sm:$0xff]  ;;  %v24336_v59 = vld [vmem:[#allocation58_spill] sm:$0xff] }
 0x346   :  { %6149 = vmatmul.bf16.gmra.mxu2 %v19135_v58  ;;  %v22177_v12 = vadd.f32 %v4904_v8, %v4307_v41  ;;  %v4226_v2 = vpop.f32.mrf.mxu3  ;;  %v19176_v8 = vld [vmem:[#allocation2 + $0x148] sm:$0xff] }
 0x348   :  { %24332 = vst [vmem:[#allocation24_spill] sm:$0xff] %v22177_v12  ;;  %v4909_v54 = vpop.f32.mrf.mxu0 }
 0x349   :  { %v3545_v3 = vpop.f32.mrf.mxu2 }
 0x34a   :  { %v3627_v62 = vadd.f32 %v3545_v3, %v24333_v43  ;;  %v22180_v47 = vpop.f32.mrf.mxu1 }
 0x34b   :  { %24334 = vst [vmem:[#allocation26_spill] sm:$0xff] %v22180_v47 }
 0x34c   :  { %v4308_v36 = vadd.f32 %v4226_v2, %v3627_v62 }
 0x34e   :  { %v4989_v7 = vadd.f32 %v4907_v31, %v4308_v36  ;;  %v4228_v24 = vpop.f32.mrf.mxu3  ;;  %v24338_v31 = vld [vmem:[#allocation59_spill] sm:$0xff] }
 0x350   :  { %v22182_v20 = vadd.f32 %v5588_v32, %v4989_v7  ;;  %v4912_v58 = vpop.f32.mrf.mxu0 }
 0x351   :  { %v3547_v33 = vpop.f32.mrf.mxu2 }
 0x352   :  { %24335 = vst [vmem:[#allocation27_spill] sm:$0xff] %v22182_v20  ;;  %v3628_v49 = vadd.f32 %v3547_v33, %v24336_v59  ;;  %v5593_v12 = vpop.f32.mrf.mxu1  ;;  %6836 = vmatmul.bf16.gmra.mxu3 %v19176_v8 }
 0x353   :  { %7518 = vmatmul.bf16.gmra.mxu0 %v19216_v57 }
 0x354   :  { %v4309_v41 = vadd.f32 %v4228_v24, %v3628_v49  ;;  %v19285_v24 = vld [vmem:[%s23873_s3] sm:$0xff]  ;;  %v19217_v49 = vld [vmem:[#allocation2 + $0x270] sm:$0xff] }
 0x355   :  { %9755 = vmatpush.bf16.msra.mxu1 %v19285_v24 }
 0x356   :  { %6154 = vmatmul.bf16.gmra.mxu2 %v19136_v53  ;;  %v22185_v3 = vadd.f32 %v4909_v54, %v4309_v41  ;;  %v4231_v43 = vpop.f32.mrf.mxu3  ;;  %v24341_v54 = vld [vmem:[#allocation60_spill] sm:$0xff]  ;;  %v19137_v41 = vld [vmem:[#allocation2 + $0x30] sm:$0xff] }
 0x358   :  { %24337 = vst [vmem:[#allocation28_spill] sm:$0xff] %v22185_v3  ;;  %v4914_v7 = vpop.f32.mrf.mxu0  ;;  %v19177_v3 = vld [vmem:[#allocation2 + $0x150] sm:$0xff] }
 0x359   :  { %v3550_v2 = vpop.f32.mrf.mxu2 }
 0x35a   :  { %v3629_v32 = vadd.f32 %v3550_v2, %v24338_v31  ;;  %v22188_v36 = vpop.f32.mrf.mxu1  ;;  %v24343_v31 = vld [vmem:[#allocation61_spill] sm:$0xff] }
 0x35b   :  { %24339 = vst [vmem:[#allocation29_spill] sm:$0xff] %v22188_v36 }
 0x35c   :  { %v4310_v62 = vadd.f32 %v4231_v43, %v3629_v32 }
 0x35e   :  { %v4991_v47 = vadd.f32 %v4912_v58, %v4310_v62  ;;  %v4233_v59 = vpop.f32.mrf.mxu3 }
 0x360   :  { %v22190_v33 = vadd.f32 %v5593_v12, %v4991_v47  ;;  %v4917_v8 = vpop.f32.mrf.mxu0 }
 0x361   :  { %v3552_v57 = vpop.f32.mrf.mxu2 }
 0x362   :  { %24340 = vst [vmem:[#allocation30_spill] sm:$0xff] %v22190_v33  ;;  %v3630_v53 = vadd.f32 %v3552_v57, %v24341_v54  ;;  %v5598_v43 = vpop.f32.mrf.mxu1  ;;  %6841 = vmatmul.bf16.gmra.mxu3 %v19177_v3  ;;  %v19138_v3 = vld [vmem:[#allocation2 + $0x38] sm:$0xff] }
 0x363   :  { %7523 = vmatmul.bf16.gmra.mxu0 %v19217_v49 }
 0x364   :  { %v4311_v2 = vadd.f32 %v4233_v59, %v3630_v53  ;;  %v19218_v59 = vld [vmem:[#allocation2 + $0x278] sm:$0xff]  ;;  %v24346_v53 = vld [vmem:[#allocation62_spill] sm:$0xff] }
 0x366   :  { %6159 = vmatmul.bf16.gmra.mxu2 %v19137_v41  ;;  %v22196_v12 = vadd.f32 %v4914_v7, %v4311_v2  ;;  %v4236_v58 = vpop.f32.mrf.mxu3  ;;  %v19178_v7 = vld [vmem:[#allocation2 + $0x158] sm:$0xff] }
 0x368   :  { %24342 = vst [vmem:[#allocation31_spill] sm:$0xff] %v22196_v12  ;;  %v4919_v62 = vpop.f32.mrf.mxu0 }
 0x369   :  { %v3555_v47 = vpop.f32.mrf.mxu2 }
 0x36a   :  { %v3631_v32 = vadd.f32 %v3555_v47, %v24343_v31  ;;  %v22199_v33 = vpop.f32.mrf.mxu1 }
 0x36b   :  { %24344 = vst [vmem:[#allocation32_spill] sm:$0xff] %v22199_v33 }
 0x36c   :  { %v4312_v36 = vadd.f32 %v4236_v58, %v3631_v32 }
 0x36e   :  { %v4993_v57 = vadd.f32 %v4917_v8, %v4312_v36  ;;  %v4238_v24 = vpop.f32.mrf.mxu3  ;;  %v24348_v36 = vld [vmem:[#allocation63_spill] sm:$0xff] }
 0x370   :  { %v22201_v54 = vadd.f32 %v5598_v43, %v4993_v57  ;;  %v4922_v41 = vpop.f32.mrf.mxu0 }
 0x371   :  { %v3557_v20 = vpop.f32.mrf.mxu2 }
 0x372   :  { %24345 = vst [vmem:[#allocation33_spill] sm:$0xff] %v22201_v54  ;;  %v3632_v49 = vadd.f32 %v3557_v20, %v24346_v53  ;;  %v5603_v12 = vpop.f32.mrf.mxu1  ;;  %6846 = vmatmul.bf16.gmra.mxu3 %v19178_v7  ;;  %v19139_v7 = vld [vmem:[#allocation2 + $0x40] sm:$0xff] }
 0x373   :  { %7528 = vmatmul.bf16.gmra.mxu0 %v19218_v59 }
 0x374   :  { %v4313_v2 = vadd.f32 %v4238_v24, %v3632_v49  ;;  %v19219_v24 = vld [vmem:[#allocation2 + $0x280] sm:$0xff] }
 0x375   :  { %v24351_v49 = vld [vmem:[#allocation64_spill] sm:$0xff] }
 0x376   :  { %6164 = vmatmul.bf16.gmra.mxu2 %v19138_v3  ;;  %v22204_v47 = vadd.f32 %v4919_v62, %v4313_v2  ;;  %v4241_v31 = vpop.f32.mrf.mxu3  ;;  %v19179_v62 = vld [vmem:[#allocation2 + $0x160] sm:$0xff] }
 0x378   :  { %24347 = vst [vmem:[#allocation34_spill] sm:$0xff] %v22204_v47  ;;  %v4924_v43 = vpop.f32.mrf.mxu0  ;;  %v19220_v47 = vld [vmem:[#allocation2 + $0x288] sm:$0xff] }
 0x379   :  { %v3560_v58 = vpop.f32.mrf.mxu2 }
 0x37a   :  { %v3633_v8 = vadd.f32 %v3560_v58, %v24348_v36  ;;  %v22207_v33 = vpop.f32.mrf.mxu1 }
 0x37b   :  { %24349 = vst [vmem:[#allocation35_spill] sm:$0xff] %v22207_v33 }
 0x37c   :  { %v4314_v32 = vadd.f32 %v4241_v31, %v3633_v8  ;;  %v24353_v8 = vld [vmem:[#allocation65_spill] sm:$0xff] }
 0x37e   :  { %v4995_v57 = vadd.f32 %v4922_v41, %v4314_v32  ;;  %v4243_v54 = vpop.f32.mrf.mxu3 }
 0x380   :  { %v22209_v20 = vadd.f32 %v5603_v12, %v4995_v57  ;;  %v4927_v3 = vpop.f32.mrf.mxu0 }
 0x381   :  { %v3562_v53 = vpop.f32.mrf.mxu2 }
 0x382   :  { %24350 = vst [vmem:[#allocation36_spill] sm:$0xff] %v22209_v20  ;;  %v3634_v59 = vadd.f32 %v3562_v53, %v24351_v49  ;;  %6851 = vmatmul.bf16.gmra.mxu3 %v19179_v62  ;;  %v5608_v31 = vpop.f32.mrf.mxu1 }
 0x383   :  { %7533 = vmatmul.bf16.gmra.mxu0 %v19219_v24 }
 0x384   :  { %v4315_v2 = vadd.f32 %v4243_v54, %v3634_v59  ;;  %v19140_v59 = vld [vmem:[#allocation2 + $0x48] sm:$0xff] }
 0x386   :  { %6169 = vmatmul.bf16.gmra.mxu2 %v19139_v7  ;;  %v22212_v58 = vadd.f32 %v4924_v43, %v4315_v2  ;;  %v4246_v36 = vpop.f32.mrf.mxu3  ;;  %v19180_v7 = vld [vmem:[#allocation2 + $0x168] sm:$0xff]  ;;  %v19253_v2 = vld [vmem:[#allocation2] sm:$0xff] }
 0x387   :  { %9756 = vmatmul.bf16.vlgmr.msra.gmra.mxu1 %v19253_v2 }
 0x388   :  { %24352 = vst [vmem:[#allocation37_spill] sm:$0xff] %v22212_v58  ;;  %v4929_v32 = vpop.f32.mrf.mxu0 }
 0x389   :  { %v3565_v41 = vpop.f32.mrf.mxu2 }
 0x38a   :  { %v3635_v12 = vadd.f32 %v3565_v41, %v24353_v8  ;;  %v22218_v43 = vpop.f32.mrf.mxu1 }
 0x38b   :  { %24356 = vst [vmem:[#allocation39_spill] sm:$0xff] %v22218_v43 }
 0x38c   :  { %v4316_v57 = vadd.f32 %v4246_v36, %v3635_v12 }
 0x38e   :  { %v4997_v33 = vadd.f32 %v4927_v3, %v4316_v57  ;;  %v4248_v49 = vpop.f32.mrf.mxu3 }
 0x390   :  { %v22215_v20 = vadd.f32 %v5608_v31, %v4997_v33  ;;  %v4932_v24 = vpop.f32.mrf.mxu0  ;;  %v24358_v31 = vld [vmem:[#allocation68_spill] sm:$0xff] }
 0x391   :  { %v3567_v53 = vpop.f32.mrf.mxu2 }
 0x392   :  { %24354 = vst [vmem:[#allocation38_spill] sm:$0xff] %v22215_v20  ;;  %v3636_v54 = vadd.f32 %v3567_v53, %v24355_v48  ;;  %6856 = vmatmul.bf16.gmra.mxu3 %v19180_v7  ;;  %v5613_v48 = vpop.f32.mrf.mxu1  ;;  %v19141_v7 = vld [vmem:[#allocation2 + $0x50] sm:$0xff] }
 0x393   :  { %7538 = vmatmul.bf16.gmra.mxu0 %v19220_v47  ;;  %v24360_v47 = vld [vmem:[#allocation69_spill] sm:$0xff] }
 0x394   :  { %v4317_v62 = vadd.f32 %v4248_v49, %v3636_v54  ;;  %v19221_v49 = vld [vmem:[#allocation2 + $0x290] sm:$0xff] }
 0x396   :  { %6174 = vmatmul.bf16.gmra.mxu2 %v19140_v59  ;;  %v22220_v41 = vadd.f32 %v4929_v32, %v4317_v62  ;;  %v4251_v3 = vpop.f32.mrf.mxu3  ;;  %v19181_v32 = vld [vmem:[#allocation2 + $0x170] sm:$0xff] }
 0x398   :  { %24357 = vst [vmem:[#allocation40_spill] sm:$0xff] %v22220_v41  ;;  %v4934_v8 = vpop.f32.mrf.mxu0  ;;  %v8692_v41 = vld [vmem:[#allocation2 + $0x8] sm:$0xf] }
 0x399   :  { %v3570_v33 = vpop.f32.mrf.mxu2 }
 0x39a   :  { %v3637_v36 = vadd.f32 %v3570_v33, %v24358_v31  ;;  %v19372_v33 = vld [vmem:[%s23873_s3 + $0xb8] sm:$0xff] }
 0x39b   :  { %11110 = vmatpush.bf16.msrb.mxu3 %v19372_v33 }
 0x39c   :  { %v4318_v12 = vadd.f32 %v4251_v3, %v3637_v36 }
 0x39e   :  { %v4999_v57 = vadd.f32 %v4932_v24, %v4318_v12  ;;  %v4253_v43 = vpop.f32.mrf.mxu3  ;;  %v19332_v24 = vld [vmem:[%s23873_s3 + $0x78] sm:$0xff] }
 0x39f   :  { %10429 = vmatpush.bf16.msrb.mxu2 %v19332_v24 }
 0x3a0   :  { %v22223_v53 = vadd.f32 %v5613_v48, %v4999_v57  ;;  %v7504_v59 = vpop.f32.mrf.mxu0  ;;  %v19412_v57 = vld [vmem:[%s23873_s3 + $0xf8] sm:$0xff] }
 0x3a1   :  { %v3572_v20 = vpop.f32.mrf.mxu2  ;;  %11791 = vmatpush.bf16.msrb.mxu0 %v19412_v57 }
 0x3a2   :  { %24359 = vst [vmem:[#allocation41_spill] sm:$0xff] %v22223_v53  ;;  %v3638_v54 = vadd.f32 %v3572_v20, %v24360_v47  ;;  %6861 = vmatmul.bf16.gmra.mxu3 %v19181_v32  ;;  %v24362_v20 = vld [vmem:[#allocation70_spill] sm:$0xff]  ;;  %v19222_v32 = vld [vmem:[#allocation2 + $0x298] sm:$0xff] }
 0x3a3   :  { %7543 = vmatmul.bf16.gmra.mxu0 %v19221_v49  ;;  %v19452_v49 = vld [vmem:[%s23873_s3 + $0x138] sm:$0xff] }
 0x3a4   :  { %v4319_v62 = vadd.f32 %v4253_v43, %v3638_v54  ;;  %12472 = vmatpush.bf16.msrb.mxu1 %v19452_v49 }
 0x3a6   :  { %6179 = vmatmul.bf16.gmra.mxu2 %v19141_v7  ;;  %v22226_v2 = vadd.f32 %v4934_v8, %v4319_v62  ;;  %v6822_v31 = vpop.f32.mrf.mxu3  ;;  %v22238_v8 = vld [vmem:[%s23874_s2] ss:$0 sm:$0xff] }
 0x3a8   :  { %24361 = vst [vmem:[#allocation42_spill] sm:$0xff] %v22226_v2  ;;  %v7506_v43 = vpop.f32.mrf.mxu0 }
 0x3a9   :  { %v6140_v3 = vpop.f32.mrf.mxu2 }
 0x3aa   :  { %v6300_v36 = vadd.f32 %v6140_v3, %v24362_v20  ;;  %v19182_v3 = vld [vmem:[#allocation2 + $0x178] sm:$0xff] }
 0x3ac   :  { %v6982_v12 = vadd.f32 %v6822_v31, %v6300_v36 }
 0x3ae   :  { %v7664_v48 = vadd.f32 %v7504_v59, %v6982_v12  ;;  %v6824_v7 = vpop.f32.mrf.mxu3  ;;  %v19142_v59 = vld [vmem:[#allocation2 + $0x58] sm:$0xff] }
 0x3b0   :  { %v7860_v47 = vadd.f32 %v22238_v8, %v7664_v48  ;;  %v7509_v33 = vpop.f32.mrf.mxu0 }
 0x3b1   :  { %v6142_v54 = vpop.f32.mrf.mxu2 }
 0x3b2   :  { %v7924_v62 = vmax.f32 %v7860_v47, 0.0  ;;  %v6301_v24 = vadd.f32 %v6142_v54, %v21658_v21  ;;  %6866 = vmatmul.bf16.gmra.mxu3 %v19182_v3 }
 0x3b3   :  { %7548 = vmatmul.bf16.gmra.mxu0 %v19222_v32 }
 0x3b4   :  { %v7988_v31 = vpack.c.bf16 %v7924_v62, %v7924_v62  ;;  %v6983_v20 = vadd.f32 %v6824_v7, %v6301_v24 }
 0x3b6   :  { %v8117_v36 = vshrl.u32 %v7988_v31, 16  ;;  %v8120_v12 = vshll.u32 %v7988_v31, 16  ;;  %v7665_v2 = vadd.f32 %v7506_v43, %v6983_v20  ;;  %6184 = vmatmul.bf16.gmra.mxu2 %v19142_v59  ;;  %v6827_v58 = vpop.f32.mrf.mxu3 }
 0x3b8   :  { %v8119_v48 = vrot.slane %v8117_v36, 7  ;;  %v8820_v57 = vrot.slane %v8117_v36, 4  ;;  %v8821_v49 = vrot.slane %v8120_v12, 5  ;;  %v7861_v53 = vadd.f32 %v22238_v8, %v7665_v2  ;;  %v7511_v60 = vpop.f32.mrf.mxu0 }
 0x3b9   :  { %v6145_v47 = vpop.f32.mrf.mxu2 }
 0x3ba   :  { %v8122_v21 = vor.u32 %v8120_v12, %v8119_v48  ;;  %v7925_v54 = vmax.f32 %v7861_v53, 0.0  ;;  %v6302_v34 = vadd.f32 %v6145_v47, %v21667_v45  ;;  %v8822_v32 = vor.u32 %v8821_v49, %v8820_v57  ;;  %v19143_v49 = vld [vmem:[#allocation2 + $0x60] sm:$0xff] }
 0x3bb   :  { %v8123_v53 = vrot.slane %v8119_v48, 4 }
 0x3bc   :  { %v8693_v7 = vsel %vm20408_vm7, %v8122_v21, %v8692_v41  ;;  %v7989_v43 = vpack.c.bf16 %v7925_v54, %v7925_v54  ;;  %v19616_v24 = vpack.c.bf16 %v7925_v54, %v7924_v62  ;;  %v6984_v59 = vadd.f32 %v6827_v58, %v6302_v34  ;;  %v9173_v21 = vld [vmem:[#allocation2 + $0x24c] sm:$0xf] }
 0x3bd   :  { %8694 = vst [vmem:[#allocation2 + $0x8] sm:$0xf] %v8693_v7  ;;  %v8823_v20 = vrot.slane %v8822_v32, 4 }
 0x3be   :  { %19617 = vst [vmem:[#allocation2 + $0x128] sm:$0xff] %v19616_v24   ;;  %v8125_v3 = vshrl.u32 %v7989_v43, 16  ;;  %v8128_v31 = vshll.u32 %v7989_v43, 16  ;;  %v7666_v2 = vadd.f32 %v7509_v33, %v6984_v59  ;;  %v6829_v47 = vpop.f32.mrf.mxu3  ;;  %v19183_v33 = vld [vmem:[#allocation2 + $0x180] sm:$0xff] }
 0x3c0   :  { %v8127_v36 = vrot.slane %v8125_v3, 7  ;;  %v8824_v19 = vrot.slane %v8128_v31, 5  ;;  %v8826_v12 = vrot.slane %v8125_v3, 4  ;;  %v7862_v17 = vadd.f32 %v22238_v8, %v7666_v2  ;;  %v7514_v58 = vpop.f32.mrf.mxu0 }
 0x3c1   :  { %v6147_v45 = vpop.f32.mrf.mxu2 }
 0x3c2   :  { %v8130_v41 = vor.u32 %v8128_v31, %v8127_v36  ;;  %v8825_v62 = vsel %vm21387_vm14, %v8823_v20, %v8824_v19  ;;  %v8827_v57 = vor.u32 %v8826_v12, %v8824_v19  ;;  %v6303_v34 = vadd.f32 %v6147_v45, %v21681_v42  ;;  %6871 = vmatmul.bf16.gmra.mxu3 %v19183_v33  ;;  %v8696_v12 = vld [vmem:[#allocation2 + $0x10] sm:$0xf] }
 0x3c3   :  { %9172 = vst [vmem:[#allocation2 + $0x248] sm:$0xf] %v8825_v62  ;;  %v7926_v54 = vmax.f32 %v7862_v17, 0.0  ;;  %7553 = vmatmul.bf16.gmra.mxu0 %v19223_v23 }
 0x3c4   :  { %v8131_v48 = vsel %vm20326_vm4, %v8123_v53, %v8130_v41  ;;  %v8828_v7 = vrot.slane %v8827_v57, 4  ;;  %v6985_v32 = vadd.f32 %v6829_v47, %v6303_v34 }
 0x3c5   :  { %8695 = vst [vmem:[#allocation2 + $0xc] sm:$0xf] %v8131_v48  ;;  %v7990_v43 = vpack.c.bf16 %v7926_v54, %v7926_v54 }
 0x3c6   :  { %v9174_v24 = vsel %vm21371_vm12, %v8828_v7, %v9173_v21  ;;  %v7667_v19 = vadd.f32 %v7511_v60, %v6985_v32  ;;  %6189 = vmatmul.bf16.gmra.mxu2 %v19143_v49  ;;  %v6832_v36 = vpop.f32.mrf.mxu3 }
 0x3c7   :  { %9175 = vst [vmem:[#allocation2 + $0x24c] sm:$0xf] %v9174_v24  ;;  %v8133_v42 = vshrl.u32 %v7990_v43, 16  ;;  %v8136_v59 = vshll.u32 %v7990_v43, 16 }
 0x3c8   :  { %v7863_v3 = vadd.f32 %v22238_v8, %v7667_v19  ;;  %v7516_v45 = vpop.f32.mrf.mxu0 }
 0x3c9   :  { %v8135_v17 = vrot.slane %v8133_v42, 7  ;;  %v8829_v31 = vrot.slane %v8133_v42, 4  ;;  %v8830_v2 = vrot.slane %v8136_v59, 5  ;;  %v6150_v20 = vpop.f32.mrf.mxu2 }
 0x3ca   :  { %v7927_v53 = vmax.f32 %v7863_v3, 0.0  ;;  %v6304_v23 = vadd.f32 %v6150_v20, %v21693_v1 }
 0x3cb   :  { %v8138_v47 = vor.u32 %v8136_v59, %v8135_v17  ;;  %v8831_v41 = vor.u32 %v8830_v2, %v8829_v31  ;;  %v8139_v19 = vrot.slane %v8135_v17, 4  ;;  %v19224_v59 = vld [vmem:[#allocation2 + $0x2a8] sm:$0xff] }
 0x3cc   :  { %v7991_v60 = vpack.c.bf16 %v7927_v53, %v7927_v53  ;;  %v19621_v62 = vpack.c.bf16 %v7927_v53, %v7926_v54  ;;  %v6986_v57 = vadd.f32 %v6832_v36, %v6304_v23  ;;  %v19254_v34 = vld [vmem:[#allocation2 + $0x8] sm:$0xff]  ;;  %v9177_v53 = vld [vmem:[#allocation2 + $0x254] sm:$0xf] }
 0x3cd   :  { %v8697_v49 = vsel %vm20408_vm7, %v8138_v47, %v8696_v12  ;;  %9761 = vmatmul.bf16.gmra.mxu1 %v19254_v34  ;;  %v8832_v7 = vrot.slane %v8831_v41, 4  ;;  %v19184_v12 = vld [vmem:[#allocation2 + $0x188] sm:$0xff] }
 0x3ce   :  { %8698 = vst [vmem:[#allocation2 + $0x10] sm:$0xf] %v8697_v49  ;;  %v8141_v33 = vshrl.u32 %v7991_v60, 16  ;;  %v8144_v21 = vshll.u32 %v7991_v60, 16  ;;  %v7668_v48 = vadd.f32 %v7514_v58, %v6986_v57  ;;  %v6834_v54 = vpop.f32.mrf.mxu3  ;;  %v19144_v58 = vld [vmem:[#allocation2 + $0x68] sm:$0xff] }
 0x3cf   :  { %20061 = vst [vmem:[#allocation2 + $0x130] sm:$0xff] %v19621_v62  }
 0x3d0   :  { %v8143_v32 = vrot.slane %v8141_v33, 7  ;;  %v8833_v43 = vrot.slane %v8144_v21, 5  ;;  %v8835_v1 = vrot.slane %v8141_v33, 4  ;;  %v7864_v24 = vadd.f32 %v22238_v8, %v7668_v48  ;;  %v7519_v36 = vpop.f32.mrf.mxu0 }
 0x3d1   :  { %v6152_v42 = vpop.f32.mrf.mxu2 }
 0x3d2   :  { %v8146_v3 = vor.u32 %v8144_v21, %v8143_v32  ;;  %v8834_v31 = vsel %vm21387_vm14, %v8832_v7, %v8833_v43  ;;  %v8836_v2 = vor.u32 %v8835_v1, %v8833_v43  ;;  %v7928_v20 = vmax.f32 %v7864_v24, 0.0  ;;  %6876 = vmatmul.bf16.gmra.mxu3 %v19184_v12  ;;  %v8700_v21 = vld [vmem:[#allocation2 + $0x18] sm:$0xf] }
 0x3d3   :  { %9176 = vst [vmem:[#allocation2 + $0x250] sm:$0xf] %v8834_v31  ;;  %v6305_v23 = vadd.f32 %v6152_v42, %v21707_v27  ;;  %7558 = vmatmul.bf16.gmra.mxu0 %v19224_v59 }
 0x3d4   :  { %v8147_v47 = vsel %vm20326_vm4, %v8139_v19, %v8146_v3  ;;  %v8837_v17 = vrot.slane %v8836_v2, 4  ;;  %v7992_v41 = vpack.c.bf16 %v7928_v20, %v7928_v20 }
 0x3d5   :  { %8699 = vst [vmem:[#allocation2 + $0x14] sm:$0xf] %v8147_v47  ;;  %v6987_v60 = vadd.f32 %v6834_v54, %v6305_v23 }
 0x3d6   :  { %v9178_v62 = vsel %vm21371_vm12, %v8837_v17, %v9177_v53  ;;  %v8149_v57 = vshrl.u32 %v7992_v41, 16  ;;  %v8152_v34 = vshll.u32 %v7992_v41, 16  ;;  %6194 = vmatmul.bf16.gmra.mxu2 %v19144_v58  ;;  %v6837_v43 = vpop.f32.mrf.mxu3 }
 0x3d7   :  { %9179 = vst [vmem:[#allocation2 + $0x254] sm:$0xf] %v9178_v62  ;;  %v7669_v49 = vadd.f32 %v7516_v45, %v6987_v60 }
 0x3d8   :  { %v8151_v33 = vrot.slane %v8149_v57, 7  ;;  %v8838_v27 = vrot.slane %v8149_v57, 4  ;;  %v8839_v48 = vrot.slane %v8152_v34, 5  ;;  %v7521_v19 = vpop.f32.mrf.mxu0  ;;  %v19225_v57 = vld [vmem:[#allocation2 + $0x2b0] sm:$0xff] }
 0x3d9   :  { %v7865_v7 = vadd.f32 %v22238_v8, %v7669_v49  ;;  %v6155_v32 = vpop.f32.mrf.mxu2 }
 0x3da   :  { %v8154_v1 = vor.u32 %v8152_v34, %v8151_v33  ;;  %v6306_v24 = vadd.f32 %v6155_v32, %v21716_v11  ;;  %v8840_v45 = vor.u32 %v8839_v48, %v8838_v27  ;;  %v19145_v27 = vld [vmem:[#allocation2 + $0x70] sm:$0xff] }
 0x3db   :  { %v7929_v42 = vmax.f32 %v7865_v7, 0.0 }
 0x3dc   :  { %v8701_v54 = vsel %vm20408_vm7, %v8154_v1, %v8700_v21  ;;  %v6988_v59 = vadd.f32 %v6837_v43, %v6306_v24  ;;  %v19255_v3 = vld [vmem:[#allocation2 + $0x10] sm:$0xff]  ;;  %v8841_v47 = vrot.slane %v8840_v45, 4  ;;  %v9181_v43 = vld [vmem:[#allocation2 + $0x25c] sm:$0xf] }
 0x3dd   :  { %8702 = vst [vmem:[#allocation2 + $0x18] sm:$0xf] %v8701_v54  ;;  %v7993_v31 = vpack.c.bf16 %v7929_v42, %v7929_v42  ;;  %v19626_v2 = vpack.c.bf16 %v7929_v42, %v7928_v20  ;;  %9766 = vmatmul.bf16.gmra.mxu1 %v19255_v3  ;;  %v19185_v20 = vld [vmem:[#allocation2 + $0x190] sm:$0xff] }
 0x3de   :  { %v7670_v58 = vadd.f32 %v7519_v36, %v6988_v59  ;;  %v6839_v62 = vpop.f32.mrf.mxu3  ;;  %v8155_v36 = vrot.slane %v8151_v33, 4  ;;  %v19331_v45 = vld [vmem:[%s23873_s3 + $0x70] sm:$0xff] }
 0x3df   :  { %v8157_v12 = vshrl.u32 %v7993_v31, 16  ;;  %v8160_v53 = vshll.u32 %v7993_v31, 16  ;;  %20062 = vst [vmem:[#allocation2 + $0x138] sm:$0xff] %v19626_v2   ;;  %v19371_v31 = vld [vmem:[%s23873_s3 + $0xb0] sm:$0xff]  ;;  %10430 = vmatpush.bf16.msrb.mxu2 %v19331_v45 }
 0x3e0   :  { %v7866_v23 = vadd.f32 %v22238_v8, %v7670_v58  ;;  %v7524_v21 = vpop.f32.mrf.mxu0  ;;  %11111 = vmatpush.bf16.msrb.mxu3 %v19371_v31 }
 0x3e1   :  { %v8159_v11 = vrot.slane %v8157_v12, 7  ;;  %v8842_v17 = vrot.slane %v8160_v53, 5  ;;  %v8844_v41 = vrot.slane %v8157_v12, 4  ;;  %v6157_v60 = vpop.f32.mrf.mxu2 }
 0x3e2   :  { %v7930_v34 = vmax.f32 %v7866_v23, 0.0  ;;  %v6307_v49 = vadd.f32 %v6157_v60, %v21738_v30  ;;  %6881 = vmatmul.bf16.gmra.mxu3 %v19185_v20  ;;  %v104_v20 = vld [vmem:[#allocation2 + $0x88] sm:$0x1] }
 0x3e3   :  { %v8162_v48 = vor.u32 %v8160_v53, %v8159_v11  ;;  %v8843_v7 = vsel %vm21387_vm14, %v8841_v47, %v8842_v17  ;;  %v8845_v32 = vor.u32 %v8844_v41, %v8842_v17  ;;  %7563 = vmatmul.bf16.gmra.mxu0 %v19225_v57 }
 0x3e4   :  { %9180 = vst [vmem:[#allocation2 + $0x258] sm:$0xf] %v8843_v7  ;;  %v7994_v1 = vpack.c.bf16 %v7930_v34, %v7930_v34  ;;  %v6989_v24 = vadd.f32 %v6839_v62, %v6307_v49 }
 0x3e5   :  { %v8163_v42 = vsel %vm20326_vm4, %v8155_v36, %v8162_v48  ;;  %v8846_v54 = vrot.slane %v8845_v32, 4  ;;  %v215_v36 = vld [vmem:[#allocation2 + $0x2cc] sm:$0x8]  ;;  %v19411_v32 = vld [vmem:[%s23873_s3 + $0xf0] sm:$0xff] }
 0x3e6   :  { %8703 = vst [vmem:[#allocation2 + $0x1c] sm:$0xf] %v8163_v42  ;;  %v8165_v30 = vshrl.u32 %v7994_v1, 16  ;;  %v8168_v59 = vshll.u32 %v7994_v1, 16  ;;  %v7671_v3 = vadd.f32 %v7521_v19, %v6989_v24  ;;  %6199 = vmatmul.bf16.gmra.mxu2 %v19145_v27  ;;  %v8704_v19 = vld [vmem:[#allocation2 + $0x20] sm:$0xf]  ;;  %v6842_v47 = vpop.f32.mrf.mxu3  ;;  %11792 = vmatpush.bf16.msrb.mxu0 %v19411_v32 }
 0x3e7   :  { %v9182_v33 = vsel %vm21371_vm12, %v8846_v54, %v9181_v43  ;;  %v19451_v43 = vld [vmem:[%s23873_s3 + $0x130] sm:$0xff] }
 0x3e8   :  { %9183 = vst [vmem:[#allocation2 + $0x25c] sm:$0xf] %v9182_v33  ;;  %v8167_v2 = vrot.slane %v8165_v30, 7  ;;  %v8847_v58 = vrot.slane %v8165_v30, 4  ;;  %v8848_v12 = vrot.slane %v8168_v59, 5  ;;  %v7867_v53 = vadd.f32 %v22238_v8, %v7671_v3  ;;  %v7526_v41 = vpop.f32.mrf.mxu0  ;;  %12473 = vmatpush.bf16.msrb.mxu1 %v19451_v43 }
 0x3e9   :  { %v6160_v23 = vpop.f32.mrf.mxu2 }
 0x3ea   :  { %v8170_v11 = vor.u32 %v8168_v59, %v8167_v2  ;;  %v7931_v17 = vmax.f32 %v7867_v53, 0.0  ;;  %v6308_v60 = vadd.f32 %v6160_v23, %v21751_v51  ;;  %v8849_v57 = vor.u32 %v8848_v12, %v8847_v58  ;;  %v19226_v12 = vld [vmem:[#allocation2 + $0x2b8] sm:$0xff] }
 0x3eb   :  { %v105_v51 = vsel %vm20226_vm2, 0, %v104_v20  ;;  %v8171_v33 = vrot.slane %v8167_v2, 4 }
 0x3ec   :  { %v8705_v62 = vsel %vm20408_vm7, %v8170_v11, %v8704_v19  ;;  %v7995_v49 = vpack.c.bf16 %v7931_v17, %v7931_v17  ;;  %v19631_v27 = vpack.c.bf16 %v7931_v17, %v7930_v34  ;;  %v6990_v48 = vadd.f32 %v6842_v47, %v6308_v60  ;;  %106 = vst [vmem:[#allocation2 + $0x88] sm:$0x1] %v105_v51  ;;  %v19146_v11 = vld [vmem:[#allocation2 + $0x78] sm:$0xff]  ;;  %v9185_v60 = vld [vmem:[#allocation2 + $0x264] sm:$0xf] }
 0x3ed   :  { %8706 = vst [vmem:[#allocation2 + $0x20] sm:$0xf] %v8705_v62  ;;  %v19256_v7 = vld [vmem:[#allocation2 + $0x18] sm:$0xff]  ;;  %v216_v34 = vsel %vm21344_vm10, 0, %v215_v36  ;;  %v8850_v54 = vrot.slane %v8849_v57, 4 }
 0x3ee   :  { %v8173_v1 = vshrl.u32 %v7995_v49, 16  ;;  %v8176_v24 = vshll.u32 %v7995_v49, 16  ;;  %20063 = vst [vmem:[#allocation2 + $0x140] sm:$0xff] %v19631_v27   ;;  %v7672_v42 = vadd.f32 %v7524_v21, %v6990_v48  ;;  %9771 = vmatmul.bf16.gmra.mxu1 %v19256_v7  ;;  %v6844_v58 = vpop.f32.mrf.mxu3  ;;  %v19186_v17 = vld [vmem:[#allocation2 + $0x198] sm:$0xff] }
 0x3ef   :  { %217 = vst [vmem:[#allocation2 + $0x2cc] sm:$0x8] %v216_v34  ;;  %v8708_v34 = vld [vmem:[#allocation2 + $0x28] sm:$0xf] }
 0x3f0   :  { %v8175_v30 = vrot.slane %v8173_v1, 7  ;;  %v8851_v59 = vrot.slane %v8176_v24, 5  ;;  %v8853_v3 = vrot.slane %v8173_v1, 4  ;;  %v7868_v45 = vadd.f32 %v22238_v8, %v7672_v42  ;;  %v7529_v47 = vpop.f32.mrf.mxu0 }
 0x3f1   :  { %v6162_v31 = vpop.f32.mrf.mxu2 }
 0x3f2   :  { %v8178_v53 = vor.u32 %v8176_v24, %v8175_v30  ;;  %v8852_v19 = vsel %vm21387_vm14, %v8850_v54, %v8851_v59  ;;  %v8854_v21 = vor.u32 %v8853_v3, %v8851_v59  ;;  %v6309_v23 = vadd.f32 %v6162_v31, %v21754_v55  ;;  %6886 = vmatmul.bf16.gmra.mxu3 %v19186_v17 }
 0x3f3   :  { %9184 = vst [vmem:[#allocation2 + $0x260] sm:$0xf] %v8852_v19  ;;  %v7932_v62 = vmax.f32 %v7868_v45, 0.0  ;;  %7568 = vmatmul.bf16.gmra.mxu0 %v19226_v12 }
 0x3f4   :  { %v8179_v2 = vsel %vm20326_vm4, %v8171_v33, %v8178_v53  ;;  %v8855_v57 = vrot.slane %v8854_v21, 4  ;;  %v6991_v49 = vadd.f32 %v6844_v58, %v6309_v23 }
 0x3f5   :  { %8707 = vst [vmem:[#allocation2 + $0x24] sm:$0xf] %v8179_v2  ;;  %v7996_v27 = vpack.c.bf16 %v7932_v62, %v7932_v62 }
 0x3f6   :  { %v9186_v20 = vsel %vm21371_vm12, %v8855_v57, %v9185_v60  ;;  %v7673_v36 = vadd.f32 %v7526_v41, %v6991_v49  ;;  %6204 = vmatmul.bf16.gmra.mxu2 %v19146_v11  ;;  %v6847_v24 = vpop.f32.mrf.mxu3  ;;  %v19227_v57 = vld [vmem:[#allocation2 + $0x2c0] sm:$0xff] }
 0x3f7   :  { %9187 = vst [vmem:[#allocation2 + $0x264] sm:$0xf] %v9186_v20  ;;  %v8181_v55 = vshrl.u32 %v7996_v27, 16  ;;  %v8184_v48 = vshll.u32 %v7996_v27, 16 }
 0x3f8   :  { %v7869_v7 = vadd.f32 %v22238_v8, %v7673_v36  ;;  %v7531_v30 = vpop.f32.mrf.mxu0 }
 0x3f9   :  { %v8183_v32 = vrot.slane %v8181_v55, 7  ;;  %v8856_v43 = vrot.slane %v8181_v55, 4  ;;  %v8857_v51 = vrot.slane %v8184_v48, 5  ;;  %v6165_v1 = vpop.f32.mrf.mxu2 }
 0x3fa   :  { %v7933_v42 = vmax.f32 %v7869_v7, 0.0  ;;  %v6310_v54 = vadd.f32 %v6165_v1, %v21767_v9  ;;  %v9189_v7 = vld [vmem:[#allocation2 + $0x26c] sm:$0xf] }
 0x3fb   :  { %v8186_v59 = vor.u32 %v8184_v48, %v8183_v32  ;;  %v8858_v3 = vor.u32 %v8857_v51, %v8856_v43  ;;  %v8187_v60 = vrot.slane %v8183_v32, 4  ;;  %v19187_v48 = vld [vmem:[#allocation2 + $0x1a0] sm:$0xff] }
 0x3fc   :  { %v7997_v41 = vpack.c.bf16 %v7933_v42, %v7933_v42  ;;  %v19636_v33 = vpack.c.bf16 %v7933_v42, %v7932_v62  ;;  %v6992_v45 = vadd.f32 %v6847_v24, %v6310_v54  ;;  %v19257_v31 = vld [vmem:[#allocation2 + $0x20] sm:$0xff] }
 0x3fd   :  { %v8709_v58 = vsel %vm20408_vm7, %v8186_v59, %v8708_v34  ;;  %v8859_v21 = vrot.slane %v8858_v3, 4 }
 0x3fe   :  { %8710 = vst [vmem:[#allocation2 + $0x28] sm:$0xf] %v8709_v58  ;;  %v8189_v12 = vshrl.u32 %v7997_v41, 16  ;;  %v8192_v53 = vshll.u32 %v7997_v41, 16  ;;  %v7674_v19 = vadd.f32 %v7529_v47, %v6992_v45  ;;  %9776 = vmatmul.bf16.gmra.mxu1 %v19257_v31  ;;  %v6849_v62 = vpop.f32.mrf.mxu3  ;;  %v19147_v47 = vld [vmem:[#allocation2 + $0x80] sm:$0xff] }
 0x3ff   :  { %20064 = vst [vmem:[#allocation2 + $0x148] sm:$0xff] %v19636_v33   ;;  %v8712_v41 = vld [vmem:[#allocation2 + $0x30] sm:$0xf] }
 0x400   :  { %v8191_v23 = vrot.slane %v8189_v12, 7  ;;  %v8860_v11 = vrot.slane %v8192_v53, 5  ;;  %v8862_v9 = vrot.slane %v8189_v12, 4  ;;  %v7870_v17 = vadd.f32 %v22238_v8, %v7674_v19  ;;  %v7534_v55 = vpop.f32.mrf.mxu0 }
 0x401   :  { %v6167_v2 = vpop.f32.mrf.mxu2 }
 0x402   :  { %v8194_v49 = vor.u32 %v8192_v53, %v8191_v23  ;;  %v8861_v27 = vsel %vm21387_vm14, %v8859_v21, %v8860_v11  ;;  %v8863_v20 = vor.u32 %v8862_v9, %v8860_v11  ;;  %v7934_v36 = vmax.f32 %v7870_v17, 0.0  ;;  %6891 = vmatmul.bf16.gmra.mxu3 %v19187_v48 }
 0x403   :  { %9188 = vst [vmem:[#allocation2 + $0x268] sm:$0xf] %v8861_v27  ;;  %v6311_v43 = vadd.f32 %v6167_v2, %v21779_v35  ;;  %7573 = vmatmul.bf16.gmra.mxu0 %v19227_v57 }
 0x404   :  { %v8195_v51 = vsel %vm20326_vm4, %v8187_v60, %v8194_v49  ;;  %v8864_v32 = vrot.slane %v8863_v20, 4  ;;  %v7998_v1 = vpack.c.bf16 %v7934_v36, %v7934_v36 }
 0x405   :  { %8711 = vst [vmem:[#allocation2 + $0x2c] sm:$0xf] %v8195_v51  ;;  %v6993_v24 = vadd.f32 %v6849_v62, %v6311_v43  ;;  %v19228_v43 = vld [vmem:[#allocation2 + $0x2c8] sm:$0xff] }
 0x406   :  { %v9190_v34 = vsel %vm21371_vm12, %v8864_v32, %v9189_v7  ;;  %v8197_v42 = vshrl.u32 %v7998_v1, 16  ;;  %v8200_v54 = vshll.u32 %v7998_v1, 16  ;;  %6209 = vmatmul.bf16.gmra.mxu2 %v19147_v47  ;;  %v6852_v58 = vpop.f32.mrf.mxu3 }
 0x407   :  { %9191 = vst [vmem:[#allocation2 + $0x26c] sm:$0xf] %v9190_v34  ;;  %v7675_v59 = vadd.f32 %v7531_v30, %v6993_v24  ;;  %v19148_v24 = vld [vmem:[#allocation2 + $0x88] sm:$0xff] }
 0x408   :  { %v8199_v3 = vrot.slane %v8197_v42, 7  ;;  %v8865_v35 = vrot.slane %v8197_v42, 4  ;;  %v8866_v33 = vrot.slane %v8200_v54, 5  ;;  %v7536_v19 = vpop.f32.mrf.mxu0 }
 0x409   :  { %v7871_v45 = vadd.f32 %v22238_v8, %v7675_v59  ;;  %v6170_v31 = vpop.f32.mrf.mxu2  ;;  %v9193_v59 = vld [vmem:[#allocation2 + $0x274] sm:$0xf] }
 0x40a   :  { %v8202_v12 = vor.u32 %v8200_v54, %v8199_v3  ;;  %v6312_v53 = vadd.f32 %v6170_v31, %v21793_v18  ;;  %v8867_v30 = vor.u32 %v8866_v33, %v8865_v35 }
 0x40b   :  { %v7935_v21 = vmax.f32 %v7871_v45, 0.0 }
 0x40c   :  { %v8713_v23 = vsel %vm20408_vm7, %v8202_v12, %v8712_v41  ;;  %v6994_v11 = vadd.f32 %v6852_v58, %v6312_v53  ;;  %v19258_v9 = vld [vmem:[#allocation2 + $0x28] sm:$0xff]  ;;  %v8868_v27 = vrot.slane %v8867_v30, 4 }
 0x40d   :  { %8714 = vst [vmem:[#allocation2 + $0x30] sm:$0xf] %v8713_v23  ;;  %v7999_v17 = vpack.c.bf16 %v7935_v21, %v7935_v21  ;;  %v19641_v60 = vpack.c.bf16 %v7935_v21, %v7934_v36  ;;  %v19188_v36 = vld [vmem:[#allocation2 + $0x1a8] sm:$0xff] }
 0x40e   :  { %v7676_v2 = vadd.f32 %v7534_v55, %v6994_v11  ;;  %9781 = vmatmul.bf16.gmra.mxu1 %v19258_v9  ;;  %v6854_v7 = vpop.f32.mrf.mxu3  ;;  %v8203_v55 = vrot.slane %v8199_v3, 4  ;;  %v8716_v11 = vld [vmem:[#allocation2 + $0x38] sm:$0xf] }
 0x40f   :  { %v8205_v62 = vshrl.u32 %v7999_v17, 16  ;;  %v8208_v57 = vshll.u32 %v7999_v17, 16  ;;  %20065 = vst [vmem:[#allocation2 + $0x150] sm:$0xff] %v19641_v60  }
 0x410   :  { %v7872_v49 = vadd.f32 %v22238_v8, %v7676_v2  ;;  %v7539_v1 = vpop.f32.mrf.mxu0 }
 0x411   :  { %v8207_v18 = vrot.slane %v8205_v62, 7  ;;  %v8869_v20 = vrot.slane %v8208_v57, 5  ;;  %v8871_v47 = vrot.slane %v8205_v62, 4  ;;  %v6172_v48 = vpop.f32.mrf.mxu2 }
 0x412   :  { %v7936_v51 = vmax.f32 %v7872_v49, 0.0  ;;  %v6313_v32 = vadd.f32 %v6172_v48, %v21805_v61  ;;  %6896 = vmatmul.bf16.gmra.mxu3 %v19188_v36 }
 0x413   :  { %v8210_v34 = vor.u32 %v8208_v57, %v8207_v18  ;;  %v8870_v42 = vsel %vm21387_vm14, %v8868_v27, %v8869_v20  ;;  %v8872_v54 = vor.u32 %v8871_v47, %v8869_v20  ;;  %7578 = vmatmul.bf16.gmra.mxu0 %v19228_v43 }
 0x414   :  { %9192 = vst [vmem:[#allocation2 + $0x270] sm:$0xf] %v8870_v42  ;;  %v8000_v41 = vpack.c.bf16 %v7936_v51, %v7936_v51  ;;  %v6995_v35 = vadd.f32 %v6854_v7, %v6313_v32 }
 0x415   :  { %v8211_v33 = vsel %vm20326_vm4, %v8203_v55, %v8210_v34  ;;  %v8873_v45 = vrot.slane %v8872_v54, 4  ;;  %v19229_v54 = vld [vmem:[#allocation2 + $0x2e0] sm:$0xff] }
 0x416   :  { %8715 = vst [vmem:[#allocation2 + $0x34] sm:$0xf] %v8211_v33  ;;  %v8213_v61 = vshrl.u32 %v8000_v41, 16  ;;  %v8216_v31 = vshll.u32 %v8000_v41, 16  ;;  %v7677_v58 = vadd.f32 %v7536_v19, %v6995_v35  ;;  %6214 = vmatmul.bf16.gmra.mxu2 %v19148_v24  ;;  %v6857_v30 = vpop.f32.mrf.mxu3 }
 0x417   :  { %v9194_v3 = vsel %vm21371_vm12, %v8873_v45, %v9193_v59  ;;  %v19189_v45 = vld [vmem:[#allocation2 + $0x1c0] sm:$0xff] }
 0x418   :  { %9195 = vst [vmem:[#allocation2 + $0x274] sm:$0xf] %v9194_v3  ;;  %v8215_v12 = vrot.slane %v8213_v61, 7  ;;  %v8874_v53 = vrot.slane %v8213_v61, 4  ;;  %v8875_v21 = vrot.slane %v8216_v31, 5  ;;  %v7873_v23 = vadd.f32 %v22238_v8, %v7677_v58  ;;  %v7541_v2 = vpop.f32.mrf.mxu0 }
 0x419   :  { %v6175_v9 = vpop.f32.mrf.mxu2  ;;  %v9197_v61 = vld [vmem:[#allocation2 + $0x27c] sm:$0xf] }
 0x41a   :  { %v8218_v17 = vor.u32 %v8216_v31, %v8215_v12  ;;  %v7937_v60 = vmax.f32 %v7873_v23, 0.0  ;;  %v6314_v62 = vadd.f32 %v6175_v9, %v21816_v40  ;;  %v8876_v57 = vor.u32 %v8875_v21, %v8874_v53 }
 0x41b   :  { %v8219_v55 = vrot.slane %v8215_v12, 4 }
 0x41c   :  { %v8717_v19 = vsel %vm20408_vm7, %v8218_v17, %v8716_v11  ;;  %v8001_v49 = vpack.c.bf16 %v7937_v60, %v7937_v60  ;;  %v19646_v27 = vpack.c.bf16 %v7937_v60, %v7936_v51  ;;  %v6996_v18 = vadd.f32 %v6857_v30, %v6314_v62  ;;  %v19330_v30 = vld [vmem:[%s23873_s3 + $0x68] sm:$0xff] }
 0x41d   :  { %8718 = vst [vmem:[#allocation2 + $0x38] sm:$0xf] %v8717_v19  ;;  %v19259_v20 = vld [vmem:[#allocation2 + $0x30] sm:$0xff]  ;;  %v8877_v43 = vrot.slane %v8876_v57, 4  ;;  %v19370_v17 = vld [vmem:[%s23873_s3 + $0xa8] sm:$0xff]  ;;  %10431 = vmatpush.bf16.msrb.mxu2 %v19330_v30 }
 0x41e   :  { %v8221_v47 = vshrl.u32 %v8001_v49, 16  ;;  %v8224_v48 = vshll.u32 %v8001_v49, 16  ;;  %20066 = vst [vmem:[#allocation2 + $0x158] sm:$0xff] %v19646_v27   ;;  %v7678_v7 = vadd.f32 %v7539_v1, %v6996_v18  ;;  %9786 = vmatmul.bf16.gmra.mxu1 %v19259_v20  ;;  %v6859_v42 = vpop.f32.mrf.mxu3  ;;  %v19149_v1 = vld [vmem:[#allocation2 + $0xa0] sm:$0xff]  ;;  %11112 = vmatpush.bf16.msrb.mxu3 %v19370_v17 }
 0x41f   :  { %v8720_v49 = vld [vmem:[#allocation2 + $0x40] sm:$0xf] }
 0x420   :  { %v8223_v32 = vrot.slane %v8221_v47, 7  ;;  %v8878_v24 = vrot.slane %v8224_v48, 5  ;;  %v8880_v36 = vrot.slane %v8221_v47, 4  ;;  %v7874_v40 = vadd.f32 %v22238_v8, %v7678_v7  ;;  %v7544_v33 = vpop.f32.mrf.mxu0 }
 0x421   :  { %v6177_v34 = vpop.f32.mrf.mxu2 }
 0x422   :  { %v8226_v59 = vor.u32 %v8224_v48, %v8223_v32  ;;  %v8879_v51 = vsel %vm21387_vm14, %v8877_v43, %v8878_v24  ;;  %v8881_v41 = vor.u32 %v8880_v36, %v8878_v24  ;;  %v6315_v35 = vadd.f32 %v6177_v34, %v21828_v22  ;;  %6901 = vmatmul.bf16.gmra.mxu3 %v19189_v45 }
 0x423   :  { %9196 = vst [vmem:[#allocation2 + $0x278] sm:$0xf] %v8879_v51  ;;  %v7938_v31 = vmax.f32 %v7874_v40, 0.0  ;;  %7583 = vmatmul.bf16.gmra.mxu0 %v19229_v54 }
 0x424   :  { %v8227_v58 = vsel %vm20326_vm4, %v8219_v55, %v8226_v59  ;;  %v8882_v3 = vrot.slane %v8881_v41, 4  ;;  %v6997_v12 = vadd.f32 %v6859_v42, %v6315_v35  ;;  %v19410_v55 = vld [vmem:[%s23873_s3 + $0xe8] sm:$0xff]  ;;  %v22364_v59 = vpop.f32.mrf.mxu1 }
 0x425   :  { %8719 = vst [vmem:[#allocation2 + $0x3c] sm:$0xf] %v8227_v58  ;;  %v8002_v53 = vpack.c.bf16 %v7938_v31, %v7938_v31  ;;  %11793 = vmatpush.bf16.msrb.mxu0 %v19410_v55  ;;  %v19230_v58 = vld [vmem:[#allocation2 + $0x2e8] sm:$0xff] }
 0x426   :  { %v9198_v21 = vsel %vm21371_vm12, %v8882_v3, %v9197_v61  ;;  %v7679_v23 = vadd.f32 %v7541_v2, %v6997_v12  ;;  %6219 = vmatmul.bf16.gmra.mxu2 %v19149_v1  ;;  %v6862_v2 = vpop.f32.mrf.mxu3 }
 0x427   :  { %9199 = vst [vmem:[#allocation2 + $0x27c] sm:$0xf] %v9198_v21  ;;  %v8229_v22 = vshrl.u32 %v8002_v53, 16  ;;  %v8232_v11 = vshll.u32 %v8002_v53, 16 }
 0x428   :  { %v7875_v9 = vadd.f32 %v22238_v8, %v7679_v23  ;;  %v7546_v20 = vpop.f32.mrf.mxu0  ;;  %v19150_v23 = vld [vmem:[#allocation2 + $0xa8] sm:$0xff] }
 0x429   :  { %v8231_v60 = vrot.slane %v8229_v22, 7  ;;  %v8883_v62 = vrot.slane %v8229_v22, 4  ;;  %v8884_v19 = vrot.slane %v8232_v11, 5  ;;  %v6180_v57 = vpop.f32.mrf.mxu2  ;;  %v19190_v22 = vld [vmem:[#allocation2 + $0x1c8] sm:$0xff] }
 0x42a   :  { %v7939_v27 = vmax.f32 %v7875_v9, 0.0  ;;  %v6316_v18 = vadd.f32 %v6180_v57, %v21839_v56  ;;  %v19450_v56 = vld [vmem:[%s23873_s3 + $0x128] sm:$0xff] }
 0x42b   :  { %v8234_v47 = vor.u32 %v8232_v11, %v8231_v60  ;;  %v8885_v48 = vor.u32 %v8884_v19, %v8883_v62  ;;  %12474 = vmatpush.bf16.msrb.mxu1 %v19450_v56  ;;  %v8235_v45 = vrot.slane %v8231_v60, 4  ;;  %v9201_v11 = vld [vmem:[#allocation2 + $0x284] sm:$0xf] }
 0x42c   :  { %v8003_v7 = vpack.c.bf16 %v7939_v27, %v7939_v27  ;;  %v19651_v43 = vpack.c.bf16 %v7939_v27, %v7938_v31  ;;  %v6998_v32 = vadd.f32 %v6862_v2, %v6316_v18  ;;  %v19260_v24 = vld [vmem:[#allocation2 + $0x38] sm:$0xff]  ;;  %v22374_v18 = vpop.f32.mrf.mxu1 }
 0x42d   :  { %v8721_v36 = vsel %vm20408_vm7, %v8234_v47, %v8720_v49  ;;  %v8886_v54 = vrot.slane %v8885_v48, 4 }
 0x42e   :  { %8722 = vst [vmem:[#allocation2 + $0x40] sm:$0xf] %v8721_v36  ;;  %v8237_v40 = vshrl.u32 %v8003_v7, 16  ;;  %v8240_v34 = vshll.u32 %v8003_v7, 16  ;;  %v7680_v42 = vadd.f32 %v7544_v33, %v6998_v32  ;;  %9791 = vmatmul.bf16.gmra.mxu1 %v19260_v24  ;;  %v6864_v31 = vpop.f32.mrf.mxu3 }
 0x42f   :  { %20067 = vst [vmem:[#allocation2 + $0x160] sm:$0xff] %v19651_v43  }
 0x430   :  { %v8239_v51 = vrot.slane %v8237_v40, 7  ;;  %v8887_v41 = vrot.slane %v8240_v34, 5  ;;  %v8889_v35 = vrot.slane %v8237_v40, 4  ;;  %v7876_v1 = vadd.f32 %v22238_v8, %v7680_v42  ;;  %v7549_v21 = vpop.f32.mrf.mxu0 }
 0x431   :  { %v6182_v61 = vpop.f32.mrf.mxu2 }
 0x432   :  { %v8242_v3 = vor.u32 %v8240_v34, %v8239_v51  ;;  %v8888_v33 = vsel %vm21387_vm14, %v8886_v54, %v8887_v41  ;;  %v8890_v12 = vor.u32 %v8889_v35, %v8887_v41  ;;  %v7940_v53 = vmax.f32 %v7876_v1, 0.0  ;;  %6906 = vmatmul.bf16.gmra.mxu3 %v19190_v22 }
 0x433   :  { %9200 = vst [vmem:[#allocation2 + $0x280] sm:$0xf] %v8888_v33  ;;  %v6317_v9 = vadd.f32 %v6182_v61, %v21848_v29  ;;  %7588 = vmatmul.bf16.gmra.mxu0 %v19230_v58  ;;  %v8724_v29 = vld [vmem:[#allocation2 + $0x48] sm:$0xf] }
 0x434   :  { %v8243_v30 = vsel %vm20326_vm4, %v8235_v45, %v8242_v3  ;;  %v8891_v17 = vrot.slane %v8890_v12, 4  ;;  %v8004_v60 = vpack.c.bf16 %v7940_v53, %v7940_v53  ;;  %v19231_v12 = vld [vmem:[#allocation2 + $0x2f0] sm:$0xff] }
 0x435   :  { %8723 = vst [vmem:[#allocation2 + $0x44] sm:$0xf] %v8243_v30  ;;  %v6999_v62 = vadd.f32 %v6864_v31, %v6317_v9  ;;  %v19151_v9 = vld [vmem:[#allocation2 + $0xb0] sm:$0xff] }
 0x436   :  { %v9202_v19 = vsel %vm21371_vm12, %v8891_v17, %v9201_v11  ;;  %v8245_v57 = vshrl.u32 %v8004_v60, 16  ;;  %v8248_v2 = vshll.u32 %v8004_v60, 16  ;;  %6224 = vmatmul.bf16.gmra.mxu2 %v19150_v23  ;;  %v6867_v32 = vpop.f32.mrf.mxu3 }
 0x437   :  { %9203 = vst [vmem:[#allocation2 + $0x284] sm:$0xf] %v9202_v19  ;;  %v7681_v49 = vadd.f32 %v7546_v20, %v6999_v62  ;;  %v9205_v62 = vld [vmem:[#allocation2 + $0x28c] sm:$0xf] }
 0x438   :  { %v8247_v27 = vrot.slane %v8245_v57, 7  ;;  %v8892_v47 = vrot.slane %v8245_v57, 4  ;;  %v8893_v48 = vrot.slane %v8248_v2, 5  ;;  %v7551_v55 = vpop.f32.mrf.mxu0 }
 0x439   :  { %v7877_v7 = vadd.f32 %v22238_v8, %v7681_v49  ;;  %v6185_v43 = vpop.f32.mrf.mxu2 }
 0x43a   :  { %v8250_v24 = vor.u32 %v8248_v2, %v8247_v27  ;;  %v6318_v36 = vadd.f32 %v6185_v43, %v21859_v6  ;;  %v8894_v42 = vor.u32 %v8893_v48, %v8892_v47 }
 0x43b   :  { %v7941_v56 = vmax.f32 %v7877_v7, 0.0 }
 0x43c   :  { %v8725_v40 = vsel %vm20408_vm7, %v8250_v24, %v8724_v29  ;;  %v7000_v34 = vadd.f32 %v6867_v32, %v6318_v36  ;;  %v19261_v20 = vld [vmem:[#allocation2 + $0x40] sm:$0xff]  ;;  %v8895_v61 = vrot.slane %v8894_v42, 4  ;;  %v8728_v36 = vld [vmem:[#allocation2 + $0x50] sm:$0xf] }
 0x43d   :  { %8726 = vst [vmem:[#allocation2 + $0x48] sm:$0xf] %v8725_v40  ;;  %v8005_v54 = vpack.c.bf16 %v7941_v56, %v7941_v56  ;;  %v19656_v51 = vpack.c.bf16 %v7941_v56, %v7940_v53  ;;  %v19191_v53 = vld [vmem:[#allocation2 + $0x1d0] sm:$0xff]  ;;  %v22393_v32 = vld [vmem:[%s23874_s2] ss:$0 sm:$0xff] }
 0x43e   :  { %v7682_v41 = vadd.f32 %v7549_v21, %v7000_v34  ;;  %9796 = vmatmul.bf16.gmra.mxu1 %v19261_v20  ;;  %v6869_v33 = vpop.f32.mrf.mxu3  ;;  %v8251_v21 = vrot.slane %v8247_v27, 4 }
 0x43f   :  { %v8253_v35 = vshrl.u32 %v8005_v54, 16  ;;  %v8256_v1 = vshll.u32 %v8005_v54, 16  ;;  %20068 = vst [vmem:[#allocation2 + $0x168] sm:$0xff] %v19656_v51  }
 0x440   :  { %v7878_v45 = vadd.f32 %v22238_v8, %v7682_v41  ;;  %v7554_v11 = vpop.f32.mrf.mxu0  ;;  %v22384_v8 = vpop.f32.mrf.mxu1 }
 0x441   :  { %v8255_v6 = vrot.slane %v8253_v35, 7  ;;  %v8896_v31 = vrot.slane %v8256_v1, 5  ;;  %v8898_v58 = vrot.slane %v8253_v35, 4  ;;  %v6187_v3 = vpop.f32.mrf.mxu2 }
 0x442   :  { %v7942_v23 = vmax.f32 %v7878_v45, 0.0  ;;  %v6319_v22 = vadd.f32 %v6187_v3, %v21871_v28  ;;  %6911 = vmatmul.bf16.gmra.mxu3 %v19191_v53 }
 0x443   :  { %v8258_v30 = vor.u32 %v8256_v1, %v8255_v6  ;;  %v8897_v17 = vsel %vm21387_vm14, %v8895_v61, %v8896_v31  ;;  %v8899_v60 = vor.u32 %v8898_v58, %v8896_v31  ;;  %7593 = vmatmul.bf16.gmra.mxu0 %v19231_v12 }
 0x444   :  { %9204 = vst [vmem:[#allocation2 + $0x288] sm:$0xf] %v8897_v17  ;;  %v8006_v19 = vpack.c.bf16 %v7942_v23, %v7942_v23  ;;  %v7001_v57 = vadd.f32 %v6869_v33, %v6319_v22 }
 0x445   :  { %v8259_v2 = vsel %vm20326_vm4, %v8251_v21, %v8258_v30  ;;  %v8900_v49 = vrot.slane %v8899_v60, 4  ;;  %v19232_v30 = vld [vmem:[#allocation2 + $0x2f8] sm:$0xff] }
 0x446   :  { %8727 = vst [vmem:[#allocation2 + $0x4c] sm:$0xf] %v8259_v2  ;;  %v8261_v28 = vshrl.u32 %v8006_v19, 16  ;;  %v8264_v29 = vshll.u32 %v8006_v19, 16  ;;  %v7683_v27 = vadd.f32 %v7551_v55, %v7001_v57  ;;  %6229 = vmatmul.bf16.gmra.mxu2 %v19151_v9  ;;  %v6872_v40 = vpop.f32.mrf.mxu3  ;;  %v19192_v57 = vld [vmem:[#allocation2 + $0x1d8] sm:$0xff] }
 0x447   :  { %v9206_v47 = vsel %vm21371_vm12, %v8900_v49, %v9205_v62  ;;  %v9209_v2 = vld [vmem:[#allocation2 + $0x294] sm:$0xf] }
 0x448   :  { %9207 = vst [vmem:[#allocation2 + $0x28c] sm:$0xf] %v9206_v47  ;;  %v8263_v48 = vrot.slane %v8261_v28, 7  ;;  %v8901_v7 = vrot.slane %v8261_v28, 4  ;;  %v8902_v43 = vrot.slane %v8264_v29, 5  ;;  %v7879_v24 = vadd.f32 %v22393_v32, %v7683_v27  ;;  %v7556_v20 = vpop.f32.mrf.mxu0 }
 0x449   :  { %v6190_v56 = vpop.f32.mrf.mxu2 }
 0x44a   :  { %v8266_v55 = vor.u32 %v8264_v29, %v8263_v48  ;;  %v7943_v34 = vmax.f32 %v7879_v24, 0.0  ;;  %v6320_v42 = vadd.f32 %v6190_v56, %v21885_v52  ;;  %v22397_v54 = vpop.f32.mrf.mxu1  ;;  %v8903_v41 = vor.u32 %v8902_v43, %v8901_v7 }
 0x44b   :  { %v8267_v22 = vrot.slane %v8263_v48, 4 }
 0x44c   :  { %v8729_v51 = vsel %vm20408_vm7, %v8266_v55, %v8728_v36  ;;  %v8007_v35 = vpack.c.bf16 %v7943_v34, %v7943_v34  ;;  %v19661_v1 = vpack.c.bf16 %v7943_v34, %v7942_v23  ;;  %v7002_v45 = vadd.f32 %v6872_v40, %v6320_v42 }
 0x44d   :  { %8730 = vst [vmem:[#allocation2 + $0x50] sm:$0xf] %v8729_v51  ;;  %v19262_v61 = vld [vmem:[#allocation2 + $0x48] sm:$0xff]  ;;  %v8904_v3 = vrot.slane %v8903_v41, 4  ;;  %v8732_v51 = vld [vmem:[#allocation2 + $0x58] sm:$0xf] }
 0x44e   :  { %v8269_v6 = vshrl.u32 %v8007_v35, 16  ;;  %v8272_v31 = vshll.u32 %v8007_v35, 16  ;;  %20069 = vst [vmem:[#allocation2 + $0x170] sm:$0xff] %v19661_v1   ;;  %v7684_v58 = vadd.f32 %v7554_v11, %v7002_v45  ;;  %9801 = vmatmul.bf16.gmra.mxu1 %v19262_v61  ;;  %v6874_v21 = vpop.f32.mrf.mxu3  ;;  %v19152_v11 = vld [vmem:[#allocation2 + $0xb8] sm:$0xff] }
 0x450   :  { %v8271_v33 = vrot.slane %v8269_v6, 7  ;;  %v8905_v12 = vrot.slane %v8272_v31, 5  ;;  %v8907_v52 = vrot.slane %v8269_v6, 4  ;;  %v7880_v9 = vadd.f32 %v22393_v32, %v7684_v58  ;;  %v7559_v19 = vpop.f32.mrf.mxu0 }
 0x451   :  { %v6192_v53 = vpop.f32.mrf.mxu2 }
 0x452   :  { %v8274_v17 = vor.u32 %v8272_v31, %v8271_v33  ;;  %v8906_v23 = vsel %vm21387_vm14, %v8904_v3, %v8905_v12  ;;  %v8908_v60 = vor.u32 %v8907_v52, %v8905_v12  ;;  %v6321_v62 = vadd.f32 %v6192_v53, %v21897_v0  ;;  %v22405_v28 = vpop.f32.mrf.mxu1  ;;  %6916 = vmatmul.bf16.gmra.mxu3 %v19192_v57 }
 0x453   :  { %9208 = vst [vmem:[#allocation2 + $0x290] sm:$0xf] %v8906_v23  ;;  %v7944_v49 = vmax.f32 %v7880_v9, 0.0  ;;  %7598 = vmatmul.bf16.gmra.mxu0 %v19232_v30 }
 0x454   :  { %v8275_v29 = vsel %vm20326_vm4, %v8267_v22, %v8274_v17  ;;  %v8909_v27 = vrot.slane %v8908_v60, 4  ;;  %v7003_v47 = vadd.f32 %v6874_v21, %v6321_v62  ;;  %v19233_v62 = vld [vmem:[#allocation2 + $0x300] sm:$0xff] }
 0x455   :  { %8731 = vst [vmem:[#allocation2 + $0x54] sm:$0xf] %v8275_v29  ;;  %v8008_v48 = vpack.c.bf16 %v7944_v49, %v7944_v49 }
 0x456   :  { %v9210_v7 = vsel %vm21371_vm12, %v8909_v27, %v9209_v2  ;;  %v7685_v0 = vadd.f32 %v7556_v20, %v7003_v47  ;;  %6234 = vmatmul.bf16.gmra.mxu2 %v19152_v11  ;;  %v6877_v42 = vpop.f32.mrf.mxu3  ;;  %v19193_v27 = vld [vmem:[#allocation2 + $0x1e0] sm:$0xff]  ;;  %v9213_v47 = vld [vmem:[#allocation2 + $0x29c] sm:$0xf] }
 0x457   :  { %9211 = vst [vmem:[#allocation2 + $0x294] sm:$0xf] %v9210_v7  ;;  %v8277_v43 = vshrl.u32 %v8008_v48, 16  ;;  %v8280_v24 = vshll.u32 %v8008_v48, 16 }
 0x458   :  { %v7881_v36 = vadd.f32 %v22393_v32, %v7685_v0  ;;  %v7561_v1 = vpop.f32.mrf.mxu0 }
 0x459   :  { %v8279_v56 = vrot.slane %v8277_v43, 7  ;;  %v8910_v40 = vrot.slane %v8277_v43, 4  ;;  %v8911_v55 = vrot.slane %v8280_v24, 5  ;;  %v6195_v34 = vpop.f32.mrf.mxu2 }
 0x45a   :  { %v7945_v41 = vmax.f32 %v7881_v36, 0.0  ;;  %v6322_v35 = vadd.f32 %v6195_v34, %v21908_v50  ;;  %v22413_v20 = vpop.f32.mrf.mxu1 }
 0x45b   :  { %v8282_v45 = vor.u32 %v8280_v24, %v8279_v56  ;;  %v8912_v61 = vor.u32 %v8911_v55, %v8910_v40  ;;  %v8283_v17 = vrot.slane %v8279_v56, 4 }
 0x45c   :  { %v8009_v6 = vpack.c.bf16 %v7945_v41, %v7945_v41  ;;  %v19666_v31 = vpack.c.bf16 %v7945_v41, %v7944_v49  ;;  %v7004_v58 = vadd.f32 %v6877_v42, %v6322_v35  ;;  %v19263_v3 = vld [vmem:[#allocation2 + $0x50] sm:$0xff]  ;;  %v19369_v42 = vld [vmem:[%s23873_s3 + $0xa0] sm:$0xff] }
 0x45d   :  { %v8733_v33 = vsel %vm20408_vm7, %v8282_v45, %v8732_v51  ;;  %v8913_v9 = vrot.slane %v8912_v61, 4  ;;  %v8736_v41 = vld [vmem:[#allocation2 + $0x60] sm:$0xf]  ;;  %11113 = vmatpush.bf16.msrb.mxu3 %v19369_v42 }
 0x45e   :  { %8734 = vst [vmem:[#allocation2 + $0x58] sm:$0xf] %v8733_v33  ;;  %v8285_v12 = vshrl.u32 %v8009_v6, 16  ;;  %v8288_v52 = vshll.u32 %v8009_v6, 16  ;;  %v7686_v22 = vadd.f32 %v7559_v19, %v7004_v58  ;;  %9806 = vmatmul.bf16.gmra.mxu1 %v19263_v3  ;;  %v6879_v60 = vpop.f32.mrf.mxu3  ;;  %v19153_v19 = vld [vmem:[#allocation2 + $0xc0] sm:$0xff] }
 0x45f   :  { %20070 = vst [vmem:[#allocation2 + $0x178] sm:$0xff] %v19666_v31  }
 0x460   :  { %v8287_v50 = vrot.slane %v8285_v12, 7  ;;  %v8914_v53 = vrot.slane %v8288_v52, 5  ;;  %v8916_v21 = vrot.slane %v8285_v12, 4  ;;  %v7882_v30 = vadd.f32 %v22393_v32, %v7686_v22  ;;  %v7564_v29 = vpop.f32.mrf.mxu0 }
 0x461   :  { %v6197_v23 = vpop.f32.mrf.mxu2 }
 0x462   :  { %v8290_v11 = vor.u32 %v8288_v52, %v8287_v50  ;;  %v8915_v57 = vsel %vm21387_vm14, %v8913_v9, %v8914_v53  ;;  %v8917_v2 = vor.u32 %v8916_v21, %v8914_v53  ;;  %v7946_v49 = vmax.f32 %v7882_v30, 0.0  ;;  %v22421_v7 = vpop.f32.mrf.mxu1  ;;  %6921 = vmatmul.bf16.gmra.mxu3 %v19193_v27  ;;  %v19234_v27 = vld [vmem:[#allocation2 + $0x308] sm:$0xff] }
 0x463   :  { %9212 = vst [vmem:[#allocation2 + $0x298] sm:$0xf] %v8915_v57  ;;  %v6323_v48 = vadd.f32 %v6197_v23, %v21920_v10  ;;  %7603 = vmatmul.bf16.gmra.mxu0 %v19233_v62  ;;  %v19329_v10 = vld [vmem:[%s23873_s3 + $0x60] sm:$0xff] }
 0x464   :  { %v8291_v0 = vsel %vm20326_vm4, %v8283_v17, %v8290_v11  ;;  %v8918_v43 = vrot.slane %v8917_v2, 4  ;;  %v8010_v24 = vpack.c.bf16 %v7946_v49, %v7946_v49  ;;  %10432 = vmatpush.bf16.msrb.mxu2 %v19329_v10  ;;  %v19409_v17 = vld [vmem:[%s23873_s3 + $0xe0] sm:$0xff] }
 0x465   :  { %8735 = vst [vmem:[#allocation2 + $0x5c] sm:$0xf] %v8291_v0  ;;  %v7005_v36 = vadd.f32 %v6879_v60, %v6323_v48  ;;  %11794 = vmatpush.bf16.msrb.mxu0 %v19409_v17 }
 0x466   :  { %v9214_v56 = vsel %vm21371_vm12, %v8918_v43, %v9213_v47  ;;  %v8293_v40 = vshrl.u32 %v8010_v24, 16  ;;  %v8296_v55 = vshll.u32 %v8010_v24, 16  ;;  %6239 = vmatmul.bf16.gmra.mxu2 %v19153_v19  ;;  %v6882_v31 = vpop.f32.mrf.mxu3  ;;  %v19154_v43 = vld [vmem:[#allocation2 + $0xc8] sm:$0xff] }
 0x467   :  { %9215 = vst [vmem:[#allocation2 + $0x29c] sm:$0xf] %v9214_v56  ;;  %v7687_v34 = vadd.f32 %v7561_v1, %v7005_v36  ;;  %v19194_v24 = vld [vmem:[#allocation2 + $0x1e8] sm:$0xff] }
 0x468   :  { %v8295_v51 = vrot.slane %v8293_v40, 7  ;;  %v8919_v35 = vrot.slane %v8293_v40, 4  ;;  %v8920_v45 = vrot.slane %v8296_v55, 5  ;;  %v7566_v3 = vpop.f32.mrf.mxu0 }
 0x469   :  { %v7883_v61 = vadd.f32 %v22393_v32, %v7687_v34  ;;  %v6200_v6 = vpop.f32.mrf.mxu2  ;;  %v9217_v34 = vld [vmem:[#allocation2 + $0x2a4] sm:$0xf] }
 0x46a   :  { %v8298_v58 = vor.u32 %v8296_v55, %v8295_v51  ;;  %v6324_v1 = vadd.f32 %v6200_v6, %v21931_v38  ;;  %v8921_v50 = vor.u32 %v8920_v45, %v8919_v35  ;;  %v19449_v38 = vld [vmem:[%s23873_s3 + $0x120] sm:$0xff]  ;;  %v8299_v36 = vrot.slane %v8295_v51, 4 }
 0x46b   :  { %v7947_v33 = vmax.f32 %v7883_v61, 0.0  ;;  %v22437_v22 = vpop.f32.mrf.mxu1  ;;  %12475 = vmatpush.bf16.msrb.mxu1 %v19449_v38 }
 0x46c   :  { %v8737_v12 = vsel %vm20408_vm7, %v8298_v58, %v8736_v41  ;;  %v7006_v52 = vadd.f32 %v6882_v31, %v6324_v1  ;;  %v19264_v9 = vld [vmem:[#allocation2 + $0x58] sm:$0xff]  ;;  %v8922_v11 = vrot.slane %v8921_v50, 4 }
 0x46d   :  { %8738 = vst [vmem:[#allocation2 + $0x60] sm:$0xf] %v8737_v12  ;;  %v8011_v53 = vpack.c.bf16 %v7947_v33, %v7947_v33  ;;  %v19671_v21 = vpack.c.bf16 %v7947_v33, %v7946_v49  ;;  %v8740_v12 = vld [vmem:[#allocation2 + $0x68] sm:$0xf] }
 0x46e   :  { %v7688_v30 = vadd.f32 %v7564_v29, %v7006_v52  ;;  %9811 = vmatmul.bf16.gmra.mxu1 %v19264_v9  ;;  %v6884_v19 = vpop.f32.mrf.mxu3 }
 0x46f   :  { %v8301_v23 = vshrl.u32 %v8011_v53, 16  ;;  %v8304_v60 = vshll.u32 %v8011_v53, 16  ;;  %20071 = vst [vmem:[#allocation2 + $0x180] sm:$0xff] %v19671_v21  }
 0x470   :  { %v7884_v62 = vadd.f32 %v22393_v32, %v7688_v30  ;;  %v7569_v0 = vpop.f32.mrf.mxu0 }
 0x471   :  { %v8303_v57 = vrot.slane %v8301_v23, 7  ;;  %v8923_v2 = vrot.slane %v8304_v60, 5  ;;  %v8925_v49 = vrot.slane %v8301_v23, 4  ;;  %v6202_v29 = vpop.f32.mrf.mxu2 }
 0x472   :  { %v7948_v47 = vmax.f32 %v7884_v62, 0.0  ;;  %v6325_v48 = vadd.f32 %v6202_v29, %v21940_v44  ;;  %6926 = vmatmul.bf16.gmra.mxu3 %v19194_v24 }
 0x473   :  { %v8306_v56 = vor.u32 %v8304_v60, %v8303_v57  ;;  %v8924_v40 = vsel %vm21387_vm14, %v8922_v11, %v8923_v2  ;;  %v8926_v55 = vor.u32 %v8925_v49, %v8923_v2  ;;  %v22449_v41 = vpop.f32.mrf.mxu1  ;;  %7608 = vmatmul.bf16.gmra.mxu0 %v19234_v27 }
 0x474   :  { %9216 = vst [vmem:[#allocation2 + $0x2a0] sm:$0xf] %v8924_v40  ;;  %v8012_v10 = vpack.c.bf16 %v7948_v47, %v7948_v47  ;;  %v7007_v42 = vadd.f32 %v6884_v19, %v6325_v48 }
 0x475   :  { %v8307_v35 = vsel %vm20326_vm4, %v8299_v36, %v8306_v56  ;;  %v8927_v45 = vrot.slane %v8926_v55, 4 }
 0x476   :  { %8739 = vst [vmem:[#allocation2 + $0x64] sm:$0xf] %v8307_v35  ;;  %v8309_v44 = vshrl.u32 %v8012_v10, 16  ;;  %v8312_v61 = vshll.u32 %v8012_v10, 16  ;;  %v7689_v51 = vadd.f32 %v7566_v3, %v7007_v42  ;;  %6244 = vmatmul.bf16.gmra.mxu2 %v19154_v43  ;;  %v6887_v9 = vpop.f32.mrf.mxu3  ;;  %v19195_v42 = vld [vmem:[#allocation2 + $0x1f0] sm:$0xff] }
 0x477   :  { %v9218_v6 = vsel %vm21371_vm12, %v8927_v45, %v9217_v34  ;;  %v9221_v35 = vld [vmem:[#allocation2 + $0x2ac] sm:$0xf] }
 0x478   :  { %9219 = vst [vmem:[#allocation2 + $0x2a4] sm:$0xf] %v9218_v6  ;;  %v8311_v31 = vrot.slane %v8309_v44, 7  ;;  %v8928_v58 = vrot.slane %v8309_v44, 4  ;;  %v8929_v1 = vrot.slane %v8312_v61, 5  ;;  %v7885_v33 = vadd.f32 %v22393_v32, %v7689_v51  ;;  %v7571_v21 = vpop.f32.mrf.mxu0 }
 0x479   :  { %v6205_v52 = vpop.f32.mrf.mxu2 }
 0x47a   :  { %v8314_v50 = vor.u32 %v8312_v61, %v8311_v31  ;;  %v7949_v53 = vmax.f32 %v7885_v33, 0.0  ;;  %v6326_v30 = vadd.f32 %v6205_v52, %v21951_v16  ;;  %v8930_v17 = vor.u32 %v8929_v1, %v8928_v58 }
 0x47b   :  { %v22459_v60 = vpop.f32.mrf.mxu1  ;;  %v8315_v48 = vrot.slane %v8311_v31, 4 }
 0x47c   :  { %v8741_v3 = vsel %vm20408_vm7, %v8314_v50, %v8740_v12  ;;  %v8013_v38 = vpack.c.bf16 %v7949_v53, %v7949_v53  ;;  %v19676_v23 = vpack.c.bf16 %v7949_v53, %v7948_v47  ;;  %v7008_v62 = vadd.f32 %v6887_v9, %v6326_v30  ;;  %v19235_v47 = vld [vmem:[#allocation2 + $0x310] sm:$0xff] }
 0x47d   :  { %8742 = vst [vmem:[#allocation2 + $0x68] sm:$0xf] %v8741_v3  ;;  %v19265_v11 = vld [vmem:[#allocation2 + $0x60] sm:$0xff]  ;;  %v8931_v29 = vrot.slane %v8930_v17, 4  ;;  %v8744_v3 = vld [vmem:[#allocation2 + $0x70] sm:$0xf] }
 0x47e   :  { %v8317_v57 = vshrl.u32 %v8013_v38, 16  ;;  %v8320_v2 = vshll.u32 %v8013_v38, 16  ;;  %20072 = vst [vmem:[#allocation2 + $0x188] sm:$0xff] %v19676_v23   ;;  %v7690_v49 = vadd.f32 %v7569_v0, %v7008_v62  ;;  %9816 = vmatmul.bf16.gmra.mxu1 %v19265_v11  ;;  %v6889_v36 = vpop.f32.mrf.mxu3  ;;  %v19155_v0 = vld [vmem:[#allocation2 + $0xd0] sm:$0xff] }
 0x480   :  { %v8319_v19 = vrot.slane %v8317_v57, 7  ;;  %v8932_v27 = vrot.slane %v8320_v2, 5  ;;  %v8934_v16 = vrot.slane %v8317_v57, 4  ;;  %v7886_v43 = vadd.f32 %v22393_v32, %v7690_v49  ;;  %v7574_v10 = vpop.f32.mrf.mxu0 }
 0x481   :  { %v6207_v24 = vpop.f32.mrf.mxu2 }
 0x482   :  { %v8322_v56 = vor.u32 %v8320_v2, %v8319_v19  ;;  %v8933_v40 = vsel %vm21387_vm14, %v8931_v29, %v8932_v27  ;;  %v8935_v55 = vor.u32 %v8934_v16, %v8932_v27  ;;  %v6327_v34 = vadd.f32 %v6207_v24, %v21963_v4  ;;  %6931 = vmatmul.bf16.gmra.mxu3 %v19195_v42 }
 0x483   :  { %9220 = vst [vmem:[#allocation2 + $0x2a8] sm:$0xf] %v8933_v40  ;;  %v7950_v45 = vmax.f32 %v7886_v43, 0.0  ;;  %v22467_v6 = vpop.f32.mrf.mxu1  ;;  %7613 = vmatmul.bf16.gmra.mxu0 %v19235_v47 }
 0x484   :  { %v8323_v44 = vsel %vm20326_vm4, %v8315_v48, %v8322_v56  ;;  %v8936_v61 = vrot.slane %v8935_v55, 4  ;;  %v7009_v51 = vadd.f32 %v6889_v36, %v6327_v34  ;;  %v19236_v34 = vld [vmem:[#allocation2 + $0x318] sm:$0xff] }
 0x485   :  { %8743 = vst [vmem:[#allocation2 + $0x6c] sm:$0xf] %v8323_v44  ;;  %v8014_v31 = vpack.c.bf16 %v7950_v45, %v7950_v45 }
 0x486   :  { %v9222_v58 = vsel %vm21371_vm12, %v8936_v61, %v9221_v35  ;;  %v7691_v4 = vadd.f32 %v7571_v21, %v7009_v51  ;;  %6249 = vmatmul.bf16.gmra.mxu2 %v19155_v0  ;;  %v6892_v30 = vpop.f32.mrf.mxu3  ;;  %v19196_v61 = vld [vmem:[#allocation2 + $0x1f8] sm:$0xff]  ;;  %v9225_v51 = vld [vmem:[#allocation2 + $0x2b4] sm:$0xf] }
 0x487   :  { %9223 = vst [vmem:[#allocation2 + $0x2ac] sm:$0xf] %v9222_v58  ;;  %v8325_v1 = vshrl.u32 %v8014_v31, 16  ;;  %v8328_v33 = vshll.u32 %v8014_v31, 16 }
 0x488   :  { %v7887_v12 = vadd.f32 %v22393_v32, %v7691_v4  ;;  %v7576_v23 = vpop.f32.mrf.mxu0 }
 0x489   :  { %v8327_v52 = vrot.slane %v8325_v1, 7  ;;  %v8937_v9 = vrot.slane %v8325_v1, 4  ;;  %v8938_v50 = vrot.slane %v8328_v33, 5  ;;  %v6210_v53 = vpop.f32.mrf.mxu2 }
 0x48a   :  { %v7951_v17 = vmax.f32 %v7887_v12, 0.0  ;;  %v6328_v38 = vadd.f32 %v6210_v53, %v21977_v14 }
 0x48b   :  { %v8330_v62 = vor.u32 %v8328_v33, %v8327_v52  ;;  %v8939_v11 = vor.u32 %v8938_v50, %v8937_v9  ;;  %v22473_v49 = vpop.f32.mrf.mxu1  ;;  %v8331_v56 = vrot.slane %v8327_v52, 4 }
 0x48c   :  { %v8015_v21 = vpack.c.bf16 %v7951_v17, %v7951_v17  ;;  %v19681_v57 = vpack.c.bf16 %v7951_v17, %v7950_v45  ;;  %v7010_v2 = vadd.f32 %v6892_v30, %v6328_v38  ;;  %v19266_v29 = vld [vmem:[#allocation2 + $0x68] sm:$0xff]  ;;  %v8748_v30 = vld [vmem:[#allocation2 + $0x78] sm:$0xf] }
 0x48d   :  { %v8745_v19 = vsel %vm20408_vm7, %v8330_v62, %v8744_v3  ;;  %v8940_v43 = vrot.slane %v8939_v11, 4 }
 0x48e   :  { %8746 = vst [vmem:[#allocation2 + $0x70] sm:$0xf] %v8745_v19  ;;  %v8333_v27 = vshrl.u32 %v8015_v21, 16  ;;  %v8336_v16 = vshll.u32 %v8015_v21, 16  ;;  %v7692_v48 = vadd.f32 %v7574_v10, %v7010_v2  ;;  %9821 = vmatmul.bf16.gmra.mxu1 %v19266_v29  ;;  %v6894_v55 = vpop.f32.mrf.mxu3  ;;  %v19156_v10 = vld [vmem:[#allocation2 + $0xd8] sm:$0xff] }
 0x48f   :  { %20073 = vst [vmem:[#allocation2 + $0x190] sm:$0xff] %v19681_v57  }
 0x490   :  { %v8335_v14 = vrot.slane %v8333_v27, 7  ;;  %v8941_v24 = vrot.slane %v8336_v16, 5  ;;  %v8943_v36 = vrot.slane %v8333_v27, 4  ;;  %v7888_v47 = vadd.f32 %v22393_v32, %v7692_v48  ;;  %v7579_v44 = vpop.f32.mrf.mxu0 }
 0x491   :  { %v6212_v40 = vpop.f32.mrf.mxu2 }
 0x492   :  { %v8338_v0 = vor.u32 %v8336_v16, %v8335_v14  ;;  %v8942_v42 = vsel %vm21387_vm14, %v8940_v43, %v8941_v24  ;;  %v8944_v35 = vor.u32 %v8943_v36, %v8941_v24  ;;  %v7952_v45 = vmax.f32 %v7888_v47, 0.0  ;;  %6936 = vmatmul.bf16.gmra.mxu3 %v19196_v61 }
 0x493   :  { %9224 = vst [vmem:[#allocation2 + $0x2b0] sm:$0xf] %v8942_v42  ;;  %v6329_v31 = vadd.f32 %v6212_v40, %v21989_v25  ;;  %v22483_v33 = vpop.f32.mrf.mxu1  ;;  %7618 = vmatmul.bf16.gmra.mxu0 %v19236_v34 }
 0x494   :  { %v8339_v58 = vsel %vm20326_vm4, %v8331_v56, %v8338_v0  ;;  %v8945_v4 = vrot.slane %v8944_v35, 4  ;;  %v8016_v1 = vpack.c.bf16 %v7952_v45, %v7952_v45  ;;  %v19237_v35 = vld [vmem:[#allocation2 + $0x320] sm:$0xff] }
 0x495   :  { %8747 = vst [vmem:[#allocation2 + $0x74] sm:$0xf] %v8339_v58  ;;  %v7011_v12 = vadd.f32 %v6894_v55, %v6329_v31  ;;  %v19157_v31 = vld [vmem:[#allocation2 + $0xe0] sm:$0xff] }
 0x496   :  { %v9226_v52 = vsel %vm21371_vm12, %v8945_v4, %v9225_v51  ;;  %v8341_v9 = vshrl.u32 %v8016_v1, 16  ;;  %v8344_v50 = vshll.u32 %v8016_v1, 16  ;;  %6254 = vmatmul.bf16.gmra.mxu2 %v19156_v10  ;;  %v6897_v11 = vpop.f32.mrf.mxu3 }
 0x497   :  { %9227 = vst [vmem:[#allocation2 + $0x2b4] sm:$0xf] %v9226_v52  ;;  %v7693_v53 = vadd.f32 %v7576_v23, %v7011_v12  ;;  %v9229_v12 = vld [vmem:[#allocation2 + $0x2bc] sm:$0xf] }
 0x498   :  { %v8343_v25 = vrot.slane %v8341_v9, 7  ;;  %v8946_v3 = vrot.slane %v8341_v9, 4  ;;  %v8947_v17 = vrot.slane %v8344_v50, 5  ;;  %v7581_v2 = vpop.f32.mrf.mxu0 }
 0x499   :  { %v7889_v38 = vadd.f32 %v22393_v32, %v7693_v53  ;;  %v6215_v62 = vpop.f32.mrf.mxu2 }
 0x49a   :  { %v8346_v21 = vor.u32 %v8344_v50, %v8343_v25  ;;  %v6330_v57 = vadd.f32 %v6215_v62, %v22000_v37  ;;  %v8948_v48 = vor.u32 %v8947_v17, %v8946_v3  ;;  %v19368_v62 = vld [vmem:[%s23873_s3 + $0x98] sm:$0xff] }
 0x49b   :  { %v7953_v29 = vmax.f32 %v7889_v38, 0.0  ;;  %v22491_v16 = vpop.f32.mrf.mxu1  ;;  %v19328_v38 = vld [vmem:[%s23873_s3 + $0x58] sm:$0xff]  ;;  %11114 = vmatpush.bf16.msrb.mxu3 %v19368_v62  ;;  %v9233_v62 = vld [vmem:[#allocation2 + $0x2c4] sm:$0xf] }
 0x49c   :  { %v8749_v19 = vsel %vm20408_vm7, %v8346_v21, %v8748_v30  ;;  %v7012_v27 = vadd.f32 %v6897_v11, %v6330_v57  ;;  %v19267_v23 = vld [vmem:[#allocation2 + $0x70] sm:$0xff]  ;;  %v8949_v56 = vrot.slane %v8948_v48, 4  ;;  %10433 = vmatpush.bf16.msrb.mxu2 %v19328_v38  ;;  %v19198_v38 = vld [vmem:[#allocation2 + $0x208] sm:$0xff] }
 0x49d   :  { %8750 = vst [vmem:[#allocation2 + $0x78] sm:$0xf] %v8749_v19  ;;  %v8017_v43 = vpack.c.bf16 %v7953_v29, %v7953_v29  ;;  %v19686_v14 = vpack.c.bf16 %v7953_v29, %v7952_v45  ;;  %v19197_v45 = vld [vmem:[#allocation2 + $0x200] sm:$0xff] }
 0x49e   :  { %v7694_v24 = vadd.f32 %v7579_v44, %v7012_v27  ;;  %9826 = vmatmul.bf16.gmra.mxu1 %v19267_v23  ;;  %v6899_v42 = vpop.f32.mrf.mxu3  ;;  %v8347_v44 = vrot.slane %v8343_v25, 4 }
 0x49f   :  { %v8349_v36 = vshrl.u32 %v8017_v43, 16  ;;  %v8352_v47 = vshll.u32 %v8017_v43, 16  ;;  %20074 = vst [vmem:[#allocation2 + $0x198] sm:$0xff] %v19686_v14   ;;  %v24363_v14 = vld [vmem:[#allocation5_spill] sm:$0xff] }
 0x4a0   :  { %v7890_v37 = vadd.f32 %v22393_v32, %v7694_v24  ;;  %v7584_v51 = vpop.f32.mrf.mxu0 }
 0x4a1   :  { %v8351_v40 = vrot.slane %v8349_v36, 7  ;;  %v8950_v55 = vrot.slane %v8352_v47, 5  ;;  %v8952_v34 = vrot.slane %v8349_v36, 4  ;;  %v6217_v0 = vpop.f32.mrf.mxu2 }
 0x4a2   :  { %v7954_v10 = vmax.f32 %v7890_v37, 0.0  ;;  %v6331_v61 = vadd.f32 %v6217_v0, %v22012_v46  ;;  %6941 = vmatmul.bf16.gmra.mxu3 %v19197_v45  ;;  %v19408_v0 = vld [vmem:[%s23873_s3 + $0xd8] sm:$0xff] }
 0x4a3   :  { %v8354_v58 = vor.u32 %v8352_v47, %v8351_v40  ;;  %v8951_v4 = vsel %vm21387_vm14, %v8949_v56, %v8950_v55  ;;  %v8953_v1 = vor.u32 %v8952_v34, %v8950_v55  ;;  %v22497_v50 = vpop.f32.mrf.mxu1  ;;  %7623 = vmatmul.bf16.gmra.mxu0 %v19237_v35 }
 0x4a4   :  { %9228 = vst [vmem:[#allocation2 + $0x2b8] sm:$0xf] %v8951_v4  ;;  %v8018_v52 = vpack.c.bf16 %v7954_v10, %v7954_v10  ;;  %v7013_v9 = vadd.f32 %v6899_v42, %v6331_v61  ;;  %v19448_v42 = vld [vmem:[%s23873_s3 + $0x118] sm:$0xff]  ;;  %11795 = vmatpush.bf16.msrb.mxu0 %v19408_v0 }
 0x4a5   :  { %v8355_v53 = vsel %vm20326_vm4, %v8347_v44, %v8354_v58  ;;  %v8954_v30 = vrot.slane %v8953_v1, 4  ;;  %12476 = vmatpush.bf16.msrb.mxu1 %v19448_v42  ;;  %v24365_v42 = vld [vmem:[#allocation4_spill] sm:$0xff] }
 0x4a6   :  { %8751 = vst [vmem:[#allocation2 + $0x7c] sm:$0xf] %v8355_v53  ;;  %v8357_v46 = vshrl.u32 %v8018_v52, 16  ;;  %v8360_v3 = vshll.u32 %v8018_v52, 16  ;;  %v7695_v25 = vadd.f32 %v7581_v2, %v7013_v9  ;;  %6259 = vmatmul.bf16.gmra.mxu2 %v19157_v31  ;;  %v8752_v2 = vld [vmem:[#allocation2 + $0x80] sm:$0xf]  ;;  %v6902_v27 = vpop.f32.mrf.mxu3 }
 0x4a7   :  { %v9230_v17 = vsel %vm21371_vm12, %v8954_v30, %v9229_v12  ;;  %v19238_v9 = vld [vmem:[#allocation2 + $0x328] sm:$0xff] }
 0x4a8   :  { %9231 = vst [vmem:[#allocation2 + $0x2bc] sm:$0xf] %v9230_v17  ;;  %v8359_v11 = vrot.slane %v8357_v46, 7  ;;  %v8955_v21 = vrot.slane %v8357_v46, 4  ;;  %v8956_v57 = vrot.slane %v8360_v3, 5  ;;  %v7891_v29 = vadd.f32 %v22393_v32, %v7695_v25  ;;  %v7586_v43 = vpop.f32.mrf.mxu0  ;;  %v19158_v17 = vld [vmem:[#allocation2 + $0xe8] sm:$0xff] }
 0x4a9   :  { %v6220_v19 = vpop.f32.mrf.mxu2 }
 0x4aa   :  { %v8362_v23 = vor.u32 %v8360_v3, %v8359_v11  ;;  %v7955_v48 = vmax.f32 %v7891_v29, 0.0  ;;  %v6332_v24 = vadd.f32 %v6220_v19, %v24363_v14  ;;  %v8957_v47 = vor.u32 %v8956_v57, %v8955_v21  ;;  %v24364_v3 = vld [vmem:[#allocation45_spill] sm:$0xff] }
 0x4ab   :  { %v22513_v40 = vpop.f32.mrf.mxu1  ;;  %v8363_v4 = vrot.slane %v8359_v11, 4 }
 0x4ac   :  { %v8753_v36 = vsel %vm20408_vm7, %v8362_v23, %v8752_v2  ;;  %v8019_v37 = vpack.c.bf16 %v7955_v48, %v7955_v48  ;;  %v19691_v56 = vpack.c.bf16 %v7955_v48, %v7954_v10  ;;  %v7014_v55 = vadd.f32 %v6902_v27, %v6332_v24 }
 0x4ad   :  { %8754 = vst [vmem:[#allocation2 + $0x80] sm:$0xf] %v8753_v36  ;;  %v19268_v34 = vld [vmem:[#allocation2 + $0x78] sm:$0xff]  ;;  %v8958_v10 = vrot.slane %v8957_v47, 4 }
 0x4ae   :  { %20075 = vst [vmem:[#allocation2 + $0x1a0] sm:$0xff] %v19691_v56   ;;  %v8365_v35 = vshrl.u32 %v8019_v37, 16  ;;  %v8368_v61 = vshll.u32 %v8019_v37, 16  ;;  %v7696_v31 = vadd.f32 %v7584_v51, %v7014_v55  ;;  %9831 = vmatmul.bf16.gmra.mxu1 %v19268_v34  ;;  %v6904_v52 = vpop.f32.mrf.mxu3  ;;  %v8756_v34 = vld [vmem:[#allocation2 + $0x98] sm:$0xf] }
 0x4b0   :  { %v8367_v45 = vrot.slane %v8365_v35, 7  ;;  %v8959_v44 = vrot.slane %v8368_v61, 5  ;;  %v8961_v58 = vrot.slane %v8365_v35, 4  ;;  %v7892_v1 = vadd.f32 %v22393_v32, %v7696_v31  ;;  %v7589_v25 = vpop.f32.mrf.mxu0 }
 0x4b1   :  { %v6222_v12 = vpop.f32.mrf.mxu2 }
 0x4b2   :  { %v8370_v53 = vor.u32 %v8368_v61, %v8367_v45  ;;  %v8960_v30 = vsel %vm21387_vm14, %v8958_v10, %v8959_v44  ;;  %v8962_v46 = vor.u32 %v8961_v58, %v8959_v44  ;;  %v6333_v51 = vadd.f32 %v6222_v12, %v24364_v3  ;;  %6946 = vmatmul.bf16.gmra.mxu3 %v19198_v38 }
 0x4b3   :  { %9232 = vst [vmem:[#allocation2 + $0x2c0] sm:$0xf] %v8960_v30  ;;  %v7956_v21 = vmax.f32 %v7892_v1, 0.0  ;;  %v22527_v2 = vpop.f32.mrf.mxu1  ;;  %7628 = vmatmul.bf16.gmra.mxu0 %v19238_v9 }
 0x4b4   :  { %v8371_v11 = vsel %vm20326_vm4, %v8363_v4, %v8370_v53  ;;  %v8963_v57 = vrot.slane %v8962_v46, 4  ;;  %v7015_v29 = vadd.f32 %v6904_v52, %v6333_v51 }
 0x4b5   :  { %8755 = vst [vmem:[#allocation2 + $0x84] sm:$0xf] %v8371_v11  ;;  %v8020_v19 = vpack.c.bf16 %v7956_v21, %v7956_v21 }
 0x4b6   :  { %v9234_v27 = vsel %vm21371_vm12, %v8963_v57, %v9233_v62  ;;  %v7697_v23 = vadd.f32 %v7586_v43, %v7015_v29  ;;  %6264 = vmatmul.bf16.gmra.mxu2 %v19158_v17  ;;  %v6907_v55 = vpop.f32.mrf.mxu3  ;;  %v19269_v43 = vld [vmem:[#allocation2 + $0x90] sm:$0xff] }
 0x4b7   :  { %9235 = vst [vmem:[#allocation2 + $0x2c4] sm:$0xf] %v9234_v27  ;;  %v8373_v48 = vshrl.u32 %v8020_v19, 16  ;;  %v8376_v14 = vshll.u32 %v8020_v19, 16 }
 0x4b8   :  { %v7893_v24 = vadd.f32 %v22393_v32, %v7697_v23  ;;  %v7591_v61 = vpop.f32.mrf.mxu0  ;;  %v19199_v23 = vld [vmem:[#allocation2 + $0x210] sm:$0xff] }
 0x4b9   :  { %v8375_v36 = vrot.slane %v8373_v48, 7  ;;  %v8964_v47 = vrot.slane %v8373_v48, 4  ;;  %v8965_v37 = vrot.slane %v8376_v14, 5  ;;  %v6225_v56 = vpop.f32.mrf.mxu2  ;;  %v9237_v48 = vld [vmem:[#allocation2 + $0x2dc] sm:$0xf] }
 0x4ba   :  { %v7957_v0 = vmax.f32 %v7893_v24, 0.0  ;;  %v6334_v35 = vadd.f32 %v6225_v56, %v24365_v42 }
 0x4bb   :  { %v8378_v31 = vor.u32 %v8376_v14, %v8375_v36  ;;  %v8966_v10 = vor.u32 %v8965_v37, %v8964_v47  ;;  %v22533_v4 = vpop.f32.mrf.mxu1  ;;  %v8379_v17 = vrot.slane %v8375_v36, 4  ;;  %v24366_v14 = vld [vmem:[#allocation47_spill] sm:$0xff] }
 0x4bc   :  { %v8021_v45 = vpack.c.bf16 %v7957_v0, %v7957_v0  ;;  %v19696_v44 = vpack.c.bf16 %v7957_v0, %v7956_v21  ;;  %v7016_v58 = vadd.f32 %v6907_v55, %v6334_v35  ;;  %v19239_v21 = vld [vmem:[#allocation2 + $0x330] sm:$0xff] }
 0x4bd   :  { %v8757_v1 = vsel %vm20408_vm7, %v8378_v31, %v8756_v34  ;;  %v8967_v53 = vrot.slane %v8966_v10, 4  ;;  %v8760_v10 = vld [vmem:[#allocation2 + $0xa0] sm:$0xf] }
 0x4be   :  { %8758 = vst [vmem:[#allocation2 + $0x98] sm:$0xf] %v8757_v1  ;;  %v8381_v12 = vshrl.u32 %v8021_v45, 16  ;;  %v8384_v52 = vshll.u32 %v8021_v45, 16  ;;  %v7698_v9 = vadd.f32 %v7589_v25, %v7016_v58  ;;  %9836 = vmatmul.bf16.gmra.mxu1 %v19269_v43  ;;  %v6909_v62 = vpop.f32.mrf.mxu3  ;;  %v19159_v25 = vld [vmem:[#allocation2 + $0xf0] sm:$0xff] }
 0x4bf   :  { %20076 = vst [vmem:[#allocation2 + $0x1b8] sm:$0xff] %v19696_v44  }
 0x4c0   :  { %v8383_v30 = vrot.slane %v8381_v12, 7  ;;  %v8968_v46 = vrot.slane %v8384_v52, 5  ;;  %v8970_v3 = vrot.slane %v8381_v12, 4  ;;  %v7894_v51 = vadd.f32 %v22393_v32, %v7698_v9  ;;  %v7594_v27 = vpop.f32.mrf.mxu0 }
 0x4c1   :  { %v6227_v38 = vpop.f32.mrf.mxu2 }
 0x4c2   :  { %v8386_v11 = vor.u32 %v8384_v52, %v8383_v30  ;;  %v8969_v57 = vsel %vm21387_vm14, %v8967_v53, %v8968_v46  ;;  %v8971_v29 = vor.u32 %v8970_v3, %v8968_v46  ;;  %v7958_v19 = vmax.f32 %v7894_v51, 0.0  ;;  %6951 = vmatmul.bf16.gmra.mxu3 %v19199_v23  ;;  %v24367_v52 = vld [vmem:[#allocation7_spill] sm:$0xff] }
 0x4c3   :  { %9236 = vst [vmem:[#allocation2 + $0x2d8] sm:$0xf] %v8969_v57  ;;  %v6335_v24 = vadd.f32 %v6227_v38, %v24366_v14  ;;  %v22543_v56 = vpop.f32.mrf.mxu1  ;;  %7633 = vmatmul.bf16.gmra.mxu0 %v19239_v21 }
 0x4c4   :  { %v8387_v47 = vsel %vm20326_vm4, %v8379_v17, %v8386_v11  ;;  %v8972_v36 = vrot.slane %v8971_v29, 4  ;;  %v8022_v37 = vpack.c.bf16 %v7958_v19, %v7958_v19 }
 0x4c5   :  { %8759 = vst [vmem:[#allocation2 + $0x9c] sm:$0xf] %v8387_v47  ;;  %v7017_v55 = vadd.f32 %v6909_v62, %v6335_v24 }
 0x4c6   :  { %v9238_v34 = vsel %vm21371_vm12, %v8972_v36, %v9237_v48  ;;  %v8389_v0 = vshrl.u32 %v8022_v37, 16  ;;  %v8392_v42 = vshll.u32 %v8022_v37, 16  ;;  %6269 = vmatmul.bf16.gmra.mxu2 %v19159_v25  ;;  %v6912_v1 = vpop.f32.mrf.mxu3  ;;  %v19240_v36 = vld [vmem:[#allocation2 + $0x338] sm:$0xff] }
 0x4c7   :  { %9239 = vst [vmem:[#allocation2 + $0x2dc] sm:$0xf] %v9238_v34  ;;  %v7699_v35 = vadd.f32 %v7591_v61, %v7017_v55  ;;  %v24368_v55 = vld [vmem:[#allocation49_spill] sm:$0xff] }
 0x4c8   :  { %v8391_v31 = vrot.slane %v8389_v0, 7  ;;  %v8973_v43 = vrot.slane %v8389_v0, 4  ;;  %v8974_v45 = vrot.slane %v8392_v42, 5  ;;  %v7596_v53 = vpop.f32.mrf.mxu0 }
 0x4c9   :  { %v7895_v44 = vadd.f32 %v22393_v32, %v7699_v35  ;;  %v6230_v58 = vpop.f32.mrf.mxu2 }
 0x4ca   :  { %v8394_v12 = vor.u32 %v8392_v42, %v8391_v31  ;;  %v6336_v9 = vadd.f32 %v6230_v58, %v24367_v52  ;;  %v8975_v17 = vor.u32 %v8974_v45, %v8973_v43  ;;  %v19160_v42 = vld [vmem:[#allocation2 + $0xf8] sm:$0xff] }
 0x4cb   :  { %v7959_v30 = vmax.f32 %v7895_v44, 0.0  ;;  %v22551_v51 = vpop.f32.mrf.mxu1 }
 0x4cc   :  { %v8761_v46 = vsel %vm20408_vm7, %v8394_v12, %v8760_v10  ;;  %v7018_v3 = vadd.f32 %v6912_v1, %v6336_v9  ;;  %v19270_v61 = vld [vmem:[#allocation2 + $0x98] sm:$0xff]  ;;  %v8976_v25 = vrot.slane %v8975_v17, 4  ;;  %v22566_v17 = vld [vmem:[%s23874_s2] ss:$0 sm:$0xff] }
 0x4cd   :  { %8762 = vst [vmem:[#allocation2 + $0xa0] sm:$0xf] %v8761_v46  ;;  %v8023_v38 = vpack.c.bf16 %v7959_v30, %v7959_v30  ;;  %v19701_v62 = vpack.c.bf16 %v7959_v30, %v7958_v19  ;;  %v19200_v19 = vld [vmem:[#allocation2 + $0x218] sm:$0xff] }
 0x4ce   :  { %v7700_v21 = vadd.f32 %v7594_v27, %v7018_v3  ;;  %9841 = vmatmul.bf16.gmra.mxu1 %v19270_v61  ;;  %v6914_v47 = vpop.f32.mrf.mxu3  ;;  %v8395_v27 = vrot.slane %v8391_v31, 4 }
 0x4cf   :  { %v8397_v11 = vshrl.u32 %v8023_v38, 16  ;;  %v8400_v57 = vshll.u32 %v8023_v38, 16  ;;  %20077 = vst [vmem:[#allocation2 + $0x1c0] sm:$0xff] %v19701_v62   ;;  %v8764_v62 = vld [vmem:[#allocation2 + $0xa8] sm:$0xf] }
 0x4d0   :  { %v7896_v29 = vadd.f32 %v22393_v32, %v7700_v21  ;;  %v7599_v0 = vpop.f32.mrf.mxu0  ;;  %v9241_v32 = vld [vmem:[#allocation2 + $0x2e4] sm:$0xf] }
 0x4d1   :  { %v8399_v23 = vrot.slane %v8397_v11, 7  ;;  %v8977_v48 = vrot.slane %v8400_v57, 5  ;;  %v8979_v14 = vrot.slane %v8397_v11, 4  ;;  %v6232_v24 = vpop.f32.mrf.mxu2 }
 0x4d2   :  { %v7960_v37 = vmax.f32 %v7896_v29, 0.0  ;;  %v6337_v34 = vadd.f32 %v6232_v24, %v24368_v55  ;;  %6956 = vmatmul.bf16.gmra.mxu3 %v19200_v19 }
 0x4d3   :  { %v8402_v35 = vor.u32 %v8400_v57, %v8399_v23  ;;  %v8978_v10 = vsel %vm21387_vm14, %v8976_v25, %v8977_v48  ;;  %v8980_v43 = vor.u32 %v8979_v14, %v8977_v48  ;;  %v22557_v58 = vpop.f32.mrf.mxu1  ;;  %7638 = vmatmul.bf16.gmra.mxu0 %v19240_v36  ;;  %v24369_v25 = vld [vmem:[#allocation6_spill] sm:$0xff] }
 0x4d4   :  { %9240 = vst [vmem:[#allocation2 + $0x2e0] sm:$0xf] %v8978_v10  ;;  %v8024_v45 = vpack.c.bf16 %v7960_v37, %v7960_v37  ;;  %v7019_v44 = vadd.f32 %v6914_v47, %v6337_v34 }
 0x4d5   :  { %v8403_v1 = vsel %vm20326_vm4, %v8395_v27, %v8402_v35  ;;  %v8981_v12 = vrot.slane %v8980_v43, 4 }
 0x4d6   :  { %8763 = vst [vmem:[#allocation2 + $0xa4] sm:$0xf] %v8403_v1  ;;  %v8405_v52 = vshrl.u32 %v8024_v45, 16  ;;  %v8408_v9 = vshll.u32 %v8024_v45, 16  ;;  %v7701_v31 = vadd.f32 %v7596_v53, %v7019_v44  ;;  %6274 = vmatmul.bf16.gmra.mxu2 %v19160_v42  ;;  %v6917_v11 = vpop.f32.mrf.mxu3 }
 0x4d7   :  { %v9242_v30 = vsel %vm21371_vm12, %v8981_v12, %v9241_v32 }
 0x4d8   :  { %9243 = vst [vmem:[#allocation2 + $0x2e4] sm:$0xf] %v9242_v30  ;;  %v8407_v46 = vrot.slane %v8405_v52, 7  ;;  %v8982_v3 = vrot.slane %v8405_v52, 4  ;;  %v8983_v61 = vrot.slane %v8408_v9, 5  ;;  %v7897_v38 = vadd.f32 %v22566_v17, %v7701_v31  ;;  %v7601_v29 = vpop.f32.mrf.mxu0  ;;  %v24370_v30 = vld [vmem:[#allocation9_spill] sm:$0xff] }
 0x4d9   :  { %v6235_v21 = vpop.f32.mrf.mxu2 }
 0x4da   :  { %v8410_v53 = vor.u32 %v8408_v9, %v8407_v46  ;;  %v7961_v57 = vmax.f32 %v7897_v38, 0.0  ;;  %v6338_v23 = vadd.f32 %v6235_v21, %v24369_v25  ;;  %v8984_v14 = vor.u32 %v8983_v61, %v8982_v3  ;;  %v19201_v38 = vld [vmem:[#allocation2 + $0x220] sm:$0xff] }
 0x4db   :  { %v22572_v36 = vpop.f32.mrf.mxu1  ;;  %v8411_v45 = vrot.slane %v8407_v46, 4 }
 0x4dc   :  { %v8765_v48 = vsel %vm20408_vm7, %v8410_v53, %v8764_v62  ;;  %v8025_v24 = vpack.c.bf16 %v7961_v57, %v7961_v57  ;;  %v19706_v47 = vpack.c.bf16 %v7961_v57, %v7960_v37  ;;  %v7020_v55 = vadd.f32 %v6917_v11, %v6338_v23  ;;  %v19241_v37 = vld [vmem:[#allocation2 + $0x340] sm:$0xff]  ;;  %v9245_v62 = vld [vmem:[#allocation2 + $0x2ec] sm:$0xf] }
 0x4dd   :  { %8766 = vst [vmem:[#allocation2 + $0xa8] sm:$0xf] %v8765_v48  ;;  %v19271_v34 = vld [vmem:[#allocation2 + $0xa0] sm:$0xff]  ;;  %v8985_v35 = vrot.slane %v8984_v14, 4 }
 0x4de   :  { %v8413_v42 = vshrl.u32 %v8025_v24, 16  ;;  %v8416_v19 = vshll.u32 %v8025_v24, 16  ;;  %20078 = vst [vmem:[#allocation2 + $0x1c8] sm:$0xff] %v19706_v47   ;;  %v7702_v27 = vadd.f32 %v7599_v0, %v7020_v55  ;;  %9846 = vmatmul.bf16.gmra.mxu1 %v19271_v34  ;;  %v6919_v12 = vpop.f32.mrf.mxu3  ;;  %v19161_v0 = vld [vmem:[#allocation2 + $0x100] sm:$0xff]  ;;  %v19327_v55 = vld [vmem:[%s23873_s3 + $0x50] sm:$0xff] }
 0x4df   :  { %v19367_v34 = vld [vmem:[%s23873_s3 + $0x90] sm:$0xff]  ;;  %10434 = vmatpush.bf16.msrb.mxu2 %v19327_v55 }
 0x4e0   :  { %v8415_v10 = vrot.slane %v8413_v42, 7  ;;  %v8986_v43 = vrot.slane %v8416_v19, 5  ;;  %v8988_v32 = vrot.slane %v8413_v42, 4  ;;  %v7898_v44 = vadd.f32 %v22566_v17, %v7702_v27  ;;  %v7604_v61 = vpop.f32.mrf.mxu0  ;;  %11115 = vmatpush.bf16.msrb.mxu3 %v19367_v34  ;;  %v24373_v34 = vld [vmem:[#allocation8_spill] sm:$0xff] }
 0x4e1   :  { %v6237_v1 = vpop.f32.mrf.mxu2 }
 0x4e2   :  { %v8418_v52 = vor.u32 %v8416_v19, %v8415_v10  ;;  %v8987_v9 = vsel %vm21387_vm14, %v8985_v35, %v8986_v43  ;;  %v8989_v31 = vor.u32 %v8988_v32, %v8986_v43  ;;  %v6339_v3 = vadd.f32 %v6237_v1, %v24370_v30  ;;  %6961 = vmatmul.bf16.gmra.mxu3 %v19201_v38  ;;  %v8768_v10 = vld [vmem:[#allocation2 + $0xb0] sm:$0xf]  ;;  %v24371_v32 = vld [vmem:[#allocation11_spill] sm:$0xff] }
 0x4e3   :  { %9244 = vst [vmem:[#allocation2 + $0x2e8] sm:$0xf] %v8987_v9  ;;  %v7962_v21 = vmax.f32 %v7898_v44, 0.0  ;;  %v22580_v57 = vpop.f32.mrf.mxu1  ;;  %7643 = vmatmul.bf16.gmra.mxu0 %v19241_v37 }
 0x4e4   :  { %v8419_v46 = vsel %vm20326_vm4, %v8411_v45, %v8418_v52  ;;  %v8990_v11 = vrot.slane %v8989_v31, 4  ;;  %v7021_v53 = vadd.f32 %v6919_v12, %v6339_v3  ;;  %v158_v3 = vld [vmem:[#allocation2 + $0x118] sm:$0x1] }
 0x4e5   :  { %8767 = vst [vmem:[#allocation2 + $0xac] sm:$0xf] %v8419_v46  ;;  %v8026_v25 = vpack.c.bf16 %v7962_v21, %v7962_v21  ;;  %v19447_v46 = vld [vmem:[%s23873_s3 + $0x110] sm:$0xff] }
 0x4e6   :  { %v9246_v23 = vsel %vm21371_vm12, %v8990_v11, %v9245_v62  ;;  %v7703_v48 = vadd.f32 %v7601_v29, %v7021_v53  ;;  %6279 = vmatmul.bf16.gmra.mxu2 %v19161_v0  ;;  %v6922_v29 = vpop.f32.mrf.mxu3  ;;  %v269_v0 = vld [vmem:[#allocation2 + $0x35c] sm:$0x8]  ;;  %v19407_v62 = vld [vmem:[%s23873_s3 + $0xd0] sm:$0xff]  ;;  %12477 = vmatpush.bf16.msrb.mxu1 %v19447_v46 }
 0x4e7   :  { %9247 = vst [vmem:[#allocation2 + $0x2ec] sm:$0xf] %v9246_v23  ;;  %v8421_v14 = vshrl.u32 %v8026_v25, 16  ;;  %v8424_v24 = vshll.u32 %v8026_v25, 16  ;;  %v270_v23 = vsel %vm21344_vm10, 0, %v269_v0  ;;  %11796 = vmatpush.bf16.msrb.mxu0 %v19407_v62 }
 0x4e8   :  { %v7899_v47 = vadd.f32 %v22566_v17, %v7703_v48  ;;  %v7606_v44 = vpop.f32.mrf.mxu0  ;;  %271 = vst [vmem:[#allocation2 + $0x35c] sm:$0x8] %v270_v23 }
 0x4e9   :  { %v8423_v42 = vrot.slane %v8421_v14, 7  ;;  %v8991_v19 = vrot.slane %v8421_v14, 4  ;;  %v8992_v27 = vrot.slane %v8424_v24, 5  ;;  %v6240_v35 = vpop.f32.mrf.mxu2 }
 0x4ea   :  { %v7963_v43 = vmax.f32 %v7899_v47, 0.0  ;;  %v6340_v45 = vadd.f32 %v6240_v35, %v24371_v32 }
 0x4eb   :  { %v8426_v1 = vor.u32 %v8424_v24, %v8423_v42  ;;  %v8993_v12 = vor.u32 %v8992_v27, %v8991_v19  ;;  %v22592_v31 = vpop.f32.mrf.mxu1  ;;  %v5659_v19 = vadd.f32 %v24373_v34, %v24372_v5  ;;  %v8427_v27 = vrot.slane %v8423_v42, 4 }
 0x4ec   :  { %v8027_v37 = vpack.c.bf16 %v7963_v43, %v7963_v43  ;;  %v19711_v52 = vpack.c.bf16 %v7963_v43, %v7962_v21  ;;  %v7022_v9 = vadd.f32 %v6922_v29, %v6340_v45  ;;  %v19272_v30 = vld [vmem:[#allocation2 + $0xa8] sm:$0xff]  ;;  %v159_v21 = vsel %vm20226_vm2, 0, %v158_v3 }
 0x4ed   :  { %v8769_v38 = vsel %vm20408_vm7, %v8426_v1, %v8768_v10  ;;  %v8994_v48 = vrot.slane %v8993_v12, 4  ;;  %160 = vst [vmem:[#allocation2 + $0x118] sm:$0x1] %v159_v21  ;;  %v19242_v29 = vld [vmem:[#allocation2 + $0x348] sm:$0xff] }
 0x4ee   :  { %8770 = vst [vmem:[#allocation2 + $0xb0] sm:$0xf] %v8769_v38  ;;  %v8429_v11 = vshrl.u32 %v8027_v37, 16  ;;  %v8432_v53 = vshll.u32 %v8027_v37, 16  ;;  %v7704_v25 = vadd.f32 %v7604_v61, %v7022_v9  ;;  %9851 = vmatmul.bf16.gmra.mxu1 %v19272_v30  ;;  %v6924_v61 = vpop.f32.mrf.mxu3  ;;  %v19162_v1 = vld [vmem:[#allocation2 + $0x108] sm:$0xff] }
 0x4ef   :  { %20079 = vst [vmem:[#allocation2 + $0x1d0] sm:$0xff] %v19711_v52   ;;  %v19202_v12 = vld [vmem:[#allocation2 + $0x228] sm:$0xff]  ;;  %v9249_v37 = vld [vmem:[#allocation2 + $0x2f4] sm:$0xf] }
 0x4f0   :  { %v8431_v14 = vrot.slane %v8429_v11, 7  ;;  %v8995_v24 = vrot.slane %v8432_v53, 5  ;;  %v8997_v47 = vrot.slane %v8429_v11, 4  ;;  %v7900_v55 = vadd.f32 %v22566_v17, %v7704_v25  ;;  %v7609_v45 = vpop.f32.mrf.mxu0 }
 0x4f1   :  { %v6242_v35 = vpop.f32.mrf.mxu2 }
 0x4f2   :  { %v8434_v63 = vor.u32 %v8432_v53, %v8431_v14  ;;  %v8996_v10 = vsel %vm21387_vm14, %v8994_v48, %v8995_v24  ;;  %v8998_v43 = vor.u32 %v8997_v47, %v8995_v24  ;;  %v7964_v32 = vmax.f32 %v7900_v55, 0.0  ;;  %6966 = vmatmul.bf16.gmra.mxu3 %v19202_v12  ;;  %v8772_v53 = vld [vmem:[#allocation2 + $0xb8] sm:$0xf]  ;;  %v24374_v55 = vld [vmem:[#allocation12_spill] sm:$0xff]  ;;  %v19366_v12 = vld [vmem:[%s23873_s3 + $0x88] sm:$0xff] }
 0x4f3   :  { %9248 = vst [vmem:[#allocation2 + $0x2f0] sm:$0xf] %v8996_v10  ;;  %v6341_v52 = vadd.f32 %v6242_v35, %v5659_v19  ;;  %v22613_v3 = vpop.f32.mrf.mxu1  ;;  %7648 = vmatmul.bf16.gmra.mxu0 %v19242_v29  ;;  %11116 = vmatpush.bf16.msrb.mxu3 %v19366_v12 }
 0x4f4   :  { %v8435_v9 = vsel %vm20326_vm4, %v8427_v27, %v8434_v63  ;;  %v8999_v42 = vrot.slane %v8998_v43, 4  ;;  %v8028_v30 = vpack.c.bf16 %v7964_v32, %v7964_v32 }
 0x4f5   :  { %8771 = vst [vmem:[#allocation2 + $0xb4] sm:$0xf] %v8435_v9  ;;  %v7023_v0 = vadd.f32 %v6924_v61, %v6341_v52 }
 0x4f6   :  { %v9250_v38 = vsel %vm21371_vm12, %v8999_v42, %v9249_v37  ;;  %v8437_v62 = vshrl.u32 %v8028_v30, 16  ;;  %v8440_v46 = vshll.u32 %v8028_v30, 16  ;;  %6284 = vmatmul.bf16.gmra.mxu2 %v19162_v1  ;;  %v6927_v24 = vpop.f32.mrf.mxu3  ;;  %v19326_v1 = vld [vmem:[%s23873_s3 + $0x48] sm:$0xff]  ;;  %v24375_v42 = vld [vmem:[#allocation15_spill] sm:$0xff] }
 0x4f7   :  { %9251 = vst [vmem:[#allocation2 + $0x2f4] sm:$0xf] %v9250_v38  ;;  %v7705_v21 = vadd.f32 %v7606_v44, %v7023_v0  ;;  %v19406_v37 = vld [vmem:[%s23873_s3 + $0xc8] sm:$0xff]  ;;  %10435 = vmatpush.bf16.msrb.mxu2 %v19326_v1 }
 0x4f8   :  { %v8439_v11 = vrot.slane %v8437_v62, 7  ;;  %v9000_v25 = vrot.slane %v8437_v62, 4  ;;  %v9001_v23 = vrot.slane %v8440_v46, 5  ;;  %v7611_v34 = vpop.f32.mrf.mxu0  ;;  %v24376_v30 = vld [vmem:[#allocation13_spill] sm:$0xff]  ;;  %11797 = vmatpush.bf16.msrb.mxu0 %v19406_v37 }
 0x4f9   :  { %v7901_v48 = vadd.f32 %v22566_v17, %v7705_v21  ;;  %v6245_v14 = vpop.f32.mrf.mxu2 }
 0x4fa   :  { %v8442_v47 = vor.u32 %v8440_v46, %v8439_v11  ;;  %v6342_v5 = vadd.f32 %v6245_v14, %v24374_v55  ;;  %v9002_v29 = vor.u32 %v9001_v23, %v9000_v25  ;;  %v19163_v25 = vld [vmem:[#allocation2 + $0x110] sm:$0xff]  ;;  %v19325_v55 = vld [vmem:[%s23873_s3 + $0x40] sm:$0xff] }
 0x4fb   :  { %v7965_v19 = vmax.f32 %v7901_v48, 0.0  ;;  %v22621_v61 = vpop.f32.mrf.mxu1  ;;  %v19243_v23 = vld [vmem:[#allocation2 + $0x350] sm:$0xff]  ;;  %10436 = vmatpush.bf16.msrb.mxu2 %v19325_v55 }
 0x4fc   :  { %v8773_v27 = vsel %vm20408_vm7, %v8442_v47, %v8772_v53  ;;  %v7024_v35 = vadd.f32 %v6927_v24, %v6342_v5  ;;  %v19273_v44 = vld [vmem:[#allocation2 + $0xb0] sm:$0xff]  ;;  %v9003_v0 = vrot.slane %v9002_v29, 4  ;;  %v19365_v5 = vld [vmem:[%s23873_s3 + $0x80] sm:$0xff] }
 0x4fd   :  { %8774 = vst [vmem:[#allocation2 + $0xb8] sm:$0xf] %v8773_v27  ;;  %v8029_v63 = vpack.c.bf16 %v7965_v19, %v7965_v19  ;;  %v19716_v10 = vpack.c.bf16 %v7965_v19, %v7964_v32  ;;  %v5661_v32 = vadd.f32 %v24376_v30, %v24375_v42  ;;  %v19203_v47 = vld [vmem:[#allocation2 + $0x230] sm:$0xff]  ;;  %v8443_v19 = vrot.slane %v8439_v11, 4  ;;  %v19405_v29 = vld [vmem:[%s23873_s3 + $0xc0] sm:$0xff]  ;;  %11117 = vmatpush.bf16.msrb.mxu3 %v19365_v5 }
 0x4fe   :  { %v7706_v43 = vadd.f32 %v7609_v45, %v7024_v35  ;;  %9856 = vmatmul.bf16.gmra.mxu1 %v19273_v44  ;;  %v6929_v53 = vpop.f32.mrf.mxu3  ;;  %11798 = vmatpush.bf16.msrb.mxu0 %v19405_v29 }
 0x4ff   :  { %v8445_v52 = vshrl.u32 %v8029_v63, 16  ;;  %v8448_v9 = vshll.u32 %v8029_v63, 16  ;;  %20080 = vst [vmem:[#allocation2 + $0x1d8] sm:$0xff] %v19716_v10   ;;  %v9253_v63 = vld [vmem:[#allocation2 + $0x2fc] sm:$0xf] }
 0x500   :  { %v7902_v45 = vadd.f32 %v22566_v17, %v7706_v43  ;;  %v7614_v24 = vpop.f32.mrf.mxu0 }
 0x501   :  { %v8447_v38 = vrot.slane %v8445_v52, 7  ;;  %v9004_v62 = vrot.slane %v8448_v9, 5  ;;  %v9006_v46 = vrot.slane %v8445_v52, 4  ;;  %v6247_v21 = vpop.f32.mrf.mxu2 }
 0x502   :  { %v7966_v48 = vmax.f32 %v7902_v45, 0.0  ;;  %v6343_v14 = vadd.f32 %v6247_v21, %v5661_v32  ;;  %6971 = vmatmul.bf16.gmra.mxu3 %v19203_v47 }
 0x503   :  { %v8450_v27 = vor.u32 %v8448_v9, %v8447_v38  ;;  %v9005_v35 = vsel %vm21387_vm14, %v9003_v0, %v9004_v62  ;;  %v9007_v44 = vor.u32 %v9006_v46, %v9004_v62  ;;  %v22646_v1 = vpop.f32.mrf.mxu1  ;;  %7653 = vmatmul.bf16.gmra.mxu0 %v19243_v23  ;;  %v8776_v38 = vld [vmem:[#allocation2 + $0xc0] sm:$0xf] }
 0x504   :  { %9252 = vst [vmem:[#allocation2 + $0x2f8] sm:$0xf] %v9005_v35  ;;  %v8030_v10 = vpack.c.bf16 %v7966_v48, %v7966_v48  ;;  %v7025_v43 = vadd.f32 %v6929_v53, %v6343_v14  ;;  %v24377_v14 = vld [vmem:[#allocation17_spill] sm:$0xff] }
 0x505   :  { %v8451_v11 = vsel %vm20326_vm4, %v8443_v19, %v8450_v27  ;;  %v9008_v12 = vrot.slane %v9007_v44, 4 }
 0x506   :  { %8775 = vst [vmem:[#allocation2 + $0xbc] sm:$0xf] %v8451_v11  ;;  %v8453_v37 = vshrl.u32 %v8030_v10, 16  ;;  %v8456_v52 = vshll.u32 %v8030_v10, 16  ;;  %v7707_v9 = vadd.f32 %v7611_v34, %v7025_v43  ;;  %6289 = vmatmul.bf16.gmra.mxu2 %v19163_v25  ;;  %v6932_v46 = vpop.f32.mrf.mxu3  ;;  %v24379_v10 = vld [vmem:[#allocation14_spill] sm:$0xff] }
 0x507   :  { %v9254_v42 = vsel %vm21371_vm12, %v9008_v12, %v9253_v63  ;;  %v24378_v63 = vld [vmem:[#allocation16_spill] sm:$0xff] }
 0x508   :  { %9255 = vst [vmem:[#allocation2 + $0x2fc] sm:$0xf] %v9254_v42  ;;  %v8455_v30 = vrot.slane %v8453_v37, 7  ;;  %v9009_v32 = vrot.slane %v8453_v37, 4  ;;  %v9010_v45 = vrot.slane %v8456_v52, 5  ;;  %v7903_v0 = vadd.f32 %v22566_v17, %v7707_v9  ;;  %v7616_v23 = vpop.f32.mrf.mxu0 }
 0x509   :  { %v6250_v62 = vpop.f32.mrf.mxu2  ;;  %v5663_v43 = vadd.f32 %v24379_v10, %v24378_v63 }
 0x50a   :  { %v8458_v21 = vor.u32 %v8456_v52, %v8455_v30  ;;  %v7967_v53 = vmax.f32 %v7903_v0, 0.0  ;;  %v6344_v34 = vadd.f32 %v6250_v62, %v24377_v14  ;;  %v9011_v47 = vor.u32 %v9010_v45, %v9009_v32  ;;  %v19244_v0 = vld [vmem:[#allocation2 + $0x358] sm:$0xff] }
 0x50b   :  { %v22656_v19 = vpop.f32.mrf.mxu1  ;;  %v8459_v42 = vrot.slane %v8455_v30, 4  ;;  %v19164_v14 = vld [vmem:[#allocation2 + $0x118] sm:$0xff] }
 0x50c   :  { %v8777_v25 = vsel %vm20408_vm7, %v8458_v21, %v8776_v38  ;;  %v8031_v55 = vpack.c.bf16 %v7967_v53, %v7967_v53  ;;  %v19721_v5 = vpack.c.bf16 %v7967_v53, %v7966_v48  ;;  %v7026_v27 = vadd.f32 %v6932_v46, %v6344_v34  ;;  %v9257_v34 = vld [vmem:[#allocation2 + $0x304] sm:$0xf] }
 0x50d   :  { %8778 = vst [vmem:[#allocation2 + $0xc0] sm:$0xf] %v8777_v25  ;;  %v19274_v35 = vld [vmem:[#allocation2 + $0xb8] sm:$0xff]  ;;  %v9012_v12 = vrot.slane %v9011_v47, 4 }
 0x50e   :  { %v8461_v44 = vshrl.u32 %v8031_v55, 16  ;;  %v8464_v29 = vshll.u32 %v8031_v55, 16  ;;  %20081 = vst [vmem:[#allocation2 + $0x1e0] sm:$0xff] %v19721_v5   ;;  %v7708_v11 = vadd.f32 %v7614_v24, %v7026_v27  ;;  %9861 = vmatmul.bf16.gmra.mxu1 %v19274_v35  ;;  %v6934_v45 = vpop.f32.mrf.mxu3  ;;  %v19204_v24 = vld [vmem:[#allocation2 + $0x238] sm:$0xff] }
 0x510   :  { %v8463_v37 = vrot.slane %v8461_v44, 7  ;;  %v9013_v52 = vrot.slane %v8464_v29, 5  ;;  %v9015_v9 = vrot.slane %v8461_v44, 4  ;;  %v7904_v48 = vadd.f32 %v22566_v17, %v7708_v11  ;;  %v7619_v53 = vpop.f32.mrf.mxu0 }
 0x511   :  { %v6252_v32 = vpop.f32.mrf.mxu2 }
 0x512   :  { %v8466_v38 = vor.u32 %v8464_v29, %v8463_v37  ;;  %v9014_v62 = vsel %vm21387_vm14, %v9012_v12, %v9013_v52  ;;  %v9016_v46 = vor.u32 %v9015_v9, %v9013_v52  ;;  %v6345_v21 = vadd.f32 %v6252_v32, %v5663_v43  ;;  %6976 = vmatmul.bf16.gmra.mxu3 %v19204_v24  ;;  %v8780_v9 = vld [vmem:[#allocation2 + $0xc8] sm:$0xf] }
 0x513   :  { %9256 = vst [vmem:[#allocation2 + $0x300] sm:$0xf] %v9014_v62  ;;  %v7968_v25 = vmax.f32 %v7904_v48, 0.0  ;;  %v22665_v5 = vpop.f32.mrf.mxu1  ;;  %7658 = vmatmul.bf16.gmra.mxu0 %v19244_v0  ;;  %v24380_v48 = vld [vmem:[#allocation18_spill] sm:$0xff] }
 0x514   :  { %v8467_v30 = vsel %vm20326_vm4, %v8459_v42, %v8466_v38  ;;  %v9017_v47 = vrot.slane %v9016_v46, 4  ;;  %v7027_v55 = vadd.f32 %v6934_v45, %v6345_v21 }
 0x515   :  { %8779 = vst [vmem:[#allocation2 + $0xc4] sm:$0xf] %v8467_v30  ;;  %v8032_v27 = vpack.c.bf16 %v7968_v25, %v7968_v25 }
 0x516   :  { %v9258_v35 = vsel %vm21371_vm12, %v9017_v47, %v9257_v34  ;;  %v7709_v44 = vadd.f32 %v7616_v23, %v7027_v55  ;;  %6294 = vmatmul.bf16.gmra.mxu2 %v19164_v14  ;;  %v6937_v52 = vpop.f32.mrf.mxu3 }
 0x517   :  { %9259 = vst [vmem:[#allocation2 + $0x304] sm:$0xf] %v9258_v35  ;;  %v8469_v29 = vshrl.u32 %v8032_v27, 16  ;;  %v8472_v63 = vshll.u32 %v8032_v27, 16 }
 0x518   :  { %v7905_v10 = vadd.f32 %v22566_v17, %v7709_v44  ;;  %v7621_v45 = vpop.f32.mrf.mxu0 }
 0x519   :  { %v8471_v43 = vrot.slane %v8469_v29, 7  ;;  %v9018_v11 = vrot.slane %v8469_v29, 4  ;;  %v9019_v12 = vrot.slane %v8472_v63, 5  ;;  %v6255_v37 = vpop.f32.mrf.mxu2 }
 0x51a   :  { %v7969_v42 = vmax.f32 %v7905_v10, 0.0  ;;  %v6346_v32 = vadd.f32 %v6255_v37, %v24380_v48 }
 0x51b   :  { %v8474_v0 = vor.u32 %v8472_v63, %v8471_v43  ;;  %v9020_v38 = vor.u32 %v9019_v12, %v9018_v11  ;;  %v22671_v21 = vpop.f32.mrf.mxu1  ;;  %v24382_v63 = vld [vmem:[#allocation19_spill] sm:$0xff]  ;;  %v8475_v11 = vrot.slane %v8471_v43, 4 }
 0x51c   :  { %v8033_v23 = vpack.c.bf16 %v7969_v42, %v7969_v42  ;;  %v19726_v62 = vpack.c.bf16 %v7969_v42, %v7968_v25  ;;  %v7028_v46 = vadd.f32 %v6937_v52, %v6346_v32  ;;  %v19275_v14 = vld [vmem:[#allocation2 + $0xc0] sm:$0xff]  ;;  %v24381_v25 = vld [vmem:[#allocation21_spill] sm:$0xff] }
 0x51d   :  { %v8781_v24 = vsel %vm20408_vm7, %v8474_v0, %v8780_v9  ;;  %v9021_v55 = vrot.slane %v9020_v38, 4  ;;  %v5665_v10 = vadd.f32 %v24382_v63, %v24381_v25  ;;  %v19293_v32 = vld [vmem:[#allocation2 + $0x120] sm:$0xff]  ;;  %v9261_v38 = vld [vmem:[#allocation2 + $0x30c] sm:$0xf] }
 0x51e   :  { %8782 = vst [vmem:[#allocation2 + $0xc8] sm:$0xf] %v8781_v24  ;;  %v8477_v34 = vshrl.u32 %v8033_v23, 16  ;;  %v8480_v30 = vshll.u32 %v8033_v23, 16  ;;  %v7710_v47 = vadd.f32 %v7619_v53, %v7028_v46  ;;  %9866 = vmatmul.bf16.gmra.mxu1 %v19275_v14  ;;  %v6939_v37 = vpop.f32.mrf.mxu3  ;;  %v19333_v0 = vld [vmem:[#allocation2 + $0x240] sm:$0xff] }
 0x51f   :  { %20082 = vst [vmem:[#allocation2 + $0x1e8] sm:$0xff] %v19726_v62   ;;  %v19373_v62 = vld [vmem:[#allocation2 + $0x8] sm:$0xff] }
 0x520   :  { %v8479_v27 = vrot.slane %v8477_v34, 7  ;;  %v9022_v35 = vrot.slane %v8480_v30, 5  ;;  %v9024_v44 = vrot.slane %v8477_v34, 4  ;;  %v7906_v29 = vadd.f32 %v22566_v17, %v7710_v47  ;;  %v7624_v48 = vpop.f32.mrf.mxu0 }
 0x521   :  { %v6257_v12 = vpop.f32.mrf.mxu2 }
 0x522   :  { %v8482_v52 = vor.u32 %v8480_v30, %v8479_v27  ;;  %v9023_v9 = vsel %vm21387_vm14, %v9021_v55, %v9022_v35  ;;  %v9025_v42 = vor.u32 %v9024_v44, %v9022_v35  ;;  %v7970_v53 = vmax.f32 %v7906_v29, 0.0  ;;  %11118 = vmatmul.bf16.vlgmr.msrb.gmra.mxu3 %v19333_v0  ;;  %v8784_v44 = vld [vmem:[#allocation2 + $0xd0] sm:$0xf] }
 0x523   :  { %9260 = vst [vmem:[#allocation2 + $0x308] sm:$0xf] %v9023_v9  ;;  %v6347_v23 = vadd.f32 %v6257_v12, %v5665_v10  ;;  %v22682_v24 = vpop.f32.mrf.mxu1  ;;  %11799 = vmatmul.bf16.vlgmr.msrb.gmra.mxu0 %v19373_v62 }
 0x524   :  { %v8483_v46 = vsel %vm20326_vm4, %v8475_v11, %v8482_v52  ;;  %v9026_v14 = vrot.slane %v9025_v42, 4  ;;  %v8034_v43 = vpack.c.bf16 %v7970_v53, %v7970_v53 }
 0x525   :  { %8783 = vst [vmem:[#allocation2 + $0xcc] sm:$0xf] %v8483_v46  ;;  %v7029_v34 = vadd.f32 %v6939_v37, %v6347_v23  ;;  %v24383_v37 = vld [vmem:[#allocation23_spill] sm:$0xff] }
 0x526   :  { %v9262_v30 = vsel %vm21371_vm12, %v9026_v14, %v9261_v38  ;;  %v8485_v47 = vshrl.u32 %v8034_v43, 16  ;;  %v8488_v55 = vshll.u32 %v8034_v43, 16  ;;  %10437 = vmatmul.bf16.vlgmr.msrb.gmra.mxu2 %v19293_v32  ;;  %v6942_v11 = vpop.f32.mrf.mxu3  ;;  %v19446_v43 = vld [vmem:[%s23873_s3 + $0x108] sm:$0xff] }
 0x527   :  { %9263 = vst [vmem:[#allocation2 + $0x30c] sm:$0xf] %v9262_v30  ;;  %v7711_v27 = vadd.f32 %v7621_v45, %v7029_v34  ;;  %12478 = vmatpush.bf16.msrb.mxu1 %v19446_v43  ;;  %v19294_v43 = vld [vmem:[#allocation2 + $0x128] sm:$0xff] }
 0x528   :  { %v8487_v35 = vrot.slane %v8485_v47, 7  ;;  %v9027_v29 = vrot.slane %v8485_v47, 4  ;;  %v9028_v25 = vrot.slane %v8488_v55, 5  ;;  %v7626_v9 = vpop.f32.mrf.mxu0  ;;  %v24384_v47 = vld [vmem:[#allocation66_spill] sm:$0xff] }
 0x529   :  { %v7907_v63 = vadd.f32 %v22566_v17, %v7711_v27  ;;  %v6260_v10 = vpop.f32.mrf.mxu2 }
 0x52a   :  { %v8490_v12 = vor.u32 %v8488_v55, %v8487_v35  ;;  %v6348_v52 = vadd.f32 %v6260_v10, %v24383_v37  ;;  %v9029_v23 = vor.u32 %v9028_v25, %v9027_v29  ;;  %v24385_v55 = vld [vmem:[#allocation20_spill] sm:$0xff] }
 0x52b   :  { %v7971_v42 = vmax.f32 %v7907_v63, 0.0  ;;  %v22690_v0 = vpop.f32.mrf.mxu1  ;;  %v5667_v27 = vadd.f32 %v24385_v55, %v24384_v47 }
 0x52c   :  { %v8785_v38 = vsel %vm20408_vm7, %v8490_v12, %v8784_v44  ;;  %v7030_v32 = vadd.f32 %v6942_v11, %v6348_v52  ;;  %v19276_v45 = vld [vmem:[#allocation2 + $0xc8] sm:$0xff]  ;;  %v9030_v63 = vrot.slane %v9029_v23, 4  ;;  %v8491_v52 = vrot.slane %v8487_v35, 4 }
 0x52d   :  { %8786 = vst [vmem:[#allocation2 + $0xd0] sm:$0xf] %v8785_v38  ;;  %v8035_v62 = vpack.c.bf16 %v7971_v42, %v7971_v42  ;;  %v19731_v46 = vpack.c.bf16 %v7971_v42, %v7970_v53 }
 0x52e   :  { %v7712_v14 = vadd.f32 %v7624_v48, %v7030_v32  ;;  %9871 = vmatmul.bf16.gmra.mxu1 %v19276_v45  ;;  %v6944_v48 = vpop.f32.mrf.mxu3  ;;  %v19374_v45 = vld [vmem:[#allocation2 + $0x10] sm:$0xff] }
 0x52f   :  { %v8493_v34 = vshrl.u32 %v8035_v62, 16  ;;  %v8496_v30 = vshll.u32 %v8035_v62, 16  ;;  %20083 = vst [vmem:[#allocation2 + $0x1f0] sm:$0xff] %v19731_v46   ;;  %v9265_v62 = vld [vmem:[#allocation2 + $0x314] sm:$0xf] }
 0x530   :  { %v7908_v44 = vadd.f32 %v22566_v17, %v7712_v14  ;;  %v7629_v37 = vpop.f32.mrf.mxu0 }
 0x531   :  { %v8495_v10 = vrot.slane %v8493_v34, 7  ;;  %v9031_v29 = vrot.slane %v8496_v30, 5  ;;  %v9033_v25 = vrot.slane %v8493_v34, 4  ;;  %v6262_v53 = vpop.f32.mrf.mxu2  ;;  %v19334_v34 = vld [vmem:[#allocation2 + $0x248] sm:$0xff] }
 0x532   :  { %v7972_v11 = vmax.f32 %v7908_v44, 0.0  ;;  %v6349_v12 = vadd.f32 %v6262_v53, %v5667_v27  ;;  %11123 = vmatmul.bf16.gmra.mxu3 %v19334_v34  ;;  %v8788_v53 = vld [vmem:[#allocation2 + $0xd8] sm:$0xf] }
 0x533   :  { %v8498_v42 = vor.u32 %v8496_v30, %v8495_v10  ;;  %v9032_v38 = vsel %vm21387_vm14, %v9030_v63, %v9031_v29  ;;  %v9034_v32 = vor.u32 %v9033_v25, %v9031_v29  ;;  %v22700_v23 = vpop.f32.mrf.mxu1  ;;  %11804 = vmatmul.bf16.gmra.mxu0 %v19374_v45 }
 0x534   :  { %9264 = vst [vmem:[#allocation2 + $0x310] sm:$0xf] %v9032_v38  ;;  %v8036_v46 = vpack.c.bf16 %v7972_v11, %v7972_v11  ;;  %v7031_v14 = vadd.f32 %v6944_v48, %v6349_v12 }
 0x535   :  { %24386 = vst [vmem:[#allocation43_spill] sm:$0xff] %v22700_v23  ;;  %v8499_v47 = vsel %vm20326_vm4, %v8491_v52, %v8498_v42  ;;  %v9035_v55 = vrot.slane %v9034_v32, 4  ;;  %v24387_v32 = vld [vmem:[#allocation25_spill] sm:$0xff] }
 0x536   :  { %8787 = vst [vmem:[#allocation2 + $0xd4] sm:$0xf] %v8499_v47  ;;  %v8501_v35 = vshrl.u32 %v8036_v46, 16  ;;  %v8504_v30 = vshll.u32 %v8036_v46, 16  ;;  %v7713_v27 = vadd.f32 %v7626_v9, %v7031_v14  ;;  %10442 = vmatmul.bf16.gmra.mxu2 %v19294_v43  ;;  %v6947_v12 = vpop.f32.mrf.mxu3 }
 0x537   :  { %v9266_v44 = vsel %vm21371_vm12, %v9035_v55, %v9265_v62 }
 0x538   :  { %9267 = vst [vmem:[#allocation2 + $0x314] sm:$0xf] %v9266_v44  ;;  %v8503_v63 = vrot.slane %v8501_v35, 7  ;;  %v9036_v10 = vrot.slane %v8501_v35, 4  ;;  %v9037_v29 = vrot.slane %v8504_v30, 5  ;;  %v7909_v25 = vadd.f32 %v22566_v17, %v7713_v27  ;;  %v7631_v38 = vpop.f32.mrf.mxu0  ;;  %v24388_v27 = vld [vmem:[#allocation24_spill] sm:$0xff] }
 0x539   :  { %v6265_v48 = vpop.f32.mrf.mxu2 }
 0x53a   :  { %v8506_v52 = vor.u32 %v8504_v30, %v8503_v63  ;;  %v7973_v42 = vmax.f32 %v7909_v25, 0.0  ;;  %v6350_v45 = vadd.f32 %v6265_v48, %v24387_v32  ;;  %v9038_v46 = vor.u32 %v9037_v29, %v9036_v10  ;;  %v24389_v30 = vld [vmem:[#allocation22_spill] sm:$0xff] }
 0x53b   :  { %v22710_v43 = vpop.f32.mrf.mxu1  ;;  %v5669_v44 = vadd.f32 %v24389_v30, %v24388_v27  ;;  %v8507_v10 = vrot.slane %v8503_v63, 4  ;;  %v19295_v27 = vld [vmem:[#allocation2 + $0x130] sm:$0xff] }
 0x53c   :  { %v8789_v9 = vsel %vm20408_vm7, %v8506_v52, %v8788_v53  ;;  %v8037_v14 = vpack.c.bf16 %v7973_v42, %v7973_v42  ;;  %v19736_v62 = vpack.c.bf16 %v7973_v42, %v7972_v11  ;;  %v7032_v34 = vadd.f32 %v6947_v12, %v6350_v45  ;;  %v19335_v30 = vld [vmem:[#allocation2 + $0x250] sm:$0xff] }
 0x53d   :  { %8790 = vst [vmem:[#allocation2 + $0xd8] sm:$0xf] %v8789_v9  ;;  %v19277_v47 = vld [vmem:[#allocation2 + $0xd0] sm:$0xff]  ;;  %v9039_v48 = vrot.slane %v9038_v46, 4 }
 0x53e   :  { %v8509_v55 = vshrl.u32 %v8037_v14, 16  ;;  %v8512_v35 = vshll.u32 %v8037_v14, 16  ;;  %20084 = vst [vmem:[#allocation2 + $0x1f8] sm:$0xff] %v19736_v62   ;;  %v7714_v25 = vadd.f32 %v7629_v37, %v7032_v34  ;;  %9876 = vmatmul.bf16.gmra.mxu1 %v19277_v47  ;;  %v6949_v52 = vpop.f32.mrf.mxu3  ;;  %v9269_v62 = vld [vmem:[#allocation2 + $0x31c] sm:$0xf] }
 0x53f   :  { %v19375_v34 = vld [vmem:[#allocation2 + $0x18] sm:$0xff] }
 0x540   :  { %v8511_v32 = vrot.slane %v8509_v55, 7  ;;  %v9040_v23 = vrot.slane %v8512_v35, 5  ;;  %v9042_v53 = vrot.slane %v8509_v55, 4  ;;  %v7910_v11 = vadd.f32 %v22566_v17, %v7714_v25  ;;  %v7634_v14 = vpop.f32.mrf.mxu0 }
 0x541   :  { %v6267_v29 = vpop.f32.mrf.mxu2 }
 0x542   :  { %v8514_v42 = vor.u32 %v8512_v35, %v8511_v32  ;;  %v9041_v12 = vsel %vm21387_vm14, %v9039_v48, %v9040_v23  ;;  %v9043_v45 = vor.u32 %v9042_v53, %v9040_v23  ;;  %v6351_v9 = vadd.f32 %v6267_v29, %v5669_v44  ;;  %11128 = vmatmul.bf16.gmra.mxu3 %v19335_v30 }
 0x543   :  { %9268 = vst [vmem:[#allocation2 + $0x318] sm:$0xf] %v9041_v12  ;;  %v7974_v37 = vmax.f32 %v7910_v11, 0.0  ;;  %v22719_v55 = vpop.f32.mrf.mxu1  ;;  %11809 = vmatmul.bf16.gmra.mxu0 %v19375_v34 }
 0x544   :  { %v8515_v46 = vsel %vm20326_vm4, %v8507_v10, %v8514_v42  ;;  %v9044_v47 = vrot.slane %v9043_v45, 4  ;;  %v7033_v63 = vadd.f32 %v6949_v52, %v6351_v9  ;;  %24390 = vst [vmem:[#allocation44_spill] sm:$0xff] %v22719_v55  ;;  %v8792_v42 = vld [vmem:[#allocation2 + $0xe0] sm:$0xf]  ;;  %v24391_v45 = vld [vmem:[#allocation27_spill] sm:$0xff] }
 0x545   :  { %8791 = vst [vmem:[#allocation2 + $0xdc] sm:$0xf] %v8515_v46  ;;  %v8038_v35 = vpack.c.bf16 %v7974_v37, %v7974_v37 }
 0x546   :  { %v9270_v23 = vsel %vm21371_vm12, %v9044_v47, %v9269_v62  ;;  %v7715_v44 = vadd.f32 %v7631_v38, %v7033_v63  ;;  %10447 = vmatmul.bf16.gmra.mxu2 %v19295_v27  ;;  %v6952_v52 = vpop.f32.mrf.mxu3 }
 0x547   :  { %9271 = vst [vmem:[#allocation2 + $0x31c] sm:$0xf] %v9270_v23  ;;  %v8517_v25 = vshrl.u32 %v8038_v35, 16  ;;  %v8520_v48 = vshll.u32 %v8038_v35, 16 }
 0x548   :  { %v7911_v32 = vadd.f32 %v22566_v17, %v7715_v44  ;;  %v7636_v34 = vpop.f32.mrf.mxu0 }
 0x549   :  { %v8519_v53 = vrot.slane %v8517_v25, 7  ;;  %v9045_v10 = vrot.slane %v8517_v25, 4  ;;  %v9046_v11 = vrot.slane %v8520_v48, 5  ;;  %v6270_v29 = vpop.f32.mrf.mxu2 }
 0x54a   :  { %v7975_v12 = vmax.f32 %v7911_v32, 0.0  ;;  %v6352_v9 = vadd.f32 %v6270_v29, %v24391_v45 }
 0x54b   :  { %v8522_v46 = vor.u32 %v8520_v48, %v8519_v53  ;;  %v9047_v62 = vor.u32 %v9046_v11, %v9045_v10  ;;  %v22725_v27 = vpop.f32.mrf.mxu1  ;;  %v24394_v11 = vld [vmem:[#allocation26_spill] sm:$0xff] }
 0x54c   :  { %v8039_v38 = vpack.c.bf16 %v7975_v12, %v7975_v12  ;;  %v19741_v47 = vpack.c.bf16 %v7975_v12, %v7974_v37  ;;  %v7034_v63 = vadd.f32 %v6952_v52, %v6352_v9  ;;  %24392 = vst [vmem:[#allocation46_spill] sm:$0xff] %v22725_v27  ;;  %v19278_v30 = vld [vmem:[#allocation2 + $0xd8] sm:$0xff]  ;;  %v24393_v37 = vld [vmem:[#allocation28_spill] sm:$0xff]  ;;  %v8523_v12 = vrot.slane %v8519_v53, 4 }
 0x54d   :  { %v8793_v35 = vsel %vm20408_vm7, %v8522_v46, %v8792_v42  ;;  %v9048_v55 = vrot.slane %v9047_v62, 4  ;;  %v5671_v52 = vadd.f32 %v24394_v11, %v24393_v37  ;;  %v19296_v53 = vld [vmem:[#allocation2 + $0x138] sm:$0xff] }
 0x54e   :  { %8794 = vst [vmem:[#allocation2 + $0xe0] sm:$0xf] %v8793_v35  ;;  %v8525_v23 = vshrl.u32 %v8039_v38, 16  ;;  %v8528_v44 = vshll.u32 %v8039_v38, 16  ;;  %v7716_v25 = vadd.f32 %v7634_v14, %v7034_v63  ;;  %9881 = vmatmul.bf16.gmra.mxu1 %v19278_v30  ;;  %v6954_v9 = vpop.f32.mrf.mxu3  ;;  %v9273_v38 = vld [vmem:[#allocation2 + $0x324] sm:$0xf] }
 0x54f   :  { %20085 = vst [vmem:[#allocation2 + $0x200] sm:$0xff] %v19741_v47   ;;  %v19376_v63 = vld [vmem:[#allocation2 + $0x20] sm:$0xff]  ;;  %v19336_v37 = vld [vmem:[#allocation2 + $0x258] sm:$0xff] }
 0x550   :  { %v8527_v32 = vrot.slane %v8525_v23, 7  ;;  %v9049_v29 = vrot.slane %v8528_v44, 5  ;;  %v9051_v48 = vrot.slane %v8525_v23, 4  ;;  %v7912_v10 = vadd.f32 %v22566_v17, %v7716_v25  ;;  %v7639_v62 = vpop.f32.mrf.mxu0 }
 0x551   :  { %v6272_v45 = vpop.f32.mrf.mxu2 }
 0x552   :  { %v8530_v27 = vor.u32 %v8528_v44, %v8527_v32  ;;  %v9050_v42 = vsel %vm21387_vm14, %v9048_v55, %v9049_v29  ;;  %v9052_v46 = vor.u32 %v9051_v48, %v9049_v29  ;;  %v7976_v14 = vmax.f32 %v7912_v10, 0.0  ;;  %11133 = vmatmul.bf16.gmra.mxu3 %v19336_v37 }
 0x553   :  { %9272 = vst [vmem:[#allocation2 + $0x320] sm:$0xf] %v9050_v42  ;;  %v6353_v47 = vadd.f32 %v6272_v45, %v5671_v52  ;;  %v22736_v25 = vpop.f32.mrf.mxu1  ;;  %11814 = vmatmul.bf16.gmra.mxu0 %v19376_v63 }
 0x554   :  { %v8531_v30 = vsel %vm20326_vm4, %v8523_v12, %v8530_v27  ;;  %v9053_v35 = vrot.slane %v9052_v46, 4  ;;  %v8040_v23 = vpack.c.bf16 %v7976_v14, %v7976_v14  ;;  %24395 = vst [vmem:[#allocation48_spill] sm:$0xff] %v22736_v25  ;;  %v8796_v27 = vld [vmem:[#allocation2 + $0xe8] sm:$0xf] }
 0x555   :  { %8795 = vst [vmem:[#allocation2 + $0xe4] sm:$0xf] %v8531_v30  ;;  %v7035_v44 = vadd.f32 %v6954_v9, %v6353_v47  ;;  %v24396_v9 = vld [vmem:[#allocation30_spill] sm:$0xff] }
 0x556   :  { %v9274_v55 = vsel %vm21371_vm12, %v9053_v35, %v9273_v38  ;;  %v8533_v32 = vshrl.u32 %v8040_v23, 16  ;;  %v8536_v29 = vshll.u32 %v8040_v23, 16  ;;  %10452 = vmatmul.bf16.gmra.mxu2 %v19296_v53  ;;  %v6957_v42 = vpop.f32.mrf.mxu3 }
 0x557   :  { %9275 = vst [vmem:[#allocation2 + $0x324] sm:$0xf] %v9274_v55  ;;  %v7717_v48 = vadd.f32 %v7636_v34, %v7035_v44 }
 0x558   :  { %v8535_v10 = vrot.slane %v8533_v32, 7  ;;  %v9054_v11 = vrot.slane %v8533_v32, 4  ;;  %v9055_v52 = vrot.slane %v8536_v29, 5  ;;  %v7641_v63 = vpop.f32.mrf.mxu0 }
 0x559   :  { %v7913_v12 = vadd.f32 %v22566_v17, %v7717_v48  ;;  %v6275_v45 = vpop.f32.mrf.mxu2  ;;  %v24399_v48 = vld [vmem:[#allocation29_spill] sm:$0xff] }
 0x55a   :  { %v8538_v46 = vor.u32 %v8536_v29, %v8535_v10  ;;  %v6354_v47 = vadd.f32 %v6275_v45, %v24396_v9  ;;  %v9056_v53 = vor.u32 %v9055_v52, %v9054_v11  ;;  %v24398_v29 = vld [vmem:[#allocation31_spill] sm:$0xff] }
 0x55b   :  { %v7977_v30 = vmax.f32 %v7913_v12, 0.0  ;;  %v22744_v23 = vpop.f32.mrf.mxu1  ;;  %v5673_v45 = vadd.f32 %v24399_v48, %v24398_v29  ;;  %v9277_v29 = vld [vmem:[#allocation2 + $0x32c] sm:$0xf] }
 0x55c   :  { %v8797_v38 = vsel %vm20408_vm7, %v8538_v46, %v8796_v27  ;;  %v7036_v35 = vadd.f32 %v6957_v42, %v6354_v47  ;;  %24397 = vst [vmem:[#allocation50_spill] sm:$0xff] %v22744_v23  ;;  %v19279_v34 = vld [vmem:[#allocation2 + $0xe0] sm:$0xff]  ;;  %v9057_v42 = vrot.slane %v9056_v53, 4 }
 0x55d   :  { %8798 = vst [vmem:[#allocation2 + $0xe8] sm:$0xf] %v8797_v38  ;;  %v8041_v37 = vpack.c.bf16 %v7977_v30, %v7977_v30  ;;  %v19746_v44 = vpack.c.bf16 %v7977_v30, %v7976_v14  ;;  %v22751_v27 = vld [vmem:[%s23874_s2] ss:$0 sm:$0xff]  ;;  %v8539_v38 = vrot.slane %v8535_v10, 4 }
 0x55e   :  { %v7718_v55 = vadd.f32 %v7639_v62, %v7036_v35  ;;  %9886 = vmatmul.bf16.gmra.mxu1 %v19279_v34  ;;  %v6959_v62 = vpop.f32.mrf.mxu3  ;;  %v19297_v23 = vld [vmem:[#allocation2 + $0x140] sm:$0xff] }
 0x55f   :  { %v8541_v17 = vshrl.u32 %v8041_v37, 16  ;;  %v8544_v32 = vshll.u32 %v8041_v37, 16  ;;  %20086 = vst [vmem:[#allocation2 + $0x208] sm:$0xff] %v19746_v44   ;;  %v19377_v44 = vld [vmem:[#allocation2 + $0x28] sm:$0xff] }
 0x560   :  { %v7914_v12 = vadd.f32 %v22751_v27, %v7718_v55  ;;  %v7644_v30 = vpop.f32.mrf.mxu0 }
 0x561   :  { %v8543_v46 = vrot.slane %v8541_v17, 7  ;;  %v9058_v11 = vrot.slane %v8544_v32, 5  ;;  %v9060_v52 = vrot.slane %v8541_v17, 4  ;;  %v6277_v14 = vpop.f32.mrf.mxu2  ;;  %v19337_v17 = vld [vmem:[#allocation2 + $0x260] sm:$0xff] }
 0x562   :  { %v7978_v9 = vmax.f32 %v7914_v12, 0.0  ;;  %v6355_v47 = vadd.f32 %v6277_v14, %v5673_v45  ;;  %11138 = vmatmul.bf16.gmra.mxu3 %v19337_v17 }
 0x563   :  { %v8546_v35 = vor.u32 %v8544_v32, %v8543_v46  ;;  %v9059_v34 = vsel %vm21387_vm14, %v9057_v42, %v9058_v11  ;;  %v9061_v37 = vor.u32 %v9060_v52, %v9058_v11  ;;  %v22756_v53 = vpop.f32.mrf.mxu1  ;;  %11819 = vmatmul.bf16.gmra.mxu0 %v19377_v44 }
 0x564   :  { %9276 = vst [vmem:[#allocation2 + $0x328] sm:$0xf] %v9059_v34  ;;  %v8042_v48 = vpack.c.bf16 %v7978_v9, %v7978_v9  ;;  %v7037_v55 = vadd.f32 %v6959_v62, %v6355_v47  ;;  %v8800_v47 = vld [vmem:[#allocation2 + $0xf0] sm:$0xf] }
 0x565   :  { %24400 = vst [vmem:[#allocation51_spill] sm:$0xff] %v22756_v53  ;;  %v8547_v12 = vsel %vm20326_vm4, %v8539_v38, %v8546_v35  ;;  %v9062_v45 = vrot.slane %v9061_v37, 4 }
 0x566   :  { %8799 = vst [vmem:[#allocation2 + $0xec] sm:$0xf] %v8547_v12  ;;  %v8549_v10 = vshrl.u32 %v8042_v48, 16  ;;  %v8552_v32 = vshll.u32 %v8042_v48, 16  ;;  %v7719_v46 = vadd.f32 %v7641_v63, %v7037_v55  ;;  %10457 = vmatmul.bf16.gmra.mxu2 %v19297_v23  ;;  %v6962_v38 = vpop.f32.mrf.mxu3  ;;  %v24401_v12 = vld [vmem:[#allocation33_spill] sm:$0xff] }
 0x567   :  { %v9278_v42 = vsel %vm21371_vm12, %v9062_v45, %v9277_v29 }
 0x568   :  { %9279 = vst [vmem:[#allocation2 + $0x32c] sm:$0xf] %v9278_v42  ;;  %v8551_v11 = vrot.slane %v8549_v10, 7  ;;  %v9063_v52 = vrot.slane %v8549_v10, 4  ;;  %v9064_v14 = vrot.slane %v8552_v32, 5  ;;  %v7915_v62 = vadd.f32 %v22751_v27, %v7719_v46  ;;  %v7646_v44 = vpop.f32.mrf.mxu0  ;;  %v19445_v46 = vld [vmem:[%s23873_s3 + $0x100] sm:$0xff] }
 0x569   :  { %v6280_v34 = vpop.f32.mrf.mxu2  ;;  %12479 = vmatpush.bf16.msrb.mxu1 %v19445_v46 }
 0x56a   :  { %v8554_v35 = vor.u32 %v8552_v32, %v8551_v11  ;;  %v7979_v37 = vmax.f32 %v7915_v62, 0.0  ;;  %v6356_v48 = vadd.f32 %v6280_v34, %v24401_v12  ;;  %v9065_v23 = vor.u32 %v9064_v14, %v9063_v52  ;;  %v24403_v62 = vld [vmem:[#allocation34_spill] sm:$0xff]  ;;  %v24404_v34 = vld [vmem:[#allocation32_spill] sm:$0xff] }
 0x56b   :  { %v22766_v17 = vpop.f32.mrf.mxu1  ;;  %v5675_v12 = vadd.f32 %v24404_v34, %v24403_v62  ;;  %v19338_v62 = vld [vmem:[#allocation2 + $0x268] sm:$0xff] }
 0x56c   :  { %v8801_v63 = vsel %vm20408_vm7, %v8554_v35, %v8800_v47  ;;  %v8043_v55 = vpack.c.bf16 %v7979_v37, %v7979_v37  ;;  %v19751_v29 = vpack.c.bf16 %v7979_v37, %v7978_v9  ;;  %24402 = vst [vmem:[#allocation52_spill] sm:$0xff] %v22766_v17  ;;  %v7038_v45 = vadd.f32 %v6962_v38, %v6356_v48 }
 0x56d   :  { %8802 = vst [vmem:[#allocation2 + $0xf0] sm:$0xf] %v8801_v63  ;;  %v19280_v10 = vld [vmem:[#allocation2 + $0xe8] sm:$0xff]  ;;  %v9066_v52 = vrot.slane %v9065_v23, 4  ;;  %v8555_v35 = vrot.slane %v8551_v11, 4  ;;  %v19378_v23 = vld [vmem:[#allocation2 + $0x30] sm:$0xff] }
 0x56e   :  { %v8557_v32 = vshrl.u32 %v8043_v55, 16  ;;  %v8560_v42 = vshll.u32 %v8043_v55, 16  ;;  %20087 = vst [vmem:[#allocation2 + $0x210] sm:$0xff] %v19751_v29   ;;  %v7720_v53 = vadd.f32 %v7644_v30, %v7038_v45  ;;  %9891 = vmatmul.bf16.gmra.mxu1 %v19280_v10  ;;  %v6964_v48 = vpop.f32.mrf.mxu3  ;;  %v9281_v30 = vld [vmem:[#allocation2 + $0x334] sm:$0xf] }
 0x570   :  { %v8559_v14 = vrot.slane %v8557_v32, 7  ;;  %v9067_v9 = vrot.slane %v8560_v42, 5  ;;  %v9069_v47 = vrot.slane %v8557_v32, 4  ;;  %v7916_v38 = vadd.f32 %v22751_v27, %v7720_v53  ;;  %v7649_v25 = vpop.f32.mrf.mxu0  ;;  %v19298_v53 = vld [vmem:[#allocation2 + $0x148] sm:$0xff] }
 0x571   :  { %v6282_v37 = vpop.f32.mrf.mxu2 }
 0x572   :  { %v8562_v63 = vor.u32 %v8560_v42, %v8559_v14  ;;  %v9068_v55 = vsel %vm21387_vm14, %v9066_v52, %v9067_v9  ;;  %v9070_v29 = vor.u32 %v9069_v47, %v9067_v9  ;;  %v6357_v17 = vadd.f32 %v6282_v37, %v5675_v12  ;;  %11143 = vmatmul.bf16.gmra.mxu3 %v19338_v62 }
 0x573   :  { %9280 = vst [vmem:[#allocation2 + $0x330] sm:$0xf] %v9068_v55  ;;  %v7980_v45 = vmax.f32 %v7916_v38, 0.0  ;;  %v22778_v32 = vpop.f32.mrf.mxu1  ;;  %11824 = vmatmul.bf16.gmra.mxu0 %v19378_v23  ;;  %v24406_v55 = vld [vmem:[#allocation36_spill] sm:$0xff] }
 0x574   :  { %v8563_v10 = vsel %vm20326_vm4, %v8555_v35, %v8562_v63  ;;  %v9071_v46 = vrot.slane %v9070_v29, 4  ;;  %v7039_v11 = vadd.f32 %v6964_v48, %v6357_v17  ;;  %24405 = vst [vmem:[#allocation53_spill] sm:$0xff] %v22778_v32  ;;  %v8804_v48 = vld [vmem:[#allocation2 + $0xf8] sm:$0xf] }
 0x575   :  { %8803 = vst [vmem:[#allocation2 + $0xf4] sm:$0xf] %v8563_v10  ;;  %v8044_v42 = vpack.c.bf16 %v7980_v45, %v7980_v45 }
 0x576   :  { %v9282_v34 = vsel %vm21371_vm12, %v9071_v46, %v9281_v30  ;;  %v7721_v12 = vadd.f32 %v7646_v44, %v7039_v11  ;;  %10462 = vmatmul.bf16.gmra.mxu2 %v19298_v53  ;;  %v6967_v37 = vpop.f32.mrf.mxu3 }
 0x577   :  { %9283 = vst [vmem:[#allocation2 + $0x334] sm:$0xf] %v9282_v34  ;;  %v8565_v52 = vshrl.u32 %v8044_v42, 16  ;;  %v8568_v14 = vshll.u32 %v8044_v42, 16 }
 0x578   :  { %v7917_v9 = vadd.f32 %v22751_v27, %v7721_v12  ;;  %v7651_v23 = vpop.f32.mrf.mxu0 }
 0x579   :  { %v8567_v47 = vrot.slane %v8565_v52, 7  ;;  %v9072_v17 = vrot.slane %v8565_v52, 4  ;;  %v9073_v35 = vrot.slane %v8568_v14, 5  ;;  %v6285_v38 = vpop.f32.mrf.mxu2 }
 0x57a   :  { %v7981_v63 = vmax.f32 %v7917_v9, 0.0  ;;  %v6358_v29 = vadd.f32 %v6285_v38, %v24406_v55 }
 0x57b   :  { %v8570_v10 = vor.u32 %v8568_v14, %v8567_v47  ;;  %v9074_v30 = vor.u32 %v9073_v35, %v9072_v17  ;;  %v22784_v53 = vpop.f32.mrf.mxu1  ;;  %v24409_v35 = vld [vmem:[#allocation35_spill] sm:$0xff] }
 0x57c   :  { %v8045_v44 = vpack.c.bf16 %v7981_v63, %v7981_v63  ;;  %v19756_v46 = vpack.c.bf16 %v7981_v63, %v7980_v45  ;;  %v7040_v11 = vadd.f32 %v6967_v37, %v6358_v29  ;;  %24407 = vst [vmem:[#allocation54_spill] sm:$0xff] %v22784_v53  ;;  %v19281_v62 = vld [vmem:[#allocation2 + $0xf0] sm:$0xff]  ;;  %v24408_v45 = vld [vmem:[#allocation37_spill] sm:$0xff]  ;;  %v8571_v63 = vrot.slane %v8567_v47, 4 }
 0x57d   :  { %v8805_v42 = vsel %vm20408_vm7, %v8570_v10, %v8804_v48  ;;  %v9075_v32 = vrot.slane %v9074_v30, 4  ;;  %v5677_v37 = vadd.f32 %v24409_v35, %v24408_v45  ;;  %v19299_v47 = vld [vmem:[#allocation2 + $0x150] sm:$0xff] }
 0x57e   :  { %8806 = vst [vmem:[#allocation2 + $0xf8] sm:$0xf] %v8805_v42  ;;  %v8573_v34 = vshrl.u32 %v8045_v44, 16  ;;  %v8576_v12 = vshll.u32 %v8045_v44, 16  ;;  %v7722_v52 = vadd.f32 %v7649_v25, %v7040_v11  ;;  %9896 = vmatmul.bf16.gmra.mxu1 %v19281_v62  ;;  %v6969_v29 = vpop.f32.mrf.mxu3  ;;  %v9285_v44 = vld [vmem:[#allocation2 + $0x33c] sm:$0xf] }
 0x57f   :  { %20088 = vst [vmem:[#allocation2 + $0x218] sm:$0xff] %v19756_v46   ;;  %v19379_v11 = vld [vmem:[#allocation2 + $0x38] sm:$0xff]  ;;  %v19339_v45 = vld [vmem:[#allocation2 + $0x270] sm:$0xff] }
 0x580   :  { %v8575_v9 = vrot.slane %v8573_v34, 7  ;;  %v9076_v38 = vrot.slane %v8576_v12, 5  ;;  %v9078_v14 = vrot.slane %v8573_v34, 4  ;;  %v7918_v17 = vadd.f32 %v22751_v27, %v7722_v52  ;;  %v7654_v30 = vpop.f32.mrf.mxu0 }
 0x581   :  { %v6287_v55 = vpop.f32.mrf.mxu2 }
 0x582   :  { %v8578_v53 = vor.u32 %v8576_v12, %v8575_v9  ;;  %v9077_v48 = vsel %vm21387_vm14, %v9075_v32, %v9076_v38  ;;  %v9079_v10 = vor.u32 %v9078_v14, %v9076_v38  ;;  %v7982_v25 = vmax.f32 %v7918_v17, 0.0  ;;  %11148 = vmatmul.bf16.gmra.mxu3 %v19339_v45 }
 0x583   :  { %9284 = vst [vmem:[#allocation2 + $0x338] sm:$0xf] %v9077_v48  ;;  %v6359_v46 = vadd.f32 %v6287_v55, %v5677_v37  ;;  %v22795_v52 = vpop.f32.mrf.mxu1  ;;  %11829 = vmatmul.bf16.gmra.mxu0 %v19379_v11 }
 0x584   :  { %v8579_v62 = vsel %vm20326_vm4, %v8571_v63, %v8578_v53  ;;  %v9080_v42 = vrot.slane %v9079_v10, 4  ;;  %v8046_v34 = vpack.c.bf16 %v7982_v25, %v7982_v25  ;;  %24410 = vst [vmem:[#allocation55_spill] sm:$0xff] %v22795_v52  ;;  %v8808_v53 = vld [vmem:[#allocation2 + $0x100] sm:$0xf] }
 0x585   :  { %8807 = vst [vmem:[#allocation2 + $0xfc] sm:$0xf] %v8579_v62  ;;  %v7041_v12 = vadd.f32 %v6969_v29, %v6359_v46  ;;  %v24411_v29 = vld [vmem:[#allocation38_spill] sm:$0xff] }
 0x586   :  { %v9286_v32 = vsel %vm21371_vm12, %v9080_v42, %v9285_v44  ;;  %v8581_v9 = vshrl.u32 %v8046_v34, 16  ;;  %v8584_v38 = vshll.u32 %v8046_v34, 16  ;;  %10467 = vmatmul.bf16.gmra.mxu2 %v19299_v47  ;;  %v6972_v48 = vpop.f32.mrf.mxu3 }
 0x587   :  { %9287 = vst [vmem:[#allocation2 + $0x33c] sm:$0xf] %v9286_v32  ;;  %v7723_v14 = vadd.f32 %v7651_v23, %v7041_v12 }
 0x588   :  { %v8583_v17 = vrot.slane %v8581_v9, 7  ;;  %v9081_v35 = vrot.slane %v8581_v9, 4  ;;  %v9082_v37 = vrot.slane %v8584_v38, 5  ;;  %v7656_v11 = vpop.f32.mrf.mxu0 }
 0x589   :  { %v7919_v63 = vadd.f32 %v22751_v27, %v7723_v14  ;;  %v6290_v55 = vpop.f32.mrf.mxu2 }
 0x58a   :  { %v8586_v10 = vor.u32 %v8584_v38, %v8583_v17  ;;  %v6360_v46 = vadd.f32 %v6290_v55, %v24411_v29  ;;  %v9083_v47 = vor.u32 %v9082_v37, %v9081_v35  ;;  %v24413_v38 = vld [vmem:[#allocation40_spill] sm:$0xff]  ;;  %v24414_v55 = vld [vmem:[#allocation39_spill] sm:$0xff] }
 0x58b   :  { %v7983_v62 = vmax.f32 %v7919_v63, 0.0  ;;  %v22803_v34 = vpop.f32.mrf.mxu1  ;;  %v5679_v29 = vadd.f32 %v24414_v55, %v24413_v38  ;;  %v19300_v38 = vld [vmem:[#allocation2 + $0x158] sm:$0xff] }
 0x58c   :  { %v8809_v44 = vsel %vm20408_vm7, %v8586_v10, %v8808_v53  ;;  %v7042_v42 = vadd.f32 %v6972_v48, %v6360_v46  ;;  %24412 = vst [vmem:[#allocation56_spill] sm:$0xff] %v22803_v34  ;;  %v19282_v23 = vld [vmem:[#allocation2 + $0xf8] sm:$0xff]  ;;  %v9084_v52 = vrot.slane %v9083_v47, 4 }
 0x58d   :  { %8810 = vst [vmem:[#allocation2 + $0x100] sm:$0xf] %v8809_v44  ;;  %v8047_v45 = vpack.c.bf16 %v7983_v62, %v7983_v62  ;;  %v19761_v12 = vpack.c.bf16 %v7983_v62, %v7982_v25  ;;  %v8587_v25 = vrot.slane %v8583_v17, 4 }
 0x58e   :  { %v7724_v32 = vadd.f32 %v7654_v30, %v7042_v42  ;;  %9901 = vmatmul.bf16.gmra.mxu1 %v19282_v23  ;;  %v6974_v34 = vpop.f32.mrf.mxu3  ;;  %v19380_v23 = vld [vmem:[#allocation2 + $0x40] sm:$0xff] }
 0x58f   :  { %v8589_v9 = vshrl.u32 %v8047_v45, 16  ;;  %v8592_v14 = vshll.u32 %v8047_v45, 16  ;;  %20089 = vst [vmem:[#allocation2 + $0x220] sm:$0xff] %v19761_v12   ;;  %v9289_v45 = vld [vmem:[#allocation2 + $0x344] sm:$0xf] }
 0x590   :  { %v7920_v63 = vadd.f32 %v22751_v27, %v7724_v32  ;;  %v7659_v37 = vpop.f32.mrf.mxu0 }
 0x591   :  { %v8591_v53 = vrot.slane %v8589_v9, 7  ;;  %v9085_v48 = vrot.slane %v8592_v14, 5  ;;  %v9087_v10 = vrot.slane %v8589_v9, 4  ;;  %v6292_v46 = vpop.f32.mrf.mxu2  ;;  %v19340_v9 = vld [vmem:[#allocation2 + $0x278] sm:$0xff] }
 0x592   :  { %v7984_v44 = vmax.f32 %v7920_v63, 0.0  ;;  %v6361_v35 = vadd.f32 %v6292_v46, %v5679_v29  ;;  %11153 = vmatmul.bf16.gmra.mxu3 %v19340_v9 }
 0x593   :  { %v8594_v30 = vor.u32 %v8592_v14, %v8591_v53  ;;  %v9086_v62 = vsel %vm21387_vm14, %v9084_v52, %v9085_v48  ;;  %v9088_v42 = vor.u32 %v9087_v10, %v9085_v48  ;;  %v22810_v47 = vpop.f32.mrf.mxu1  ;;  %11834 = vmatmul.bf16.gmra.mxu0 %v19380_v23  ;;  %v19532_v53 = vld [vmem:[%s23873_s3 + $0x1b8] sm:$0xff] }
 0x594   :  { %9288 = vst [vmem:[#allocation2 + $0x340] sm:$0xf] %v9086_v62  ;;  %v8048_v12 = vpack.c.bf16 %v7984_v44, %v7984_v44  ;;  %v7043_v32 = vadd.f32 %v6974_v34, %v6361_v35  ;;  %v19492_v34 = vld [vmem:[%s23873_s3 + $0x178] sm:$0xff]  ;;  %13834 = vmatpush.bf16.msra.mxu3 %v19532_v53  ;;  %v24416_v53 = vld [vmem:[#allocation42_spill] sm:$0xff] }
 0x595   :  { %v8595_v55 = vsel %vm20326_vm4, %v8587_v25, %v8594_v30  ;;  %v9089_v29 = vrot.slane %v9088_v42, 4  ;;  %13153 = vmatpush.bf16.msra.mxu2 %v19492_v34 }
 0x596   :  { %8811 = vst [vmem:[#allocation2 + $0x104] sm:$0xf] %v8595_v55  ;;  %v8597_v17 = vshrl.u32 %v8048_v12, 16  ;;  %v8600_v14 = vshll.u32 %v8048_v12, 16  ;;  %v7725_v63 = vadd.f32 %v7656_v11, %v7043_v32  ;;  %10472 = vmatmul.bf16.gmra.mxu2 %v19300_v38  ;;  %v8812_v11 = vld [vmem:[#allocation2 + $0x108] sm:$0xf]  ;;  %v6977_v30 = vpop.f32.mrf.mxu3 }
 0x597   :  { %v9290_v52 = vsel %vm21371_vm12, %v9089_v29, %v9289_v45  ;;  %v24415_v45 = vld [vmem:[#allocation41_spill] sm:$0xff] }
 0x598   :  { %9291 = vst [vmem:[#allocation2 + $0x344] sm:$0xf] %v9290_v52  ;;  %v8599_v48 = vrot.slane %v8597_v17, 7  ;;  %v9090_v10 = vrot.slane %v8597_v17, 4  ;;  %v9091_v46 = vrot.slane %v8600_v14, 5  ;;  %v7921_v35 = vadd.f32 %v22751_v27, %v7725_v63  ;;  %v7661_v23 = vpop.f32.mrf.mxu0  ;;  %v19572_v17 = vld [vmem:[%s23873_s3 + $0x1f8] sm:$0xff] }
 0x599   :  { %v6295_v25 = vpop.f32.mrf.mxu2  ;;  %14515 = vmatpush.bf16.msra.mxu0 %v19572_v17  ;;  %v9293_v17 = vld [vmem:[#allocation2 + $0x34c] sm:$0xf] }
 0x59a   :  { %v8602_v62 = vor.u32 %v8600_v14, %v8599_v48  ;;  %v7985_v42 = vmax.f32 %v7921_v35, 0.0  ;;  %v6362_v12 = vadd.f32 %v6295_v25, %v24415_v45  ;;  %v9092_v38 = vor.u32 %v9091_v46, %v9090_v10 }
 0x59b   :  { %v22826_v29 = vpop.f32.mrf.mxu1  ;;  %v5681_v35 = vadd.f32 %v22364_v59, %v24416_v53 }
 0x59c   :  { %v8813_v32 = vsel %vm20408_vm7, %v8602_v62, %v8812_v11  ;;  %v8049_v9 = vpack.c.bf16 %v7985_v42, %v7985_v42  ;;  %v19766_v55 = vpack.c.bf16 %v7985_v42, %v7984_v44  ;;  %v7044_v63 = vadd.f32 %v6977_v30, %v6362_v12  ;;  %v19612_v44 = vld [vmem:[%s23873_s3 + $0x238] sm:$0xff] }
 0x59d   :  { %8814 = vst [vmem:[#allocation2 + $0x108] sm:$0xf] %v8813_v32  ;;  %v19283_v52 = vld [vmem:[#allocation2 + $0x100] sm:$0xff]  ;;  %v9093_v10 = vrot.slane %v9092_v38, 4  ;;  %v8603_v42 = vrot.slane %v8599_v48, 4  ;;  %15196 = vmatpush.bf16.msra.mxu1 %v19612_v44  ;;  %v19381_v38 = vld [vmem:[#allocation2 + $0x48] sm:$0xff] }
 0x59e   :  { %v8605_v14 = vshrl.u32 %v8049_v9, 16  ;;  %v8608_v34 = vshll.u32 %v8049_v9, 16  ;;  %20090 = vst [vmem:[#allocation2 + $0x228] sm:$0xff] %v19766_v55   ;;  %v7726_v11 = vadd.f32 %v7659_v37, %v7044_v63  ;;  %9906 = vmatmul.bf16.gmra.mxu1 %v19283_v52  ;;  %v6979_v12 = vpop.f32.mrf.mxu3  ;;  %v19341_v44 = vld [vmem:[#allocation2 + $0x280] sm:$0xff] }
 0x5a0   :  { %v8607_v46 = vrot.slane %v8605_v14, 7  ;;  %v9094_v25 = vrot.slane %v8608_v34, 5  ;;  %v9096_v62 = vrot.slane %v8605_v14, 4  ;;  %v7922_v30 = vadd.f32 %v22751_v27, %v7726_v11  ;;  %v11800_v55 = vpop.f32.mrf.mxu0  ;;  %v19301_v11 = vld [vmem:[#allocation2 + $0x160] sm:$0xff] }
 0x5a1   :  { %v6297_v45 = vpop.f32.mrf.mxu2 }
 0x5a2   :  { %v8610_v32 = vor.u32 %v8608_v34, %v8607_v46  ;;  %v9095_v59 = vsel %vm21387_vm14, %v9093_v10, %v9094_v25  ;;  %v9097_v37 = vor.u32 %v9096_v62, %v9094_v25  ;;  %v6363_v9 = vadd.f32 %v6297_v45, %v5681_v35  ;;  %11158 = vmatmul.bf16.gmra.mxu3 %v19341_v44 }
 0x5a3   :  { %9292 = vst [vmem:[#allocation2 + $0x348] sm:$0xf] %v9095_v59  ;;  %v7986_v63 = vmax.f32 %v7922_v30, 0.0  ;;  %v22841_v53 = vpop.f32.mrf.mxu1  ;;  %11839 = vmatmul.bf16.gmra.mxu0 %v19381_v38  ;;  %v8816_v59 = vld [vmem:[#allocation2 + $0x110] sm:$0xf] }
 0x5a4   :  { %v8611_v52 = vsel %vm20326_vm4, %v8603_v42, %v8610_v32  ;;  %v9098_v48 = vrot.slane %v9097_v37, 4  ;;  %v7045_v14 = vadd.f32 %v6979_v12, %v6363_v9 }
 0x5a5   :  { %8815 = vst [vmem:[#allocation2 + $0x10c] sm:$0xf] %v8611_v52  ;;  %v8050_v34 = vpack.c.bf16 %v7986_v63, %v7986_v63 }
 0x5a6   :  { %v9294_v35 = vsel %vm21371_vm12, %v9098_v48, %v9293_v17  ;;  %v7727_v10 = vadd.f32 %v7661_v23, %v7045_v14  ;;  %10477 = vmatmul.bf16.gmra.mxu2 %v19301_v11  ;;  %v11119_v32 = vpop.f32.mrf.mxu3 }
 0x5a7   :  { %9295 = vst [vmem:[#allocation2 + $0x34c] sm:$0xf] %v9294_v35  ;;  %v8613_v46 = vshrl.u32 %v8050_v34, 16  ;;  %v8616_v25 = vshll.u32 %v8050_v34, 16 }
 0x5a8   :  { %v7923_v62 = vadd.f32 %v22751_v27, %v7727_v10  ;;  %v11802_v38 = vpop.f32.mrf.mxu0 }
 0x5a9   :  { %v8615_v42 = vrot.slane %v8613_v46, 7  ;;  %v9099_v30 = vrot.slane %v8613_v46, 4  ;;  %v9100_v45 = vrot.slane %v8616_v25, 5  ;;  %v10438_v12 = vpop.f32.mrf.mxu2 }
 0x5aa   :  { %v7987_v37 = vmax.f32 %v7923_v62, 0.0  ;;  %v10598_v9 = vadd.f32 %v10438_v12, %v22374_v18 }
 0x5ab   :  { %v8618_v52 = vor.u32 %v8616_v25, %v8615_v42  ;;  %v9101_v17 = vor.u32 %v9100_v45, %v9099_v30  ;;  %v22847_v11 = vpop.f32.mrf.mxu1  ;;  %v8619_v30 = vrot.slane %v8615_v42, 4  ;;  %v19302_v42 = vld [vmem:[#allocation2 + $0x168] sm:$0xff] }
 0x5ac   :  { %v8051_v23 = vpack.c.bf16 %v7987_v37, %v7987_v37  ;;  %v19771_v48 = vpack.c.bf16 %v7987_v37, %v7986_v63  ;;  %v11279_v14 = vadd.f32 %v11119_v32, %v10598_v9  ;;  %v19284_v44 = vld [vmem:[#allocation2 + $0x108] sm:$0xff]  ;;  %v19382_v9 = vld [vmem:[#allocation2 + $0x50] sm:$0xff] }
 0x5ad   :  { %v8817_v27 = vsel %vm20408_vm7, %v8618_v52, %v8816_v59  ;;  %v9102_v18 = vrot.slane %v9101_v17, 4 }
 0x5ae   :  { %8818 = vst [vmem:[#allocation2 + $0x110] sm:$0xf] %v8817_v27  ;;  %v8621_v34 = vshrl.u32 %v8051_v23, 16  ;;  %v8624_v35 = vshll.u32 %v8051_v23, 16  ;;  %v22851_v10 = vadd.f32 %v11800_v55, %v11279_v14  ;;  %9911 = vmatmul.bf16.gmra.mxu1 %v19284_v44  ;;  %v11121_v45 = vpop.f32.mrf.mxu3  ;;  %v9297_v55 = vld [vmem:[#allocation2 + $0x354] sm:$0xf] }
 0x5af   :  { %20091 = vst [vmem:[#allocation2 + $0x230] sm:$0xff] %v19771_v48   ;;  %v19342_v14 = vld [vmem:[#allocation2 + $0x288] sm:$0xff] }
 0x5b0   :  { %v8623_v46 = vrot.slane %v8621_v34, 7  ;;  %v9103_v25 = vrot.slane %v8624_v35, 5  ;;  %v9105_v62 = vrot.slane %v8621_v34, 4  ;;  %v11805_v37 = vpop.f32.mrf.mxu0 }
 0x5b1   :  { %v10440_v63 = vpop.f32.mrf.mxu2 }
 0x5b2   :  { %v8626_v12 = vor.u32 %v8624_v35, %v8623_v46  ;;  %v9104_v32 = vsel %vm21387_vm14, %v9102_v18, %v9103_v25  ;;  %v9106_v15 = vor.u32 %v9105_v62, %v9103_v25  ;;  %v10599_v59 = vadd.f32 %v10440_v63, %v22384_v8  ;;  %11163 = vmatmul.bf16.gmra.mxu3 %v19342_v14  ;;  %v19413_v46 = vld [vmem:[#allocation2 + $0x128] sm:$0xff] }
 0x5b3   :  { %9296 = vst [vmem:[#allocation2 + $0x350] sm:$0xf] %v9104_v32  ;;  %v22858_v48 = vpop.f32.mrf.mxu1  ;;  %11844 = vmatmul.bf16.gmra.mxu0 %v19382_v9  ;;  %v19303_v32 = vld [vmem:[#allocation2 + $0x170] sm:$0xff] }
 0x5b4   :  { %v8627_v52 = vsel %vm20326_vm4, %v8619_v30, %v8626_v12  ;;  %v9107_v17 = vrot.slane %v9106_v15, 4  ;;  %v11280_v23 = vadd.f32 %v11121_v45, %v10599_v59  ;;  %v19343_v15 = vld [vmem:[#allocation2 + $0x290] sm:$0xff] }
 0x5b5   :  { %8819 = vst [vmem:[#allocation2 + $0x114] sm:$0xf] %v8627_v52 }
 0x5b6   :  { %v9298_v26 = vsel %vm21371_vm12, %v9107_v17, %v9297_v55  ;;  %10482 = vmatmul.bf16.gmra.mxu2 %v19302_v42  ;;  %v22862_v8 = vadd.f32 %v11802_v38, %v11280_v23  ;;  %v11124_v27 = vpop.f32.mrf.mxu3  ;;  %v19383_v38 = vld [vmem:[#allocation2 + $0x58] sm:$0xff] }
 0x5b7   :  { %9299 = vst [vmem:[#allocation2 + $0x354] sm:$0xf] %v9298_v26 }
 0x5b8   :  { %v11807_v34 = vpop.f32.mrf.mxu0 }
 0x5b9   :  { %v10443_v44 = vpop.f32.mrf.mxu2 }
 0x5ba   :  { %v10600_v39 = vadd.f32 %v10443_v44, %v22397_v54 }
 0x5bb   :  { %v22865_v18 = vpop.f32.mrf.mxu1 }
 0x5bc   :  { %v11281_v35 = vadd.f32 %v11124_v27, %v10600_v39  ;;  %v19304_v27 = vld [vmem:[#allocation2 + $0x178] sm:$0xff]  ;;  %v19384_v39 = vld [vmem:[#allocation2 + $0x60] sm:$0xff] }
 0x5be   :  { %v22867_v25 = vadd.f32 %v11805_v37, %v11281_v35  ;;  %12480 = vmatmul.bf16.vlgmr.msrb.gmra.mxu1 %v19413_v46  ;;  %v11126_v13 = vpop.f32.mrf.mxu3  ;;  %v19344_v46 = vld [vmem:[#allocation2 + $0x298] sm:$0xff] }
 0x5c0   :  { %v11810_v63 = vpop.f32.mrf.mxu0 }
 0x5c1   :  { %v10445_v62 = vpop.f32.mrf.mxu2 }
 0x5c2   :  { %v10601_v30 = vadd.f32 %v10445_v62, %v22405_v28  ;;  %11168 = vmatmul.bf16.gmra.mxu3 %v19343_v15  ;;  %v19414_v28 = vld [vmem:[#allocation2 + $0x130] sm:$0xff] }
 0x5c3   :  { %v22870_v12 = vpop.f32.mrf.mxu1  ;;  %11849 = vmatmul.bf16.gmra.mxu0 %v19383_v38  ;;  %v19531_v62 = vld [vmem:[%s23873_s3 + $0x1b0] sm:$0xff] }
 0x5c4   :  { %v11282_v45 = vadd.f32 %v11126_v13, %v10601_v30  ;;  %13835 = vmatpush.bf16.msra.mxu3 %v19531_v62  ;;  %v19571_v15 = vld [vmem:[%s23873_s3 + $0x1f0] sm:$0xff] }
 0x5c5   :  { %14516 = vmatpush.bf16.msra.mxu0 %v19571_v15 }
 0x5c6   :  { %10487 = vmatmul.bf16.gmra.mxu2 %v19303_v32  ;;  %v22872_v54 = vadd.f32 %v11807_v34, %v11282_v45  ;;  %v11129_v37 = vpop.f32.mrf.mxu3 }
 0x5c8   :  { %v11812_v9 = vpop.f32.mrf.mxu0 }
 0x5c9   :  { %v10448_v59 = vpop.f32.mrf.mxu2 }
 0x5ca   :  { %v10602_v55 = vadd.f32 %v10448_v59, %v22413_v20  ;;  %v19491_v20 = vld [vmem:[%s23873_s3 + $0x170] sm:$0xff]  ;;  %v19415_v59 = vld [vmem:[#allocation2 + $0x138] sm:$0xff] }
 0x5cb   :  { %v22875_v17 = vpop.f32.mrf.mxu1  ;;  %13154 = vmatpush.bf16.msra.mxu2 %v19491_v20 }
 0x5cc   :  { %v11283_v52 = vadd.f32 %v11129_v37, %v10602_v55  ;;  %v19611_v55 = vld [vmem:[%s23873_s3 + $0x230] sm:$0xff] }
 0x5cd   :  { %15197 = vmatpush.bf16.msra.mxu1 %v19611_v55 }
 0x5ce   :  { %v22877_v23 = vadd.f32 %v11810_v63, %v11283_v52  ;;  %12485 = vmatmul.bf16.gmra.mxu1 %v19414_v28  ;;  %v11131_v14 = vpop.f32.mrf.mxu3 }
 0x5d0   :  { %v11815_v44 = vpop.f32.mrf.mxu0 }
 0x5d1   :  { %v10450_v42 = vpop.f32.mrf.mxu2 }
 0x5d2   :  { %v10603_v26 = vadd.f32 %v10450_v42, %v22421_v7  ;;  %11173 = vmatmul.bf16.gmra.mxu3 %v19344_v46  ;;  %v19385_v42 = vld [vmem:[#allocation2 + $0x68] sm:$0xff] }
 0x5d3   :  { %v22880_v35 = vpop.f32.mrf.mxu1  ;;  %11854 = vmatmul.bf16.gmra.mxu0 %v19384_v39  ;;  %v19345_v39 = vld [vmem:[#allocation2 + $0x2a0] sm:$0xff] }
 0x5d4   :  { %v11284_v34 = vadd.f32 %v11131_v14, %v10603_v26 }
 0x5d6   :  { %10492 = vmatmul.bf16.gmra.mxu2 %v19304_v27  ;;  %v22888_v13 = vadd.f32 %v11812_v9, %v11284_v34  ;;  %v11134_v30 = vpop.f32.mrf.mxu3  ;;  %v19305_v27 = vld [vmem:[#allocation2 + $0x180] sm:$0xff] }
 0x5d8   :  { %v11817_v38 = vpop.f32.mrf.mxu0 }
 0x5d9   :  { %v10453_v7 = vpop.f32.mrf.mxu2 }
 0x5da   :  { %v10604_v63 = vadd.f32 %v10453_v7, %v22437_v22 }
 0x5db   :  { %v22891_v32 = vpop.f32.mrf.mxu1 }
 0x5dc   :  { %v11285_v45 = vadd.f32 %v11134_v30, %v10604_v63 }
 0x5de   :  { %v22896_v37 = vadd.f32 %v11815_v44, %v11285_v45  ;;  %12490 = vmatmul.bf16.gmra.mxu1 %v19415_v59  ;;  %v11136_v52 = vpop.f32.mrf.mxu3 }
 0x5e0   :  { %v11820_v28 = vpop.f32.mrf.mxu0 }
 0x5e1   :  { %v10455_v9 = vpop.f32.mrf.mxu2 }
 0x5e2   :  { %v10605_v22 = vadd.f32 %v10455_v9, %v22449_v41  ;;  %11178 = vmatmul.bf16.gmra.mxu3 %v19345_v39  ;;  %v19416_v41 = vld [vmem:[#allocation2 + $0x140] sm:$0xff]  ;;  %v19386_v9 = vld [vmem:[#allocation2 + $0x70] sm:$0xff] }
 0x5e3   :  { %v22902_v26 = vpop.f32.mrf.mxu1  ;;  %11859 = vmatmul.bf16.gmra.mxu0 %v19385_v42  ;;  %v19346_v42 = vld [vmem:[#allocation2 + $0x2a8] sm:$0xff] }
 0x5e4   :  { %v11286_v14 = vadd.f32 %v11136_v52, %v10605_v22  ;;  %v19306_v22 = vld [vmem:[#allocation2 + $0x188] sm:$0xff] }
 0x5e6   :  { %10497 = vmatmul.bf16.gmra.mxu2 %v19305_v27  ;;  %v22904_v44 = vadd.f32 %v11817_v38, %v11286_v14  ;;  %v11139_v46 = vpop.f32.mrf.mxu3 }
 0x5e8   :  { %v11822_v62 = vpop.f32.mrf.mxu0 }
 0x5e9   :  { %v10458_v34 = vpop.f32.mrf.mxu2 }
 0x5ea   :  { %v10606_v20 = vadd.f32 %v10458_v34, %v22459_v60 }
 0x5eb   :  { %v22907_v30 = vpop.f32.mrf.mxu1 }
 0x5ec   :  { %v11287_v7 = vadd.f32 %v11139_v46, %v10606_v20 }
 0x5ee   :  { %v22909_v63 = vadd.f32 %v11820_v28, %v11287_v7  ;;  %12495 = vmatmul.bf16.gmra.mxu1 %v19416_v41  ;;  %v11141_v15 = vpop.f32.mrf.mxu3 }
 0x5f0   :  { %v11825_v55 = vpop.f32.mrf.mxu0 }
 0x5f1   :  { %v10460_v45 = vpop.f32.mrf.mxu2 }
 0x5f2   :  { %v10607_v59 = vadd.f32 %v10460_v45, %v22467_v6  ;;  %11183 = vmatmul.bf16.gmra.mxu3 %v19346_v42  ;;  %v19417_v6 = vld [vmem:[#allocation2 + $0x148] sm:$0xff] }
 0x5f3   :  { %v22912_v52 = vpop.f32.mrf.mxu1  ;;  %11864 = vmatmul.bf16.gmra.mxu0 %v19386_v9 }
 0x5f4   :  { %v11288_v38 = vadd.f32 %v11141_v15, %v10607_v59  ;;  %v19387_v59 = vld [vmem:[#allocation2 + $0x78] sm:$0xff] }
 0x5f6   :  { %10502 = vmatmul.bf16.gmra.mxu2 %v19306_v22  ;;  %v22914_v60 = vadd.f32 %v11822_v62, %v11288_v38  ;;  %v11144_v28 = vpop.f32.mrf.mxu3  ;;  %v19307_v38 = vld [vmem:[#allocation2 + $0x190] sm:$0xff] }
 0x5f7   :  { %v19347_v22 = vld [vmem:[#allocation2 + $0x2b0] sm:$0xff] }
 0x5f8   :  { %v11827_v39 = vpop.f32.mrf.mxu0 }
 0x5f9   :  { %v10463_v14 = vpop.f32.mrf.mxu2 }
 0x5fa   :  { %v10608_v27 = vadd.f32 %v10463_v14, %v22473_v49 }
 0x5fb   :  { %v22917_v46 = vpop.f32.mrf.mxu1 }
 0x5fc   :  { %v11289_v34 = vadd.f32 %v11144_v28, %v10608_v27 }
 0x5fe   :  { %v22919_v20 = vadd.f32 %v11825_v55, %v11289_v34  ;;  %12500 = vmatmul.bf16.gmra.mxu1 %v19417_v6  ;;  %v11146_v41 = vpop.f32.mrf.mxu3 }
 0x600   :  { %v11830_v15 = vpop.f32.mrf.mxu0 }
 0x601   :  { %v10465_v7 = vpop.f32.mrf.mxu2 }
 0x602   :  { %v10609_v45 = vadd.f32 %v10465_v7, %v22483_v33  ;;  %11188 = vmatmul.bf16.gmra.mxu3 %v19347_v22  ;;  %v19418_v33 = vld [vmem:[#allocation2 + $0x150] sm:$0xff] }
 0x603   :  { %v22922_v9 = vpop.f32.mrf.mxu1  ;;  %11869 = vmatmul.bf16.gmra.mxu0 %v19387_v59 }
 0x604   :  { %v11290_v62 = vadd.f32 %v11146_v41, %v10609_v45  ;;  %24417 = vst [vmem:[#allocation57_spill] sm:$0xff] %v22922_v9  ;;  %v19348_v9 = vld [vmem:[#allocation2 + $0x2b8] sm:$0xff] }
 0x606   :  { %10507 = vmatmul.bf16.gmra.mxu2 %v19307_v38  ;;  %v22924_v49 = vadd.f32 %v11827_v39, %v11290_v62  ;;  %v11149_v55 = vpop.f32.mrf.mxu3  ;;  %v19308_v38 = vld [vmem:[#allocation2 + $0x198] sm:$0xff]  ;;  %v19388_v39 = vld [vmem:[#allocation2 + $0x80] sm:$0xff] }
 0x608   :  { %v11832_v28 = vpop.f32.mrf.mxu0 }
 0x609   :  { %v10468_v42 = vpop.f32.mrf.mxu2 }
 0x60a   :  { %v10610_v14 = vadd.f32 %v10468_v42, %v22491_v16  ;;  %v19490_v16 = vld [vmem:[%s23873_s3 + $0x168] sm:$0xff] }
 0x60b   :  { %v22927_v34 = vpop.f32.mrf.mxu1  ;;  %13155 = vmatpush.bf16.msra.mxu2 %v19490_v16  ;;  %v19309_v16 = vld [vmem:[#allocation2 + $0x1b0] sm:$0xff] }
 0x60c   :  { %v11291_v27 = vadd.f32 %v11149_v55, %v10610_v14  ;;  %24418 = vst [vmem:[#allocation58_spill] sm:$0xff] %v22927_v34  ;;  %v19350_v34 = vld [vmem:[#allocation2 + $0x2d8] sm:$0xff] }
 0x60e   :  { %v22929_v6 = vadd.f32 %v11830_v15, %v11291_v27  ;;  %12505 = vmatmul.bf16.gmra.mxu1 %v19418_v33  ;;  %v11151_v41 = vpop.f32.mrf.mxu3  ;;  %v19530_v15 = vld [vmem:[%s23873_s3 + $0x1a8] sm:$0xff] }
 0x60f   :  { %13836 = vmatpush.bf16.msra.mxu3 %v19530_v15  ;;  %v19349_v15 = vld [vmem:[#allocation2 + $0x2d0] sm:$0xff] }
 0x610   :  { %v11835_v59 = vpop.f32.mrf.mxu0 }
 0x611   :  { %v10470_v7 = vpop.f32.mrf.mxu2 }
 0x612   :  { %v10611_v45 = vadd.f32 %v10470_v7, %v22497_v50  ;;  %11193 = vmatmul.bf16.gmra.mxu3 %v19348_v9  ;;  %v19610_v9 = vld [vmem:[%s23873_s3 + $0x228] sm:$0xff] }
 0x613   :  { %v22932_v22 = vpop.f32.mrf.mxu1  ;;  %11874 = vmatmul.bf16.gmra.mxu0 %v19388_v39  ;;  %15198 = vmatpush.bf16.msra.mxu1 %v19610_v9 }
 0x614   :  { %v11292_v62 = vadd.f32 %v11151_v41, %v10611_v45  ;;  %24419 = vst [vmem:[#allocation59_spill] sm:$0xff] %v22932_v22  ;;  %v19419_v41 = vld [vmem:[#allocation2 + $0x158] sm:$0xff]  ;;  %v19570_v45 = vld [vmem:[%s23873_s3 + $0x1e8] sm:$0xff] }
 0x615   :  { %14517 = vmatpush.bf16.msra.mxu0 %v19570_v45 }
 0x616   :  { %10512 = vmatmul.bf16.gmra.mxu2 %v19308_v38  ;;  %v22940_v42 = vadd.f32 %v11832_v28, %v11292_v62  ;;  %v11154_v55 = vpop.f32.mrf.mxu3 }
 0x618   :  { %v11837_v27 = vpop.f32.mrf.mxu0 }
 0x619   :  { %v10473_v50 = vpop.f32.mrf.mxu2 }
 0x61a   :  { %v10612_v14 = vadd.f32 %v10473_v50, %v22513_v40  ;;  %v19389_v50 = vld [vmem:[#allocation2 + $0x98] sm:$0xff] }
 0x61b   :  { %v22943_v7 = vpop.f32.mrf.mxu1 }
 0x61c   :  { %v11293_v33 = vadd.f32 %v11154_v55, %v10612_v14  ;;  %24420 = vst [vmem:[#allocation60_spill] sm:$0xff] %v22943_v7 }
 0x61e   :  { %v22948_v39 = vadd.f32 %v11835_v59, %v11293_v33  ;;  %12510 = vmatmul.bf16.gmra.mxu1 %v19419_v41  ;;  %v11156_v38 = vpop.f32.mrf.mxu3 }
 0x620   :  { %v11840_v62 = vpop.f32.mrf.mxu0 }
 0x621   :  { %v10475_v28 = vpop.f32.mrf.mxu2 }
 0x622   :  { %v10613_v40 = vadd.f32 %v10475_v28, %v22527_v2  ;;  %11198 = vmatmul.bf16.gmra.mxu3 %v19349_v15  ;;  %v19420_v2 = vld [vmem:[#allocation2 + $0x160] sm:$0xff] }
 0x623   :  { %v22954_v14 = vpop.f32.mrf.mxu1  ;;  %11879 = vmatmul.bf16.gmra.mxu0 %v19389_v50  ;;  %v19390_v15 = vld [vmem:[#allocation2 + $0xa0] sm:$0xff] }
 0x624   :  { %v11294_v55 = vadd.f32 %v11156_v38, %v10613_v40  ;;  %24421 = vst [vmem:[#allocation61_spill] sm:$0xff] %v22954_v14  ;;  %v19310_v14 = vld [vmem:[#allocation2 + $0x1b8] sm:$0xff] }
 0x626   :  { %10517 = vmatmul.bf16.gmra.mxu2 %v19309_v16  ;;  %v22956_v59 = vadd.f32 %v11837_v27, %v11294_v55  ;;  %v11159_v41 = vpop.f32.mrf.mxu3 }
 0x628   :  { %v11842_v7 = vpop.f32.mrf.mxu0 }
 0x629   :  { %v10478_v33 = vpop.f32.mrf.mxu2 }
 0x62a   :  { %v10614_v45 = vadd.f32 %v10478_v33, %v22533_v4 }
 0x62b   :  { %v22959_v22 = vpop.f32.mrf.mxu1 }
 0x62c   :  { %v11295_v9 = vadd.f32 %v11159_v41, %v10614_v45  ;;  %24422 = vst [vmem:[#allocation62_spill] sm:$0xff] %v22959_v22  ;;  %v19311_v22 = vld [vmem:[#allocation2 + $0x1c0] sm:$0xff] }
 0x62e   :  { %v22961_v28 = vadd.f32 %v11840_v62, %v11295_v9  ;;  %12515 = vmatmul.bf16.gmra.mxu1 %v19420_v2  ;;  %v11161_v40 = vpop.f32.mrf.mxu3 }
 0x630   :  { %v11845_v16 = vpop.f32.mrf.mxu0 }
 0x631   :  { %v10480_v38 = vpop.f32.mrf.mxu2 }
 0x632   :  { %v10615_v50 = vadd.f32 %v10480_v38, %v22543_v56  ;;  %11203 = vmatmul.bf16.gmra.mxu3 %v19350_v34  ;;  %v19421_v38 = vld [vmem:[#allocation2 + $0x168] sm:$0xff] }
 0x633   :  { %v22964_v55 = vpop.f32.mrf.mxu1  ;;  %11884 = vmatmul.bf16.gmra.mxu0 %v19390_v15 }
 0x634   :  { %v11296_v27 = vadd.f32 %v11161_v40, %v10615_v50  ;;  %24423 = vst [vmem:[#allocation63_spill] sm:$0xff] %v22964_v55 }
 0x636   :  { %10522 = vmatmul.bf16.gmra.mxu2 %v19310_v14  ;;  %v22966_v4 = vadd.f32 %v11842_v7, %v11296_v27  ;;  %v11164_v62 = vpop.f32.mrf.mxu3  ;;  %v19391_v14 = vld [vmem:[#allocation2 + $0xa8] sm:$0xff] }
 0x638   :  { %v11847_v45 = vpop.f32.mrf.mxu0 }
 0x639   :  { %v10483_v33 = vpop.f32.mrf.mxu2 }
 0x63a   :  { %v10616_v41 = vadd.f32 %v10483_v33, %v22551_v51  ;;  %v19351_v51 = vld [vmem:[#allocation2 + $0x2e0] sm:$0xff] }
 0x63b   :  { %v12481_v2 = vpop.f32.mrf.mxu1 }
 0x63c   :  { %v11297_v9 = vadd.f32 %v11164_v62, %v10616_v41  ;;  %v22970_v56 = vadd.f32 %v12481_v2, %v22851_v10 }
 0x63e   :  { %v22972_v40 = vadd.f32 %v11845_v16, %v11297_v9  ;;  %12520 = vmatmul.bf16.gmra.mxu1 %v19421_v38  ;;  %v11166_v15 = vpop.f32.mrf.mxu3 }
 0x640   :  { %v11850_v7 = vpop.f32.mrf.mxu0 }
 0x641   :  { %v10485_v50 = vpop.f32.mrf.mxu2 }
 0x642   :  { %v10617_v34 = vadd.f32 %v10485_v50, %v22557_v58  ;;  %11208 = vmatmul.bf16.gmra.mxu3 %v19351_v51  ;;  %v19422_v50 = vld [vmem:[#allocation2 + $0x170] sm:$0xff]  ;;  %v19312_v51 = vld [vmem:[#allocation2 + $0x1c8] sm:$0xff] }
 0x643   :  { %v12483_v55 = vpop.f32.mrf.mxu1  ;;  %11889 = vmatmul.bf16.gmra.mxu0 %v19391_v14 }
 0x644   :  { %v11298_v27 = vadd.f32 %v11166_v15, %v10617_v34  ;;  %v22976_v33 = vadd.f32 %v12483_v55, %v22862_v8  ;;  %v19392_v34 = vld [vmem:[#allocation2 + $0xb0] sm:$0xff] }
 0x646   :  { %10527 = vmatmul.bf16.gmra.mxu2 %v19311_v22  ;;  %v22978_v10 = vadd.f32 %v11847_v45, %v11298_v27  ;;  %v11169_v62 = vpop.f32.mrf.mxu3 }
 0x648   :  { %v11852_v9 = vpop.f32.mrf.mxu0 }
 0x649   :  { %v10488_v16 = vpop.f32.mrf.mxu2 }
 0x64a   :  { %v10618_v41 = vadd.f32 %v10488_v16, %v22572_v36  ;;  %v19352_v36 = vld [vmem:[#allocation2 + $0x2e8] sm:$0xff]  ;;  %v19489_v16 = vld [vmem:[%s23873_s3 + $0x160] sm:$0xff] }
 0x64b   :  { %v12486_v2 = vpop.f32.mrf.mxu1  ;;  %13156 = vmatpush.bf16.msra.mxu2 %v19489_v16 }
 0x64c   :  { %v11299_v58 = vadd.f32 %v11169_v62, %v10618_v41  ;;  %v22982_v38 = vadd.f32 %v12486_v2, %v22867_v25 }
 0x64e   :  { %v22984_v15 = vadd.f32 %v11850_v7, %v11299_v58  ;;  %12525 = vmatmul.bf16.gmra.mxu1 %v19422_v50  ;;  %v11171_v55 = vpop.f32.mrf.mxu3  ;;  %v19529_v7 = vld [vmem:[%s23873_s3 + $0x1a0] sm:$0xff] }
 0x64f   :  { %13837 = vmatpush.bf16.msra.mxu3 %v19529_v7  ;;  %v19313_v7 = vld [vmem:[#allocation2 + $0x1d0] sm:$0xff] }
 0x650   :  { %v11855_v45 = vpop.f32.mrf.mxu0 }
 0x651   :  { %v10490_v8 = vpop.f32.mrf.mxu2 }
 0x652   :  { %v10619_v22 = vadd.f32 %v10490_v8, %v22580_v57  ;;  %11213 = vmatmul.bf16.gmra.mxu3 %v19352_v36 }
 0x653   :  { %v12488_v27 = vpop.f32.mrf.mxu1  ;;  %11894 = vmatmul.bf16.gmra.mxu0 %v19392_v34 }
 0x654   :  { %v11300_v14 = vadd.f32 %v11171_v55, %v10619_v22  ;;  %v22991_v25 = vadd.f32 %v12488_v27, %v22872_v54  ;;  %v19423_v55 = vld [vmem:[#allocation2 + $0x178] sm:$0xff]  ;;  %v19569_v22 = vld [vmem:[%s23873_s3 + $0x1e0] sm:$0xff] }
 0x655   :  { %14518 = vmatpush.bf16.msra.mxu0 %v19569_v22 }
 0x656   :  { %10532 = vmatmul.bf16.gmra.mxu2 %v19312_v51  ;;  %v22996_v57 = vadd.f32 %v11852_v9, %v11300_v14  ;;  %v11174_v41 = vpop.f32.mrf.mxu3  ;;  %v19609_v9 = vld [vmem:[%s23873_s3 + $0x220] sm:$0xff]  ;;  %v19393_v51 = vld [vmem:[#allocation2 + $0xb8] sm:$0xff] }
 0x657   :  { %15199 = vmatpush.bf16.msra.mxu1 %v19609_v9 }
 0x658   :  { %v11857_v2 = vpop.f32.mrf.mxu0 }
 0x659   :  { %v10493_v62 = vpop.f32.mrf.mxu2 }
 0x65a   :  { %v10620_v58 = vadd.f32 %v10493_v62, %v22592_v31  ;;  %v19353_v62 = vld [vmem:[#allocation2 + $0x2f0] sm:$0xff] }
 0x65b   :  { %v12491_v8 = vpop.f32.mrf.mxu1 }
 0x65c   :  { %v11301_v50 = vadd.f32 %v11174_v41, %v10620_v58  ;;  %v23000_v54 = vadd.f32 %v12491_v8, %v22877_v23 }
 0x65e   :  { %v23005_v34 = vadd.f32 %v11855_v45, %v11301_v50  ;;  %12530 = vmatmul.bf16.gmra.mxu1 %v19423_v55  ;;  %v11176_v14 = vpop.f32.mrf.mxu3 }
 0x660   :  { %v11860_v23 = vpop.f32.mrf.mxu0 }
 0x661   :  { %v10495_v31 = vpop.f32.mrf.mxu2 }
 0x662   :  { %v10621_v27 = vadd.f32 %v10495_v31, %v22613_v3  ;;  %11218 = vmatmul.bf16.gmra.mxu3 %v19353_v62  ;;  %v19424_v31 = vld [vmem:[#allocation2 + $0x180] sm:$0xff]  ;;  %v19314_v62 = vld [vmem:[#allocation2 + $0x1d8] sm:$0xff] }
 0x663   :  { %v12493_v16 = vpop.f32.mrf.mxu1  ;;  %11899 = vmatmul.bf16.gmra.mxu0 %v19393_v51 }
 0x664   :  { %v11302_v36 = vadd.f32 %v11176_v14, %v10621_v27  ;;  %v23012_v45 = vadd.f32 %v12493_v16, %v22888_v13 }
 0x666   :  { %10537 = vmatmul.bf16.gmra.mxu2 %v19313_v7  ;;  %v23014_v41 = vadd.f32 %v11857_v2, %v11302_v36  ;;  %v11179_v50 = vpop.f32.mrf.mxu3  ;;  %v19394_v36 = vld [vmem:[#allocation2 + $0xc0] sm:$0xff] }
 0x668   :  { %v11862_v55 = vpop.f32.mrf.mxu0 }
 0x669   :  { %v10498_v58 = vpop.f32.mrf.mxu2 }
 0x66a   :  { %v10622_v8 = vadd.f32 %v10498_v58, %v22621_v61  ;;  %v19354_v61 = vld [vmem:[#allocation2 + $0x2f8] sm:$0xff] }
 0x66b   :  { %v12496_v22 = vpop.f32.mrf.mxu1 }
 0x66c   :  { %v11303_v3 = vadd.f32 %v11179_v50, %v10622_v8  ;;  %v23018_v9 = vadd.f32 %v12496_v22, %v22896_v37 }
 0x66e   :  { %v23020_v14 = vadd.f32 %v11860_v23, %v11303_v3  ;;  %12535 = vmatmul.bf16.gmra.mxu1 %v19424_v31  ;;  %v11181_v27 = vpop.f32.mrf.mxu3 }
 0x670   :  { %v11865_v2 = vpop.f32.mrf.mxu0 }
 0x671   :  { %v10500_v13 = vpop.f32.mrf.mxu2 }
 0x672   :  { %v10623_v51 = vadd.f32 %v10500_v13, %v22646_v1  ;;  %11223 = vmatmul.bf16.gmra.mxu3 %v19354_v61  ;;  %v19425_v13 = vld [vmem:[#allocation2 + $0x188] sm:$0xff]  ;;  %v19315_v61 = vld [vmem:[#allocation2 + $0x1e0] sm:$0xff] }
 0x673   :  { %v12498_v7 = vpop.f32.mrf.mxu1  ;;  %11904 = vmatmul.bf16.gmra.mxu0 %v19394_v36 }
 0x674   :  { %v11304_v16 = vadd.f32 %v11181_v27, %v10623_v51  ;;  %v23024_v58 = vadd.f32 %v12498_v7, %v22904_v44 }
 0x676   :  { %10542 = vmatmul.bf16.gmra.mxu2 %v19314_v62  ;;  %v23026_v37 = vadd.f32 %v11862_v55, %v11304_v16  ;;  %v11184_v50 = vpop.f32.mrf.mxu3  ;;  %v19395_v16 = vld [vmem:[#allocation2 + $0xc8] sm:$0xff] }
 0x678   :  { %v11867_v3 = vpop.f32.mrf.mxu0 }
 0x679   :  { %v10503_v23 = vpop.f32.mrf.mxu2 }
 0x67a   :  { %v10624_v8 = vadd.f32 %v10503_v23, %v22656_v19  ;;  %v19355_v19 = vld [vmem:[#allocation2 + $0x300] sm:$0xff] }
 0x67b   :  { %v12501_v22 = vpop.f32.mrf.mxu1 }
 0x67c   :  { %v11305_v1 = vadd.f32 %v11184_v50, %v10624_v8  ;;  %v23030_v31 = vadd.f32 %v12501_v22, %v22909_v63 }
 0x67e   :  { %v23032_v27 = vadd.f32 %v11865_v2, %v11305_v1  ;;  %12540 = vmatmul.bf16.gmra.mxu1 %v19425_v13  ;;  %v11186_v51 = vpop.f32.mrf.mxu3 }
 0x680   :  { %v11870_v55 = vpop.f32.mrf.mxu0 }
 0x681   :  { %v10505_v44 = vpop.f32.mrf.mxu2 }
 0x682   :  { %v10625_v36 = vadd.f32 %v10505_v44, %v22665_v5  ;;  %11228 = vmatmul.bf16.gmra.mxu3 %v19355_v19  ;;  %v19426_v44 = vld [vmem:[#allocation2 + $0x190] sm:$0xff]  ;;  %v19316_v19 = vld [vmem:[#allocation2 + $0x1e8] sm:$0xff] }
 0x683   :  { %v12503_v62 = vpop.f32.mrf.mxu1  ;;  %11909 = vmatmul.bf16.gmra.mxu0 %v19395_v16 }
 0x684   :  { %v11306_v7 = vadd.f32 %v11186_v51, %v10625_v36  ;;  %v23036_v23 = vadd.f32 %v12503_v62, %v22914_v60 }
 0x686   :  { %10547 = vmatmul.bf16.gmra.mxu2 %v19315_v61  ;;  %v23038_v63 = vadd.f32 %v11867_v3, %v11306_v7  ;;  %v11189_v50 = vpop.f32.mrf.mxu3  ;;  %v19396_v7 = vld [vmem:[#allocation2 + $0xd0] sm:$0xff] }
 0x688   :  { %v11872_v1 = vpop.f32.mrf.mxu0 }
 0x689   :  { %v10508_v2 = vpop.f32.mrf.mxu2 }
 0x68a   :  { %v10626_v8 = vadd.f32 %v10508_v2, %v22671_v21  ;;  %v19356_v21 = vld [vmem:[#allocation2 + $0x308] sm:$0xff]  ;;  %v19488_v2 = vld [vmem:[%s23873_s3 + $0x158] sm:$0xff] }
 0x68b   :  { %v12506_v22 = vpop.f32.mrf.mxu1  ;;  %13157 = vmatpush.bf16.msra.mxu2 %v19488_v2 }
 0x68c   :  { %v11307_v5 = vadd.f32 %v11189_v50, %v10626_v8  ;;  %v23042_v13 = vadd.f32 %v12506_v22, %v22919_v20 }
 0x68e   :  { %v23044_v51 = vadd.f32 %v11870_v55, %v11307_v5  ;;  %12545 = vmatmul.bf16.gmra.mxu1 %v19426_v44  ;;  %v11191_v36 = vpop.f32.mrf.mxu3  ;;  %v19528_v55 = vld [vmem:[%s23873_s3 + $0x198] sm:$0xff] }
 0x68f   :  { %13838 = vmatpush.bf16.msra.mxu3 %v19528_v55 }
 0x690   :  { %v11875_v3 = vpop.f32.mrf.mxu0 }
 0x691   :  { %v10510_v60 = vpop.f32.mrf.mxu2 }
 0x692   :  { %v10627_v16 = vadd.f32 %v10510_v60, %v22682_v24  ;;  %11233 = vmatmul.bf16.gmra.mxu3 %v19356_v21  ;;  %v19397_v21 = vld [vmem:[#allocation2 + $0xd8] sm:$0xff] }
 0x693   :  { %v12508_v61 = vpop.f32.mrf.mxu1  ;;  %11914 = vmatmul.bf16.gmra.mxu0 %v19396_v7 }
 0x694   :  { %v11308_v62 = vadd.f32 %v11191_v36, %v10627_v16  ;;  %v23051_v20 = vadd.f32 %v12508_v61, %v22924_v49  ;;  %v19427_v36 = vld [vmem:[#allocation2 + $0x198] sm:$0xff] }
 0x695   :  { %v19568_v16 = vld [vmem:[%s23873_s3 + $0x1d8] sm:$0xff] }
 0x696   :  { %10552 = vmatmul.bf16.gmra.mxu2 %v19316_v19  ;;  %v23056_v24 = vadd.f32 %v11872_v1, %v11308_v62  ;;  %v11194_v8 = vpop.f32.mrf.mxu3  ;;  %14519 = vmatpush.bf16.msra.mxu0 %v19568_v16  ;;  %v19608_v1 = vld [vmem:[%s23873_s3 + $0x218] sm:$0xff] }
 0x697   :  { %15200 = vmatpush.bf16.msra.mxu1 %v19608_v1  ;;  %v24425_v61 = vld [vmem:[#allocation43_spill] sm:$0xff] }
 0x698   :  { %v11877_v22 = vpop.f32.mrf.mxu0 }
 0x699   :  { %v10513_v50 = vpop.f32.mrf.mxu2 }
 0x69a   :  { %v10628_v5 = vadd.f32 %v10513_v50, %v22690_v0  ;;  %v19317_v50 = vld [vmem:[#allocation2 + $0x1f0] sm:$0xff] }
 0x69b   :  { %v12511_v60 = vpop.f32.mrf.mxu1 }
 0x69c   :  { %v11309_v44 = vadd.f32 %v11194_v8, %v10628_v5  ;;  %v23060_v49 = vadd.f32 %v12511_v60, %v22929_v6  ;;  %v19357_v8 = vld [vmem:[#allocation2 + $0x310] sm:$0xff] }
 0x69e   :  { %24424 = vst [vmem:[#allocation64_spill] sm:$0xff] %v23060_v49  ;;  %v23065_v7 = vadd.f32 %v11875_v3, %v11309_v44  ;;  %12550 = vmatmul.bf16.gmra.mxu1 %v19427_v36  ;;  %v11196_v62 = vpop.f32.mrf.mxu3  ;;  %v19318_v49 = vld [vmem:[#allocation2 + $0x1f8] sm:$0xff] }
 0x6a0   :  { %v11880_v6 = vpop.f32.mrf.mxu0 }
 0x6a1   :  { %v10515_v0 = vpop.f32.mrf.mxu2 }
 0x6a2   :  { %v10629_v19 = vadd.f32 %v10515_v0, %v24425_v61  ;;  %11238 = vmatmul.bf16.gmra.mxu3 %v19357_v8  ;;  %v19428_v61 = vld [vmem:[#allocation2 + $0x1a0] sm:$0xff] }
 0x6a3   :  { %v12513_v55 = vpop.f32.mrf.mxu1  ;;  %11919 = vmatmul.bf16.gmra.mxu0 %v19397_v21 }
 0x6a4   :  { %v11310_v2 = vadd.f32 %v11196_v62, %v10629_v19  ;;  %v23072_v3 = vadd.f32 %v12513_v55, %v22940_v42  ;;  %v24428_v55 = vld [vmem:[#allocation44_spill] sm:$0xff] }
 0x6a6   :  { %24426 = vst [vmem:[#allocation65_spill] sm:$0xff] %v23072_v3  ;;  %10557 = vmatmul.bf16.gmra.mxu2 %v19317_v50  ;;  %v23074_v5 = vadd.f32 %v11877_v22, %v11310_v2  ;;  %v11199_v60 = vpop.f32.mrf.mxu3  ;;  %v19398_v2 = vld [vmem:[#allocation2 + $0xe0] sm:$0xff] }
 0x6a8   :  { %v11882_v16 = vpop.f32.mrf.mxu0 }
 0x6a9   :  { %v10518_v44 = vpop.f32.mrf.mxu2 }
 0x6aa   :  { %v10630_v36 = vadd.f32 %v10518_v44, %v22710_v43  ;;  %v19358_v43 = vld [vmem:[#allocation2 + $0x318] sm:$0xff] }
 0x6ab   :  { %v12516_v0 = vpop.f32.mrf.mxu1 }
 0x6ac   :  { %v11311_v1 = vadd.f32 %v11199_v60, %v10630_v36  ;;  %v23078_v62 = vadd.f32 %v12516_v0, %v22948_v39  ;;  %v24430_v36 = vld [vmem:[#allocation46_spill] sm:$0xff] }
 0x6ae   :  { %24427 = vst [vmem:[#allocation67_spill] sm:$0xff] %v23078_v62  ;;  %v23080_v19 = vadd.f32 %v11880_v6, %v11311_v1  ;;  %12555 = vmatmul.bf16.gmra.mxu1 %v19428_v61  ;;  %v11201_v21 = vpop.f32.mrf.mxu3  ;;  %v19319_v62 = vld [vmem:[#allocation2 + $0x200] sm:$0xff] }
 0x6b0   :  { %v11885_v22 = vpop.f32.mrf.mxu0 }
 0x6b1   :  { %v10520_v42 = vpop.f32.mrf.mxu2 }
 0x6b2   :  { %v10631_v50 = vadd.f32 %v10520_v42, %v24428_v55  ;;  %11243 = vmatmul.bf16.gmra.mxu3 %v19358_v43  ;;  %v19429_v55 = vld [vmem:[#allocation2 + $0x1b8] sm:$0xff] }
 0x6b3   :  { %v12518_v3 = vpop.f32.mrf.mxu1  ;;  %11924 = vmatmul.bf16.gmra.mxu0 %v19398_v2 }
 0x6b4   :  { %v11312_v8 = vadd.f32 %v11201_v21, %v10631_v50  ;;  %v23084_v44 = vadd.f32 %v12518_v3, %v22956_v59 }
 0x6b6   :  { %24429 = vst [vmem:[#allocation68_spill] sm:$0xff] %v23084_v44  ;;  %10562 = vmatmul.bf16.gmra.mxu2 %v19318_v49  ;;  %v23086_v39 = vadd.f32 %v11882_v16, %v11312_v8  ;;  %v11204_v60 = vpop.f32.mrf.mxu3  ;;  %v24432_v49 = vld [vmem:[#allocation48_spill] sm:$0xff]  ;;  %v19399_v8 = vld [vmem:[#allocation2 + $0xe8] sm:$0xff] }
 0x6b8   :  { %v11887_v0 = vpop.f32.mrf.mxu0 }
 0x6b9   :  { %v10523_v6 = vpop.f32.mrf.mxu2 }
 0x6ba   :  { %v10632_v1 = vadd.f32 %v10523_v6, %v24430_v36  ;;  %v19359_v6 = vld [vmem:[#allocation2 + $0x320] sm:$0xff] }
 0x6bb   :  { %v12521_v42 = vpop.f32.mrf.mxu1 }
 0x6bc   :  { %v11313_v61 = vadd.f32 %v11204_v60, %v10632_v1  ;;  %v23090_v21 = vadd.f32 %v12521_v42, %v22961_v28  ;;  %v24434_v1 = vld [vmem:[#allocation50_spill] sm:$0xff] }
 0x6be   :  { %24431 = vst [vmem:[#allocation69_spill] sm:$0xff] %v23090_v21  ;;  %v23092_v50 = vadd.f32 %v11885_v22, %v11313_v61  ;;  %12560 = vmatmul.bf16.gmra.mxu1 %v19429_v55  ;;  %v11206_v3 = vpop.f32.mrf.mxu3  ;;  %v19320_v21 = vld [vmem:[#allocation2 + $0x208] sm:$0xff] }
 0x6c0   :  { %v11890_v16 = vpop.f32.mrf.mxu0 }
 0x6c1   :  { %v10525_v59 = vpop.f32.mrf.mxu2 }
 0x6c2   :  { %v10633_v2 = vadd.f32 %v10525_v59, %v24432_v49  ;;  %11248 = vmatmul.bf16.gmra.mxu3 %v19359_v6  ;;  %v19430_v49 = vld [vmem:[#allocation2 + $0x1c0] sm:$0xff] }
 0x6c3   :  { %v12523_v44 = vpop.f32.mrf.mxu1  ;;  %11929 = vmatmul.bf16.gmra.mxu0 %v19399_v8 }
 0x6c4   :  { %v11314_v43 = vadd.f32 %v11206_v3, %v10633_v2  ;;  %v23096_v60 = vadd.f32 %v12523_v44, %v22966_v4 }
 0x6c6   :  { %24433 = vst [vmem:[#allocation70_spill] sm:$0xff] %v23096_v60  ;;  %10567 = vmatmul.bf16.gmra.mxu2 %v19319_v62  ;;  %v23098_v28 = vadd.f32 %v11887_v0, %v11314_v43  ;;  %v11209_v36 = vpop.f32.mrf.mxu3  ;;  %v24436_v62 = vld [vmem:[#allocation51_spill] sm:$0xff]  ;;  %v19400_v43 = vld [vmem:[#allocation2 + $0xf0] sm:$0xff] }
 0x6c8   :  { %v11892_v42 = vpop.f32.mrf.mxu0 }
 0x6c9   :  { %v10528_v22 = vpop.f32.mrf.mxu2 }
 0x6ca   :  { %v10634_v61 = vadd.f32 %v10528_v22, %v24434_v1  ;;  %v19360_v22 = vld [vmem:[#allocation2 + $0x328] sm:$0xff] }
 0x6cb   :  { %v12526_v59 = vpop.f32.mrf.mxu1 }
 0x6cc   :  { %v11315_v55 = vadd.f32 %v11209_v36, %v10634_v61  ;;  %v23102_v3 = vadd.f32 %v12526_v59, %v22972_v40  ;;  %v19487_v36 = vld [vmem:[%s23873_s3 + $0x150] sm:$0xff]  ;;  %v24438_v59 = vld [vmem:[#allocation52_spill] sm:$0xff] }
 0x6cd   :  { %13158 = vmatpush.bf16.msra.mxu2 %v19487_v36 }
 0x6ce   :  { %24435 = vst [vmem:[#allocation5_spill] sm:$0xff] %v23102_v3  ;;  %v23104_v2 = vadd.f32 %v11890_v16, %v11315_v55  ;;  %12565 = vmatmul.bf16.gmra.mxu1 %v19430_v49  ;;  %v11211_v44 = vpop.f32.mrf.mxu3  ;;  %v19527_v16 = vld [vmem:[%s23873_s3 + $0x190] sm:$0xff]  ;;  %v19322_v3 = vld [vmem:[#allocation2 + $0x218] sm:$0xff] }
 0x6cf   :  { %13839 = vmatpush.bf16.msra.mxu3 %v19527_v16  ;;  %v19401_v16 = vld [vmem:[#allocation2 + $0xf8] sm:$0xff] }
 0x6d0   :  { %v11895_v0 = vpop.f32.mrf.mxu0 }
 0x6d1   :  { %v10530_v4 = vpop.f32.mrf.mxu2 }
 0x6d2   :  { %v10635_v8 = vadd.f32 %v10530_v4, %v24436_v62  ;;  %11253 = vmatmul.bf16.gmra.mxu3 %v19360_v22  ;;  %v24440_v22 = vld [vmem:[#allocation53_spill] sm:$0xff] }
 0x6d3   :  { %v12528_v60 = vpop.f32.mrf.mxu1  ;;  %11934 = vmatmul.bf16.gmra.mxu0 %v19400_v43 }
 0x6d4   :  { %v11316_v6 = vadd.f32 %v11211_v44, %v10635_v8  ;;  %v23111_v40 = vadd.f32 %v12528_v60, %v22978_v10  ;;  %v19431_v60 = vld [vmem:[#allocation2 + $0x1c8] sm:$0xff] }
 0x6d6   :  { %24437 = vst [vmem:[#allocation45_spill] sm:$0xff] %v23111_v40  ;;  %10572 = vmatmul.bf16.gmra.mxu2 %v19320_v21  ;;  %v23116_v1 = vadd.f32 %v11892_v42, %v11316_v6  ;;  %v11214_v55 = vpop.f32.mrf.mxu3  ;;  %v19567_v21 = vld [vmem:[%s23873_s3 + $0x1d0] sm:$0xff] }
 0x6d7   :  { %14520 = vmatpush.bf16.msra.mxu0 %v19567_v21  ;;  %v19607_v42 = vld [vmem:[%s23873_s3 + $0x210] sm:$0xff] }
 0x6d8   :  { %v11897_v4 = vpop.f32.mrf.mxu0  ;;  %15201 = vmatpush.bf16.msra.mxu1 %v19607_v42  ;;  %v24442_v21 = vld [vmem:[#allocation54_spill] sm:$0xff] }
 0x6d9   :  { %v10533_v61 = vpop.f32.mrf.mxu2 }
 0x6da   :  { %v10636_v49 = vadd.f32 %v10533_v61, %v24438_v59  ;;  %v19321_v59 = vld [vmem:[#allocation2 + $0x210] sm:$0xff] }
 0x6db   :  { %v12531_v62 = vpop.f32.mrf.mxu1 }
 0x6dc   :  { %v11317_v44 = vadd.f32 %v11214_v55, %v10636_v49  ;;  %v23120_v10 = vadd.f32 %v12531_v62, %v22984_v15  ;;  %v19361_v49 = vld [vmem:[#allocation2 + $0x330] sm:$0xff] }
 0x6de   :  { %24439 = vst [vmem:[#allocation4_spill] sm:$0xff] %v23120_v10  ;;  %v23125_v8 = vadd.f32 %v11895_v0, %v11317_v44  ;;  %12570 = vmatmul.bf16.gmra.mxu1 %v19431_v60  ;;  %v11216_v6 = vpop.f32.mrf.mxu3 }
 0x6e0   :  { %v11900_v15 = vpop.f32.mrf.mxu0 }
 0x6e1   :  { %v10535_v43 = vpop.f32.mrf.mxu2 }
 0x6e2   :  { %v10637_v36 = vadd.f32 %v10535_v43, %v24440_v22  ;;  %11258 = vmatmul.bf16.gmra.mxu3 %v19361_v49 }
 0x6e3   :  { %v12533_v55 = vpop.f32.mrf.mxu1  ;;  %11939 = vmatmul.bf16.gmra.mxu0 %v19401_v16 }
 0x6e4   :  { %v11318_v61 = vadd.f32 %v11216_v6, %v10637_v36  ;;  %v23132_v0 = vadd.f32 %v12533_v55, %v22996_v57  ;;  %v19432_v36 = vld [vmem:[#allocation2 + $0x1d0] sm:$0xff]  ;;  %v24443_v55 = vld [vmem:[#allocation55_spill] sm:$0xff] }
 0x6e6   :  { %24441 = vst [vmem:[#allocation47_spill] sm:$0xff] %v23132_v0  ;;  %10577 = vmatmul.bf16.gmra.mxu2 %v19321_v59  ;;  %v23134_v44 = vadd.f32 %v11897_v4, %v11318_v61  ;;  %v11219_v60 = vpop.f32.mrf.mxu3  ;;  %v19402_v61 = vld [vmem:[#allocation2 + $0x100] sm:$0xff] }
 0x6e8   :  { %v11902_v10 = vpop.f32.mrf.mxu0 }
 0x6e9   :  { %v10538_v62 = vpop.f32.mrf.mxu2 }
 0x6ea   :  { %v10638_v42 = vadd.f32 %v10538_v62, %v24442_v21  ;;  %v19362_v62 = vld [vmem:[#allocation2 + $0x338] sm:$0xff] }
 0x6eb   :  { %v12536_v22 = vpop.f32.mrf.mxu1 }
 0x6ec   :  { %v11319_v43 = vadd.f32 %v11219_v60, %v10638_v42  ;;  %v23138_v6 = vadd.f32 %v12536_v22, %v23005_v34  ;;  %v24444_v42 = vld [vmem:[#allocation56_spill] sm:$0xff] }
 0x6ee   :  { %v23140_v40 = vadd.f32 %v11900_v15, %v11319_v43  ;;  %12575 = vmatmul.bf16.gmra.mxu1 %v19432_v36  ;;  %v11221_v16 = vpop.f32.mrf.mxu3 }
 0x6f0   :  { %v11905_v4 = vpop.f32.mrf.mxu0 }
 0x6f1   :  { %v10540_v57 = vpop.f32.mrf.mxu2 }
 0x6f2   :  { %v10639_v59 = vadd.f32 %v10540_v57, %v24443_v55  ;;  %11263 = vmatmul.bf16.gmra.mxu3 %v19362_v62  ;;  %v19433_v55 = vld [vmem:[#allocation2 + $0x1d8] sm:$0xff]  ;;  %v19485_v62 = vld [vmem:[%s23873_s3 + $0x140] sm:$0xff] }
 0x6f3   :  { %v12538_v0 = vpop.f32.mrf.mxu1  ;;  %11944 = vmatmul.bf16.gmra.mxu0 %v19402_v61 }
 0x6f4   :  { %v11320_v49 = vadd.f32 %v11221_v16, %v10639_v59  ;;  %v23144_v60 = vadd.f32 %v12538_v0, %v23014_v41  ;;  %v19486_v41 = vld [vmem:[%s23873_s3 + $0x148] sm:$0xff] }
 0x6f5   :  { %13159 = vmatpush.bf16.msra.mxu2 %v19486_v41 }
 0x6f6   :  { %10582 = vmatmul.bf16.gmra.mxu2 %v19322_v3  ;;  %v23146_v34 = vadd.f32 %v11902_v10, %v11320_v49  ;;  %v11224_v21 = vpop.f32.mrf.mxu3  ;;  %v19526_v3 = vld [vmem:[%s23873_s3 + $0x188] sm:$0xff] }
 0x6f7   :  { %v19566_v10 = vld [vmem:[%s23873_s3 + $0x1c8] sm:$0xff]  ;;  %13840 = vmatpush.bf16.msra.mxu3 %v19526_v3 }
 0x6f8   :  { %v11907_v22 = vpop.f32.mrf.mxu0  ;;  %v19403_v49 = vld [vmem:[#allocation2 + $0x108] sm:$0xff]  ;;  %14521 = vmatpush.bf16.msra.mxu0 %v19566_v10 }
 0x6f9   :  { %v10543_v15 = vpop.f32.mrf.mxu2  ;;  %13160 = vmatpush.bf16.msra.mxu2 %v19485_v62 }
 0x6fa   :  { %v10640_v43 = vadd.f32 %v10543_v15, %v24444_v42  ;;  %v19525_v15 = vld [vmem:[%s23873_s3 + $0x180] sm:$0xff] }
 0x6fb   :  { %v12541_v57 = vpop.f32.mrf.mxu1  ;;  %13841 = vmatpush.bf16.msra.mxu3 %v19525_v15 }
 0x6fc   :  { %v11321_v36 = vadd.f32 %v11224_v21, %v10640_v43  ;;  %v23150_v16 = vadd.f32 %v12541_v57, %v23020_v14  ;;  %v19565_v21 = vld [vmem:[%s23873_s3 + $0x1c0] sm:$0xff] }
 0x6fd   :  { %v19363_v57 = vld [vmem:[#allocation2 + $0x340] sm:$0xff]  ;;  %14522 = vmatpush.bf16.msra.mxu0 %v19565_v21  ;;  %v19404_v21 = vld [vmem:[#allocation2 + $0x110] sm:$0xff] }
 0x6fe   :  { %24445 = vst [vmem:[#allocation7_spill] sm:$0xff] %v23150_v16  ;;  %v23152_v59 = vadd.f32 %v11905_v4, %v11321_v36  ;;  %12580 = vmatmul.bf16.gmra.mxu1 %v19433_v55  ;;  %v11226_v61 = vpop.f32.mrf.mxu3  ;;  %v19323_v36 = vld [vmem:[#allocation2 + $0x220] sm:$0xff] }
 0x700   :  { %v11910_v4 = vpop.f32.mrf.mxu0 }
 0x701   :  { %v10545_v0 = vpop.f32.mrf.mxu2 }
 0x702   :  { %v10641_v14 = vadd.f32 %v10545_v0, %v22810_v47  ;;  %11268 = vmatmul.bf16.gmra.mxu3 %v19363_v57  ;;  %v19324_v57 = vld [vmem:[#allocation2 + $0x228] sm:$0xff] }
 0x703   :  { %v12543_v43 = vpop.f32.mrf.mxu1  ;;  %11949 = vmatmul.bf16.gmra.mxu0 %v19403_v49 }
 0x704   :  { %v11322_v42 = vadd.f32 %v11226_v61, %v10641_v14  ;;  %v23174_v47 = vadd.f32 %v12543_v43, %v23026_v37  ;;  %v19434_v37 = vld [vmem:[#allocation2 + $0x1e0] sm:$0xff] }
 0x706   :  { %10587 = vmatmul.bf16.gmra.mxu2 %v19323_v36  ;;  %v23176_v55 = vadd.f32 %v11907_v22, %v11322_v42  ;;  %v11229_v3 = vpop.f32.mrf.mxu3 }
 0x708   :  { %v11912_v0 = vpop.f32.mrf.mxu0 }
 0x709   :  { %v10548_v41 = vpop.f32.mrf.mxu2 }
 0x70a   :  { %v10642_v10 = vadd.f32 %v10548_v41, %v22826_v29  ;;  %v19364_v29 = vld [vmem:[#allocation2 + $0x348] sm:$0xff] }
 0x70b   :  { %v12546_v14 = vpop.f32.mrf.mxu1 }
 0x70c   :  { %v11323_v61 = vadd.f32 %v11229_v3, %v10642_v10  ;;  %v23180_v16 = vadd.f32 %v12546_v14, %v23032_v27 }
 0x70e   :  { %v23182_v43 = vadd.f32 %v11910_v4, %v11323_v61  ;;  %12585 = vmatmul.bf16.gmra.mxu1 %v19434_v37  ;;  %v11231_v62 = vpop.f32.mrf.mxu3 }
 0x710   :  { %v11915_v15 = vpop.f32.mrf.mxu0 }
 0x711   :  { %v10550_v49 = vpop.f32.mrf.mxu2 }
 0x712   :  { %v10643_v22 = vadd.f32 %v10550_v49, %v22841_v53  ;;  %11273 = vmatmul.bf16.gmra.mxu3 %v19364_v29  ;;  %v19435_v49 = vld [vmem:[#allocation2 + $0x1e8] sm:$0xff] }
 0x713   :  { %v12548_v36 = vpop.f32.mrf.mxu1  ;;  %11954 = vmatmul.bf16.gmra.mxu0 %v19404_v21  ;;  %v19453_v29 = vld [vmem:[#allocation2 + $0x248] sm:$0xff] }
 0x714   :  { %v11324_v42 = vadd.f32 %v11231_v62, %v10643_v22  ;;  %v23186_v41 = vadd.f32 %v12548_v36, %v23038_v63  ;;  %v19606_v63 = vld [vmem:[%s23873_s3 + $0x208] sm:$0xff] }
 0x715   :  { %15202 = vmatpush.bf16.msra.mxu1 %v19606_v63 }
 0x716   :  { %10592 = vmatmul.bf16.gmra.mxu2 %v19324_v57  ;;  %v23188_v27 = vadd.f32 %v11912_v0, %v11324_v42  ;;  %v11234_v3 = vpop.f32.mrf.mxu3  ;;  %v19533_v42 = vld [vmem:[#allocation2 + $0x130] sm:$0xff] }
 0x718   :  { %v11917_v61 = vpop.f32.mrf.mxu0 }
 0x719   :  { %v10553_v4 = vpop.f32.mrf.mxu2 }
 0x71a   :  { %v10644_v10 = vadd.f32 %v10553_v4, %v22847_v11 }
 0x71b   :  { %v12551_v14 = vpop.f32.mrf.mxu1 }
 0x71c   :  { %v11325_v53 = vadd.f32 %v11234_v3, %v10644_v10  ;;  %v23192_v37 = vadd.f32 %v12551_v14, %v23044_v51  ;;  %v19493_v51 = vld [vmem:[#allocation2 + $0x10] sm:$0xff] }
 0x71e   :  { %v23194_v62 = vadd.f32 %v11915_v15, %v11325_v53  ;;  %12590 = vmatmul.bf16.gmra.mxu1 %v19435_v49  ;;  %v11236_v22 = vpop.f32.mrf.mxu3 }
 0x720   :  { %v11920_v11 = vpop.f32.mrf.mxu0 }
 0x721   :  { %v10555_v0 = vpop.f32.mrf.mxu2 }
 0x722   :  { %v10645_v21 = vadd.f32 %v10555_v0, %v22858_v48  ;;  %13842 = vmatmul.bf16.vlgmr.msra.gmra.mxu3 %v19493_v51  ;;  %v19436_v0 = vld [vmem:[#allocation2 + $0x1f0] sm:$0xff] }
 0x723   :  { %v12553_v57 = vpop.f32.mrf.mxu1  ;;  %14523 = vmatmul.bf16.vlgmr.msra.gmra.mxu0 %v19533_v42  ;;  %v19454_v51 = vld [vmem:[#allocation2 + $0x250] sm:$0xff] }
 0x724   :  { %v11326_v36 = vadd.f32 %v11236_v22, %v10645_v21  ;;  %v23201_v4 = vadd.f32 %v12553_v57, %v23056_v24 }
 0x726   :  { %13161 = vmatmul.bf16.vlgmr.msra.gmra.mxu2 %v19453_v29  ;;  %v23203_v15 = vadd.f32 %v11917_v61, %v11326_v36  ;;  %v11239_v10 = vpop.f32.mrf.mxu3  ;;  %v19534_v36 = vld [vmem:[#allocation2 + $0x138] sm:$0xff] }
 0x728   :  { %v11922_v14 = vpop.f32.mrf.mxu0 }
 0x729   :  { %v10558_v3 = vpop.f32.mrf.mxu2 }
 0x72a   :  { %v10646_v53 = vadd.f32 %v10558_v3, %v22865_v18  ;;  %v19494_v18 = vld [vmem:[#allocation2 + $0x18] sm:$0xff] }
 0x72b   :  { %v12556_v49 = vpop.f32.mrf.mxu1 }
 0x72c   :  { %v11327_v48 = vadd.f32 %v11239_v10, %v10646_v53  ;;  %v23207_v63 = vadd.f32 %v12556_v49, %v23065_v7 }
 0x72e   :  { %v23209_v22 = vadd.f32 %v11920_v11, %v11327_v48  ;;  %12595 = vmatmul.bf16.gmra.mxu1 %v19436_v0  ;;  %v11241_v21 = vpop.f32.mrf.mxu3 }
 0x730   :  { %v11925_v61 = vpop.f32.mrf.mxu0 }
 0x731   :  { %v10560_v24 = vpop.f32.mrf.mxu2 }
 0x732   :  { %v10647_v42 = vadd.f32 %v10560_v24, %v22870_v12  ;;  %13847 = vmatmul.bf16.gmra.mxu3 %v19494_v18  ;;  %v19437_v24 = vld [vmem:[#allocation2 + $0x1f8] sm:$0xff] }
 0x733   :  { %v12558_v29 = vpop.f32.mrf.mxu1  ;;  %14528 = vmatmul.bf16.gmra.mxu0 %v19534_v36  ;;  %v19455_v18 = vld [vmem:[#allocation2 + $0x258] sm:$0xff] }
 0x734   :  { %v11328_v57 = vadd.f32 %v11241_v21, %v10647_v42  ;;  %v23213_v3 = vadd.f32 %v12558_v29, %v23074_v5 }
 0x736   :  { %13166 = vmatmul.bf16.gmra.mxu2 %v19454_v51  ;;  %v23215_v7 = vadd.f32 %v11922_v14, %v11328_v57  ;;  %v11244_v10 = vpop.f32.mrf.mxu3  ;;  %v19535_v57 = vld [vmem:[#allocation2 + $0x140] sm:$0xff] }
 0x738   :  { %v11927_v48 = vpop.f32.mrf.mxu0 }
 0x739   :  { %v10563_v11 = vpop.f32.mrf.mxu2 }
 0x73a   :  { %v10648_v53 = vadd.f32 %v10563_v11, %v22875_v17  ;;  %v19495_v17 = vld [vmem:[#allocation2 + $0x20] sm:$0xff] }
 0x73b   :  { %v12561_v49 = vpop.f32.mrf.mxu1 }
 0x73c   :  { %v11329_v12 = vadd.f32 %v11244_v10, %v10648_v53  ;;  %v23219_v0 = vadd.f32 %v12561_v49, %v23080_v19 }
 0x73e   :  { %v23221_v21 = vadd.f32 %v11925_v61, %v11329_v12  ;;  %12600 = vmatmul.bf16.gmra.mxu1 %v19437_v24  ;;  %v11246_v42 = vpop.f32.mrf.mxu3 }
 0x740   :  { %v11930_v14 = vpop.f32.mrf.mxu0 }
 0x741   :  { %v10565_v5 = vpop.f32.mrf.mxu2 }
 0x742   :  { %v10649_v36 = vadd.f32 %v10565_v5, %v22880_v35  ;;  %13852 = vmatmul.bf16.gmra.mxu3 %v19495_v17  ;;  %v19438_v5 = vld [vmem:[#allocation2 + $0x200] sm:$0xff] }
 0x743   :  { %v12563_v51 = vpop.f32.mrf.mxu1  ;;  %14533 = vmatmul.bf16.gmra.mxu0 %v19535_v57  ;;  %v19456_v17 = vld [vmem:[#allocation2 + $0x260] sm:$0xff] }
 0x744   :  { %v11330_v29 = vadd.f32 %v11246_v42, %v10649_v36  ;;  %v23225_v11 = vadd.f32 %v12563_v51, %v23086_v39 }
 0x746   :  { %13171 = vmatmul.bf16.gmra.mxu2 %v19455_v18  ;;  %v23227_v19 = vadd.f32 %v11927_v48, %v11330_v29  ;;  %v11249_v10 = vpop.f32.mrf.mxu3  ;;  %v19536_v29 = vld [vmem:[#allocation2 + $0x148] sm:$0xff] }
 0x748   :  { %v11932_v12 = vpop.f32.mrf.mxu0 }
 0x749   :  { %v10568_v61 = vpop.f32.mrf.mxu2 }
 0x74a   :  { %v10650_v53 = vadd.f32 %v10568_v61, %v22891_v32  ;;  %v19496_v32 = vld [vmem:[#allocation2 + $0x28] sm:$0xff] }
 0x74b   :  { %v12566_v49 = vpop.f32.mrf.mxu1 }
 0x74c   :  { %v11331_v35 = vadd.f32 %v11249_v10, %v10650_v53  ;;  %v23231_v24 = vadd.f32 %v12566_v49, %v23092_v50 }
 0x74e   :  { %v23233_v42 = vadd.f32 %v11930_v14, %v11331_v35  ;;  %12605 = vmatmul.bf16.gmra.mxu1 %v19438_v5  ;;  %v11251_v36 = vpop.f32.mrf.mxu3 }
 0x750   :  { %v11935_v48 = vpop.f32.mrf.mxu0 }
 0x751   :  { %v10570_v39 = vpop.f32.mrf.mxu2 }
 0x752   :  { %v10651_v57 = vadd.f32 %v10570_v39, %v22902_v26  ;;  %13857 = vmatmul.bf16.gmra.mxu3 %v19496_v32  ;;  %v19439_v39 = vld [vmem:[#allocation2 + $0x208] sm:$0xff] }
 0x753   :  { %v12568_v18 = vpop.f32.mrf.mxu1  ;;  %14538 = vmatmul.bf16.gmra.mxu0 %v19536_v29  ;;  %v19457_v32 = vld [vmem:[#allocation2 + $0x268] sm:$0xff] }
 0x754   :  { %v11332_v51 = vadd.f32 %v11251_v36, %v10651_v57  ;;  %v23237_v61 = vadd.f32 %v12568_v18, %v23098_v28  ;;  %v19605_v28 = vld [vmem:[%s23873_s3 + $0x200] sm:$0xff] }
 0x755   :  { %15203 = vmatpush.bf16.msra.mxu1 %v19605_v28 }
 0x756   :  { %13176 = vmatmul.bf16.gmra.mxu2 %v19456_v17  ;;  %v23239_v50 = vadd.f32 %v11932_v12, %v11332_v51  ;;  %v11254_v10 = vpop.f32.mrf.mxu3  ;;  %v19537_v51 = vld [vmem:[#allocation2 + $0x150] sm:$0xff] }
 0x758   :  { %v11937_v35 = vpop.f32.mrf.mxu0 }
 0x759   :  { %v10573_v14 = vpop.f32.mrf.mxu2 }
 0x75a   :  { %v10652_v53 = vadd.f32 %v10573_v14, %v22907_v30 }
 0x75b   :  { %v12571_v49 = vpop.f32.mrf.mxu1 }
 0x75c   :  { %v11333_v26 = vadd.f32 %v11254_v10, %v10652_v53  ;;  %v23243_v5 = vadd.f32 %v12571_v49, %v23104_v2  ;;  %v19497_v2 = vld [vmem:[#allocation2 + $0x30] sm:$0xff] }
 0x75e   :  { %v23245_v36 = vadd.f32 %v11935_v48, %v11333_v26  ;;  %12610 = vmatmul.bf16.gmra.mxu1 %v19439_v39  ;;  %v11256_v57 = vpop.f32.mrf.mxu3 }
 0x760   :  { %v11940_v30 = vpop.f32.mrf.mxu0 }
 0x761   :  { %v10575_v12 = vpop.f32.mrf.mxu2 }
 0x762   :  { %v10653_v29 = vadd.f32 %v10575_v12, %v22912_v52  ;;  %13862 = vmatmul.bf16.gmra.mxu3 %v19497_v2  ;;  %v19440_v12 = vld [vmem:[#allocation2 + $0x210] sm:$0xff] }
 0x763   :  { %v12573_v17 = vpop.f32.mrf.mxu1  ;;  %14543 = vmatmul.bf16.gmra.mxu0 %v19537_v51  ;;  %v24448_v51 = vld [vmem:[#allocation57_spill] sm:$0xff] }
 0x764   :  { %v11334_v18 = vadd.f32 %v11256_v57, %v10653_v29  ;;  %v23252_v14 = vadd.f32 %v12573_v17, %v23116_v1 }
 0x766   :  { %24446 = vst [vmem:[#allocation49_spill] sm:$0xff] %v23252_v14  ;;  %13181 = vmatmul.bf16.gmra.mxu2 %v19457_v32  ;;  %v23254_v48 = vadd.f32 %v11937_v35, %v11334_v18  ;;  %v11259_v53 = vpop.f32.mrf.mxu3  ;;  %v19538_v18 = vld [vmem:[#allocation2 + $0x158] sm:$0xff]  ;;  %v19458_v14 = vld [vmem:[#allocation2 + $0x270] sm:$0xff] }
 0x768   :  { %v11942_v49 = vpop.f32.mrf.mxu0 }
 0x769   :  { %v10578_v10 = vpop.f32.mrf.mxu2 }
 0x76a   :  { %v10654_v26 = vadd.f32 %v10578_v10, %v22917_v46  ;;  %v19498_v46 = vld [vmem:[#allocation2 + $0x38] sm:$0xff] }
 0x76b   :  { %v12576_v39 = vpop.f32.mrf.mxu1 }
 0x76c   :  { %v11335_v52 = vadd.f32 %v11259_v53, %v10654_v26  ;;  %v23258_v28 = vadd.f32 %v12576_v39, %v23125_v8  ;;  %v24450_v26 = vld [vmem:[#allocation58_spill] sm:$0xff] }
 0x76e   :  { %24447 = vst [vmem:[#allocation6_spill] sm:$0xff] %v23258_v28  ;;  %v23260_v57 = vadd.f32 %v11940_v30, %v11335_v52  ;;  %12615 = vmatmul.bf16.gmra.mxu1 %v19440_v12  ;;  %v11261_v29 = vpop.f32.mrf.mxu3  ;;  %v19459_v28 = vld [vmem:[#allocation2 + $0x278] sm:$0xff] }
 0x770   :  { %v11945_v35 = vpop.f32.mrf.mxu0 }
 0x771   :  { %v10580_v1 = vpop.f32.mrf.mxu2 }
 0x772   :  { %v10655_v17 = vadd.f32 %v10580_v1, %v24448_v51  ;;  %13867 = vmatmul.bf16.gmra.mxu3 %v19498_v46  ;;  %v19441_v51 = vld [vmem:[#allocation2 + $0x218] sm:$0xff] }
 0x773   :  { %v12578_v2 = vpop.f32.mrf.mxu1  ;;  %14548 = vmatmul.bf16.gmra.mxu0 %v19538_v18 }
 0x774   :  { %v11336_v32 = vadd.f32 %v11261_v29, %v10655_v17  ;;  %v23264_v10 = vadd.f32 %v12578_v2, %v23134_v44 }
 0x776   :  { %24449 = vst [vmem:[#allocation9_spill] sm:$0xff] %v23264_v10  ;;  %13186 = vmatmul.bf16.gmra.mxu2 %v19458_v14  ;;  %v23266_v8 = vadd.f32 %v11942_v49, %v11336_v32  ;;  %v11264_v53 = vpop.f32.mrf.mxu3  ;;  %v24452_v14 = vld [vmem:[#allocation59_spill] sm:$0xff]  ;;  %v19539_v32 = vld [vmem:[#allocation2 + $0x160] sm:$0xff] }
 0x778   :  { %v11947_v39 = vpop.f32.mrf.mxu0 }
 0x779   :  { %v10583_v30 = vpop.f32.mrf.mxu2 }
 0x77a   :  { %v10656_v52 = vadd.f32 %v10583_v30, %v24450_v26  ;;  %v19499_v30 = vld [vmem:[#allocation2 + $0x40] sm:$0xff] }
 0x77b   :  { %v12581_v1 = vpop.f32.mrf.mxu1 }
 0x77c   :  { %v11337_v12 = vadd.f32 %v11264_v53, %v10656_v52  ;;  %v23270_v29 = vadd.f32 %v12581_v1, %v23140_v40  ;;  %v24454_v52 = vld [vmem:[#allocation60_spill] sm:$0xff] }
 0x77e   :  { %24451 = vst [vmem:[#allocation11_spill] sm:$0xff] %v23270_v29  ;;  %v23272_v17 = vadd.f32 %v11945_v35, %v11337_v12  ;;  %12620 = vmatmul.bf16.gmra.mxu1 %v19441_v51  ;;  %v11266_v18 = vpop.f32.mrf.mxu3  ;;  %v19460_v29 = vld [vmem:[#allocation2 + $0x280] sm:$0xff] }
 0x780   :  { %v11950_v49 = vpop.f32.mrf.mxu0 }
 0x781   :  { %v10585_v44 = vpop.f32.mrf.mxu2 }
 0x782   :  { %v10657_v2 = vadd.f32 %v10585_v44, %v24452_v14  ;;  %13872 = vmatmul.bf16.gmra.mxu3 %v19499_v30  ;;  %v19442_v14 = vld [vmem:[#allocation2 + $0x220] sm:$0xff] }
 0x783   :  { %v12583_v10 = vpop.f32.mrf.mxu1  ;;  %14553 = vmatmul.bf16.gmra.mxu0 %v19539_v32 }
 0x784   :  { %v11338_v46 = vadd.f32 %v11266_v18, %v10657_v2  ;;  %v23276_v53 = vadd.f32 %v12583_v10, %v23146_v34 }
 0x786   :  { %24453 = vst [vmem:[#allocation10_spill] sm:$0xff] %v23276_v53  ;;  %13191 = vmatmul.bf16.gmra.mxu2 %v19459_v28  ;;  %v23278_v40 = vadd.f32 %v11947_v39, %v11338_v46  ;;  %v11269_v26 = vpop.f32.mrf.mxu3  ;;  %v24456_v28 = vld [vmem:[#allocation61_spill] sm:$0xff] }
 0x787   :  { %v19540_v46 = vld [vmem:[#allocation2 + $0x168] sm:$0xff] }
 0x788   :  { %v11952_v1 = vpop.f32.mrf.mxu0 }
 0x789   :  { %v10588_v35 = vpop.f32.mrf.mxu2 }
 0x78a   :  { %v10658_v12 = vadd.f32 %v10588_v35, %v24454_v52  ;;  %v19500_v35 = vld [vmem:[#allocation2 + $0x48] sm:$0xff] }
 0x78b   :  { %v12586_v44 = vpop.f32.mrf.mxu1 }
 0x78c   :  { %v11339_v51 = vadd.f32 %v11269_v26, %v10658_v12  ;;  %v23282_v18 = vadd.f32 %v12586_v44, %v23152_v59  ;;  %v24458_v12 = vld [vmem:[#allocation62_spill] sm:$0xff] }
 0x78e   :  { %24455 = vst [vmem:[#allocation8_spill] sm:$0xff] %v23282_v18  ;;  %v23284_v2 = vadd.f32 %v11950_v49, %v11339_v51  ;;  %12625 = vmatmul.bf16.gmra.mxu1 %v19442_v14  ;;  %v11271_v10 = vpop.f32.mrf.mxu3  ;;  %v19461_v18 = vld [vmem:[#allocation2 + $0x288] sm:$0xff] }
 0x790   :  { %v11955_v39 = vpop.f32.mrf.mxu0 }
 0x791   :  { %v10590_v34 = vpop.f32.mrf.mxu2 }
 0x792   :  { %v10659_v32 = vadd.f32 %v10590_v34, %v24456_v28  ;;  %13877 = vmatmul.bf16.gmra.mxu3 %v19500_v35  ;;  %v19443_v28 = vld [vmem:[#allocation2 + $0x228] sm:$0xff] }
 0x793   :  { %v12588_v53 = vpop.f32.mrf.mxu1  ;;  %14558 = vmatmul.bf16.gmra.mxu0 %v19540_v46 }
 0x794   :  { %v11340_v30 = vadd.f32 %v11271_v10, %v10659_v32  ;;  %v23288_v26 = vadd.f32 %v12588_v53, %v23176_v55 }
 0x796   :  { %24457 = vst [vmem:[#allocation12_spill] sm:$0xff] %v23288_v26  ;;  %13196 = vmatmul.bf16.gmra.mxu2 %v19460_v29  ;;  %v23290_v59 = vadd.f32 %v11952_v1, %v11340_v30  ;;  %v11274_v52 = vpop.f32.mrf.mxu3  ;;  %v24459_v29 = vld [vmem:[#allocation63_spill] sm:$0xff]  ;;  %v19541_v30 = vld [vmem:[#allocation2 + $0x170] sm:$0xff] }
 0x798   :  { %v11957_v44 = vpop.f32.mrf.mxu0 }
 0x799   :  { %v10593_v49 = vpop.f32.mrf.mxu2 }
 0x79a   :  { %v10660_v51 = vadd.f32 %v10593_v49, %v24458_v12  ;;  %v19501_v49 = vld [vmem:[#allocation2 + $0x50] sm:$0xff] }
 0x79b   :  { %v12591_v34 = vpop.f32.mrf.mxu1 }
 0x79c   :  { %v11341_v14 = vadd.f32 %v11274_v52, %v10660_v51  ;;  %v23294_v10 = vadd.f32 %v12591_v34, %v23182_v43 }
 0x79e   :  { %v23296_v32 = vadd.f32 %v11955_v39, %v11341_v14  ;;  %12630 = vmatmul.bf16.gmra.mxu1 %v19443_v28  ;;  %v11276_v53 = vpop.f32.mrf.mxu3 }
 0x7a0   :  { %v14524_v1 = vpop.f32.mrf.mxu0 }
 0x7a1   :  { %v10595_v55 = vpop.f32.mrf.mxu2 }
 0x7a2   :  { %v10661_v46 = vadd.f32 %v10595_v55, %v24459_v29  ;;  %13882 = vmatmul.bf16.gmra.mxu3 %v19501_v49  ;;  %v19462_v49 = vld [vmem:[#allocation2 + $0x290] sm:$0xff] }
 0x7a3   :  { %v12593_v26 = vpop.f32.mrf.mxu1  ;;  %14563 = vmatmul.bf16.gmra.mxu0 %v19541_v30 }
 0x7a4   :  { %v11342_v35 = vadd.f32 %v11276_v53, %v10661_v46  ;;  %v23300_v52 = vadd.f32 %v12593_v26, %v23188_v27  ;;  %v19444_v53 = vld [vmem:[#allocation2 + $0x230] sm:$0xff]  ;;  %v19542_v46 = vld [vmem:[#allocation2 + $0x178] sm:$0xff] }
 0x7a6   :  { %13201 = vmatmul.bf16.gmra.mxu2 %v19461_v18  ;;  %v23302_v43 = vadd.f32 %v11957_v44, %v11342_v35  ;;  %v13843_v12 = vpop.f32.mrf.mxu3 }
 0x7a8   :  { %v14526_v14 = vpop.f32.mrf.mxu0 }
 0x7a9   :  { %v13162_v39 = vpop.f32.mrf.mxu2 }
 0x7aa   :  { %v13322_v51 = vadd.f32 %v13162_v39, %v22970_v56  ;;  %v19502_v56 = vld [vmem:[#allocation2 + $0x58] sm:$0xff] }
 0x7ab   :  { %v12596_v28 = vpop.f32.mrf.mxu1 }
 0x7ac   :  { %v14003_v34 = vadd.f32 %v13843_v12, %v13322_v51  ;;  %v23306_v55 = vadd.f32 %v12596_v28, %v23194_v62 }
 0x7ae   :  { %v23308_v29 = vadd.f32 %v14524_v1, %v14003_v34  ;;  %12635 = vmatmul.bf16.gmra.mxu1 %v19444_v53  ;;  %v13845_v26 = vpop.f32.mrf.mxu3 }
 0x7b0   :  { %v14529_v44 = vpop.f32.mrf.mxu0 }
 0x7b1   :  { %v13164_v27 = vpop.f32.mrf.mxu2 }
 0x7b2   :  { %v13323_v18 = vadd.f32 %v13164_v27, %v22976_v33  ;;  %13887 = vmatmul.bf16.gmra.mxu3 %v19502_v56  ;;  %v19573_v27 = vld [vmem:[#allocation2 + $0x250] sm:$0xff]  ;;  %v19463_v56 = vld [vmem:[#allocation2 + $0x298] sm:$0xff] }
 0x7b3   :  { %v12598_v35 = vpop.f32.mrf.mxu1  ;;  %14568 = vmatmul.bf16.gmra.mxu0 %v19542_v46 }
 0x7b4   :  { %v14004_v30 = vadd.f32 %v13845_v26, %v13323_v18  ;;  %v23312_v39 = vadd.f32 %v12598_v35, %v23203_v15 }
 0x7b6   :  { %13206 = vmatmul.bf16.gmra.mxu2 %v19462_v49  ;;  %v23314_v62 = vadd.f32 %v14526_v14, %v14004_v30  ;;  %v13848_v12 = vpop.f32.mrf.mxu3  ;;  %v19543_v30 = vld [vmem:[#allocation2 + $0x180] sm:$0xff] }
 0x7b8   :  { %v14531_v34 = vpop.f32.mrf.mxu0 }
 0x7b9   :  { %v13167_v1 = vpop.f32.mrf.mxu2 }
 0x7ba   :  { %v13324_v51 = vadd.f32 %v13167_v1, %v22982_v38  ;;  %v19503_v38 = vld [vmem:[#allocation2 + $0x60] sm:$0xff] }
 0x7bb   :  { %v12601_v28 = vpop.f32.mrf.mxu1 }
 0x7bc   :  { %v14005_v33 = vadd.f32 %v13848_v12, %v13324_v51  ;;  %v23318_v53 = vadd.f32 %v12601_v28, %v23209_v22 }
 0x7be   :  { %v23320_v26 = vadd.f32 %v14529_v44, %v14005_v33  ;;  %15204 = vmatmul.bf16.vlgmr.msra.gmra.mxu1 %v19573_v27  ;;  %v13850_v18 = vpop.f32.mrf.mxu3 }
 0x7c0   :  { %v14534_v14 = vpop.f32.mrf.mxu0 }
 0x7c1   :  { %v13169_v15 = vpop.f32.mrf.mxu2 }
 0x7c2   :  { %v13325_v46 = vadd.f32 %v13169_v15, %v22991_v25  ;;  %13892 = vmatmul.bf16.gmra.mxu3 %v19503_v38  ;;  %v19574_v15 = vld [vmem:[#allocation2 + $0x258] sm:$0xff]  ;;  %v19464_v38 = vld [vmem:[#allocation2 + $0x2a0] sm:$0xff] }
 0x7c3   :  { %v12603_v49 = vpop.f32.mrf.mxu1  ;;  %14573 = vmatmul.bf16.gmra.mxu0 %v19543_v30 }
 0x7c4   :  { %v14006_v35 = vadd.f32 %v13850_v18, %v13325_v46  ;;  %v23324_v1 = vadd.f32 %v12603_v49, %v23215_v7 }
 0x7c6   :  { %13211 = vmatmul.bf16.gmra.mxu2 %v19463_v56  ;;  %v23326_v22 = vadd.f32 %v14531_v34, %v14006_v35  ;;  %v13853_v12 = vpop.f32.mrf.mxu3  ;;  %v19544_v35 = vld [vmem:[#allocation2 + $0x188] sm:$0xff] }
 0x7c8   :  { %v14536_v33 = vpop.f32.mrf.mxu0 }
 0x7c9   :  { %v13172_v44 = vpop.f32.mrf.mxu2 }
 0x7ca   :  { %v13326_v51 = vadd.f32 %v13172_v44, %v23000_v54  ;;  %v19504_v54 = vld [vmem:[#allocation2 + $0x68] sm:$0xff] }
 0x7cb   :  { %v12606_v28 = vpop.f32.mrf.mxu1 }
 0x7cc   :  { %v14007_v25 = vadd.f32 %v13853_v12, %v13326_v51  ;;  %v23330_v27 = vadd.f32 %v12606_v28, %v23221_v21 }
 0x7ce   :  { %24460 = vst [vmem:[#allocation15_spill] sm:$0xff] %v23330_v27  ;;  %v23332_v18 = vadd.f32 %v14534_v14, %v14007_v25  ;;  %15209 = vmatmul.bf16.gmra.mxu1 %v19574_v15  ;;  %v13855_v46 = vpop.f32.mrf.mxu3 }
 0x7d0   :  { %v14539_v34 = vpop.f32.mrf.mxu0 }
 0x7d1   :  { %v13174_v7 = vpop.f32.mrf.mxu2 }
 0x7d2   :  { %v13327_v30 = vadd.f32 %v13174_v7, %v23012_v45  ;;  %13897 = vmatmul.bf16.gmra.mxu3 %v19504_v54  ;;  %v19575_v7 = vld [vmem:[#allocation2 + $0x260] sm:$0xff]  ;;  %v19465_v54 = vld [vmem:[#allocation2 + $0x2a8] sm:$0xff] }
 0x7d3   :  { %v12608_v56 = vpop.f32.mrf.mxu1  ;;  %14578 = vmatmul.bf16.gmra.mxu0 %v19544_v35 }
 0x7d4   :  { %v14008_v49 = vadd.f32 %v13855_v46, %v13327_v30  ;;  %v23336_v44 = vadd.f32 %v12608_v56, %v23227_v19 }
 0x7d6   :  { %24461 = vst [vmem:[#allocation13_spill] sm:$0xff] %v23336_v44  ;;  %13216 = vmatmul.bf16.gmra.mxu2 %v19464_v38  ;;  %v23338_v21 = vadd.f32 %v14536_v33, %v14008_v49  ;;  %v13858_v12 = vpop.f32.mrf.mxu3  ;;  %v19545_v49 = vld [vmem:[#allocation2 + $0x190] sm:$0xff] }
 0x7d8   :  { %v14541_v25 = vpop.f32.mrf.mxu0 }
 0x7d9   :  { %v13177_v14 = vpop.f32.mrf.mxu2 }
 0x7da   :  { %v13328_v51 = vadd.f32 %v13177_v14, %v23018_v9  ;;  %v19505_v9 = vld [vmem:[#allocation2 + $0x70] sm:$0xff] }
 0x7db   :  { %v12611_v28 = vpop.f32.mrf.mxu1 }
 0x7dc   :  { %v14009_v45 = vadd.f32 %v13858_v12, %v13328_v51  ;;  %v23342_v15 = vadd.f32 %v12611_v28, %v23233_v42 }
 0x7de   :  { %24462 = vst [vmem:[#allocation17_spill] sm:$0xff] %v23342_v15  ;;  %v23344_v46 = vadd.f32 %v14539_v34, %v14009_v45  ;;  %15214 = vmatmul.bf16.gmra.mxu1 %v19575_v7  ;;  %v13860_v30 = vpop.f32.mrf.mxu3 }
 0x7e0   :  { %v14544_v33 = vpop.f32.mrf.mxu0 }
 0x7e1   :  { %v13179_v19 = vpop.f32.mrf.mxu2 }
 0x7e2   :  { %v13329_v35 = vadd.f32 %v13179_v19, %v23024_v58  ;;  %13902 = vmatmul.bf16.gmra.mxu3 %v19505_v9  ;;  %v19576_v19 = vld [vmem:[#allocation2 + $0x268] sm:$0xff]  ;;  %v19466_v9 = vld [vmem:[#allocation2 + $0x2b0] sm:$0xff] }
 0x7e3   :  { %v12613_v38 = vpop.f32.mrf.mxu1  ;;  %14583 = vmatmul.bf16.gmra.mxu0 %v19545_v49 }
 0x7e4   :  { %v14010_v56 = vadd.f32 %v13860_v30, %v13329_v35  ;;  %v23348_v14 = vadd.f32 %v12613_v38, %v23239_v50 }
 0x7e6   :  { %24463 = vst [vmem:[#allocation16_spill] sm:$0xff] %v23348_v14  ;;  %13221 = vmatmul.bf16.gmra.mxu2 %v19465_v54  ;;  %v23350_v42 = vadd.f32 %v14541_v25, %v14010_v56  ;;  %v13863_v12 = vpop.f32.mrf.mxu3  ;;  %v19546_v56 = vld [vmem:[#allocation2 + $0x198] sm:$0xff] }
 0x7e8   :  { %v14546_v45 = vpop.f32.mrf.mxu0 }
 0x7e9   :  { %v13182_v34 = vpop.f32.mrf.mxu2 }
 0x7ea   :  { %v13330_v51 = vadd.f32 %v13182_v34, %v23030_v31  ;;  %v19506_v31 = vld [vmem:[#allocation2 + $0x78] sm:$0xff] }
 0x7eb   :  { %v12616_v28 = vpop.f32.mrf.mxu1 }
 0x7ec   :  { %v14011_v58 = vadd.f32 %v13863_v12, %v13330_v51  ;;  %v23354_v7 = vadd.f32 %v12616_v28, %v23245_v36 }
 0x7ee   :  { %24464 = vst [vmem:[#allocation14_spill] sm:$0xff] %v23354_v7  ;;  %v23356_v30 = vadd.f32 %v14544_v33, %v14011_v58  ;;  %15219 = vmatmul.bf16.gmra.mxu1 %v19576_v19  ;;  %v13865_v35 = vpop.f32.mrf.mxu3  ;;  %v24482_v7 = vld [vmem:[#allocation4_spill] sm:$0xff] }
 0x7f0   :  { %v14549_v25 = vpop.f32.mrf.mxu0 }
 0x7f1   :  { %v13184_v50 = vpop.f32.mrf.mxu2 }
 0x7f2   :  { %v13331_v49 = vadd.f32 %v13184_v50, %v23036_v23  ;;  %13907 = vmatmul.bf16.gmra.mxu3 %v19506_v31  ;;  %v19577_v50 = vld [vmem:[#allocation2 + $0x270] sm:$0xff]  ;;  %v19467_v31 = vld [vmem:[#allocation2 + $0x2b8] sm:$0xff] }
 0x7f3   :  { %v12618_v54 = vpop.f32.mrf.mxu1  ;;  %14588 = vmatmul.bf16.gmra.mxu0 %v19546_v56 }
 0x7f4   :  { %v14012_v38 = vadd.f32 %v13865_v35, %v13331_v49  ;;  %v23360_v34 = vadd.f32 %v12618_v54, %v23254_v48 }
 0x7f6   :  { %24465 = vst [vmem:[#allocation18_spill] sm:$0xff] %v23360_v34  ;;  %13226 = vmatmul.bf16.gmra.mxu2 %v19466_v9  ;;  %v23362_v36 = vadd.f32 %v14546_v45, %v14012_v38  ;;  %v13868_v12 = vpop.f32.mrf.mxu3  ;;  %v19547_v38 = vld [vmem:[#allocation2 + $0x1a0] sm:$0xff] }
 0x7f8   :  { %v14551_v58 = vpop.f32.mrf.mxu0 }
 0x7f9   :  { %v13187_v33 = vpop.f32.mrf.mxu2 }
 0x7fa   :  { %v13332_v51 = vadd.f32 %v13187_v33, %v23042_v13  ;;  %v19507_v13 = vld [vmem:[#allocation2 + $0x80] sm:$0xff] }
 0x7fb   :  { %v12621_v28 = vpop.f32.mrf.mxu1 }
 0x7fc   :  { %v14013_v23 = vadd.f32 %v13868_v12, %v13332_v51  ;;  %v23366_v19 = vadd.f32 %v12621_v28, %v23260_v57  ;;  %v24468_v51 = vld [vmem:[#allocation64_spill] sm:$0xff] }
 0x7fe   :  { %24466 = vst [vmem:[#allocation21_spill] sm:$0xff] %v23366_v19  ;;  %v23368_v35 = vadd.f32 %v14549_v25, %v14013_v23  ;;  %15224 = vmatmul.bf16.gmra.mxu1 %v19577_v50  ;;  %v13870_v49 = vpop.f32.mrf.mxu3 }
 0x800   :  { %v14554_v45 = vpop.f32.mrf.mxu0 }
 0x801   :  { %v13189_v48 = vpop.f32.mrf.mxu2 }
 0x802   :  { %v13333_v56 = vadd.f32 %v13189_v48, %v23051_v20  ;;  %13912 = vmatmul.bf16.gmra.mxu3 %v19507_v13  ;;  %v19508_v13 = vld [vmem:[#allocation2 + $0x88] sm:$0xff] }
 0x803   :  { %v12623_v9 = vpop.f32.mrf.mxu1  ;;  %14593 = vmatmul.bf16.gmra.mxu0 %v19547_v38 }
 0x804   :  { %v14014_v54 = vadd.f32 %v13870_v49, %v13333_v56  ;;  %v23372_v33 = vadd.f32 %v12623_v9, %v23266_v8  ;;  %v19578_v49 = vld [vmem:[#allocation2 + $0x278] sm:$0xff]  ;;  %v19548_v9 = vld [vmem:[#allocation2 + $0x1a8] sm:$0xff] }
 0x806   :  { %24467 = vst [vmem:[#allocation19_spill] sm:$0xff] %v23372_v33  ;;  %13231 = vmatmul.bf16.gmra.mxu2 %v19467_v31  ;;  %v23374_v57 = vadd.f32 %v14551_v58, %v14014_v54  ;;  %v13873_v12 = vpop.f32.mrf.mxu3  ;;  %v24470_v31 = vld [vmem:[#allocation65_spill] sm:$0xff] }
 0x808   :  { %v14556_v28 = vpop.f32.mrf.mxu0 }
 0x809   :  { %v13192_v25 = vpop.f32.mrf.mxu2 }
 0x80a   :  { %v13334_v23 = vadd.f32 %v13192_v25, %v24468_v51  ;;  %v19468_v25 = vld [vmem:[#allocation2 + $0x2c0] sm:$0xff] }
 0x80b   :  { %v12626_v50 = vpop.f32.mrf.mxu1 }
 0x80c   :  { %v14015_v20 = vadd.f32 %v13873_v12, %v13334_v23  ;;  %v23378_v48 = vadd.f32 %v12626_v50, %v23272_v17  ;;  %v24472_v23 = vld [vmem:[#allocation67_spill] sm:$0xff] }
 0x80e   :  { %24469 = vst [vmem:[#allocation23_spill] sm:$0xff] %v23378_v48  ;;  %v23380_v56 = vadd.f32 %v14554_v45, %v14015_v20  ;;  %15229 = vmatmul.bf16.gmra.mxu1 %v19578_v49  ;;  %v13875_v38 = vpop.f32.mrf.mxu3  ;;  %v19469_v48 = vld [vmem:[#allocation2 + $0x2d8] sm:$0xff] }
 0x810   :  { %v14559_v54 = vpop.f32.mrf.mxu0 }
 0x811   :  { %v13194_v8 = vpop.f32.mrf.mxu2 }
 0x812   :  { %v13335_v58 = vadd.f32 %v13194_v8, %v24470_v31  ;;  %13917 = vmatmul.bf16.gmra.mxu3 %v19508_v13 }
 0x813   :  { %v12628_v19 = vpop.f32.mrf.mxu1  ;;  %14598 = vmatmul.bf16.gmra.mxu0 %v19548_v9  ;;  %v24474_v9 = vld [vmem:[#allocation68_spill] sm:$0xff] }
 0x814   :  { %v14016_v33 = vadd.f32 %v13875_v38, %v13335_v58  ;;  %v23384_v12 = vadd.f32 %v12628_v19, %v23278_v40  ;;  %v19579_v38 = vld [vmem:[#allocation2 + $0x280] sm:$0xff] }
 0x816   :  { %24471 = vst [vmem:[#allocation66_spill] sm:$0xff] %v23384_v12  ;;  %13236 = vmatmul.bf16.gmra.mxu2 %v19468_v25  ;;  %v23386_v17 = vadd.f32 %v14556_v28, %v14016_v33  ;;  %v13878_v51 = vpop.f32.mrf.mxu3  ;;  %v19549_v28 = vld [vmem:[#allocation2 + $0x1c0] sm:$0xff] }
 0x818   :  { %v14561_v50 = vpop.f32.mrf.mxu0 }
 0x819   :  { %v13197_v45 = vpop.f32.mrf.mxu2 }
 0x81a   :  { %v13336_v20 = vadd.f32 %v13197_v45, %v24472_v23  ;;  %v19509_v45 = vld [vmem:[#allocation2 + $0xa0] sm:$0xff] }
 0x81b   :  { %v12631_v8 = vpop.f32.mrf.mxu1 }
 0x81c   :  { %v14017_v49 = vadd.f32 %v13878_v51, %v13336_v20  ;;  %v23390_v31 = vadd.f32 %v12631_v8, %v23284_v2  ;;  %v24476_v20 = vld [vmem:[#allocation69_spill] sm:$0xff] }
 0x81e   :  { %24473 = vst [vmem:[#allocation20_spill] sm:$0xff] %v23390_v31  ;;  %v23392_v58 = vadd.f32 %v14559_v54, %v14017_v49  ;;  %15234 = vmatmul.bf16.gmra.mxu1 %v19579_v38  ;;  %v13880_v19 = vpop.f32.mrf.mxu3  ;;  %v19470_v31 = vld [vmem:[#allocation2 + $0x2e0] sm:$0xff] }
 0x820   :  { %v14564_v33 = vpop.f32.mrf.mxu0 }
 0x821   :  { %v13199_v40 = vpop.f32.mrf.mxu2 }
 0x822   :  { %v13337_v13 = vadd.f32 %v13199_v40, %v24474_v9  ;;  %13922 = vmatmul.bf16.gmra.mxu3 %v19509_v45  ;;  %v19580_v9 = vld [vmem:[#allocation2 + $0x288] sm:$0xff] }
 0x823   :  { %v12633_v12 = vpop.f32.mrf.mxu1  ;;  %14603 = vmatmul.bf16.gmra.mxu0 %v19549_v28 }
 0x824   :  { %v14018_v25 = vadd.f32 %v13880_v19, %v13337_v13  ;;  %v23396_v51 = vadd.f32 %v12633_v12, %v23290_v59 }
 0x826   :  { %24475 = vst [vmem:[#allocation25_spill] sm:$0xff] %v23396_v51  ;;  %13241 = vmatmul.bf16.gmra.mxu2 %v19469_v48  ;;  %v23398_v2 = vadd.f32 %v14561_v50, %v14018_v25  ;;  %v13883_v23 = vpop.f32.mrf.mxu3  ;;  %v24478_v48 = vld [vmem:[#allocation70_spill] sm:$0xff]  ;;  %v19550_v25 = vld [vmem:[#allocation2 + $0x1c8] sm:$0xff] }
 0x828   :  { %v14566_v8 = vpop.f32.mrf.mxu0 }
 0x829   :  { %v13202_v54 = vpop.f32.mrf.mxu2 }
 0x82a   :  { %v13338_v49 = vadd.f32 %v13202_v54, %v24476_v20  ;;  %v19510_v54 = vld [vmem:[#allocation2 + $0xa8] sm:$0xff] }
 0x82b   :  { %v12636_v40 = vpop.f32.mrf.mxu1 }
 0x82c   :  { %v14019_v38 = vadd.f32 %v13883_v23, %v13338_v49  ;;  %v23402_v19 = vadd.f32 %v12636_v40, %v23296_v32  ;;  %v24480_v49 = vld [vmem:[#allocation5_spill] sm:$0xff] }
 0x82e   :  { %24477 = vst [vmem:[#allocation24_spill] sm:$0xff] %v23402_v19  ;;  %v23404_v13 = vadd.f32 %v14564_v33, %v14019_v38  ;;  %15239 = vmatmul.bf16.gmra.mxu1 %v19580_v9  ;;  %v13885_v12 = vpop.f32.mrf.mxu3 }
 0x830   :  { %v14569_v50 = vpop.f32.mrf.mxu0 }
 0x831   :  { %v13204_v59 = vpop.f32.mrf.mxu2 }
 0x832   :  { %v13339_v28 = vadd.f32 %v13204_v59, %v24478_v48  ;;  %13927 = vmatmul.bf16.gmra.mxu3 %v19510_v54  ;;  %v19581_v48 = vld [vmem:[#allocation2 + $0x290] sm:$0xff] }
 0x833   :  { %v12638_v51 = vpop.f32.mrf.mxu1  ;;  %14608 = vmatmul.bf16.gmra.mxu0 %v19550_v25  ;;  %v24481_v25 = vld [vmem:[#allocation45_spill] sm:$0xff] }
 0x834   :  { %v14020_v45 = vadd.f32 %v13885_v12, %v13339_v28  ;;  %v23408_v23 = vadd.f32 %v12638_v51, %v23302_v43  ;;  %v23419_v43 = vld [vmem:[%s23875_s4] ss:$0 sm:$0xff] }
 0x836   :  { %24479 = vst [vmem:[#allocation22_spill] sm:$0xff] %v23408_v23  ;;  %13246 = vmatmul.bf16.gmra.mxu2 %v19470_v31  ;;  %v23410_v32 = vadd.f32 %v14566_v8, %v14020_v45  ;;  %v13888_v20 = vpop.f32.mrf.mxu3  ;;  %v19774_v31 = vld [vmem:[%s23872_s0] sm:$0xff]  }
 0x838   :  { %v14571_v40 = vpop.f32.mrf.mxu0 }
 0x839   :  { %v13207_v33 = vpop.f32.mrf.mxu2 }
 0x83a   :  { %v13340_v38 = vadd.f32 %v13207_v33, %v24480_v49  ;;  %v19775_v33 = vunpack.c.l.bf16 %v19774_v31 }
 0x83b   :  { %v15205_v59 = vpop.f32.mrf.mxu1 }
 0x83c   :  { %v14021_v9 = vadd.f32 %v13888_v20, %v13340_v38  ;;  %v15365_v28 = vadd.f32 %v15205_v59, %v23308_v29  ;;  %v19551_v20 = vld [vmem:[#allocation2 + $0x1d0] sm:$0xff]  ;;  %v19471_v38 = vld [vmem:[#allocation2 + $0x2e8] sm:$0xff] }
 0x83e   :  { %v23413_v12 = vadd.f32 %v14569_v50, %v14021_v9  ;;  %15244 = vmatmul.bf16.gmra.mxu1 %v19581_v48  ;;  %v13890_v8 = vpop.f32.mrf.mxu3  ;;  %v15561_v50 = vadd.f32 %v23419_v43, %v15365_v28  ;;  %v19511_v9 = vld [vmem:[#allocation2 + $0xb0] sm:$0xff]  ;;  %v19776_v48 = vunpack.c.h.bf16 %v19774_v31  ;;  %v19582_v31 = vld [vmem:[#allocation2 + $0x298] sm:$0xff] }
 0x840   :  { %v14574_v54 = vpop.f32.mrf.mxu0  ;;  %v15753_v19 = vadd.f32 %v19775_v33, %v15561_v50  ;;  %v24483_v50 = vld [vmem:[#allocation47_spill] sm:$0xff] }
 0x841   :  { %v13209_v51 = vpop.f32.mrf.mxu2 }
 0x842   :  { %v13341_v45 = vadd.f32 %v13209_v51, %v24481_v25  ;;  %13932 = vmatmul.bf16.gmra.mxu3 %v19511_v9  ;;  %v19512_v9 = vld [vmem:[#allocation2 + $0xb8] sm:$0xff] }
 0x843   :  { %v15207_v49 = vpop.f32.mrf.mxu1  ;;  %14613 = vmatmul.bf16.gmra.mxu0 %v19551_v20 }
 0x844   :  { %v14022_v29 = vadd.f32 %v13890_v8, %v13341_v45  ;;  %v15366_v59 = vadd.f32 %v15207_v49, %v23314_v62  ;;  %v15817_v45 = vmax.f32 %v15753_v19, 0.0 }
 0x846   :  { %13251 = vmatmul.bf16.gmra.mxu2 %v19471_v38  ;;  %v23427_v23 = vadd.f32 %v14571_v40, %v14022_v29  ;;  %v15562_v51 = vadd.f32 %v23419_v43, %v15366_v59  ;;  %v13893_v28 = vpop.f32.mrf.mxu3  ;;  %v19472_v38 = vld [vmem:[#allocation2 + $0x2f0] sm:$0xff] }
 0x848   :  { %v15754_v25 = vadd.f32 %v19776_v48, %v15562_v51  ;;  %v14576_v8 = vpop.f32.mrf.mxu0 }
 0x849   :  { %v13212_v34 = vpop.f32.mrf.mxu2 }
 0x84a   :  { %v13342_v14 = vadd.f32 %v13212_v34, %v24482_v7  ;;  %v15818_v15 = vmax.f32 %v15754_v25, 0.0  ;;  %v20092_v7 = vld [vmem:[%s23872_s0 + $0x8] sm:$0xff]  }
 0x84b   :  { %v15210_v27 = vpop.f32.mrf.mxu1 }
 0x84c   :  { %v14023_v44 = vadd.f32 %v13893_v28, %v13342_v14  ;;  %v19904_v62 = vpack.c.bf16 %v15818_v15, %v15817_v45  ;;  %v15367_v40 = vadd.f32 %v15210_v27, %v23320_v26  ;;  %v19780_v27 = vunpack.c.h.bf16 %v20092_v7 }
 0x84e   :  { %v23431_v20 = vadd.f32 %v14574_v54, %v14023_v44  ;;  %19905 = vst [vmem:[%s23876_s5] sm:$0xff] %v19904_v62   ;;  %15249 = vmatmul.bf16.gmra.mxu1 %v19582_v31  ;;  %v13895_v19 = vpop.f32.mrf.mxu3  ;;  %v15563_v15 = vadd.f32 %v23419_v43, %v15367_v40  ;;  %v19779_v44 = vunpack.c.l.bf16 %v20092_v7  ;;  %v19552_v54 = vld [vmem:[#allocation2 + $0x1d8] sm:$0xff]  ;;  %v19583_v7 = vld [vmem:[#allocation2 + $0x2a0] sm:$0xff] }
 0x850   :  { %v14579_v33 = vpop.f32.mrf.mxu0  ;;  %v15755_v48 = vadd.f32 %v19779_v44, %v15563_v15 }
 0x851   :  { %v13214_v34 = vpop.f32.mrf.mxu2 }
 0x852   :  { %v13343_v14 = vadd.f32 %v13214_v34, %v24483_v50  ;;  %13937 = vmatmul.bf16.gmra.mxu3 %v19512_v9  ;;  %v15819_v40 = vmax.f32 %v15755_v48, 0.0  ;;  %v19513_v48 = vld [vmem:[#allocation2 + $0xc0] sm:$0xff] }
 0x853   :  { %v15212_v49 = vpop.f32.mrf.mxu1  ;;  %14618 = vmatmul.bf16.gmra.mxu0 %v19552_v54 }
 0x854   :  { %v14024_v29 = vadd.f32 %v13895_v19, %v13343_v14  ;;  %v15368_v26 = vadd.f32 %v15212_v49, %v23326_v22 }
 0x856   :  { %13256 = vmatmul.bf16.gmra.mxu2 %v19472_v38  ;;  %v23443_v59 = vadd.f32 %v14576_v8, %v14024_v29  ;;  %v15564_v51 = vadd.f32 %v23419_v43, %v15368_v26  ;;  %v13898_v45 = vpop.f32.mrf.mxu3  ;;  %v19553_v38 = vld [vmem:[#allocation2 + $0x1e0] sm:$0xff] }
 0x858   :  { %v15756_v25 = vadd.f32 %v19780_v27, %v15564_v51  ;;  %v14581_v31 = vpop.f32.mrf.mxu0  ;;  %v19473_v27 = vld [vmem:[#allocation2 + $0x2f8] sm:$0xff] }
 0x859   :  { %v13217_v28 = vpop.f32.mrf.mxu2 }
 0x85a   :  { %v13344_v62 = vadd.f32 %v13217_v28, %v23138_v6  ;;  %v15820_v34 = vmax.f32 %v15756_v25, 0.0  ;;  %v20093_v6 = vld [vmem:[%s23872_s0 + $0x10] sm:$0xff]  }
 0x85b   :  { %v15215_v50 = vpop.f32.mrf.mxu1  ;;  %v19784_v51 = vunpack.c.h.bf16 %v20093_v6 }
 0x85c   :  { %v14025_v19 = vadd.f32 %v13898_v45, %v13344_v62  ;;  %v19909_v22 = vpack.c.bf16 %v15820_v34, %v15819_v40  ;;  %v15369_v8 = vadd.f32 %v15215_v50, %v23332_v18  ;;  %v24484_v34 = vld [vmem:[#allocation7_spill] sm:$0xff] }
 0x85e   :  { %v23447_v14 = vadd.f32 %v14579_v33, %v14025_v19  ;;  %20123 = vst [vmem:[%s23876_s5 + $0x8] sm:$0xff] %v19909_v22   ;;  %15254 = vmatmul.bf16.gmra.mxu1 %v19583_v7  ;;  %v13900_v44 = vpop.f32.mrf.mxu3  ;;  %v15565_v49 = vadd.f32 %v23419_v43, %v15369_v8  ;;  %v19783_v33 = vunpack.c.l.bf16 %v20093_v6  ;;  %v19584_v6 = vld [vmem:[#allocation2 + $0x2a8] sm:$0xff] }
 0x860   :  { %v14584_v29 = vpop.f32.mrf.mxu0  ;;  %v15757_v28 = vadd.f32 %v19783_v33, %v15565_v49 }
 0x861   :  { %v13219_v15 = vpop.f32.mrf.mxu2 }
 0x862   :  { %v13345_v54 = vadd.f32 %v13219_v15, %v23144_v60  ;;  %13942 = vmatmul.bf16.gmra.mxu3 %v19513_v48  ;;  %v15821_v22 = vmax.f32 %v15757_v28, 0.0  ;;  %v19514_v28 = vld [vmem:[#allocation2 + $0xc8] sm:$0xff] }
 0x863   :  { %v15217_v26 = vpop.f32.mrf.mxu1  ;;  %14623 = vmatmul.bf16.gmra.mxu0 %v19553_v38 }
 0x864   :  { %v14026_v9 = vadd.f32 %v13900_v44, %v13345_v54  ;;  %v15370_v18 = vadd.f32 %v15217_v26, %v23338_v21  ;;  %v20094_v54 = vld [vmem:[%s23872_s0 + $0x18] sm:$0xff]  }
 0x866   :  { %13261 = vmatmul.bf16.gmra.mxu2 %v19473_v27  ;;  %v23459_v25 = vadd.f32 %v14581_v31, %v14026_v9  ;;  %v15566_v60 = vadd.f32 %v23419_v43, %v15370_v18  ;;  %v13903_v40 = vpop.f32.mrf.mxu3  ;;  %v19554_v27 = vld [vmem:[#allocation2 + $0x1e8] sm:$0xff] }
 0x868   :  { %v15758_v45 = vadd.f32 %v19784_v51, %v15566_v60  ;;  %v14586_v50 = vpop.f32.mrf.mxu0  ;;  %v19474_v51 = vld [vmem:[#allocation2 + $0x300] sm:$0xff]  ;;  %v19788_v60 = vunpack.c.h.bf16 %v20094_v54 }
 0x869   :  { %v13222_v62 = vpop.f32.mrf.mxu2 }
 0x86a   :  { %v13346_v19 = vadd.f32 %v13222_v62, %v24484_v34  ;;  %v15822_v7 = vmax.f32 %v15758_v45, 0.0 }
 0x86b   :  { %v15220_v15 = vpop.f32.mrf.mxu1 }
 0x86c   :  { %v14027_v8 = vadd.f32 %v13903_v40, %v13346_v19  ;;  %v19914_v21 = vpack.c.bf16 %v15822_v7, %v15821_v22  ;;  %v15371_v31 = vadd.f32 %v15220_v15, %v23344_v46 }
 0x86e   :  { %v23463_v44 = vadd.f32 %v14584_v29, %v14027_v8  ;;  %20124 = vst [vmem:[%s23876_s5 + $0x10] sm:$0xff] %v19914_v21   ;;  %15259 = vmatmul.bf16.gmra.mxu1 %v19584_v6  ;;  %v13905_v33 = vpop.f32.mrf.mxu3  ;;  %v15567_v26 = vadd.f32 %v23419_v43, %v15371_v31  ;;  %v19787_v29 = vunpack.c.l.bf16 %v20094_v54  ;;  %v19585_v31 = vld [vmem:[#allocation2 + $0x2b0] sm:$0xff] }
 0x870   :  { %v14589_v9 = vpop.f32.mrf.mxu0  ;;  %v15759_v62 = vadd.f32 %v19787_v29, %v15567_v26 }
 0x871   :  { %v13224_v49 = vpop.f32.mrf.mxu2 }
 0x872   :  { %v13347_v38 = vadd.f32 %v13224_v49, %v23174_v47  ;;  %13947 = vmatmul.bf16.gmra.mxu3 %v19514_v28  ;;  %v15823_v8 = vmax.f32 %v15759_v62, 0.0  ;;  %v19515_v28 = vld [vmem:[#allocation2 + $0xd0] sm:$0xff] }
 0x873   :  { %v15222_v18 = vpop.f32.mrf.mxu1  ;;  %14628 = vmatmul.bf16.gmra.mxu0 %v19554_v27  ;;  %v19555_v27 = vld [vmem:[#allocation2 + $0x1f0] sm:$0xff] }
 0x874   :  { %v14028_v48 = vadd.f32 %v13905_v33, %v13347_v38  ;;  %v15372_v46 = vadd.f32 %v15222_v18, %v23350_v42 }
 0x876   :  { %13266 = vmatmul.bf16.gmra.mxu2 %v19474_v51  ;;  %v23475_v45 = vadd.f32 %v14586_v50, %v14028_v48  ;;  %v15568_v47 = vadd.f32 %v23419_v43, %v15372_v46  ;;  %v13908_v19 = vpop.f32.mrf.mxu3  ;;  %v19475_v51 = vld [vmem:[#allocation2 + $0x308] sm:$0xff] }
 0x878   :  { %v15760_v40 = vadd.f32 %v19788_v60, %v15568_v47  ;;  %v14591_v7 = vpop.f32.mrf.mxu0 }
 0x879   :  { %v13227_v34 = vpop.f32.mrf.mxu2 }
 0x87a   :  { %v13348_v22 = vadd.f32 %v13227_v34, %v23180_v16  ;;  %v15824_v15 = vmax.f32 %v15760_v40, 0.0  ;;  %v20095_v16 = vld [vmem:[%s23872_s0 + $0x20] sm:$0xff]  }
 0x87b   :  { %v15225_v6 = vpop.f32.mrf.mxu1  ;;  %v19792_v46 = vunpack.c.h.bf16 %v20095_v16 }
 0x87c   :  { %v14029_v21 = vadd.f32 %v13908_v19, %v13348_v22  ;;  %v19919_v42 = vpack.c.bf16 %v15824_v15, %v15823_v8  ;;  %v15373_v50 = vadd.f32 %v15225_v6, %v23356_v30 }
 0x87e   :  { %v23479_v54 = vadd.f32 %v14589_v9, %v14029_v21  ;;  %20125 = vst [vmem:[%s23876_s5 + $0x18] sm:$0xff] %v19919_v42   ;;  %15264 = vmatmul.bf16.gmra.mxu1 %v19585_v31  ;;  %v13910_v33 = vpop.f32.mrf.mxu3  ;;  %v15569_v29 = vadd.f32 %v23419_v43, %v15373_v50  ;;  %v19791_v9 = vunpack.c.l.bf16 %v20095_v16  ;;  %v19586_v42 = vld [vmem:[#allocation2 + $0x2b8] sm:$0xff] }
 0x880   :  { %v14594_v26 = vpop.f32.mrf.mxu0  ;;  %v15761_v62 = vadd.f32 %v19791_v9, %v15569_v29  ;;  %v19556_v29 = vld [vmem:[#allocation2 + $0x1f8] sm:$0xff] }
 0x881   :  { %v13229_v49 = vpop.f32.mrf.mxu2 }
 0x882   :  { %v13349_v38 = vadd.f32 %v13229_v49, %v23186_v41  ;;  %13952 = vmatmul.bf16.gmra.mxu3 %v19515_v28  ;;  %v15825_v8 = vmax.f32 %v15761_v62, 0.0 }
 0x883   :  { %v15227_v18 = vpop.f32.mrf.mxu1  ;;  %14633 = vmatmul.bf16.gmra.mxu0 %v19555_v27 }
 0x884   :  { %v14030_v48 = vadd.f32 %v13910_v33, %v13349_v38  ;;  %v15374_v30 = vadd.f32 %v15227_v18, %v23362_v36  ;;  %v19516_v18 = vld [vmem:[#allocation2 + $0xd8] sm:$0xff] }
 0x886   :  { %13271 = vmatmul.bf16.gmra.mxu2 %v19475_v51  ;;  %v23491_v60 = vadd.f32 %v14591_v7, %v14030_v48  ;;  %v15570_v41 = vadd.f32 %v23419_v43, %v15374_v30  ;;  %v13913_v34 = vpop.f32.mrf.mxu3  ;;  %v19476_v48 = vld [vmem:[#allocation2 + $0x310] sm:$0xff] }
 0x888   :  { %v15762_v47 = vadd.f32 %v19792_v46, %v15570_v41  ;;  %v14596_v22 = vpop.f32.mrf.mxu0 }
 0x889   :  { %v13232_v40 = vpop.f32.mrf.mxu2 }
 0x88a   :  { %v13350_v19 = vadd.f32 %v13232_v40, %v23192_v37  ;;  %v15826_v15 = vmax.f32 %v15762_v47, 0.0  ;;  %v20096_v37 = vld [vmem:[%s23872_s0 + $0x28] sm:$0xff]  }
 0x88b   :  { %v15230_v6 = vpop.f32.mrf.mxu1  ;;  %v19796_v51 = vunpack.c.h.bf16 %v20096_v37 }
 0x88c   :  { %v14031_v21 = vadd.f32 %v13913_v34, %v13350_v19  ;;  %v19924_v36 = vpack.c.bf16 %v15826_v15, %v15825_v8  ;;  %v15375_v7 = vadd.f32 %v15230_v6, %v23368_v35 }
 0x88e   :  { %v23495_v31 = vadd.f32 %v14594_v26, %v14031_v21  ;;  %20126 = vst [vmem:[%s23876_s5 + $0x20] sm:$0xff] %v19924_v36   ;;  %15269 = vmatmul.bf16.gmra.mxu1 %v19586_v42  ;;  %v13915_v16 = vpop.f32.mrf.mxu3  ;;  %v15571_v38 = vadd.f32 %v23419_v43, %v15375_v7  ;;  %v19795_v26 = vunpack.c.l.bf16 %v20096_v37  ;;  %v19587_v21 = vld [vmem:[#allocation2 + $0x2c0] sm:$0xff] }
 0x890   :  { %v14599_v33 = vpop.f32.mrf.mxu0  ;;  %v15763_v30 = vadd.f32 %v19795_v26, %v15571_v38  ;;  %v19477_v26 = vld [vmem:[#allocation2 + $0x318] sm:$0xff] }
 0x891   :  { %v13234_v50 = vpop.f32.mrf.mxu2 }
 0x892   :  { %v13351_v49 = vadd.f32 %v13234_v50, %v23201_v4  ;;  %13957 = vmatmul.bf16.gmra.mxu3 %v19516_v18  ;;  %v15827_v34 = vmax.f32 %v15763_v30, 0.0 }
 0x893   :  { %v15232_v27 = vpop.f32.mrf.mxu1  ;;  %14638 = vmatmul.bf16.gmra.mxu0 %v19556_v29  ;;  %v19517_v29 = vld [vmem:[#allocation2 + $0xe0] sm:$0xff] }
 0x894   :  { %v14032_v9 = vadd.f32 %v13915_v16, %v13351_v49  ;;  %v15376_v35 = vadd.f32 %v15232_v27, %v23374_v57  ;;  %v19557_v49 = vld [vmem:[#allocation2 + $0x200] sm:$0xff] }
 0x896   :  { %13276 = vmatmul.bf16.gmra.mxu2 %v19476_v48  ;;  %v23507_v28 = vadd.f32 %v14596_v22, %v14032_v9  ;;  %v15572_v4 = vadd.f32 %v23419_v43, %v15376_v35  ;;  %v13918_v41 = vpop.f32.mrf.mxu3 }
 0x898   :  { %v15764_v46 = vadd.f32 %v19796_v51, %v15572_v4  ;;  %v14601_v40 = vpop.f32.mrf.mxu0 }
 0x899   :  { %v13237_v62 = vpop.f32.mrf.mxu2 }
 0x89a   :  { %v13352_v47 = vadd.f32 %v13237_v62, %v23207_v63  ;;  %v15828_v19 = vmax.f32 %v15764_v46, 0.0  ;;  %v20097_v63 = vld [vmem:[%s23872_s0 + $0x30] sm:$0xff]  }
 0x89b   :  { %v15235_v15 = vpop.f32.mrf.mxu1  ;;  %v19799_v16 = vunpack.c.l.bf16 %v20097_v63  ;;  %v19800_v9 = vunpack.c.h.bf16 %v20097_v63 }
 0x89c   :  { %v14033_v8 = vadd.f32 %v13918_v41, %v13352_v47  ;;  %v19929_v57 = vpack.c.bf16 %v15828_v19, %v15827_v34  ;;  %v15377_v22 = vadd.f32 %v15235_v15, %v23380_v56  ;;  %v19588_v41 = vld [vmem:[#allocation2 + $0x2c8] sm:$0xff] }
 0x89e   :  { %v23511_v6 = vadd.f32 %v14599_v33, %v14033_v8  ;;  %20127 = vst [vmem:[%s23876_s5 + $0x28] sm:$0xff] %v19929_v57   ;;  %15274 = vmatmul.bf16.gmra.mxu1 %v19587_v21  ;;  %v13920_v42 = vpop.f32.mrf.mxu3  ;;  %v15573_v50 = vadd.f32 %v23419_v43, %v15377_v22 }
 0x8a0   :  { %v14604_v37 = vpop.f32.mrf.mxu0  ;;  %v15765_v48 = vadd.f32 %v19799_v16, %v15573_v50  ;;  %v19518_v50 = vld [vmem:[#allocation2 + $0xe8] sm:$0xff] }
 0x8a1   :  { %v13239_v36 = vpop.f32.mrf.mxu2 }
 0x8a2   :  { %v13353_v7 = vadd.f32 %v13239_v36, %v23213_v3  ;;  %13962 = vmatmul.bf16.gmra.mxu3 %v19517_v29  ;;  %v15829_v46 = vmax.f32 %v15765_v48, 0.0  ;;  %v19558_v36 = vld [vmem:[#allocation2 + $0x208] sm:$0xff] }
 0x8a3   :  { %v15237_v38 = vpop.f32.mrf.mxu1  ;;  %14643 = vmatmul.bf16.gmra.mxu0 %v19557_v49 }
 0x8a4   :  { %v14034_v33 = vadd.f32 %v13920_v42, %v13353_v7  ;;  %v15378_v56 = vadd.f32 %v15237_v38, %v23386_v17 }
 0x8a6   :  { %13281 = vmatmul.bf16.gmra.mxu2 %v19477_v26  ;;  %v23523_v27 = vadd.f32 %v14601_v40, %v14034_v33  ;;  %v15574_v3 = vadd.f32 %v23419_v43, %v15378_v56  ;;  %v13923_v51 = vpop.f32.mrf.mxu3 }
 0x8a8   :  { %v15766_v18 = vadd.f32 %v19800_v9, %v15574_v3  ;;  %v14606_v4 = vpop.f32.mrf.mxu0 }
 0x8a9   :  { %v13242_v35 = vpop.f32.mrf.mxu2 }
 0x8aa   :  { %v13354_v30 = vadd.f32 %v13242_v35, %v23219_v0  ;;  %v15830_v62 = vmax.f32 %v15766_v18, 0.0  ;;  %v20098_v0 = vld [vmem:[%s23872_s0 + $0x38] sm:$0xff]  }
 0x8ab   :  { %v15240_v17 = vpop.f32.mrf.mxu1  ;;  %v19803_v63 = vunpack.c.l.bf16 %v20098_v0  ;;  %v19804_v16 = vunpack.c.h.bf16 %v20098_v0 }
 0x8ac   :  { %v14035_v47 = vadd.f32 %v13923_v51, %v13354_v30  ;;  %v19934_v34 = vpack.c.bf16 %v15830_v62, %v15829_v46  ;;  %v15379_v40 = vadd.f32 %v15240_v17, %v23392_v58  ;;  %v19589_v51 = vld [vmem:[#allocation2 + $0x2e0] sm:$0xff] }
 0x8ae   :  { %v23527_v19 = vadd.f32 %v14604_v37, %v14035_v47  ;;  %20128 = vst [vmem:[%s23876_s5 + $0x30] sm:$0xff] %v19934_v34   ;;  %15279 = vmatmul.bf16.gmra.mxu1 %v19588_v41  ;;  %v13925_v15 = vpop.f32.mrf.mxu3  ;;  %v15575_v22 = vadd.f32 %v23419_v43, %v15379_v40  ;;  %v19478_v37 = vld [vmem:[#allocation2 + $0x320] sm:$0xff]  ;;  %v19559_v34 = vld [vmem:[#allocation2 + $0x210] sm:$0xff] }
 0x8b0   :  { %v14609_v21 = vpop.f32.mrf.mxu0  ;;  %v15767_v33 = vadd.f32 %v19803_v63, %v15575_v22 }
 0x8b1   :  { %v13244_v8 = vpop.f32.mrf.mxu2 }
 0x8b2   :  { %v13355_v57 = vadd.f32 %v13244_v8, %v23225_v11  ;;  %13967 = vmatmul.bf16.gmra.mxu3 %v19518_v50  ;;  %v15831_v9 = vmax.f32 %v15767_v33, 0.0  ;;  %v19479_v8 = vld [vmem:[#allocation2 + $0x328] sm:$0xff] }
 0x8b3   :  { %v15242_v7 = vpop.f32.mrf.mxu1  ;;  %14648 = vmatmul.bf16.gmra.mxu0 %v19558_v36 }
 0x8b4   :  { %v14036_v42 = vadd.f32 %v13925_v15, %v13355_v57  ;;  %v15380_v58 = vadd.f32 %v15242_v7, %v23398_v2  ;;  %v19519_v15 = vld [vmem:[#allocation2 + $0xf0] sm:$0xff] }
 0x8b6   :  { %13286 = vmatmul.bf16.gmra.mxu2 %v19478_v37  ;;  %v23539_v49 = vadd.f32 %v14606_v4, %v14036_v42  ;;  %v15576_v11 = vadd.f32 %v23419_v43, %v15380_v58  ;;  %v13928_v29 = vpop.f32.mrf.mxu3 }
 0x8b8   :  { %v15768_v38 = vadd.f32 %v19804_v16, %v15576_v11  ;;  %v14611_v18 = vpop.f32.mrf.mxu0  ;;  %v19590_v11 = vld [vmem:[#allocation2 + $0x2e8] sm:$0xff] }
 0x8b9   :  { %v13247_v26 = vpop.f32.mrf.mxu2 }
 0x8ba   :  { %v13356_v56 = vadd.f32 %v13247_v26, %v23231_v24  ;;  %v15832_v48 = vmax.f32 %v15768_v38, 0.0  ;;  %v20099_v24 = vld [vmem:[%s23872_s0 + $0x40] sm:$0xff]  }
 0x8bb   :  { %v15245_v35 = vpop.f32.mrf.mxu1  ;;  %v19807_v17 = vunpack.c.l.bf16 %v20099_v24 }
 0x8bc   :  { %v14037_v3 = vadd.f32 %v13928_v29, %v13356_v56  ;;  %v19939_v2 = vpack.c.bf16 %v15832_v48, %v15831_v9  ;;  %v15381_v4 = vadd.f32 %v15245_v35, %v23404_v13  ;;  %v19808_v13 = vunpack.c.h.bf16 %v20099_v24  ;;  %v24485_v48 = vld [vmem:[#allocation49_spill] sm:$0xff]  ;;  %v19480_v24 = vld [vmem:[#allocation2 + $0x330] sm:$0xff] }
 0x8be   :  { %v23543_v30 = vadd.f32 %v14609_v21, %v14037_v3  ;;  %20129 = vst [vmem:[%s23876_s5 + $0x38] sm:$0xff] %v19939_v2   ;;  %15284 = vmatmul.bf16.gmra.mxu1 %v19589_v51  ;;  %v13930_v62 = vpop.f32.mrf.mxu3  ;;  %v15577_v47 = vadd.f32 %v23419_v43, %v15381_v4  ;;  %v19560_v2 = vld [vmem:[#allocation2 + $0x218] sm:$0xff] }
 0x8c0   :  { %v14614_v21 = vpop.f32.mrf.mxu0  ;;  %v15769_v63 = vadd.f32 %v19807_v17, %v15577_v47 }
 0x8c1   :  { %v13249_v46 = vpop.f32.mrf.mxu2 }
 0x8c2   :  { %v13357_v41 = vadd.f32 %v13249_v46, %v23237_v61  ;;  %13972 = vmatmul.bf16.gmra.mxu3 %v19519_v15  ;;  %v15833_v50 = vmax.f32 %v15769_v63, 0.0  ;;  %v19520_v46 = vld [vmem:[#allocation2 + $0xf8] sm:$0xff] }
 0x8c3   :  { %v15247_v0 = vpop.f32.mrf.mxu1  ;;  %14653 = vmatmul.bf16.gmra.mxu0 %v19559_v34 }
 0x8c4   :  { %v14038_v40 = vadd.f32 %v13930_v62, %v13357_v41  ;;  %v15382_v57 = vadd.f32 %v15247_v0, %v23410_v32 }
 0x8c6   :  { %13291 = vmatmul.bf16.gmra.mxu2 %v19479_v8  ;;  %v23555_v22 = vadd.f32 %v14611_v18, %v14038_v40  ;;  %v15578_v61 = vadd.f32 %v23419_v43, %v15382_v57  ;;  %v13933_v7 = vpop.f32.mrf.mxu3  ;;  %v24486_v8 = vld [vmem:[#allocation6_spill] sm:$0xff] }
 0x8c8   :  { %v15770_v36 = vadd.f32 %v19808_v13, %v15578_v61  ;;  %v14616_v29 = vpop.f32.mrf.mxu0 }
 0x8c9   :  { %v13252_v42 = vpop.f32.mrf.mxu2 }
 0x8ca   :  { %v13358_v37 = vadd.f32 %v13252_v42, %v23243_v5  ;;  %v15834_v58 = vmax.f32 %v15770_v36, 0.0  ;;  %v20100_v5 = vld [vmem:[%s23872_s0 + $0x48] sm:$0xff]   ;;  %v19591_v36 = vld [vmem:[#allocation2 + $0x2f0] sm:$0xff] }
 0x8cb   :  { %v15250_v33 = vpop.f32.mrf.mxu1  ;;  %v19811_v35 = vunpack.c.l.bf16 %v20100_v5  ;;  %v19812_v62 = vunpack.c.h.bf16 %v20100_v5 }
 0x8cc   :  { %v14039_v16 = vadd.f32 %v13933_v7, %v13358_v37  ;;  %v19944_v32 = vpack.c.bf16 %v15834_v58, %v15833_v50  ;;  %v15383_v26 = vadd.f32 %v15250_v33, %v23413_v12  ;;  %v20101_v37 = vld [vmem:[%s23872_s0 + $0x50] sm:$0xff]   ;;  %v24487_v58 = vld [vmem:[#allocation9_spill] sm:$0xff] }
 0x8ce   :  { %v23559_v38 = vadd.f32 %v14614_v21, %v14039_v16  ;;  %20130 = vst [vmem:[%s23876_s5 + $0x40] sm:$0xff] %v19944_v32   ;;  %15289 = vmatmul.bf16.gmra.mxu1 %v19590_v11  ;;  %v13935_v9 = vpop.f32.mrf.mxu3  ;;  %v15579_v18 = vadd.f32 %v23419_v43, %v15383_v26  ;;  %v19815_v32 = vunpack.c.l.bf16 %v20101_v37  ;;  %v19561_v26 = vld [vmem:[#allocation2 + $0x220] sm:$0xff] }
 0x8d0   :  { %v15771_v47 = vadd.f32 %v19811_v35, %v15579_v18  ;;  %v14619_v13 = vpop.f32.mrf.mxu0 }
 0x8d1   :  { %v13254_v56 = vpop.f32.mrf.mxu2 }
 0x8d2   :  { %v13359_v3 = vadd.f32 %v13254_v56, %v24485_v48  ;;  %13977 = vmatmul.bf16.gmra.mxu3 %v19520_v46  ;;  %v15835_v57 = vmax.f32 %v15771_v47, 0.0  ;;  %v19481_v56 = vld [vmem:[#allocation2 + $0x338] sm:$0xff] }
 0x8d3   :  { %v15252_v4 = vpop.f32.mrf.mxu1  ;;  %14658 = vmatmul.bf16.gmra.mxu0 %v19560_v2  ;;  %v20102_v47 = vld [vmem:[%s23872_s0 + $0x58] sm:$0xff]  }
 0x8d4   :  { %v14040_v51 = vadd.f32 %v13935_v9, %v13359_v3  ;;  %v15384_v12 = vadd.f32 %v15252_v4, %v23427_v23  ;;  %v19521_v9 = vld [vmem:[#allocation2 + $0x100] sm:$0xff]  ;;  %v19816_v3 = vunpack.c.h.bf16 %v20101_v37 }
 0x8d5   :  { %v19593_v37 = vld [vmem:[#allocation2 + $0x300] sm:$0xff] }
 0x8d6   :  { %13296 = vmatmul.bf16.gmra.mxu2 %v19480_v24  ;;  %v23571_v41 = vadd.f32 %v14616_v29, %v14040_v51  ;;  %v15580_v17 = vadd.f32 %v23419_v43, %v15384_v12  ;;  %v13938_v0 = vpop.f32.mrf.mxu3 }
 0x8d8   :  { %v15772_v34 = vadd.f32 %v19812_v62, %v15580_v17  ;;  %v14621_v48 = vpop.f32.mrf.mxu0  ;;  %v19592_v62 = vld [vmem:[#allocation2 + $0x2f8] sm:$0xff] }
 0x8d9   :  { %v13257_v40 = vpop.f32.mrf.mxu2 }
 0x8da   :  { %v13360_v15 = vadd.f32 %v13257_v40, %v24486_v8  ;;  %v15836_v21 = vmax.f32 %v15772_v34, 0.0  ;;  %v19819_v34 = vunpack.c.l.bf16 %v20102_v47  ;;  %v19562_v40 = vld [vmem:[#allocation2 + $0x228] sm:$0xff]  ;;  %v19482_v8 = vld [vmem:[#allocation2 + $0x340] sm:$0xff] }
 0x8db   :  { %v15255_v61 = vpop.f32.mrf.mxu1 }
 0x8dc   :  { %v14041_v63 = vadd.f32 %v13938_v0, %v13360_v15  ;;  %v19949_v23 = vpack.c.bf16 %v15836_v21, %v15835_v57  ;;  %v15385_v7 = vadd.f32 %v15255_v61, %v23431_v20  ;;  %v19522_v15 = vld [vmem:[#allocation2 + $0x108] sm:$0xff] }
 0x8de   :  { %v23575_v42 = vadd.f32 %v14619_v13, %v14041_v63  ;;  %20131 = vst [vmem:[%s23876_s5 + $0x48] sm:$0xff] %v19949_v23   ;;  %15294 = vmatmul.bf16.gmra.mxu1 %v19591_v36  ;;  %v15581_v33 = vadd.f32 %v23419_v43, %v15385_v7  ;;  %v13940_v11 = vpop.f32.mrf.mxu3  ;;  %v19820_v13 = vunpack.c.h.bf16 %v20102_v47 }
 0x8e0   :  { %v15773_v35 = vadd.f32 %v19815_v32, %v15581_v33  ;;  %v19563_v33 = vld [vmem:[#allocation2 + $0x230] sm:$0xff] }
 0x8e1   :  { %v13259_v50 = vpop.f32.mrf.mxu2 }
 0x8e2   :  { %v13361_v16 = vadd.f32 %v13259_v50, %v24487_v58  ;;  %13982 = vmatmul.bf16.gmra.mxu3 %v19521_v9  ;;  %v15837_v4 = vmax.f32 %v15773_v35, 0.0 }
 0x8e3   :  { %v15257_v5 = vpop.f32.mrf.mxu1  ;;  %14663 = vmatmul.bf16.gmra.mxu0 %v19561_v26  ;;  %v19523_v26 = vld [vmem:[#allocation2 + $0x110] sm:$0xff] }
 0x8e4   :  { %v14042_v29 = vadd.f32 %v13940_v11, %v13361_v16  ;;  %v15386_v20 = vadd.f32 %v15257_v5, %v23443_v59  ;;  %v19483_v11 = vld [vmem:[#allocation2 + $0x348] sm:$0xff] }
 0x8e6   :  { %13301 = vmatmul.bf16.gmra.mxu2 %v19481_v56  ;;  %v23587_v18 = vadd.f32 %v14621_v48, %v14042_v29  ;;  %v15582_v2 = vadd.f32 %v23419_v43, %v15386_v20 }
 0x8e8   :  { %v15774_v51 = vadd.f32 %v19816_v3, %v15582_v2  ;;  %v19594_v2 = vld [vmem:[#allocation2 + $0x308] sm:$0xff] }
 0x8ea   :  { %v15838_v24 = vmax.f32 %v15774_v51, 0.0 }
 0x8eb   :  { %v15260_v46 = vpop.f32.mrf.mxu1 }
 0x8ec   :  { %v19954_v12 = vpack.c.bf16 %v15838_v24, %v15837_v4  ;;  %v15387_v59 = vadd.f32 %v15260_v46, %v23447_v14  ;;  %v19564_v4 = vld [vmem:[#allocation2 + $0x238] sm:$0xff] }
 0x8ed   :  { %v19524_v24 = vld [vmem:[#allocation2 + $0x118] sm:$0xff] }
 0x8ee   :  { %20132 = vst [vmem:[%s23876_s5 + $0x50] sm:$0xff] %v19954_v12   ;;  %15299 = vmatmul.bf16.gmra.mxu1 %v19592_v62  ;;  %v15583_v17 = vadd.f32 %v23419_v43, %v15387_v59  ;;  %v19484_v59 = vld [vmem:[#allocation2 + $0x350] sm:$0xff] }
 0x8f0   :  { %v15775_v21 = vadd.f32 %v19819_v34, %v15583_v17 }
 0x8f2   :  { %13987 = vmatmul.bf16.gmra.mxu3 %v19522_v15  ;;  %v15839_v61 = vmax.f32 %v15775_v21, 0.0 }
 0x8f3   :  { %v15262_v0 = vpop.f32.mrf.mxu1  ;;  %14668 = vmatmul.bf16.gmra.mxu0 %v19562_v40 }
 0x8f4   :  { %v15388_v57 = vadd.f32 %v15262_v0, %v23459_v25  ;;  %v20103_v25 = vld [vmem:[%s23872_s0 + $0x60] sm:$0xff]  }
 0x8f5   :  { %v19823_v16 = vunpack.c.l.bf16 %v20103_v25  ;;  %v19824_v5 = vunpack.c.h.bf16 %v20103_v25 }
 0x8f6   :  { %13306 = vmatmul.bf16.gmra.mxu2 %v19482_v8  ;;  %v15584_v14 = vadd.f32 %v23419_v43, %v15388_v57 }
 0x8f8   :  { %v15776_v63 = vadd.f32 %v19820_v13, %v15584_v14  ;;  %v19595_v13 = vld [vmem:[#allocation2 + $0x310] sm:$0xff] }
 0x8fa   :  { %v15840_v23 = vmax.f32 %v15776_v63, 0.0 }
 0x8fb   :  { %v15265_v36 = vpop.f32.mrf.mxu1 }
 0x8fc   :  { %v19959_v7 = vpack.c.bf16 %v15840_v23, %v15839_v61  ;;  %v15389_v50 = vadd.f32 %v15265_v36, %v23463_v44 }
 0x8fe   :  { %20133 = vst [vmem:[%s23876_s5 + $0x58] sm:$0xff] %v19959_v7   ;;  %15304 = vmatmul.bf16.gmra.mxu1 %v19593_v37  ;;  %v15585_v58 = vadd.f32 %v23419_v43, %v15389_v50 }
 0x900   :  { %v15777_v56 = vadd.f32 %v19823_v16, %v15585_v58 }
 0x902   :  { %13992 = vmatmul.bf16.gmra.mxu3 %v19523_v26  ;;  %v15841_v48 = vmax.f32 %v15777_v56, 0.0 }
 0x903   :  { %v15267_v32 = vpop.f32.mrf.mxu1  ;;  %14673 = vmatmul.bf16.gmra.mxu0 %v19563_v33  ;;  %v19596_v33 = vld [vmem:[#allocation2 + $0x318] sm:$0xff] }
 0x904   :  { %v15390_v29 = vadd.f32 %v15267_v32, %v23475_v45  ;;  %v20104_v45 = vld [vmem:[%s23872_s0 + $0x68] sm:$0xff]  }
 0x905   :  { %v19827_v12 = vunpack.c.l.bf16 %v20104_v45  ;;  %v19828_v17 = vunpack.c.h.bf16 %v20104_v45  ;;  %v23647_v45 = vpop.f32.mrf.mxu2 }
 0x906   :  { %13311 = vmatmul.bf16.gmra.mxu2 %v19483_v11  ;;  %v15586_v44 = vadd.f32 %v23419_v43, %v15390_v29 }
 0x908   :  { %v15778_v9 = vadd.f32 %v19824_v5, %v15586_v44 }
 0x90a   :  { %v15842_v20 = vmax.f32 %v15778_v9, 0.0 }
 0x90b   :  { %v15270_v3 = vpop.f32.mrf.mxu1 }
 0x90c   :  { %v19964_v35 = vpack.c.bf16 %v15842_v20, %v15841_v48  ;;  %v15391_v51 = vadd.f32 %v15270_v3, %v23479_v54 }
 0x90e   :  { %20134 = vst [vmem:[%s23876_s5 + $0x60] sm:$0xff] %v19964_v35   ;;  %15309 = vmatmul.bf16.gmra.mxu1 %v19594_v2  ;;  %v15587_v46 = vadd.f32 %v23419_v43, %v15391_v51  ;;  %v19597_v2 = vld [vmem:[#allocation2 + $0x320] sm:$0xff] }
 0x910   :  { %v15779_v34 = vadd.f32 %v19827_v12, %v15587_v46 }
 0x912   :  { %13997 = vmatmul.bf16.gmra.mxu3 %v19524_v24  ;;  %v15843_v0 = vmax.f32 %v15779_v34, 0.0  ;;  %v23654_v34 = vpop.f32.mrf.mxu0 }
 0x913   :  { %v15272_v62 = vpop.f32.mrf.mxu1  ;;  %14678 = vmatmul.bf16.gmra.mxu0 %v19564_v4 }
 0x914   :  { %v15392_v47 = vadd.f32 %v15272_v62, %v23491_v60  ;;  %v20105_v60 = vld [vmem:[%s23872_s0 + $0x70] sm:$0xff]  }
 0x915   :  { %v19831_v63 = vunpack.c.l.bf16 %v20105_v60  ;;  %v19832_v36 = vunpack.c.h.bf16 %v20105_v60 }
 0x916   :  { %13316 = vmatmul.bf16.gmra.mxu2 %v19484_v59  ;;  %v15588_v54 = vadd.f32 %v23419_v43, %v15392_v47 }
 0x918   :  { %v15780_v40 = vadd.f32 %v19828_v17, %v15588_v54  ;;  %v23652_v17 = vpop.f32.mrf.mxu3 }
 0x91a   :  { %v15844_v8 = vmax.f32 %v15780_v40, 0.0 }
 0x91b   :  { %v15275_v15 = vpop.f32.mrf.mxu1 }
 0x91c   :  { %v19969_v57 = vpack.c.bf16 %v15844_v8, %v15843_v0  ;;  %v15393_v21 = vadd.f32 %v15275_v15, %v23495_v31  ;;  %v23656_v0 = vpop.f32.mrf.mxu2 }
 0x91e   :  { %20135 = vst [vmem:[%s23876_s5 + $0x68] sm:$0xff] %v19969_v57   ;;  %15314 = vmatmul.bf16.gmra.mxu1 %v19595_v13  ;;  %v15589_v14 = vadd.f32 %v23419_v43, %v15393_v21  ;;  %v19598_v57 = vld [vmem:[#allocation2 + $0x328] sm:$0xff] }
 0x91f   :  { %v20108_v13 = vld [vmem:[%s23872_s0 + $0x88] sm:$0xff]  }
 0x920   :  { %v15781_v7 = vadd.f32 %v19831_v63, %v15589_v14  ;;  %v23665_v21 = vpop.f32.mrf.mxu3  ;;  %v19843_v14 = vunpack.c.l.bf16 %v20108_v13 }
 0x922   :  { %v15845_v25 = vmax.f32 %v15781_v7, 0.0 }
 0x923   :  { %v15277_v61 = vpop.f32.mrf.mxu1 }
 0x924   :  { %v15394_v23 = vadd.f32 %v15277_v61, %v23507_v28  ;;  %v20106_v28 = vld [vmem:[%s23872_s0 + $0x78] sm:$0xff]   ;;  %v23668_v61 = vpop.f32.mrf.mxu0  ;;  %v23671_v7 = vpop.f32.mrf.mxu2 }
 0x925   :  { %v19835_v26 = vunpack.c.l.bf16 %v20106_v28  ;;  %v19836_v56 = vunpack.c.h.bf16 %v20106_v28 }
 0x926   :  { %v15590_v37 = vadd.f32 %v23419_v43, %v15394_v23 }
 0x928   :  { %v15782_v50 = vadd.f32 %v19832_v36, %v15590_v37  ;;  %v19844_v36 = vunpack.c.h.bf16 %v20108_v13 }
 0x92a   :  { %v15846_v58 = vmax.f32 %v15782_v50, 0.0 }
 0x92b   :  { %v15280_v16 = vpop.f32.mrf.mxu1 }
 0x92c   :  { %v19974_v31 = vpack.c.bf16 %v15846_v58, %v15845_v25  ;;  %v15395_v32 = vadd.f32 %v15280_v16, %v23511_v6  ;;  %v23679_v16 = vpop.f32.mrf.mxu3 }
 0x92e   :  { %20136 = vst [vmem:[%s23876_s5 + $0x70] sm:$0xff] %v19974_v31   ;;  %15319 = vmatmul.bf16.gmra.mxu1 %v19596_v33  ;;  %v15591_v11 = vadd.f32 %v23419_v43, %v15395_v32  ;;  %v19599_v32 = vld [vmem:[#allocation2 + $0x330] sm:$0xff] }
 0x930   :  { %v15783_v44 = vadd.f32 %v19835_v26, %v15591_v11  ;;  %v23687_v11 = vpop.f32.mrf.mxu2  ;;  %v20109_v26 = vld [vmem:[%s23872_s0 + $0x90] sm:$0xff]  }
 0x932   :  { %v15847_v20 = vmax.f32 %v15783_v44, 0.0 }
 0x933   :  { %v15282_v29 = vpop.f32.mrf.mxu1 }
 0x934   :  { %v15396_v5 = vadd.f32 %v15282_v29, %v23523_v27  ;;  %v20107_v27 = vld [vmem:[%s23872_s0 + $0x80] sm:$0xff]  }
 0x935   :  { %v19839_v24 = vunpack.c.l.bf16 %v20107_v27  ;;  %v19840_v62 = vunpack.c.h.bf16 %v20107_v27 }
 0x936   :  { %v15592_v9 = vadd.f32 %v23419_v43, %v15396_v5  ;;  %v19847_v5 = vunpack.c.l.bf16 %v20109_v26 }
 0x938   :  { %v15784_v48 = vadd.f32 %v19836_v56, %v15592_v9  ;;  %v19848_v9 = vunpack.c.h.bf16 %v20109_v26 }
 0x93a   :  { %v15848_v3 = vmax.f32 %v15784_v48, 0.0  ;;  %v23694_v48 = vpop.f32.mrf.mxu3 }
 0x93b   :  { %v15285_v35 = vpop.f32.mrf.mxu1 }
 0x93c   :  { %v19979_v6 = vpack.c.bf16 %v15848_v3, %v15847_v20  ;;  %v15397_v51 = vadd.f32 %v15285_v35, %v23527_v19 }
 0x93e   :  { %20137 = vst [vmem:[%s23876_s5 + $0x78] sm:$0xff] %v19979_v6   ;;  %15324 = vmatmul.bf16.gmra.mxu1 %v19597_v2  ;;  %v15593_v4 = vadd.f32 %v23419_v43, %v15397_v51  ;;  %v23699_v6 = vpop.f32.mrf.mxu2 }
 0x940   :  { %v15785_v59 = vadd.f32 %v19839_v24, %v15593_v4  ;;  %v19600_v24 = vld [vmem:[#allocation2 + $0x338] sm:$0xff] }
 0x942   :  { %v15849_v54 = vmax.f32 %v15785_v59, 0.0 }
 0x943   :  { %v15287_v46 = vpop.f32.mrf.mxu1 }
 0x944   :  { %v15398_v12 = vadd.f32 %v15287_v46, %v23539_v49  ;;  %v23705_v46 = vpop.f32.mrf.mxu3 }
 0x946   :  { %v15594_v47 = vadd.f32 %v23419_v43, %v15398_v12  ;;  %v20110_v12 = vld [vmem:[%s23872_s0 + $0x98] sm:$0xff]  }
 0x948   :  { %v15786_v19 = vadd.f32 %v19840_v62, %v15594_v47  ;;  %v19851_v47 = vunpack.c.l.bf16 %v20110_v12 }
 0x94a   :  { %v15850_v40 = vmax.f32 %v15786_v19, 0.0  ;;  %v23713_v19 = vpop.f32.mrf.mxu2 }
 0x94b   :  { %v15290_v8 = vpop.f32.mrf.mxu1 }
 0x94c   :  { %v19984_v15 = vpack.c.bf16 %v15850_v40, %v15849_v54  ;;  %v15399_v49 = vadd.f32 %v15290_v8, %v23543_v30  ;;  %v23676_v30 = vld [vmem:[%s23875_s4] ss:$0 sm:$0xff]  ;;  %v24488_v40 = vld [vmem:[#allocation11_spill] sm:$0xff] }
 0x94d   :  { %v13362_v8 = vadd.f32 %v23647_v45, %v24488_v40 }
 0x94e   :  { %20138 = vst [vmem:[%s23876_s5 + $0x80] sm:$0xff] %v19984_v15   ;;  %15329 = vmatmul.bf16.gmra.mxu1 %v19598_v57  ;;  %v15595_v60 = vadd.f32 %v23419_v43, %v15399_v49  ;;  %v19852_v15 = vunpack.c.h.bf16 %v20110_v12  ;;  %v19602_v12 = vld [vmem:[#allocation2 + $0x348] sm:$0xff] }
 0x94f   :  { %v14043_v13 = vadd.f32 %v23652_v17, %v13362_v8 }
 0x950   :  { %v15787_v37 = vadd.f32 %v19843_v14, %v15595_v60  ;;  %v23720_v14 = vpop.f32.mrf.mxu3 }
 0x952   :  { %v15851_v58 = vmax.f32 %v15787_v37, 0.0 }
 0x953   :  { %v15292_v63 = vpop.f32.mrf.mxu1 }
 0x954   :  { %v15400_v23 = vadd.f32 %v15292_v63, %v23555_v22  ;;  %v23681_v22 = vpop.f32.mrf.mxu0  ;;  %v24489_v63 = vld [vmem:[#allocation10_spill] sm:$0xff] }
 0x956   :  { %v15596_v50 = vadd.f32 %v23676_v30, %v15400_v23  ;;  %v13363_v23 = vadd.f32 %v23656_v0, %v24489_v63  ;;  %v20111_v0 = vld [vmem:[%s23872_s0 + $0xa0] sm:$0xff]  }
 0x958   :  { %v15788_v25 = vadd.f32 %v19844_v36, %v15596_v50 }
 0x95a   :  { %v15852_v43 = vmax.f32 %v15788_v25, 0.0 }
 0x95b   :  { %v15295_v31 = vpop.f32.mrf.mxu1 }
 0x95c   :  { %v19989_v33 = vpack.c.bf16 %v15852_v43, %v15851_v58  ;;  %v15401_v28 = vadd.f32 %v15295_v31, %v23559_v38  ;;  %v23697_v38 = vpop.f32.mrf.mxu0  ;;  %v19601_v58 = vld [vmem:[#allocation2 + $0x340] sm:$0xff]  ;;  %v23727_v43 = vpop.f32.mrf.mxu2  ;;  %v14044_v31 = vadd.f32 %v23665_v21, %v13363_v23 }
 0x95e   :  { %20139 = vst [vmem:[%s23876_s5 + $0x88] sm:$0xff] %v19989_v33   ;;  %15334 = vmatmul.bf16.gmra.mxu1 %v19599_v32  ;;  %v15597_v29 = vadd.f32 %v23676_v30, %v15401_v28  ;;  %v19855_v32 = vunpack.c.l.bf16 %v20111_v0  ;;  %v23738_v28 = vpop.f32.mrf.mxu3 }
 0x960   :  { %v15789_v20 = vadd.f32 %v19847_v5, %v15597_v29  ;;  %v24490_v29 = vld [vmem:[#allocation8_spill] sm:$0xff] }
 0x961   :  { %v13364_v21 = vadd.f32 %v23671_v7, %v24490_v29 }
 0x962   :  { %v15853_v2 = vmax.f32 %v15789_v20, 0.0 }
 0x963   :  { %v15297_v56 = vpop.f32.mrf.mxu1 }
 0x964   :  { %v15402_v44 = vadd.f32 %v15297_v56, %v23571_v41  ;;  %v23710_v62 = vpop.f32.mrf.mxu0  ;;  %v19856_v56 = vunpack.c.h.bf16 %v20111_v0 }
 0x966   :  { %v15598_v3 = vadd.f32 %v23676_v30, %v15402_v44 }
 0x968   :  { %v15790_v35 = vadd.f32 %v19848_v9, %v15598_v3  ;;  %v13279_v3 = vpop.f32.mrf.mxu2 }
 0x96a   :  { %v15854_v51 = vmax.f32 %v15790_v35, 0.0  ;;  %v14045_v35 = vadd.f32 %v23679_v16, %v13364_v21  ;;  %v20112_v16 = vld [vmem:[%s23872_s0 + $0xa8] sm:$0xff]  }
 0x96b   :  { %v15300_v27 = vpop.f32.mrf.mxu1 }
 0x96c   :  { %v19994_v4 = vpack.c.bf16 %v15854_v51, %v15853_v2  ;;  %v15403_v41 = vadd.f32 %v15300_v27, %v23575_v42  ;;  %v23724_v25 = vpop.f32.mrf.mxu0  ;;  %v24491_v51 = vld [vmem:[#allocation12_spill] sm:$0xff]  ;;  %v14726_v7 = vadd.f32 %v23681_v22, %v14045_v35  ;;  %v13369_v35 = vadd.f32 %v13279_v3, %v23312_v39  ;;  %v20114_v39 = vld [vmem:[%s23872_s0 + $0xb8] sm:$0xff]  }
 0x96e   :  { %20140 = vst [vmem:[%s23876_s5 + $0x90] sm:$0xff] %v19994_v4   ;;  %15339 = vmatmul.bf16.gmra.mxu1 %v19600_v24  ;;  %v15599_v59 = vadd.f32 %v23676_v30, %v15403_v41 }
 0x970   :  { %v15791_v57 = vadd.f32 %v19851_v47, %v15599_v59  ;;  %v13960_v59 = vpop.f32.mrf.mxu3  ;;  %v13282_v40 = vpop.f32.mrf.mxu2 }
 0x972   :  { %v15855_v36 = vmax.f32 %v15791_v57, 0.0 }
 0x973   :  { %v15302_v54 = vpop.f32.mrf.mxu1 }
 0x974   :  { %v15404_v42 = vadd.f32 %v15302_v54, %v23587_v18  ;;  %v14724_v18 = vadd.f32 %v23654_v34, %v14043_v13  ;;  %v14725_v34 = vadd.f32 %v23668_v61, %v14044_v31  ;;  %v23742_v44 = vpop.f32.mrf.mxu0  ;;  %v13365_v61 = vadd.f32 %v23687_v11, %v24491_v51 }
 0x976   :  { %v15600_v49 = vadd.f32 %v23676_v30, %v15404_v42  ;;  %v14046_v47 = vadd.f32 %v23694_v48, %v13365_v61  ;;  %v19859_v42 = vunpack.c.l.bf16 %v20112_v16  ;;  %v13366_v48 = vadd.f32 %v23699_v6, %v23294_v10  ;;  %v19603_v6 = vld [vmem:[#allocation2 + $0x350] sm:$0xff]  ;;  %v19604_v61 = vld [vmem:[#allocation2 + $0x358] sm:$0xff] }
 0x978   :  { %v15792_v60 = vadd.f32 %v19852_v15, %v15600_v49  ;;  %v14727_v22 = vadd.f32 %v23697_v38, %v14046_v47  ;;  %v19860_v49 = vunpack.c.h.bf16 %v20112_v16  ;;  %v13963_v63 = vpop.f32.mrf.mxu3  ;;  %v14047_v23 = vadd.f32 %v23705_v46, %v13366_v48  ;;  %v13284_v38 = vpop.f32.mrf.mxu2 }
 0x97a   :  { %v15856_v37 = vmax.f32 %v15792_v60, 0.0  ;;  %v14728_v10 = vadd.f32 %v23710_v62, %v14047_v23 }
 0x97b   :  { %v15305_v50 = vpop.f32.mrf.mxu1 }
 0x97c   :  { %v19999_v45 = vpack.c.bf16 %v15856_v37, %v15855_v36  ;;  %v15405_v17 = vadd.f32 %v15305_v50, %v14724_v18  ;;  %v14641_v11 = vpop.f32.mrf.mxu0  ;;  %v13367_v37 = vadd.f32 %v23713_v19, %v23300_v52  ;;  %v20113_v52 = vld [vmem:[%s23872_s0 + $0xb0] sm:$0xff]  }
 0x97d   :  { %v19864_v29 = vunpack.c.h.bf16 %v20113_v52 }
 0x97e   :  { %20141 = vst [vmem:[%s23876_s5 + $0x98] sm:$0xff] %v19999_v45   ;;  %15344 = vmatmul.bf16.gmra.mxu1 %v19601_v58  ;;  %v15601_v33 = vadd.f32 %v23676_v30, %v15405_v17  ;;  %v14048_v17 = vadd.f32 %v23720_v14, %v13367_v37  ;;  %v13368_v14 = vadd.f32 %v23727_v43, %v23306_v55 }
 0x97f   :  { %v14050_v43 = vadd.f32 %v13960_v59, %v13369_v35  ;;  %v20116_v35 = vld [vmem:[%s23872_s0 + $0xc8] sm:$0xff]  }
 0x980   :  { %v15793_v9 = vadd.f32 %v19855_v32, %v15601_v33  ;;  %v13965_v19 = vpop.f32.mrf.mxu3  ;;  %v19863_v33 = vunpack.c.l.bf16 %v20113_v52  ;;  %v14729_v32 = vadd.f32 %v23724_v25, %v14048_v17  ;;  %v13287_v21 = vpop.f32.mrf.mxu2 }
 0x982   :  { %v15857_v27 = vmax.f32 %v15793_v9, 0.0  ;;  %v14049_v9 = vadd.f32 %v23738_v28, %v13368_v14 }
 0x983   :  { %v15307_v26 = vpop.f32.mrf.mxu1 }
 0x984   :  { %v15406_v5 = vadd.f32 %v15307_v26, %v14725_v34  ;;  %v14644_v50 = vpop.f32.mrf.mxu0  ;;  %v14730_v55 = vadd.f32 %v23742_v44, %v14049_v9  ;;  %v13370_v44 = vadd.f32 %v13282_v40, %v23318_v53 }
 0x986   :  { %v15602_v20 = vadd.f32 %v23676_v30, %v15406_v5 }
 0x988   :  { %v15794_v2 = vadd.f32 %v19856_v56, %v15602_v20  ;;  %v13968_v25 = vpop.f32.mrf.mxu3  ;;  %v13289_v28 = vpop.f32.mrf.mxu2 }
 0x98a   :  { %v15858_v4 = vmax.f32 %v15794_v2, 0.0 }
 0x98b   :  { %v15310_v24 = vpop.f32.mrf.mxu1 }
 0x98c   :  { %v20004_v41 = vpack.c.bf16 %v15858_v4, %v15857_v27  ;;  %v15407_v54 = vadd.f32 %v15310_v24, %v14726_v7  ;;  %v14646_v34 = vpop.f32.mrf.mxu0  ;;  %v19867_v7 = vunpack.c.l.bf16 %v20114_v39 }
 0x98e   :  { %20142 = vst [vmem:[%s23876_s5 + $0xa0] sm:$0xff] %v20004_v41   ;;  %15349 = vmatmul.bf16.gmra.mxu1 %v19602_v12  ;;  %v15603_v8 = vadd.f32 %v23676_v30, %v15407_v54  ;;  %v14731_v12 = vadd.f32 %v14641_v11, %v14050_v43  ;;  %v19868_v54 = vunpack.c.h.bf16 %v20114_v39 }
 0x990   :  { %v15795_v13 = vadd.f32 %v19859_v42, %v15603_v8  ;;  %v13970_v16 = vpop.f32.mrf.mxu3 }
 0x992   :  { %v15859_v45 = vmax.f32 %v15795_v13, 0.0 }
 0x993   :  { %v15312_v15 = vpop.f32.mrf.mxu1 }
 0x994   :  { %v15408_v57 = vadd.f32 %v15312_v15, %v14727_v22  ;;  %v14649_v24 = vpop.f32.mrf.mxu0  ;;  %v14051_v22 = vadd.f32 %v13963_v63, %v13370_v44  ;;  %v20115_v63 = vld [vmem:[%s23872_s0 + $0xc0] sm:$0xff]  }
 0x995   :  { %v19872_v17 = vunpack.c.h.bf16 %v20115_v63 }
 0x996   :  { %v15604_v60 = vadd.f32 %v23676_v30, %v15408_v57  ;;  %v13292_v57 = vpop.f32.mrf.mxu2  ;;  %v14732_v11 = vadd.f32 %v14644_v50, %v14051_v22 }
 0x998   :  { %v15796_v36 = vadd.f32 %v19860_v49, %v15604_v60  ;;  %v13371_v49 = vadd.f32 %v13284_v38, %v23324_v1  ;;  %v13973_v40 = vpop.f32.mrf.mxu3  ;;  %v19871_v1 = vunpack.c.l.bf16 %v20115_v63 }
 0x99a   :  { %v15860_v18 = vmax.f32 %v15796_v36, 0.0  ;;  %v14052_v37 = vadd.f32 %v13965_v19, %v13371_v49 }
 0x99b   :  { %v15315_v58 = vpop.f32.mrf.mxu1 }
 0x99c   :  { %v20009_v31 = vpack.c.bf16 %v15860_v18, %v15859_v45  ;;  %v15409_v46 = vadd.f32 %v15315_v58, %v14728_v10  ;;  %v14651_v15 = vpop.f32.mrf.mxu0  ;;  %v14733_v38 = vadd.f32 %v14646_v34, %v14052_v37  ;;  %v24492_v10 = vld [vmem:[#allocation15_spill] sm:$0xff]  ;;  %v24496_v37 = vld [vmem:[#allocation14_spill] sm:$0xff] }
 0x99d   :  { %v13372_v50 = vadd.f32 %v13287_v21, %v24492_v10 }
 0x99e   :  { %20143 = vst [vmem:[%s23876_s5 + $0xa8] sm:$0xff] %v20009_v31   ;;  %15354 = vmatmul.bf16.gmra.mxu1 %v19603_v6  ;;  %v15605_v0 = vadd.f32 %v23676_v30, %v15409_v46  ;;  %v13294_v58 = vpop.f32.mrf.mxu2 }
 0x99f   :  { %v14053_v19 = vadd.f32 %v13968_v25, %v13372_v50 }
 0x9a0   :  { %v15797_v5 = vadd.f32 %v19863_v33, %v15605_v0  ;;  %v13975_v33 = vpop.f32.mrf.mxu3 }
 0x9a1   :  { %v14734_v34 = vadd.f32 %v14649_v24, %v14053_v19  ;;  %v19876_v24 = vunpack.c.h.bf16 %v20116_v35 }
 0x9a2   :  { %v15861_v2 = vmax.f32 %v15797_v5, 0.0 }
 0x9a3   :  { %v15317_v62 = vpop.f32.mrf.mxu1 }
 0x9a4   :  { %v15410_v26 = vadd.f32 %v15317_v62, %v14729_v32  ;;  %v14654_v45 = vpop.f32.mrf.mxu0  ;;  %v24493_v32 = vld [vmem:[#allocation13_spill] sm:$0xff] }
 0x9a5   :  { %v13373_v62 = vadd.f32 %v13289_v28, %v24493_v32 }
 0x9a6   :  { %v15606_v56 = vadd.f32 %v23676_v30, %v15410_v26  ;;  %v13297_v9 = vpop.f32.mrf.mxu2 }
 0x9a8   :  { %v15798_v20 = vadd.f32 %v19864_v29, %v15606_v56  ;;  %v13978_v25 = vpop.f32.mrf.mxu3 }
 0x9aa   :  { %v15862_v51 = vmax.f32 %v15798_v20, 0.0  ;;  %v14054_v20 = vadd.f32 %v13970_v16, %v13373_v62  ;;  %v20118_v62 = vld [vmem:[%s23872_s0 + $0xd8] sm:$0xff]  }
 0x9ab   :  { %v15320_v27 = vpop.f32.mrf.mxu1 }
 0x9ac   :  { %v20014_v4 = vpack.c.bf16 %v15862_v51, %v15861_v2  ;;  %v15411_v41 = vadd.f32 %v15320_v27, %v14730_v55  ;;  %v14656_v5 = vpop.f32.mrf.mxu0  ;;  %v19875_v51 = vunpack.c.l.bf16 %v20116_v35  ;;  %v19884_v35 = vunpack.c.h.bf16 %v20118_v62 }
 0x9ae   :  { %20144 = vst [vmem:[%s23876_s5 + $0xb0] sm:$0xff] %v20014_v4   ;;  %15359 = vmatmul.bf16.gmra.mxu1 %v19604_v61  ;;  %v15607_v3 = vadd.f32 %v23676_v30, %v15411_v41  ;;  %v14735_v61 = vadd.f32 %v14651_v15, %v14054_v20  ;;  %v24494_v4 = vld [vmem:[#allocation17_spill] sm:$0xff] }
 0x9af   :  { %v13374_v55 = vadd.f32 %v13292_v57, %v24494_v4  ;;  %v20117_v57 = vld [vmem:[%s23872_s0 + $0xd0] sm:$0xff]   ;;  %v24499_v4 = vld [vmem:[#allocation19_spill] sm:$0xff] }
 0x9b0   :  { %v15799_v8 = vadd.f32 %v19867_v7, %v15607_v3  ;;  %v13299_v3 = vpop.f32.mrf.mxu2  ;;  %v13980_v22 = vpop.f32.mrf.mxu3  ;;  %v19880_v63 = vunpack.c.h.bf16 %v20117_v57 }
 0x9b1   :  { %v14055_v7 = vadd.f32 %v13973_v40, %v13374_v55 }
 0x9b2   :  { %v15863_v13 = vmax.f32 %v15799_v8, 0.0 }
 0x9b3   :  { %v15322_v47 = vpop.f32.mrf.mxu1 }
 0x9b4   :  { %v15412_v59 = vadd.f32 %v15322_v47, %v14731_v12  ;;  %v14659_v41 = vpop.f32.mrf.mxu0  ;;  %v24495_v47 = vld [vmem:[#allocation16_spill] sm:$0xff] }
 0x9b5   :  { %v13375_v44 = vadd.f32 %v13294_v58, %v24495_v47 }
 0x9b6   :  { %v15608_v42 = vadd.f32 %v23676_v30, %v15412_v59 }
 0x9b7   :  { %v14056_v15 = vadd.f32 %v13975_v33, %v13375_v44 }
 0x9b8   :  { %v15800_v48 = vadd.f32 %v19868_v54, %v15608_v42  ;;  %v14736_v42 = vadd.f32 %v14654_v45, %v14055_v7 }
 0x9ba   :  { %v15864_v60 = vmax.f32 %v15800_v48, 0.0 }
 0x9bb   :  { %v15325_v23 = vpop.f32.mrf.mxu1 }
 0x9bc   :  { %v20019_v36 = vpack.c.bf16 %v15864_v60, %v15863_v13  ;;  %v15413_v53 = vadd.f32 %v15325_v23, %v14732_v11  ;;  %v14661_v49 = vpop.f32.mrf.mxu0  ;;  %v13302_v13 = vpop.f32.mrf.mxu2  ;;  %v19879_v23 = vunpack.c.l.bf16 %v20117_v57 }
 0x9be   :  { %20145 = vst [vmem:[%s23876_s5 + $0xb8] sm:$0xff] %v20019_v36   ;;  %v15609_v18 = vadd.f32 %v23676_v30, %v15413_v53  ;;  %v14737_v36 = vadd.f32 %v14656_v5, %v14056_v15  ;;  %v13376_v53 = vadd.f32 %v13297_v9, %v24496_v37 }
 0x9c0   :  { %v15801_v46 = vadd.f32 %v19871_v1, %v15609_v18  ;;  %v13983_v1 = vpop.f32.mrf.mxu3 }
 0x9c2   :  { %v15865_v14 = vmax.f32 %v15801_v46, 0.0 }
 0x9c3   :  { %v15327_v31 = vpop.f32.mrf.mxu1 }
 0x9c4   :  { %v15414_v6 = vadd.f32 %v15327_v31, %v14733_v38  ;;  %v14057_v38 = vadd.f32 %v13978_v25, %v13376_v53  ;;  %v24497_v31 = vld [vmem:[#allocation18_spill] sm:$0xff]  ;;  %v14664_v50 = vpop.f32.mrf.mxu0  ;;  %v13304_v46 = vpop.f32.mrf.mxu2 }
 0x9c5   :  { %v13377_v10 = vadd.f32 %v13299_v3, %v24497_v31  ;;  %v13379_v55 = vadd.f32 %v13304_v46, %v24499_v4  ;;  %v24501_v53 = vld [vmem:[#allocation66_spill] sm:$0xff] }
 0x9c6   :  { %v15610_v52 = vadd.f32 %v23676_v30, %v15414_v6 }
 0x9c7   :  { %v14058_v33 = vadd.f32 %v13980_v22, %v13377_v10  ;;  %v24500_v22 = vld [vmem:[#allocation23_spill] sm:$0xff] }
 0x9c8   :  { %v15802_v0 = vadd.f32 %v19872_v17, %v15610_v52 }
 0x9c9   :  { %v14739_v5 = vadd.f32 %v14661_v49, %v14058_v33  ;;  %v24502_v33 = vld [vmem:[#allocation20_spill] sm:$0xff] }
 0x9ca   :  { %v15866_v26 = vmax.f32 %v15802_v0, 0.0  ;;  %v14738_v0 = vadd.f32 %v14659_v41, %v14057_v38 }
 0x9cb   :  { %v15330_v29 = vpop.f32.mrf.mxu1 }
 0x9cc   :  { %v20024_v56 = vpack.c.bf16 %v15866_v26, %v15865_v14  ;;  %v15415_v21 = vadd.f32 %v15330_v29, %v14734_v34  ;;  %v13985_v14 = vpop.f32.mrf.mxu3  ;;  %v19883_v29 = vunpack.c.l.bf16 %v20118_v62  ;;  %v24498_v34 = vld [vmem:[#allocation21_spill] sm:$0xff]  ;;  %v14666_v20 = vpop.f32.mrf.mxu0 }
 0x9cd   :  { %v13378_v9 = vadd.f32 %v13302_v13, %v24498_v34  ;;  %v14060_v7 = vadd.f32 %v13985_v14, %v13379_v55 }
 0x9ce   :  { %20146 = vst [vmem:[%s23876_s5 + $0xc0] sm:$0xff] %v20024_v56   ;;  %v15611_v2 = vadd.f32 %v23676_v30, %v15415_v21 }
 0x9cf   :  { %v14059_v25 = vadd.f32 %v13983_v1, %v13378_v9  ;;  %v24503_v9 = vld [vmem:[#allocation25_spill] sm:$0xff] }
 0x9d0   :  { %v15803_v28 = vadd.f32 %v19875_v51, %v15611_v2  ;;  %v13307_v2 = vpop.f32.mrf.mxu2 }
 0x9d1   :  { %v14740_v3 = vadd.f32 %v14664_v50, %v14059_v25  ;;  %v13380_v15 = vadd.f32 %v13307_v2, %v24500_v22  ;;  %v20120_v50 = vld [vmem:[%s23872_s0 + $0xe8] sm:$0xff]  }
 0x9d2   :  { %v15867_v59 = vmax.f32 %v15803_v28, 0.0  ;;  %v19891_v46 = vunpack.c.l.bf16 %v20120_v50  ;;  %v19892_v14 = vunpack.c.h.bf16 %v20120_v50 }
 0x9d3   :  { %v15332_v27 = vpop.f32.mrf.mxu1 }
 0x9d4   :  { %v15416_v43 = vadd.f32 %v15332_v27, %v14735_v61  ;;  %v13988_v41 = vpop.f32.mrf.mxu3 }
 0x9d6   :  { %v15612_v39 = vadd.f32 %v23676_v30, %v15416_v43 }
 0x9d8   :  { %v15804_v12 = vadd.f32 %v19876_v24, %v15612_v39  ;;  %v13309_v44 = vpop.f32.mrf.mxu2 }
 0x9da   :  { %v15868_v54 = vmax.f32 %v15804_v12, 0.0  ;;  %v14669_v12 = vpop.f32.mrf.mxu0 }
 0x9db   :  { %v15335_v16 = vpop.f32.mrf.mxu1 }
 0x9dc   :  { %v20029_v8 = vpack.c.bf16 %v15868_v54, %v15867_v59  ;;  %v15417_v48 = vadd.f32 %v15335_v16, %v14736_v42  ;;  %v20119_v59 = vld [vmem:[%s23872_s0 + $0xe0] sm:$0xff]   ;;  %v13990_v49 = vpop.f32.mrf.mxu3 }
 0x9dd   :  { %v19887_v16 = vunpack.c.l.bf16 %v20119_v59  ;;  %v19888_v57 = vunpack.c.h.bf16 %v20119_v59 }
 0x9de   :  { %20147 = vst [vmem:[%s23876_s5 + $0xc8] sm:$0xff] %v20029_v8   ;;  %v15613_v60 = vadd.f32 %v23676_v30, %v15417_v48  ;;  %v14741_v8 = vadd.f32 %v14666_v20, %v14060_v7  ;;  %v24504_v7 = vld [vmem:[#allocation24_spill] sm:$0xff] }
 0x9e0   :  { %v15805_v45 = vadd.f32 %v19879_v23, %v15613_v60  ;;  %v14061_v23 = vadd.f32 %v13988_v41, %v13380_v15  ;;  %v13312_v37 = vpop.f32.mrf.mxu2  ;;  %v24505_v15 = vld [vmem:[#allocation22_spill] sm:$0xff] }
 0x9e2   :  { %v15869_v6 = vmax.f32 %v15805_v45, 0.0  ;;  %v14742_v38 = vadd.f32 %v14669_v12, %v14061_v23 }
 0x9e3   :  { %v15337_v11 = vpop.f32.mrf.mxu1 }
 0x9e4   :  { %v15418_v40 = vadd.f32 %v15337_v11, %v14737_v36  ;;  %v14671_v36 = vpop.f32.mrf.mxu0  ;;  %v13993_v10 = vpop.f32.mrf.mxu3 }
 0x9e6   :  { %v15614_v18 = vadd.f32 %v23676_v30, %v15418_v40  ;;  %v13381_v40 = vadd.f32 %v13309_v44, %v24501_v53 }
 0x9e8   :  { %v15806_v58 = vadd.f32 %v19880_v63, %v15614_v18 }
 0x9ea   :  { %v15870_v17 = vmax.f32 %v15806_v58, 0.0  ;;  %v14062_v58 = vadd.f32 %v13990_v49, %v13381_v40  ;;  %v20122_v40 = vld [vmem:[%s23872_s0 + $0xf8] sm:$0xff]  }
 0x9eb   :  { %v15340_v52 = vpop.f32.mrf.mxu1 }
 0x9ec   :  { %v20034_v19 = vpack.c.bf16 %v15870_v17, %v15869_v6  ;;  %v15419_v32 = vadd.f32 %v15340_v52, %v14738_v0  ;;  %v14674_v6 = vpop.f32.mrf.mxu0  ;;  %v14743_v52 = vadd.f32 %v14671_v36, %v14062_v58  ;;  %v13995_v34 = vpop.f32.mrf.mxu3  ;;  %v19900_v58 = vunpack.c.h.bf16 %v20122_v40 }
 0x9ee   :  { %20148 = vst [vmem:[%s23876_s5 + $0xd0] sm:$0xff] %v20034_v19   ;;  %v15615_v26 = vadd.f32 %v23676_v30, %v15419_v32  ;;  %v13314_v19 = vpop.f32.mrf.mxu2  ;;  %v13382_v32 = vadd.f32 %v13312_v37, %v24502_v33 }
 0x9ef   :  { %v13383_v20 = vadd.f32 %v13314_v19, %v24503_v9 }
 0x9f0   :  { %v15807_v51 = vadd.f32 %v19883_v29, %v15615_v26 }
 0x9f1   :  { %v14064_v4 = vadd.f32 %v13995_v34, %v13383_v20 }
 0x9f2   :  { %v15871_v43 = vmax.f32 %v15807_v51, 0.0 }
 0x9f3   :  { %v15342_v56 = vpop.f32.mrf.mxu1 }
 0x9f4   :  { %v15420_v21 = vadd.f32 %v15342_v56, %v14739_v5  ;;  %v14063_v5 = vadd.f32 %v13993_v10, %v13382_v32  ;;  %v14676_v25 = vpop.f32.mrf.mxu0 }
 0x9f6   :  { %v15616_v61 = vadd.f32 %v23676_v30, %v15420_v21 }
 0x9f8   :  { %v15808_v27 = vadd.f32 %v19884_v35, %v15616_v61  ;;  %v14744_v61 = vadd.f32 %v14674_v6, %v14063_v5 }
 0x9fa   :  { %v15872_v24 = vmax.f32 %v15808_v27, 0.0  ;;  %v13317_v27 = vpop.f32.mrf.mxu2 }
 0x9fb   :  { %v15345_v28 = vpop.f32.mrf.mxu1  ;;  %v13384_v12 = vadd.f32 %v13317_v27, %v24504_v7 }
 0x9fc   :  { %v20039_v39 = vpack.c.bf16 %v15872_v24, %v15871_v43  ;;  %v15421_v47 = vadd.f32 %v15345_v28, %v14740_v3  ;;  %v20121_v43 = vld [vmem:[%s23872_s0 + $0xf0] sm:$0xff]   ;;  %v13998_v24 = vpop.f32.mrf.mxu3  ;;  %v14679_v59 = vpop.f32.mrf.mxu0 }
 0x9fd   :  { %v19895_v28 = vunpack.c.l.bf16 %v20121_v43  ;;  %v19896_v44 = vunpack.c.h.bf16 %v20121_v43 }
 0x9fe   :  { %20149 = vst [vmem:[%s23876_s5 + $0xd8] sm:$0xff] %v20039_v39   ;;  %v15617_v54 = vadd.f32 %v23676_v30, %v15421_v47  ;;  %v14745_v39 = vadd.f32 %v14676_v25, %v14064_v4 }
 0xa00   :  { %v15809_v13 = vadd.f32 %v19887_v16, %v15617_v54 }
 0xa02   :  { %v15873_v63 = vmax.f32 %v15809_v13, 0.0 }
 0xa03   :  { %v15347_v42 = vpop.f32.mrf.mxu1 }
 0xa04   :  { %v15422_v48 = vadd.f32 %v15347_v42, %v14741_v8  ;;  %v13319_v8 = vpop.f32.mrf.mxu2  ;;  %v14065_v42 = vadd.f32 %v13998_v24, %v13384_v12  ;;  %v14000_v13 = vpop.f32.mrf.mxu3 }
 0xa05   :  { %v14681_v53 = vpop.f32.mrf.mxu0 }
 0xa06   :  { %v15618_v60 = vadd.f32 %v23676_v30, %v15422_v48  ;;  %v13385_v48 = vadd.f32 %v13319_v8, %v24505_v15  ;;  %v14746_v23 = vadd.f32 %v14679_v59, %v14065_v42 }
 0xa08   :  { %v15810_v11 = vadd.f32 %v19888_v57, %v15618_v60 }
 0xa0a   :  { %v15874_v45 = vmax.f32 %v15810_v11, 0.0  ;;  %v14066_v11 = vadd.f32 %v14000_v13, %v13385_v48 }
 0xa0b   :  { %v15350_v18 = vpop.f32.mrf.mxu1 }
 0xa0c   :  { %v20044_v1 = vpack.c.bf16 %v15874_v45, %v15873_v63  ;;  %v15423_v31 = vadd.f32 %v15350_v18, %v14742_v38  ;;  %v14747_v63 = vadd.f32 %v14681_v53, %v14066_v11  ;;  %v19899_v18 = vunpack.c.l.bf16 %v20122_v40 }
 0xa0e   :  { %20150 = vst [vmem:[%s23876_s5 + $0xe0] sm:$0xff] %v20044_v1   ;;  %v15619_v17 = vadd.f32 %v23676_v30, %v15423_v31 }
 0xa10   :  { %v15811_v26 = vadd.f32 %v19891_v46, %v15619_v17 }
 0xa12   :  { %v15875_v21 = vmax.f32 %v15811_v26, 0.0 }
 0xa13   :  { %v15352_v0 = vpop.f32.mrf.mxu1 }
 0xa14   :  { %v15424_v62 = vadd.f32 %v15352_v0, %v14743_v52 }
 0xa16   :  { %v15620_v29 = vadd.f32 %v23676_v30, %v15424_v62 }
 0xa18   :  { %v15812_v56 = vadd.f32 %v19892_v14, %v15620_v29 }
 0xa1a   :  { %v15876_v35 = vmax.f32 %v15812_v56, 0.0 }
 0xa1b   :  { %v15355_v2 = vpop.f32.mrf.mxu1 }
 0xa1c   :  { %v20049_v51 = vpack.c.bf16 %v15876_v35, %v15875_v21  ;;  %v15425_v55 = vadd.f32 %v15355_v2, %v14744_v61 }
 0xa1e   :  { %20151 = vst [vmem:[%s23876_s5 + $0xe8] sm:$0xff] %v20049_v51   ;;  %v15621_v41 = vadd.f32 %v23676_v30, %v15425_v55 }
 0xa20   :  { %v15813_v54 = vadd.f32 %v19895_v28, %v15621_v41 }
 0xa22   :  { %v15877_v57 = vmax.f32 %v15813_v54, 0.0 }
 0xa23   :  { %v15357_v3 = vpop.f32.mrf.mxu1 }
 0xa24   :  { %v15426_v47 = vadd.f32 %v15357_v3, %v14745_v39 }
 0xa26   :  { %v15622_v16 = vadd.f32 %v23676_v30, %v15426_v47 }
 0xa28   :  { %v15814_v22 = vadd.f32 %v19896_v44, %v15622_v16 }
 0xa2a   :  { %v15878_v49 = vmax.f32 %v15814_v22, 0.0 }
 0xa2b   :  { %v15360_v60 = vpop.f32.mrf.mxu1 }
 0xa2c   :  { %v20054_v36 = vpack.c.bf16 %v15878_v49, %v15877_v57  ;;  %v15427_v37 = vadd.f32 %v15360_v60, %v14746_v23 }
 0xa2e   :  { %20152 = vst [vmem:[%s23876_s5 + $0xf0] sm:$0xff] %v20054_v36   ;;  %v15623_v45 = vadd.f32 %v23676_v30, %v15427_v37 }
 0xa30   :  { %v15815_v31 = vadd.f32 %v19899_v18, %v15623_v45 }
 0xa32   :  { %v15879_v6 = vmax.f32 %v15815_v31, 0.0 }
 0xa33   :  { %v15362_v1 = vpop.f32.mrf.mxu1 }
 0xa34   :  { %v15428_v38 = vadd.f32 %v15362_v1, %v14747_v63 }
 0xa36   :  { %v15624_v10 = vadd.f32 %v23676_v30, %v15428_v38 }
 0xa38   :  { %v15816_v50 = vadd.f32 %v19900_v58, %v15624_v10 }
 0xa3a   :  { %v15880_v17 = vmax.f32 %v15816_v50, 0.0 }
 0xa3c   :  { %v20059_v46 = vpack.c.bf16 %v15880_v17, %v15879_v6 }
 0xa3e   :  { %20153 = vst [vmem:[%s23876_s5 + $0xf8] sm:$0xff] %v20059_v46  }

</bundles_post_ra>
